<compile_context>
chip_gen: v5e
topology: v5e:2x2
jax: 0.10.0
libtpu: 0.0.40
codegen_flags: <defaults>
</compile_context>

<pallas_src>
import functools

import jax
import jax.numpy as jnp
from jax.experimental import pallas as pl
from jax.experimental.pallas import tpu as pltpu


CPAD = 128  # all intermediate feature maps carry 128 (zero-padded) channels


# ---------------------------------------------------------------------------
# Fused conv + bias + norm + ReLU block
# ---------------------------------------------------------------------------
def _conv_block_kernel(xpar_ref, w_ref, b_ref, g_ref, bt_ref, o_ref, acc_ref,
                       *, ho, wo):
    """3x3 stride-2 conv + bias + per-(sample,channel) norm + ReLU, one sample.

    xpar_ref: (4, ho+1, wo+1, cin)  parity-split zero-padded input, bf16
    w_ref:    (9, cin, 128)         conv taps (out-channels zero-padded), bf16
    b_ref, g_ref, bt_ref: (1, 128)  bias / gamma / beta, f32
    o_ref:    (ho*wo, 128)          output, bf16 (lane-dense)
    acc_ref:  (ho*wo, 128)          f32 VMEM accumulator
    """
    bias = b_ref[...]                                     # (1, 128) f32
    # conv as 9 shifted unit-stride taps; accumulate per output row in f32.
    for oi in range(ho):
        row_acc = None
        for ky in range(3):
            py, dy = ky % 2, ky // 2
            for kx in range(3):
                px, dx = kx % 2, kx // 2
                lhs = xpar_ref[py * 2 + px, oi + dy, dx:dx + wo, :]   # (wo, cin)
                part = jnp.dot(lhs, w_ref[ky * 3 + kx],
                               preferred_element_type=jnp.float32)
                row_acc = part if row_acc is None else row_acc + part
        acc_ref[oi * wo:(oi + 1) * wo, :] = row_acc + bias

    # epilogue: single-pass per-channel stats over the ho*wo points, affine, ReLU.
    a = acc_ref[...]
    inv_n = 1.0 / float(ho * wo)
    mean = jnp.sum(a, axis=0, keepdims=True) * inv_n
    var = jnp.maximum(jnp.sum(a * a, axis=0, keepdims=True) * inv_n - mean * mean,
                      0.0)
    y = (a - mean) * jax.lax.rsqrt(var + 1e-5) * g_ref[...] + bt_ref[...]
    o_ref[...] = jnp.maximum(y, 0.0).astype(o_ref.dtype)


def _pad_and_parity_split(x):
    """x: [B, H, W, C] (H, W even) -> [B, 4, H//2+1, W//2+1, C].

    Zero-pads by 1 on each spatial side and splits into the 4 (row, col) parity
    sub-images so that the stride-2 3x3 conv only needs unit-stride slices.
    """
    B, H, W, C = x.shape
    assert H % 2 == 0 and W % 2 == 0, (H, W)
    xp = jnp.pad(x, ((0, 0), (1, 1), (1, 1), (0, 0)))
    hh, wh = (H + 2) // 2, (W + 2) // 2
    xp = xp.reshape(B, hh, 2, wh, 2, C)
    xp = jnp.transpose(xp, (0, 2, 4, 1, 3, 5))            # [B, py, px, hh, wh, C]
    return xp.reshape(B, 4, hh, wh, C)


def conv_norm_act(x_nhwc, w9, b, g, bt):
    """One fused D4 block.  x_nhwc: [B, H, W, Cin] -> [B, (H//2)*(W//2), 128]."""
    B, H, W, cin = x_nhwc.shape
    ho, wo = H // 2, W // 2
    hh, wh = ho + 1, wo + 1
    xpar = _pad_and_parity_split(x_nhwc).astype(jnp.bfloat16)
    kernel = functools.partial(_conv_block_kernel, ho=ho, wo=wo)
    return pl.pallas_call(
        kernel,
        out_shape=jax.ShapeDtypeStruct((B, ho * wo, CPAD), jnp.bfloat16),
        grid=(B,),
        in_specs=[
            pl.BlockSpec((None, 4, hh, wh, cin), lambda i: (i, 0, 0, 0, 0)),
            pl.BlockSpec((9, cin, CPAD), lambda i: (0, 0, 0)),
            pl.BlockSpec((1, CPAD), lambda i: (0, 0)),
            pl.BlockSpec((1, CPAD), lambda i: (0, 0)),
            pl.BlockSpec((1, CPAD), lambda i: (0, 0)),
        ],
        out_specs=pl.BlockSpec((None, ho * wo, CPAD), lambda i: (i, 0, 0)),
        scratch_shapes=[pltpu.VMEM((ho * wo, CPAD), jnp.float32)],
        compiler_params=pltpu.CompilerParams(dimension_semantics=("parallel",)),
    )(xpar, w9, b, g, bt)


# ---------------------------------------------------------------------------
# Fused MLP head (flatten already folded into fc1 weight ordering)
# ---------------------------------------------------------------------------
def _head_kernel_1(x_ref, w1_ref, b1_ref, w2_ref, b2_ref, w3t_ref, b3_ref, o_ref):
    h = jnp.dot(x_ref[...], w1_ref[...],
                preferred_element_type=jnp.float32) + b1_ref[...]
    h = jnp.maximum(h, 0.0)
    h = jnp.dot(h.astype(jnp.bfloat16), w2_ref[...],
                preferred_element_type=jnp.float32) + b2_ref[...]
    h = jnp.maximum(h, 0.0)
    # final Linear(128, 1): VPU multiply + lane reduce (no N=1 MXU matmul)
    out = jnp.sum(h * w3t_ref[...], axis=1, keepdims=True) + b3_ref[...]
    o_ref[...] = out.astype(o_ref.dtype)


def _head_kernel_n(x_ref, w1_ref, b1_ref, w2_ref, b2_ref, w3t_ref, b3_ref, o_ref):
    h = jnp.dot(x_ref[...], w1_ref[...],
                preferred_element_type=jnp.float32) + b1_ref[...]
    h = jnp.maximum(h, 0.0)
    h = jnp.dot(h.astype(jnp.bfloat16), w2_ref[...],
                preferred_element_type=jnp.float32) + b2_ref[...]
    h = jnp.maximum(h, 0.0)
    out = jax.lax.dot_general(h, w3t_ref[...], (((1,), (1,)), ((), ())),
                              preferred_element_type=jnp.float32) + b3_ref[...]
    o_ref[...] = out.astype(o_ref.dtype)


def mlp_head(x, w1, b1, w2, b2, w3t, b3):
    B = x.shape[0]
    out_dims = w3t.shape[0]
    kernel = _head_kernel_1 if out_dims == 1 else _head_kernel_n
    return pl.pallas_call(
        kernel,
        out_shape=jax.ShapeDtypeStruct((B, out_dims), jnp.float32),
    )(x, w1, b1, w2, b2, w3t, b3)


def adaptive_avg_pool_nhwc(x, out_hw=(4, 4)):
    # only used when the post-conv spatial grid is larger than 4x4
    B, H, W, C = x.shape
    oh, ow = out_hw
    assert H % oh == 0 and W % ow == 0
    x = x.astype(jnp.float32).reshape(B, oh, H // oh, ow, W // ow, C)
    return x.mean(axis=(2, 4))


# ---------------------------------------------------------------------------
# Parameters (deterministic; mirrors the shapes implied by D4.__init__)
# ---------------------------------------------------------------------------
def kaiming_uniform(key, fan_in, shape):
    bound = (6.0 / fan_in) ** 0.5
    return jax.random.uniform(key, shape, jnp.float32, -bound, bound)


def init_d4_params(key, in_channels, out_dims=1, C=32):
    ks = jax.random.split(key, 5)
    p = {}
    p["conv1_w"] = kaiming_uniform(ks[0], 9 * in_channels, (9, in_channels, C))
    p["conv1_b"] = jnp.zeros((C,), jnp.float32)
    p["norm1_g"] = jnp.ones((C,), jnp.float32)
    p["norm1_b"] = jnp.zeros((C,), jnp.float32)
    p["conv2_w"] = kaiming_uniform(ks[1], 9 * C, (9, C, 2 * C))
    p["conv2_b"] = jnp.zeros((2 * C,), jnp.float32)
    p["norm2_g"] = jnp.ones((2 * C,), jnp.float32)
    p["norm2_b"] = jnp.zeros((2 * C,), jnp.float32)
    d0, d1, d2 = C * 16 * 2, C * 4, 128
    p["fc1_w"] = kaiming_uniform(ks[2], d0, (d0, d1))
    p["fc1_b"] = jnp.zeros((d1,), jnp.float32)
    p["fc2_w"] = kaiming_uniform(ks[3], d1, (d1, d2))
    p["fc2_b"] = jnp.zeros((d2,), jnp.float32)
    p["fc3_w"] = kaiming_uniform(ks[4], d2, (d2, out_dims))
    p["fc3_b"] = jnp.zeros((out_dims,), jnp.float32)
    return p


def prepare_d4_params(p, in_channels, C=32):
    """One-time repack: pad channels to 128, cast MXU operands to bf16, and
    fold the PyTorch NCHW-major flatten into the fc1 weight row order."""
    prep = {}

    def pad_vec(v):
        return jnp.zeros((1, CPAD), jnp.float32).at[0, :v.shape[0]].set(v)

    prep["w1"] = (jnp.zeros((9, in_channels, CPAD), jnp.float32)
                  .at[:, :, :C].set(p["conv1_w"])).astype(jnp.bfloat16)
    prep["b1"] = pad_vec(p["conv1_b"])
    prep["g1"] = pad_vec(p["norm1_g"])
    prep["bt1"] = pad_vec(p["norm1_b"])

    prep["w2"] = (jnp.zeros((9, CPAD, CPAD), jnp.float32)
                  .at[:, :C, :2 * C].set(p["conv2_w"])).astype(jnp.bfloat16)
    prep["b2"] = pad_vec(p["conv2_b"])
    prep["g2"] = pad_vec(p["norm2_g"])
    prep["bt2"] = pad_vec(p["norm2_b"])

    d1 = p["fc1_w"].shape[1]
    fc1 = p["fc1_w"].reshape(2 * C, 4, 4, d1).transpose(1, 2, 0, 3)   # (h,w,c,d1)
    fc1 = jnp.zeros((4, 4, CPAD, d1), jnp.float32).at[:, :, :2 * C, :].set(fc1)
    prep["fc1_w"] = fc1.reshape(4 * 4 * CPAD, d1).astype(jnp.bfloat16)
    prep["fc1_b"] = p["fc1_b"].reshape(1, -1)
    prep["fc2_w"] = p["fc2_w"].astype(jnp.bfloat16)
    prep["fc2_b"] = p["fc2_b"].reshape(1, -1)
    prep["fc3_wt"] = p["fc3_w"].T                                    # (out_dims, 128)
    prep["fc3_b"] = p["fc3_b"].reshape(1, -1)
    return prep


# ---------------------------------------------------------------------------
# D4 forward
# ---------------------------------------------------------------------------
@jax.jit
def d4_forward(x_nchw, prep):
    B, _, H, W = x_nchw.shape
    x = jnp.transpose(x_nchw, (0, 2, 3, 1)).astype(jnp.bfloat16)      # NHWC

    # block 1: fused conv(stride 2) + bias + norm + ReLU
    y = conv_norm_act(x, prep["w1"], prep["b1"], prep["g1"], prep["bt1"])
    H1, W1 = H // 2, W // 2
    y = y.reshape(B, H1, W1, CPAD)

    # block 2
    y = conv_norm_act(y, prep["w2"], prep["b2"], prep["g2"], prep["bt2"])
    H2, W2 = H1 // 2, W1 // 2

    # AdaptiveAvgPoolSequence((4,4), out_layers): pool is the identity for a
    # 16x16 input; the NCHW-major flatten is folded into fc1's weight layout.
    if (H2, W2) != (4, 4):
        y = adaptive_avg_pool_nhwc(y.reshape(B, H2, W2, CPAD), (4, 4))
        y = y.astype(jnp.bfloat16)
    feat = y.reshape(B, 4 * 4 * CPAD)

    return mlp_head(feat, prep["fc1_w"], prep["fc1_b"],
                    prep["fc2_w"], prep["fc2_b"],
                    prep["fc3_wt"], prep["fc3_b"])


# ---------------------------------------------------------------------------
if __name__ == "__main__":
    B, in_channels, H, W = 2, 4, 16, 16
    C, out_dims = 32, 1

    key = jax.random.PRNGKey(0)
    kx, kp = jax.random.split(key)
    x = jax.random.normal(kx, (B, in_channels, H, W), jnp.float32)
    params = init_d4_params(kp, in_channels, out_dims=out_dims, C=C)
    prep = prepare_d4_params(params, in_channels, C=C)

    out = d4_forward(x, prep)
    out = jax.block_until_ready(out)

    assert out.shape == (B, out_dims), out.shape
    assert bool(jnp.all(jnp.isfinite(out)))
    print("KERNEL_OK")
</pallas_src>

<mosaic_0001>
module attributes {stable_mosaic.version = 11 : i64} {
  func.func @_conv_block_kernel(%arg0: i32, %arg1: memref<1x4x9x9x4xbf16, #tpu.memory_space<vmem>>, %arg2: memref<9x4x128xbf16, #tpu.memory_space<vmem>>, %arg3: memref<1x128xf32, #tpu.memory_space<vmem>>, %arg4: memref<1x128xf32, #tpu.memory_space<vmem>>, %arg5: memref<1x128xf32, #tpu.memory_space<vmem>>, %arg6: memref<1x64x128xbf16, #tpu.memory_space<vmem>>, %arg7: memref<64x128xf32, #tpu.memory_space<vmem>>) attributes {dimension_semantics = [#tpu.dimension_semantics<parallel>], iteration_bounds = array<i64: 2>, scalar_prefetch = 0 : i64, scratch_operands = 1 : i64, tpu.core_type = #tpu.core_type<tc>, window_params = [{transform_indices = @transform_0, window_bounds = array<i64: 1, 4, 9, 9, 4>}, {pipeline_mode = #tpu.pipeline_mode<synchronous>, transform_indices = @transform_1, window_bounds = array<i64: 9, 4, 128>}, {pipeline_mode = #tpu.pipeline_mode<synchronous>, transform_indices = @transform_2, window_bounds = array<i64: 1, 128>}, {pipeline_mode = #tpu.pipeline_mode<synchronous>, transform_indices = @transform_3, window_bounds = array<i64: 1, 128>}, {pipeline_mode = #tpu.pipeline_mode<synchronous>, transform_indices = @transform_4, window_bounds = array<i64: 1, 128>}, {transform_indices = @transform_5, window_bounds = array<i64: 1, 64, 128>}]} {
    %c0 = arith.constant 0 : index
    %c0_0 = arith.constant 0 : index
    %0 = vector.load %arg3[%c0, %c0_0] : memref<1x128xf32, #tpu.memory_space<vmem>>, vector<1x128xf32>
    %c0_1 = arith.constant 0 : index
    %c0_2 = arith.constant 0 : index
    %c0_3 = arith.constant 0 : index
    %c0_4 = arith.constant 0 : index
    %c0_5 = arith.constant 0 : index
    %1 = vector.load %arg1[%c0_1, %c0_2, %c0_3, %c0_4, %c0_5] : memref<1x4x9x9x4xbf16, #tpu.memory_space<vmem>>, vector<1x1x1x8x4xbf16>
    %2 = vector.shape_cast %1 : vector<1x1x1x8x4xbf16> to vector<8x4xbf16>
    %c0_6 = arith.constant 0 : index
    %c0_7 = arith.constant 0 : index
    %c0_8 = arith.constant 0 : index
    %3 = vector.load %arg2[%c0_6, %c0_7, %c0_8] : memref<9x4x128xbf16, #tpu.memory_space<vmem>>, vector<1x4x128xbf16>
    %4 = vector.shape_cast %3 : vector<1x4x128xbf16> to vector<4x128xbf16>
    %cst = arith.constant dense<0.000000e+00> : vector<8x128xf32>
    %5 = tpu.matmul %2, %4, %cst {dimension_numbers = #tpu.dot_dimension_numbers<[1], [0], [0], [1], [0, 0, 1, 1], [], []>} : vector<8x4xbf16>, vector<4x128xbf16>, vector<8x128xf32> -> vector<8x128xf32>
    %c0_9 = arith.constant 0 : index
    %c1 = arith.constant 1 : index
    %c0_10 = arith.constant 0 : index
    %c0_11 = arith.constant 0 : index
    %c0_12 = arith.constant 0 : index
    %6 = vector.load %arg1[%c0_9, %c1, %c0_10, %c0_11, %c0_12] : memref<1x4x9x9x4xbf16, #tpu.memory_space<vmem>>, vector<1x1x1x8x4xbf16>
    %7 = vector.shape_cast %6 : vector<1x1x1x8x4xbf16> to vector<8x4xbf16>
    %c1_13 = arith.constant 1 : index
    %c0_14 = arith.constant 0 : index
    %c0_15 = arith.constant 0 : index
    %8 = vector.load %arg2[%c1_13, %c0_14, %c0_15] : memref<9x4x128xbf16, #tpu.memory_space<vmem>>, vector<1x4x128xbf16>
    %9 = vector.shape_cast %8 : vector<1x4x128xbf16> to vector<4x128xbf16>
    %cst_16 = arith.constant dense<0.000000e+00> : vector<8x128xf32>
    %10 = tpu.matmul %7, %9, %cst_16 {dimension_numbers = #tpu.dot_dimension_numbers<[1], [0], [0], [1], [0, 0, 1, 1], [], []>} : vector<8x4xbf16>, vector<4x128xbf16>, vector<8x128xf32> -> vector<8x128xf32>
    %11 = arith.addf %5, %10 : vector<8x128xf32>
    %c0_17 = arith.constant 0 : index
    %c0_18 = arith.constant 0 : index
    %c0_19 = arith.constant 0 : index
    %c1_20 = arith.constant 1 : index
    %c0_21 = arith.constant 0 : index
    %12 = vector.load %arg1[%c0_17, %c0_18, %c0_19, %c1_20, %c0_21] : memref<1x4x9x9x4xbf16, #tpu.memory_space<vmem>>, vector<1x1x1x8x4xbf16>
    %13 = vector.shape_cast %12 : vector<1x1x1x8x4xbf16> to vector<8x4xbf16>
    %c2 = arith.constant 2 : index
    %c0_22 = arith.constant 0 : index
    %c0_23 = arith.constant 0 : index
    %14 = vector.load %arg2[%c2, %c0_22, %c0_23] : memref<9x4x128xbf16, #tpu.memory_space<vmem>>, vector<1x4x128xbf16>
    %15 = vector.shape_cast %14 : vector<1x4x128xbf16> to vector<4x128xbf16>
    %cst_24 = arith.constant dense<0.000000e+00> : vector<8x128xf32>
    %16 = tpu.matmul %13, %15, %cst_24 {dimension_numbers = #tpu.dot_dimension_numbers<[1], [0], [0], [1], [0, 0, 1, 1], [], []>} : vector<8x4xbf16>, vector<4x128xbf16>, vector<8x128xf32> -> vector<8x128xf32>
    %17 = arith.addf %11, %16 : vector<8x128xf32>
    %c0_25 = arith.constant 0 : index
    %c2_26 = arith.constant 2 : index
    %c0_27 = arith.constant 0 : index
    %c0_28 = arith.constant 0 : index
    %c0_29 = arith.constant 0 : index
    %18 = vector.load %arg1[%c0_25, %c2_26, %c0_27, %c0_28, %c0_29] : memref<1x4x9x9x4xbf16, #tpu.memory_space<vmem>>, vector<1x1x1x8x4xbf16>
    %19 = vector.shape_cast %18 : vector<1x1x1x8x4xbf16> to vector<8x4xbf16>
    %c3 = arith.constant 3 : index
    %c0_30 = arith.constant 0 : index
    %c0_31 = arith.constant 0 : index
    %20 = vector.load %arg2[%c3, %c0_30, %c0_31] : memref<9x4x128xbf16, #tpu.memory_space<vmem>>, vector<1x4x128xbf16>
    %21 = vector.shape_cast %20 : vector<1x4x128xbf16> to vector<4x128xbf16>
    %cst_32 = arith.constant dense<0.000000e+00> : vector<8x128xf32>
    %22 = tpu.matmul %19, %21, %cst_32 {dimension_numbers = #tpu.dot_dimension_numbers<[1], [0], [0], [1], [0, 0, 1, 1], [], []>} : vector<8x4xbf16>, vector<4x128xbf16>, vector<8x128xf32> -> vector<8x128xf32>
    %23 = arith.addf %17, %22 : vector<8x128xf32>
    %c0_33 = arith.constant 0 : index
    %c3_34 = arith.constant 3 : index
    %c0_35 = arith.constant 0 : index
    %c0_36 = arith.constant 0 : index
    %c0_37 = arith.constant 0 : index
    %24 = vector.load %arg1[%c0_33, %c3_34, %c0_35, %c0_36, %c0_37] : memref<1x4x9x9x4xbf16, #tpu.memory_space<vmem>>, vector<1x1x1x8x4xbf16>
    %25 = vector.shape_cast %24 : vector<1x1x1x8x4xbf16> to vector<8x4xbf16>
    %c4 = arith.constant 4 : index
    %c0_38 = arith.constant 0 : index
    %c0_39 = arith.constant 0 : index
    %26 = vector.load %arg2[%c4, %c0_38, %c0_39] : memref<9x4x128xbf16, #tpu.memory_space<vmem>>, vector<1x4x128xbf16>
    %27 = vector.shape_cast %26 : vector<1x4x128xbf16> to vector<4x128xbf16>
    %cst_40 = arith.constant dense<0.000000e+00> : vector<8x128xf32>
    %28 = tpu.matmul %25, %27, %cst_40 {dimension_numbers = #tpu.dot_dimension_numbers<[1], [0], [0], [1], [0, 0, 1, 1], [], []>} : vector<8x4xbf16>, vector<4x128xbf16>, vector<8x128xf32> -> vector<8x128xf32>
    %29 = arith.addf %23, %28 : vector<8x128xf32>
    %c0_41 = arith.constant 0 : index
    %c2_42 = arith.constant 2 : index
    %c0_43 = arith.constant 0 : index
    %c1_44 = arith.constant 1 : index
    %c0_45 = arith.constant 0 : index
    %30 = vector.load %arg1[%c0_41, %c2_42, %c0_43, %c1_44, %c0_45] : memref<1x4x9x9x4xbf16, #tpu.memory_space<vmem>>, vector<1x1x1x8x4xbf16>
    %31 = vector.shape_cast %30 : vector<1x1x1x8x4xbf16> to vector<8x4xbf16>
    %c5 = arith.constant 5 : index
    %c0_46 = arith.constant 0 : index
    %c0_47 = arith.constant 0 : index
    %32 = vector.load %arg2[%c5, %c0_46, %c0_47] : memref<9x4x128xbf16, #tpu.memory_space<vmem>>, vector<1x4x128xbf16>
    %33 = vector.shape_cast %32 : vector<1x4x128xbf16> to vector<4x128xbf16>
    %cst_48 = arith.constant dense<0.000000e+00> : vector<8x128xf32>
    %34 = tpu.matmul %31, %33, %cst_48 {dimension_numbers = #tpu.dot_dimension_numbers<[1], [0], [0], [1], [0, 0, 1, 1], [], []>} : vector<8x4xbf16>, vector<4x128xbf16>, vector<8x128xf32> -> vector<8x128xf32>
    %35 = arith.addf %29, %34 : vector<8x128xf32>
    %c0_49 = arith.constant 0 : index
    %c0_50 = arith.constant 0 : index
    %c1_51 = arith.constant 1 : index
    %c0_52 = arith.constant 0 : index
    %c0_53 = arith.constant 0 : index
    %36 = vector.load %arg1[%c0_49, %c0_50, %c1_51, %c0_52, %c0_53] : memref<1x4x9x9x4xbf16, #tpu.memory_space<vmem>>, vector<1x1x1x8x4xbf16>
    %37 = vector.shape_cast %36 : vector<1x1x1x8x4xbf16> to vector<8x4xbf16>
    %c6 = arith.constant 6 : index
    %c0_54 = arith.constant 0 : index
    %c0_55 = arith.constant 0 : index
    %38 = vector.load %arg2[%c6, %c0_54, %c0_55] : memref<9x4x128xbf16, #tpu.memory_space<vmem>>, vector<1x4x128xbf16>
    %39 = vector.shape_cast %38 : vector<1x4x128xbf16> to vector<4x128xbf16>
    %cst_56 = arith.constant dense<0.000000e+00> : vector<8x128xf32>
    %40 = tpu.matmul %37, %39, %cst_56 {dimension_numbers = #tpu.dot_dimension_numbers<[1], [0], [0], [1], [0, 0, 1, 1], [], []>} : vector<8x4xbf16>, vector<4x128xbf16>, vector<8x128xf32> -> vector<8x128xf32>
    %41 = arith.addf %35, %40 : vector<8x128xf32>
    %c0_57 = arith.constant 0 : index
    %c1_58 = arith.constant 1 : index
    %c1_59 = arith.constant 1 : index
    %c0_60 = arith.constant 0 : index
    %c0_61 = arith.constant 0 : index
    %42 = vector.load %arg1[%c0_57, %c1_58, %c1_59, %c0_60, %c0_61] : memref<1x4x9x9x4xbf16, #tpu.memory_space<vmem>>, vector<1x1x1x8x4xbf16>
    %43 = vector.shape_cast %42 : vector<1x1x1x8x4xbf16> to vector<8x4xbf16>
    %c7 = arith.constant 7 : index
    %c0_62 = arith.constant 0 : index
    %c0_63 = arith.constant 0 : index
    %44 = vector.load %arg2[%c7, %c0_62, %c0_63] : memref<9x4x128xbf16, #tpu.memory_space<vmem>>, vector<1x4x128xbf16>
    %45 = vector.shape_cast %44 : vector<1x4x128xbf16> to vector<4x128xbf16>
    %cst_64 = arith.constant dense<0.000000e+00> : vector<8x128xf32>
    %46 = tpu.matmul %43, %45, %cst_64 {dimension_numbers = #tpu.dot_dimension_numbers<[1], [0], [0], [1], [0, 0, 1, 1], [], []>} : vector<8x4xbf16>, vector<4x128xbf16>, vector<8x128xf32> -> vector<8x128xf32>
    %47 = arith.addf %41, %46 : vector<8x128xf32>
    %c0_65 = arith.constant 0 : index
    %c0_66 = arith.constant 0 : index
    %c1_67 = arith.constant 1 : index
    %c1_68 = arith.constant 1 : index
    %c0_69 = arith.constant 0 : index
    %48 = vector.load %arg1[%c0_65, %c0_66, %c1_67, %c1_68, %c0_69] : memref<1x4x9x9x4xbf16, #tpu.memory_space<vmem>>, vector<1x1x1x8x4xbf16>
    %49 = vector.shape_cast %48 : vector<1x1x1x8x4xbf16> to vector<8x4xbf16>
    %c8 = arith.constant 8 : index
    %c0_70 = arith.constant 0 : index
    %c0_71 = arith.constant 0 : index
    %50 = vector.load %arg2[%c8, %c0_70, %c0_71] : memref<9x4x128xbf16, #tpu.memory_space<vmem>>, vector<1x4x128xbf16>
    %51 = vector.shape_cast %50 : vector<1x4x128xbf16> to vector<4x128xbf16>
    %cst_72 = arith.constant dense<0.000000e+00> : vector<8x128xf32>
    %52 = tpu.matmul %49, %51, %cst_72 {dimension_numbers = #tpu.dot_dimension_numbers<[1], [0], [0], [1], [0, 0, 1, 1], [], []>} : vector<8x4xbf16>, vector<4x128xbf16>, vector<8x128xf32> -> vector<8x128xf32>
    %53 = arith.addf %47, %52 : vector<8x128xf32>
    %54 = vector.broadcast %0 : vector<1x128xf32> to vector<8x128xf32>
    %55 = arith.addf %53, %54 : vector<8x128xf32>
    %c0_73 = arith.constant 0 : index
    %c0_74 = arith.constant 0 : index
    %56 = vector.load %arg7[%c0_73, %c0_74] : memref<64x128xf32, #tpu.memory_space<vmem>>, vector<8x128xf32>
    tpu.vector_store %arg7[%c0_73, %c0_74], %55 {strides = array<i32>} : memref<64x128xf32, #tpu.memory_space<vmem>>, vector<8x128xf32>,
    %c0_75 = arith.constant 0 : index
    %c0_76 = arith.constant 0 : index
    %c1_77 = arith.constant 1 : index
    %c0_78 = arith.constant 0 : index
    %c0_79 = arith.constant 0 : index
    %57 = vector.load %arg1[%c0_75, %c0_76, %c1_77, %c0_78, %c0_79] : memref<1x4x9x9x4xbf16, #tpu.memory_space<vmem>>, vector<1x1x1x8x4xbf16>
    %58 = vector.shape_cast %57 : vector<1x1x1x8x4xbf16> to vector<8x4xbf16>
    %c0_80 = arith.constant 0 : index
    %c0_81 = arith.constant 0 : index
    %c0_82 = arith.constant 0 : index
    %59 = vector.load %arg2[%c0_80, %c0_81, %c0_82] : memref<9x4x128xbf16, #tpu.memory_space<vmem>>, vector<1x4x128xbf16>
    %60 = vector.shape_cast %59 : vector<1x4x128xbf16> to vector<4x128xbf16>
    %cst_83 = arith.constant dense<0.000000e+00> : vector<8x128xf32>
    %61 = tpu.matmul %58, %60, %cst_83 {dimension_numbers = #tpu.dot_dimension_numbers<[1], [0], [0], [1], [0, 0, 1, 1], [], []>} : vector<8x4xbf16>, vector<4x128xbf16>, vector<8x128xf32> -> vector<8x128xf32>
    %c0_84 = arith.constant 0 : index
    %c1_85 = arith.constant 1 : index
    %c1_86 = arith.constant 1 : index
    %c0_87 = arith.constant 0 : index
    %c0_88 = arith.constant 0 : index
    %62 = vector.load %arg1[%c0_84, %c1_85, %c1_86, %c0_87, %c0_88] : memref<1x4x9x9x4xbf16, #tpu.memory_space<vmem>>, vector<1x1x1x8x4xbf16>
    %63 = vector.shape_cast %62 : vector<1x1x1x8x4xbf16> to vector<8x4xbf16>
    %c1_89 = arith.constant 1 : index
    %c0_90 = arith.constant 0 : index
    %c0_91 = arith.constant 0 : index
    %64 = vector.load %arg2[%c1_89, %c0_90, %c0_91] : memref<9x4x128xbf16, #tpu.memory_space<vmem>>, vector<1x4x128xbf16>
    %65 = vector.shape_cast %64 : vector<1x4x128xbf16> to vector<4x128xbf16>
    %cst_92 = arith.constant dense<0.000000e+00> : vector<8x128xf32>
    %66 = tpu.matmul %63, %65, %cst_92 {dimension_numbers = #tpu.dot_dimension_numbers<[1], [0], [0], [1], [0, 0, 1, 1], [], []>} : vector<8x4xbf16>, vector<4x128xbf16>, vector<8x128xf32> -> vector<8x128xf32>
    %67 = arith.addf %61, %66 : vector<8x128xf32>
    %c0_93 = arith.constant 0 : index
    %c0_94 = arith.constant 0 : index
    %c1_95 = arith.constant 1 : index
    %c1_96 = arith.constant 1 : index
    %c0_97 = arith.constant 0 : index
    %68 = vector.load %arg1[%c0_93, %c0_94, %c1_95, %c1_96, %c0_97] : memref<1x4x9x9x4xbf16, #tpu.memory_space<vmem>>, vector<1x1x1x8x4xbf16>
    %69 = vector.shape_cast %68 : vector<1x1x1x8x4xbf16> to vector<8x4xbf16>
    %c2_98 = arith.constant 2 : index
    %c0_99 = arith.constant 0 : index
    %c0_100 = arith.constant 0 : index
    %70 = vector.load %arg2[%c2_98, %c0_99, %c0_100] : memref<9x4x128xbf16, #tpu.memory_space<vmem>>, vector<1x4x128xbf16>
    %71 = vector.shape_cast %70 : vector<1x4x128xbf16> to vector<4x128xbf16>
    %cst_101 = arith.constant dense<0.000000e+00> : vector<8x128xf32>
    %72 = tpu.matmul %69, %71, %cst_101 {dimension_numbers = #tpu.dot_dimension_numbers<[1], [0], [0], [1], [0, 0, 1, 1], [], []>} : vector<8x4xbf16>, vector<4x128xbf16>, vector<8x128xf32> -> vector<8x128xf32>
    %73 = arith.addf %67, %72 : vector<8x128xf32>
    %c0_102 = arith.constant 0 : index
    %c2_103 = arith.constant 2 : index
    %c1_104 = arith.constant 1 : index
    %c0_105 = arith.constant 0 : index
    %c0_106 = arith.constant 0 : index
    %74 = vector.load %arg1[%c0_102, %c2_103, %c1_104, %c0_105, %c0_106] : memref<1x4x9x9x4xbf16, #tpu.memory_space<vmem>>, vector<1x1x1x8x4xbf16>
    %75 = vector.shape_cast %74 : vector<1x1x1x8x4xbf16> to vector<8x4xbf16>
    %c3_107 = arith.constant 3 : index
    %c0_108 = arith.constant 0 : index
    %c0_109 = arith.constant 0 : index
    %76 = vector.load %arg2[%c3_107, %c0_108, %c0_109] : memref<9x4x128xbf16, #tpu.memory_space<vmem>>, vector<1x4x128xbf16>
    %77 = vector.shape_cast %76 : vector<1x4x128xbf16> to vector<4x128xbf16>
    %cst_110 = arith.constant dense<0.000000e+00> : vector<8x128xf32>
    %78 = tpu.matmul %75, %77, %cst_110 {dimension_numbers = #tpu.dot_dimension_numbers<[1], [0], [0], [1], [0, 0, 1, 1], [], []>} : vector<8x4xbf16>, vector<4x128xbf16>, vector<8x128xf32> -> vector<8x128xf32>
    %79 = arith.addf %73, %78 : vector<8x128xf32>
    %c0_111 = arith.constant 0 : index
    %c3_112 = arith.constant 3 : index
    %c1_113 = arith.constant 1 : index
    %c0_114 = arith.constant 0 : index
    %c0_115 = arith.constant 0 : index
    %80 = vector.load %arg1[%c0_111, %c3_112, %c1_113, %c0_114, %c0_115] : memref<1x4x9x9x4xbf16, #tpu.memory_space<vmem>>, vector<1x1x1x8x4xbf16>
    %81 = vector.shape_cast %80 : vector<1x1x1x8x4xbf16> to vector<8x4xbf16>
    %c4_116 = arith.constant 4 : index
    %c0_117 = arith.constant 0 : index
    %c0_118 = arith.constant 0 : index
    %82 = vector.load %arg2[%c4_116, %c0_117, %c0_118] : memref<9x4x128xbf16, #tpu.memory_space<vmem>>, vector<1x4x128xbf16>
    %83 = vector.shape_cast %82 : vector<1x4x128xbf16> to vector<4x128xbf16>
    %cst_119 = arith.constant dense<0.000000e+00> : vector<8x128xf32>
    %84 = tpu.matmul %81, %83, %cst_119 {dimension_numbers = #tpu.dot_dimension_numbers<[1], [0], [0], [1], [0, 0, 1, 1], [], []>} : vector<8x4xbf16>, vector<4x128xbf16>, vector<8x128xf32> -> vector<8x128xf32>
    %85 = arith.addf %79, %84 : vector<8x128xf32>
    %c0_120 = arith.constant 0 : index
    %c2_121 = arith.constant 2 : index
    %c1_122 = arith.constant 1 : index
    %c1_123 = arith.constant 1 : index
    %c0_124 = arith.constant 0 : index
    %86 = vector.load %arg1[%c0_120, %c2_121, %c1_122, %c1_123, %c0_124] : memref<1x4x9x9x4xbf16, #tpu.memory_space<vmem>>, vector<1x1x1x8x4xbf16>
    %87 = vector.shape_cast %86 : vector<1x1x1x8x4xbf16> to vector<8x4xbf16>
    %c5_125 = arith.constant 5 : index
    %c0_126 = arith.constant 0 : index
    %c0_127 = arith.constant 0 : index
    %88 = vector.load %arg2[%c5_125, %c0_126, %c0_127] : memref<9x4x128xbf16, #tpu.memory_space<vmem>>, vector<1x4x128xbf16>
    %89 = vector.shape_cast %88 : vector<1x4x128xbf16> to vector<4x128xbf16>
    %cst_128 = arith.constant dense<0.000000e+00> : vector<8x128xf32>
    %90 = tpu.matmul %87, %89, %cst_128 {dimension_numbers = #tpu.dot_dimension_numbers<[1], [0], [0], [1], [0, 0, 1, 1], [], []>} : vector<8x4xbf16>, vector<4x128xbf16>, vector<8x128xf32> -> vector<8x128xf32>
    %91 = arith.addf %85, %90 : vector<8x128xf32>
    %c0_129 = arith.constant 0 : index
    %c0_130 = arith.constant 0 : index
    %c2_131 = arith.constant 2 : index
    %c0_132 = arith.constant 0 : index
    %c0_133 = arith.constant 0 : index
    %92 = vector.load %arg1[%c0_129, %c0_130, %c2_131, %c0_132, %c0_133] : memref<1x4x9x9x4xbf16, #tpu.memory_space<vmem>>, vector<1x1x1x8x4xbf16>
    %93 = vector.shape_cast %92 : vector<1x1x1x8x4xbf16> to vector<8x4xbf16>
    %c6_134 = arith.constant 6 : index
    %c0_135 = arith.constant 0 : index
    %c0_136 = arith.constant 0 : index
    %94 = vector.load %arg2[%c6_134, %c0_135, %c0_136] : memref<9x4x128xbf16, #tpu.memory_space<vmem>>, vector<1x4x128xbf16>
    %95 = vector.shape_cast %94 : vector<1x4x128xbf16> to vector<4x128xbf16>
    %cst_137 = arith.constant dense<0.000000e+00> : vector<8x128xf32>
    %96 = tpu.matmul %93, %95, %cst_137 {dimension_numbers = #tpu.dot_dimension_numbers<[1], [0], [0], [1], [0, 0, 1, 1], [], []>} : vector<8x4xbf16>, vector<4x128xbf16>, vector<8x128xf32> -> vector<8x128xf32>
    %97 = arith.addf %91, %96 : vector<8x128xf32>
    %c0_138 = arith.constant 0 : index
    %c1_139 = arith.constant 1 : index
    %c2_140 = arith.constant 2 : index
    %c0_141 = arith.constant 0 : index
    %c0_142 = arith.constant 0 : index
    %98 = vector.load %arg1[%c0_138, %c1_139, %c2_140, %c0_141, %c0_142] : memref<1x4x9x9x4xbf16, #tpu.memory_space<vmem>>, vector<1x1x1x8x4xbf16>
    %99 = vector.shape_cast %98 : vector<1x1x1x8x4xbf16> to vector<8x4xbf16>
    %c7_143 = arith.constant 7 : index
    %c0_144 = arith.constant 0 : index
    %c0_145 = arith.constant 0 : index
    %100 = vector.load %arg2[%c7_143, %c0_144, %c0_145] : memref<9x4x128xbf16, #tpu.memory_space<vmem>>, vector<1x4x128xbf16>
    %101 = vector.shape_cast %100 : vector<1x4x128xbf16> to vector<4x128xbf16>
    %cst_146 = arith.constant dense<0.000000e+00> : vector<8x128xf32>
    %102 = tpu.matmul %99, %101, %cst_146 {dimension_numbers = #tpu.dot_dimension_numbers<[1], [0], [0], [1], [0, 0, 1, 1], [], []>} : vector<8x4xbf16>, vector<4x128xbf16>, vector<8x128xf32> -> vector<8x128xf32>
    %103 = arith.addf %97, %102 : vector<8x128xf32>
    %c0_147 = arith.constant 0 : index
    %c0_148 = arith.constant 0 : index
    %c2_149 = arith.constant 2 : index
    %c1_150 = arith.constant 1 : index
    %c0_151 = arith.constant 0 : index
    %104 = vector.load %arg1[%c0_147, %c0_148, %c2_149, %c1_150, %c0_151] : memref<1x4x9x9x4xbf16, #tpu.memory_space<vmem>>, vector<1x1x1x8x4xbf16>
    %105 = vector.shape_cast %104 : vector<1x1x1x8x4xbf16> to vector<8x4xbf16>
    %c8_152 = arith.constant 8 : index
    %c0_153 = arith.constant 0 : index
    %c0_154 = arith.constant 0 : index
    %106 = vector.load %arg2[%c8_152, %c0_153, %c0_154] : memref<9x4x128xbf16, #tpu.memory_space<vmem>>, vector<1x4x128xbf16>
    %107 = vector.shape_cast %106 : vector<1x4x128xbf16> to vector<4x128xbf16>
    %cst_155 = arith.constant dense<0.000000e+00> : vector<8x128xf32>
    %108 = tpu.matmul %105, %107, %cst_155 {dimension_numbers = #tpu.dot_dimension_numbers<[1], [0], [0], [1], [0, 0, 1, 1], [], []>} : vector<8x4xbf16>, vector<4x128xbf16>, vector<8x128xf32> -> vector<8x128xf32>
    %109 = arith.addf %103, %108 : vector<8x128xf32>
    %110 = vector.broadcast %0 : vector<1x128xf32> to vector<8x128xf32>
    %111 = arith.addf %109, %110 : vector<8x128xf32>
    %c8_156 = arith.constant 8 : index
    %c0_157 = arith.constant 0 : index
    %112 = vector.load %arg7[%c8_156, %c0_157] : memref<64x128xf32, #tpu.memory_space<vmem>>, vector<8x128xf32>
    tpu.vector_store %arg7[%c8_156, %c0_157], %111 {strides = array<i32>} : memref<64x128xf32, #tpu.memory_space<vmem>>, vector<8x128xf32>,
    %c0_158 = arith.constant 0 : index
    %c0_159 = arith.constant 0 : index
    %c2_160 = arith.constant 2 : index
    %c0_161 = arith.constant 0 : index
    %c0_162 = arith.constant 0 : index
    %113 = vector.load %arg1[%c0_158, %c0_159, %c2_160, %c0_161, %c0_162] : memref<1x4x9x9x4xbf16, #tpu.memory_space<vmem>>, vector<1x1x1x8x4xbf16>
    %114 = vector.shape_cast %113 : vector<1x1x1x8x4xbf16> to vector<8x4xbf16>
    %c0_163 = arith.constant 0 : index
    %c0_164 = arith.constant 0 : index
    %c0_165 = arith.constant 0 : index
    %115 = vector.load %arg2[%c0_163, %c0_164, %c0_165] : memref<9x4x128xbf16, #tpu.memory_space<vmem>>, vector<1x4x128xbf16>
    %116 = vector.shape_cast %115 : vector<1x4x128xbf16> to vector<4x128xbf16>
    %cst_166 = arith.constant dense<0.000000e+00> : vector<8x128xf32>
    %117 = tpu.matmul %114, %116, %cst_166 {dimension_numbers = #tpu.dot_dimension_numbers<[1], [0], [0], [1], [0, 0, 1, 1], [], []>} : vector<8x4xbf16>, vector<4x128xbf16>, vector<8x128xf32> -> vector<8x128xf32>
    %c0_167 = arith.constant 0 : index
    %c1_168 = arith.constant 1 : index
    %c2_169 = arith.constant 2 : index
    %c0_170 = arith.constant 0 : index
    %c0_171 = arith.constant 0 : index
    %118 = vector.load %arg1[%c0_167, %c1_168, %c2_169, %c0_170, %c0_171] : memref<1x4x9x9x4xbf16, #tpu.memory_space<vmem>>, vector<1x1x1x8x4xbf16>
    %119 = vector.shape_cast %118 : vector<1x1x1x8x4xbf16> to vector<8x4xbf16>
    %c1_172 = arith.constant 1 : index
    %c0_173 = arith.constant 0 : index
    %c0_174 = arith.constant 0 : index
    %120 = vector.load %arg2[%c1_172, %c0_173, %c0_174] : memref<9x4x128xbf16, #tpu.memory_space<vmem>>, vector<1x4x128xbf16>
    %121 = vector.shape_cast %120 : vector<1x4x128xbf16> to vector<4x128xbf16>
    %cst_175 = arith.constant dense<0.000000e+00> : vector<8x128xf32>
    %122 = tpu.matmul %119, %121, %cst_175 {dimension_numbers = #tpu.dot_dimension_numbers<[1], [0], [0], [1], [0, 0, 1, 1], [], []>} : vector<8x4xbf16>, vector<4x128xbf16>, vector<8x128xf32> -> vector<8x128xf32>
    %123 = arith.addf %117, %122 : vector<8x128xf32>
    %c0_176 = arith.constant 0 : index
    %c0_177 = arith.constant 0 : index
    %c2_178 = arith.constant 2 : index
    %c1_179 = arith.constant 1 : index
    %c0_180 = arith.constant 0 : index
    %124 = vector.load %arg1[%c0_176, %c0_177, %c2_178, %c1_179, %c0_180] : memref<1x4x9x9x4xbf16, #tpu.memory_space<vmem>>, vector<1x1x1x8x4xbf16>
    %125 = vector.shape_cast %124 : vector<1x1x1x8x4xbf16> to vector<8x4xbf16>
    %c2_181 = arith.constant 2 : index
    %c0_182 = arith.constant 0 : index
    %c0_183 = arith.constant 0 : index
    %126 = vector.load %arg2[%c2_181, %c0_182, %c0_183] : memref<9x4x128xbf16, #tpu.memory_space<vmem>>, vector<1x4x128xbf16>
    %127 = vector.shape_cast %126 : vector<1x4x128xbf16> to vector<4x128xbf16>
    %cst_184 = arith.constant dense<0.000000e+00> : vector<8x128xf32>
    %128 = tpu.matmul %125, %127, %cst_184 {dimension_numbers = #tpu.dot_dimension_numbers<[1], [0], [0], [1], [0, 0, 1, 1], [], []>} : vector<8x4xbf16>, vector<4x128xbf16>, vector<8x128xf32> -> vector<8x128xf32>
    %129 = arith.addf %123, %128 : vector<8x128xf32>
    %c0_185 = arith.constant 0 : index
    %c2_186 = arith.constant 2 : index
    %c2_187 = arith.constant 2 : index
    %c0_188 = arith.constant 0 : index
    %c0_189 = arith.constant 0 : index
    %130 = vector.load %arg1[%c0_185, %c2_186, %c2_187, %c0_188, %c0_189] : memref<1x4x9x9x4xbf16, #tpu.memory_space<vmem>>, vector<1x1x1x8x4xbf16>
    %131 = vector.shape_cast %130 : vector<1x1x1x8x4xbf16> to vector<8x4xbf16>
    %c3_190 = arith.constant 3 : index
    %c0_191 = arith.constant 0 : index
    %c0_192 = arith.constant 0 : index
    %132 = vector.load %arg2[%c3_190, %c0_191, %c0_192] : memref<9x4x128xbf16, #tpu.memory_space<vmem>>, vector<1x4x128xbf16>
    %133 = vector.shape_cast %132 : vector<1x4x128xbf16> to vector<4x128xbf16>
    %cst_193 = arith.constant dense<0.000000e+00> : vector<8x128xf32>
    %134 = tpu.matmul %131, %133, %cst_193 {dimension_numbers = #tpu.dot_dimension_numbers<[1], [0], [0], [1], [0, 0, 1, 1], [], []>} : vector<8x4xbf16>, vector<4x128xbf16>, vector<8x128xf32> -> vector<8x128xf32>
    %135 = arith.addf %129, %134 : vector<8x128xf32>
    %c0_194 = arith.constant 0 : index
    %c3_195 = arith.constant 3 : index
    %c2_196 = arith.constant 2 : index
    %c0_197 = arith.constant 0 : index
    %c0_198 = arith.constant 0 : index
    %136 = vector.load %arg1[%c0_194, %c3_195, %c2_196, %c0_197, %c0_198] : memref<1x4x9x9x4xbf16, #tpu.memory_space<vmem>>, vector<1x1x1x8x4xbf16>
    %137 = vector.shape_cast %136 : vector<1x1x1x8x4xbf16> to vector<8x4xbf16>
    %c4_199 = arith.constant 4 : index
    %c0_200 = arith.constant 0 : index
    %c0_201 = arith.constant 0 : index
    %138 = vector.load %arg2[%c4_199, %c0_200, %c0_201] : memref<9x4x128xbf16, #tpu.memory_space<vmem>>, vector<1x4x128xbf16>
    %139 = vector.shape_cast %138 : vector<1x4x128xbf16> to vector<4x128xbf16>
    %cst_202 = arith.constant dense<0.000000e+00> : vector<8x128xf32>
    %140 = tpu.matmul %137, %139, %cst_202 {dimension_numbers = #tpu.dot_dimension_numbers<[1], [0], [0], [1], [0, 0, 1, 1], [], []>} : vector<8x4xbf16>, vector<4x128xbf16>, vector<8x128xf32> -> vector<8x128xf32>
    %141 = arith.addf %135, %140 : vector<8x128xf32>
    %c0_203 = arith.constant 0 : index
    %c2_204 = arith.constant 2 : index
    %c2_205 = arith.constant 2 : index
    %c1_206 = arith.constant 1 : index
    %c0_207 = arith.constant 0 : index
    %142 = vector.load %arg1[%c0_203, %c2_204, %c2_205, %c1_206, %c0_207] : memref<1x4x9x9x4xbf16, #tpu.memory_space<vmem>>, vector<1x1x1x8x4xbf16>
    %143 = vector.shape_cast %142 : vector<1x1x1x8x4xbf16> to vector<8x4xbf16>
    %c5_208 = arith.constant 5 : index
    %c0_209 = arith.constant 0 : index
    %c0_210 = arith.constant 0 : index
    %144 = vector.load %arg2[%c5_208, %c0_209, %c0_210] : memref<9x4x128xbf16, #tpu.memory_space<vmem>>, vector<1x4x128xbf16>
    %145 = vector.shape_cast %144 : vector<1x4x128xbf16> to vector<4x128xbf16>
    %cst_211 = arith.constant dense<0.000000e+00> : vector<8x128xf32>
    %146 = tpu.matmul %143, %145, %cst_211 {dimension_numbers = #tpu.dot_dimension_numbers<[1], [0], [0], [1], [0, 0, 1, 1], [], []>} : vector<8x4xbf16>, vector<4x128xbf16>, vector<8x128xf32> -> vector<8x128xf32>
    %147 = arith.addf %141, %146 : vector<8x128xf32>
    %c0_212 = arith.constant 0 : index
    %c0_213 = arith.constant 0 : index
    %c3_214 = arith.constant 3 : index
    %c0_215 = arith.constant 0 : index
    %c0_216 = arith.constant 0 : index
    %148 = vector.load %arg1[%c0_212, %c0_213, %c3_214, %c0_215, %c0_216] : memref<1x4x9x9x4xbf16, #tpu.memory_space<vmem>>, vector<1x1x1x8x4xbf16>
    %149 = vector.shape_cast %148 : vector<1x1x1x8x4xbf16> to vector<8x4xbf16>
    %c6_217 = arith.constant 6 : index
    %c0_218 = arith.constant 0 : index
    %c0_219 = arith.constant 0 : index
    %150 = vector.load %arg2[%c6_217, %c0_218, %c0_219] : memref<9x4x128xbf16, #tpu.memory_space<vmem>>, vector<1x4x128xbf16>
    %151 = vector.shape_cast %150 : vector<1x4x128xbf16> to vector<4x128xbf16>
    %cst_220 = arith.constant dense<0.000000e+00> : vector<8x128xf32>
    %152 = tpu.matmul %149, %151, %cst_220 {dimension_numbers = #tpu.dot_dimension_numbers<[1], [0], [0], [1], [0, 0, 1, 1], [], []>} : vector<8x4xbf16>, vector<4x128xbf16>, vector<8x128xf32> -> vector<8x128xf32>
    %153 = arith.addf %147, %152 : vector<8x128xf32>
    %c0_221 = arith.constant 0 : index
    %c1_222 = arith.constant 1 : index
    %c3_223 = arith.constant 3 : index
    %c0_224 = arith.constant 0 : index
    %c0_225 = arith.constant 0 : index
    %154 = vector.load %arg1[%c0_221, %c1_222, %c3_223, %c0_224, %c0_225] : memref<1x4x9x9x4xbf16, #tpu.memory_space<vmem>>, vector<1x1x1x8x4xbf16>
    %155 = vector.shape_cast %154 : vector<1x1x1x8x4xbf16> to vector<8x4xbf16>
    %c7_226 = arith.constant 7 : index
    %c0_227 = arith.constant 0 : index
    %c0_228 = arith.constant 0 : index
    %156 = vector.load %arg2[%c7_226, %c0_227, %c0_228] : memref<9x4x128xbf16, #tpu.memory_space<vmem>>, vector<1x4x128xbf16>
    %157 = vector.shape_cast %156 : vector<1x4x128xbf16> to vector<4x128xbf16>
    %cst_229 = arith.constant dense<0.000000e+00> : vector<8x128xf32>
    %158 = tpu.matmul %155, %157, %cst_229 {dimension_numbers = #tpu.dot_dimension_numbers<[1], [0], [0], [1], [0, 0, 1, 1], [], []>} : vector<8x4xbf16>, vector<4x128xbf16>, vector<8x128xf32> -> vector<8x128xf32>
    %159 = arith.addf %153, %158 : vector<8x128xf32>
    %c0_230 = arith.constant 0 : index
    %c0_231 = arith.constant 0 : index
    %c3_232 = arith.constant 3 : index
    %c1_233 = arith.constant 1 : index
    %c0_234 = arith.constant 0 : index
    %160 = vector.load %arg1[%c0_230, %c0_231, %c3_232, %c1_233, %c0_234] : memref<1x4x9x9x4xbf16, #tpu.memory_space<vmem>>, vector<1x1x1x8x4xbf16>
    %161 = vector.shape_cast %160 : vector<1x1x1x8x4xbf16> to vector<8x4xbf16>
    %c8_235 = arith.constant 8 : index
    %c0_236 = arith.constant 0 : index
    %c0_237 = arith.constant 0 : index
    %162 = vector.load %arg2[%c8_235, %c0_236, %c0_237] : memref<9x4x128xbf16, #tpu.memory_space<vmem>>, vector<1x4x128xbf16>
    %163 = vector.shape_cast %162 : vector<1x4x128xbf16> to vector<4x128xbf16>
    %cst_238 = arith.constant dense<0.000000e+00> : vector<8x128xf32>
    %164 = tpu.matmul %161, %163, %cst_238 {dimension_numbers = #tpu.dot_dimension_numbers<[1], [0], [0], [1], [0, 0, 1, 1], [], []>} : vector<8x4xbf16>, vector<4x128xbf16>, vector<8x128xf32> -> vector<8x128xf32>
    %165 = arith.addf %159, %164 : vector<8x128xf32>
    %166 = vector.broadcast %0 : vector<1x128xf32> to vector<8x128xf32>
    %167 = arith.addf %165, %166 : vector<8x128xf32>
    %c16 = arith.constant 16 : index
    %c0_239 = arith.constant 0 : index
    %168 = vector.load %arg7[%c16, %c0_239] : memref<64x128xf32, #tpu.memory_space<vmem>>, vector<8x128xf32>
    tpu.vector_store %arg7[%c16, %c0_239], %167 {strides = array<i32>} : memref<64x128xf32, #tpu.memory_space<vmem>>, vector<8x128xf32>,
    %c0_240 = arith.constant 0 : index
    %c0_241 = arith.constant 0 : index
    %c3_242 = arith.constant 3 : index
    %c0_243 = arith.constant 0 : index
    %c0_244 = arith.constant 0 : index
    %169 = vector.load %arg1[%c0_240, %c0_241, %c3_242, %c0_243, %c0_244] : memref<1x4x9x9x4xbf16, #tpu.memory_space<vmem>>, vector<1x1x1x8x4xbf16>
    %170 = vector.shape_cast %169 : vector<1x1x1x8x4xbf16> to vector<8x4xbf16>
    %c0_245 = arith.constant 0 : index
    %c0_246 = arith.constant 0 : index
    %c0_247 = arith.constant 0 : index
    %171 = vector.load %arg2[%c0_245, %c0_246, %c0_247] : memref<9x4x128xbf16, #tpu.memory_space<vmem>>, vector<1x4x128xbf16>
    %172 = vector.shape_cast %171 : vector<1x4x128xbf16> to vector<4x128xbf16>
    %cst_248 = arith.constant dense<0.000000e+00> : vector<8x128xf32>
    %173 = tpu.matmul %170, %172, %cst_248 {dimension_numbers = #tpu.dot_dimension_numbers<[1], [0], [0], [1], [0, 0, 1, 1], [], []>} : vector<8x4xbf16>, vector<4x128xbf16>, vector<8x128xf32> -> vector<8x128xf32>
    %c0_249 = arith.constant 0 : index
    %c1_250 = arith.constant 1 : index
    %c3_251 = arith.constant 3 : index
    %c0_252 = arith.constant 0 : index
    %c0_253 = arith.constant 0 : index
    %174 = vector.load %arg1[%c0_249, %c1_250, %c3_251, %c0_252, %c0_253] : memref<1x4x9x9x4xbf16, #tpu.memory_space<vmem>>, vector<1x1x1x8x4xbf16>
    %175 = vector.shape_cast %174 : vector<1x1x1x8x4xbf16> to vector<8x4xbf16>
    %c1_254 = arith.constant 1 : index
    %c0_255 = arith.constant 0 : index
    %c0_256 = arith.constant 0 : index
    %176 = vector.load %arg2[%c1_254, %c0_255, %c0_256] : memref<9x4x128xbf16, #tpu.memory_space<vmem>>, vector<1x4x128xbf16>
    %177 = vector.shape_cast %176 : vector<1x4x128xbf16> to vector<4x128xbf16>
    %cst_257 = arith.constant dense<0.000000e+00> : vector<8x128xf32>
    %178 = tpu.matmul %175, %177, %cst_257 {dimension_numbers = #tpu.dot_dimension_numbers<[1], [0], [0], [1], [0, 0, 1, 1], [], []>} : vector<8x4xbf16>, vector<4x128xbf16>, vector<8x128xf32> -> vector<8x128xf32>
    %179 = arith.addf %173, %178 : vector<8x128xf32>
    %c0_258 = arith.constant 0 : index
    %c0_259 = arith.constant 0 : index
    %c3_260 = arith.constant 3 : index
    %c1_261 = arith.constant 1 : index
    %c0_262 = arith.constant 0 : index
    %180 = vector.load %arg1[%c0_258, %c0_259, %c3_260, %c1_261, %c0_262] : memref<1x4x9x9x4xbf16, #tpu.memory_space<vmem>>, vector<1x1x1x8x4xbf16>
    %181 = vector.shape_cast %180 : vector<1x1x1x8x4xbf16> to vector<8x4xbf16>
    %c2_263 = arith.constant 2 : index
    %c0_264 = arith.constant 0 : index
    %c0_265 = arith.constant 0 : index
    %182 = vector.load %arg2[%c2_263, %c0_264, %c0_265] : memref<9x4x128xbf16, #tpu.memory_space<vmem>>, vector<1x4x128xbf16>
    %183 = vector.shape_cast %182 : vector<1x4x128xbf16> to vector<4x128xbf16>
    %cst_266 = arith.constant dense<0.000000e+00> : vector<8x128xf32>
    %184 = tpu.matmul %181, %183, %cst_266 {dimension_numbers = #tpu.dot_dimension_numbers<[1], [0], [0], [1], [0, 0, 1, 1], [], []>} : vector<8x4xbf16>, vector<4x128xbf16>, vector<8x128xf32> -> vector<8x128xf32>
    %185 = arith.addf %179, %184 : vector<8x128xf32>
    %c0_267 = arith.constant 0 : index
    %c2_268 = arith.constant 2 : index
    %c3_269 = arith.constant 3 : index
    %c0_270 = arith.constant 0 : index
    %c0_271 = arith.constant 0 : index
    %186 = vector.load %arg1[%c0_267, %c2_268, %c3_269, %c0_270, %c0_271] : memref<1x4x9x9x4xbf16, #tpu.memory_space<vmem>>, vector<1x1x1x8x4xbf16>
    %187 = vector.shape_cast %186 : vector<1x1x1x8x4xbf16> to vector<8x4xbf16>
    %c3_272 = arith.constant 3 : index
    %c0_273 = arith.constant 0 : index
    %c0_274 = arith.constant 0 : index
    %188 = vector.load %arg2[%c3_272, %c0_273, %c0_274] : memref<9x4x128xbf16, #tpu.memory_space<vmem>>, vector<1x4x128xbf16>
    %189 = vector.shape_cast %188 : vector<1x4x128xbf16> to vector<4x128xbf16>
    %cst_275 = arith.constant dense<0.000000e+00> : vector<8x128xf32>
    %190 = tpu.matmul %187, %189, %cst_275 {dimension_numbers = #tpu.dot_dimension_numbers<[1], [0], [0], [1], [0, 0, 1, 1], [], []>} : vector<8x4xbf16>, vector<4x128xbf16>, vector<8x128xf32> -> vector<8x128xf32>
    %191 = arith.addf %185, %190 : vector<8x128xf32>
    %c0_276 = arith.constant 0 : index
    %c3_277 = arith.constant 3 : index
    %c3_278 = arith.constant 3 : index
    %c0_279 = arith.constant 0 : index
    %c0_280 = arith.constant 0 : index
    %192 = vector.load %arg1[%c0_276, %c3_277, %c3_278, %c0_279, %c0_280] : memref<1x4x9x9x4xbf16, #tpu.memory_space<vmem>>, vector<1x1x1x8x4xbf16>
    %193 = vector.shape_cast %192 : vector<1x1x1x8x4xbf16> to vector<8x4xbf16>
    %c4_281 = arith.constant 4 : index
    %c0_282 = arith.constant 0 : index
    %c0_283 = arith.constant 0 : index
    %194 = vector.load %arg2[%c4_281, %c0_282, %c0_283] : memref<9x4x128xbf16, #tpu.memory_space<vmem>>, vector<1x4x128xbf16>
    %195 = vector.shape_cast %194 : vector<1x4x128xbf16> to vector<4x128xbf16>
    %cst_284 = arith.constant dense<0.000000e+00> : vector<8x128xf32>
    %196 = tpu.matmul %193, %195, %cst_284 {dimension_numbers = #tpu.dot_dimension_numbers<[1], [0], [0], [1], [0, 0, 1, 1], [], []>} : vector<8x4xbf16>, vector<4x128xbf16>, vector<8x128xf32> -> vector<8x128xf32>
    %197 = arith.addf %191, %196 : vector<8x128xf32>
    %c0_285 = arith.constant 0 : index
    %c2_286 = arith.constant 2 : index
    %c3_287 = arith.constant 3 : index
    %c1_288 = arith.constant 1 : index
    %c0_289 = arith.constant 0 : index
    %198 = vector.load %arg1[%c0_285, %c2_286, %c3_287, %c1_288, %c0_289] : memref<1x4x9x9x4xbf16, #tpu.memory_space<vmem>>, vector<1x1x1x8x4xbf16>
    %199 = vector.shape_cast %198 : vector<1x1x1x8x4xbf16> to vector<8x4xbf16>
    %c5_290 = arith.constant 5 : index
    %c0_291 = arith.constant 0 : index
    %c0_292 = arith.constant 0 : index
    %200 = vector.load %arg2[%c5_290, %c0_291, %c0_292] : memref<9x4x128xbf16, #tpu.memory_space<vmem>>, vector<1x4x128xbf16>
    %201 = vector.shape_cast %200 : vector<1x4x128xbf16> to vector<4x128xbf16>
    %cst_293 = arith.constant dense<0.000000e+00> : vector<8x128xf32>
    %202 = tpu.matmul %199, %201, %cst_293 {dimension_numbers = #tpu.dot_dimension_numbers<[1], [0], [0], [1], [0, 0, 1, 1], [], []>} : vector<8x4xbf16>, vector<4x128xbf16>, vector<8x128xf32> -> vector<8x128xf32>
    %203 = arith.addf %197, %202 : vector<8x128xf32>
    %c0_294 = arith.constant 0 : index
    %c0_295 = arith.constant 0 : index
    %c4_296 = arith.constant 4 : index
    %c0_297 = arith.constant 0 : index
    %c0_298 = arith.constant 0 : index
    %204 = vector.load %arg1[%c0_294, %c0_295, %c4_296, %c0_297, %c0_298] : memref<1x4x9x9x4xbf16, #tpu.memory_space<vmem>>, vector<1x1x1x8x4xbf16>
    %205 = vector.shape_cast %204 : vector<1x1x1x8x4xbf16> to vector<8x4xbf16>
    %c6_299 = arith.constant 6 : index
    %c0_300 = arith.constant 0 : index
    %c0_301 = arith.constant 0 : index
    %206 = vector.load %arg2[%c6_299, %c0_300, %c0_301] : memref<9x4x128xbf16, #tpu.memory_space<vmem>>, vector<1x4x128xbf16>
    %207 = vector.shape_cast %206 : vector<1x4x128xbf16> to vector<4x128xbf16>
    %cst_302 = arith.constant dense<0.000000e+00> : vector<8x128xf32>
    %208 = tpu.matmul %205, %207, %cst_302 {dimension_numbers = #tpu.dot_dimension_numbers<[1], [0], [0], [1], [0, 0, 1, 1], [], []>} : vector<8x4xbf16>, vector<4x128xbf16>, vector<8x128xf32> -> vector<8x128xf32>
    %209 = arith.addf %203, %208 : vector<8x128xf32>
    %c0_303 = arith.constant 0 : index
    %c1_304 = arith.constant 1 : index
    %c4_305 = arith.constant 4 : index
    %c0_306 = arith.constant 0 : index
    %c0_307 = arith.constant 0 : index
    %210 = vector.load %arg1[%c0_303, %c1_304, %c4_305, %c0_306, %c0_307] : memref<1x4x9x9x4xbf16, #tpu.memory_space<vmem>>, vector<1x1x1x8x4xbf16>
    %211 = vector.shape_cast %210 : vector<1x1x1x8x4xbf16> to vector<8x4xbf16>
    %c7_308 = arith.constant 7 : index
    %c0_309 = arith.constant 0 : index
    %c0_310 = arith.constant 0 : index
    %212 = vector.load %arg2[%c7_308, %c0_309, %c0_310] : memref<9x4x128xbf16, #tpu.memory_space<vmem>>, vector<1x4x128xbf16>
    %213 = vector.shape_cast %212 : vector<1x4x128xbf16> to vector<4x128xbf16>
    %cst_311 = arith.constant dense<0.000000e+00> : vector<8x128xf32>
    %214 = tpu.matmul %211, %213, %cst_311 {dimension_numbers = #tpu.dot_dimension_numbers<[1], [0], [0], [1], [0, 0, 1, 1], [], []>} : vector<8x4xbf16>, vector<4x128xbf16>, vector<8x128xf32> -> vector<8x128xf32>
    %215 = arith.addf %209, %214 : vector<8x128xf32>
    %c0_312 = arith.constant 0 : index
    %c0_313 = arith.constant 0 : index
    %c4_314 = arith.constant 4 : index
    %c1_315 = arith.constant 1 : index
    %c0_316 = arith.constant 0 : index
    %216 = vector.load %arg1[%c0_312, %c0_313, %c4_314, %c1_315, %c0_316] : memref<1x4x9x9x4xbf16, #tpu.memory_space<vmem>>, vector<1x1x1x8x4xbf16>
    %217 = vector.shape_cast %216 : vector<1x1x1x8x4xbf16> to vector<8x4xbf16>
    %c8_317 = arith.constant 8 : index
    %c0_318 = arith.constant 0 : index
    %c0_319 = arith.constant 0 : index
    %218 = vector.load %arg2[%c8_317, %c0_318, %c0_319] : memref<9x4x128xbf16, #tpu.memory_space<vmem>>, vector<1x4x128xbf16>
    %219 = vector.shape_cast %218 : vector<1x4x128xbf16> to vector<4x128xbf16>
    %cst_320 = arith.constant dense<0.000000e+00> : vector<8x128xf32>
    %220 = tpu.matmul %217, %219, %cst_320 {dimension_numbers = #tpu.dot_dimension_numbers<[1], [0], [0], [1], [0, 0, 1, 1], [], []>} : vector<8x4xbf16>, vector<4x128xbf16>, vector<8x128xf32> -> vector<8x128xf32>
    %221 = arith.addf %215, %220 : vector<8x128xf32>
    %222 = vector.broadcast %0 : vector<1x128xf32> to vector<8x128xf32>
    %223 = arith.addf %221, %222 : vector<8x128xf32>
    %c24 = arith.constant 24 : index
    %c0_321 = arith.constant 0 : index
    %224 = vector.load %arg7[%c24, %c0_321] : memref<64x128xf32, #tpu.memory_space<vmem>>, vector<8x128xf32>
    tpu.vector_store %arg7[%c24, %c0_321], %223 {strides = array<i32>} : memref<64x128xf32, #tpu.memory_space<vmem>>, vector<8x128xf32>,
    %c0_322 = arith.constant 0 : index
    %c0_323 = arith.constant 0 : index
    %c4_324 = arith.constant 4 : index
    %c0_325 = arith.constant 0 : index
    %c0_326 = arith.constant 0 : index
    %225 = vector.load %arg1[%c0_322, %c0_323, %c4_324, %c0_325, %c0_326] : memref<1x4x9x9x4xbf16, #tpu.memory_space<vmem>>, vector<1x1x1x8x4xbf16>
    %226 = vector.shape_cast %225 : vector<1x1x1x8x4xbf16> to vector<8x4xbf16>
    %c0_327 = arith.constant 0 : index
    %c0_328 = arith.constant 0 : index
    %c0_329 = arith.constant 0 : index
    %227 = vector.load %arg2[%c0_327, %c0_328, %c0_329] : memref<9x4x128xbf16, #tpu.memory_space<vmem>>, vector<1x4x128xbf16>
    %228 = vector.shape_cast %227 : vector<1x4x128xbf16> to vector<4x128xbf16>
    %cst_330 = arith.constant dense<0.000000e+00> : vector<8x128xf32>
    %229 = tpu.matmul %226, %228, %cst_330 {dimension_numbers = #tpu.dot_dimension_numbers<[1], [0], [0], [1], [0, 0, 1, 1], [], []>} : vector<8x4xbf16>, vector<4x128xbf16>, vector<8x128xf32> -> vector<8x128xf32>
    %c0_331 = arith.constant 0 : index
    %c1_332 = arith.constant 1 : index
    %c4_333 = arith.constant 4 : index
    %c0_334 = arith.constant 0 : index
    %c0_335 = arith.constant 0 : index
    %230 = vector.load %arg1[%c0_331, %c1_332, %c4_333, %c0_334, %c0_335] : memref<1x4x9x9x4xbf16, #tpu.memory_space<vmem>>, vector<1x1x1x8x4xbf16>
    %231 = vector.shape_cast %230 : vector<1x1x1x8x4xbf16> to vector<8x4xbf16>
    %c1_336 = arith.constant 1 : index
    %c0_337 = arith.constant 0 : index
    %c0_338 = arith.constant 0 : index
    %232 = vector.load %arg2[%c1_336, %c0_337, %c0_338] : memref<9x4x128xbf16, #tpu.memory_space<vmem>>, vector<1x4x128xbf16>
    %233 = vector.shape_cast %232 : vector<1x4x128xbf16> to vector<4x128xbf16>
    %cst_339 = arith.constant dense<0.000000e+00> : vector<8x128xf32>
    %234 = tpu.matmul %231, %233, %cst_339 {dimension_numbers = #tpu.dot_dimension_numbers<[1], [0], [0], [1], [0, 0, 1, 1], [], []>} : vector<8x4xbf16>, vector<4x128xbf16>, vector<8x128xf32> -> vector<8x128xf32>
    %235 = arith.addf %229, %234 : vector<8x128xf32>
    %c0_340 = arith.constant 0 : index
    %c0_341 = arith.constant 0 : index
    %c4_342 = arith.constant 4 : index
    %c1_343 = arith.constant 1 : index
    %c0_344 = arith.constant 0 : index
    %236 = vector.load %arg1[%c0_340, %c0_341, %c4_342, %c1_343, %c0_344] : memref<1x4x9x9x4xbf16, #tpu.memory_space<vmem>>, vector<1x1x1x8x4xbf16>
    %237 = vector.shape_cast %236 : vector<1x1x1x8x4xbf16> to vector<8x4xbf16>
    %c2_345 = arith.constant 2 : index
    %c0_346 = arith.constant 0 : index
    %c0_347 = arith.constant 0 : index
    %238 = vector.load %arg2[%c2_345, %c0_346, %c0_347] : memref<9x4x128xbf16, #tpu.memory_space<vmem>>, vector<1x4x128xbf16>
    %239 = vector.shape_cast %238 : vector<1x4x128xbf16> to vector<4x128xbf16>
    %cst_348 = arith.constant dense<0.000000e+00> : vector<8x128xf32>
    %240 = tpu.matmul %237, %239, %cst_348 {dimension_numbers = #tpu.dot_dimension_numbers<[1], [0], [0], [1], [0, 0, 1, 1], [], []>} : vector<8x4xbf16>, vector<4x128xbf16>, vector<8x128xf32> -> vector<8x128xf32>
    %241 = arith.addf %235, %240 : vector<8x128xf32>
    %c0_349 = arith.constant 0 : index
    %c2_350 = arith.constant 2 : index
    %c4_351 = arith.constant 4 : index
    %c0_352 = arith.constant 0 : index
    %c0_353 = arith.constant 0 : index
    %242 = vector.load %arg1[%c0_349, %c2_350, %c4_351, %c0_352, %c0_353] : memref<1x4x9x9x4xbf16, #tpu.memory_space<vmem>>, vector<1x1x1x8x4xbf16>
    %243 = vector.shape_cast %242 : vector<1x1x1x8x4xbf16> to vector<8x4xbf16>
    %c3_354 = arith.constant 3 : index
    %c0_355 = arith.constant 0 : index
    %c0_356 = arith.constant 0 : index
    %244 = vector.load %arg2[%c3_354, %c0_355, %c0_356] : memref<9x4x128xbf16, #tpu.memory_space<vmem>>, vector<1x4x128xbf16>
    %245 = vector.shape_cast %244 : vector<1x4x128xbf16> to vector<4x128xbf16>
    %cst_357 = arith.constant dense<0.000000e+00> : vector<8x128xf32>
    %246 = tpu.matmul %243, %245, %cst_357 {dimension_numbers = #tpu.dot_dimension_numbers<[1], [0], [0], [1], [0, 0, 1, 1], [], []>} : vector<8x4xbf16>, vector<4x128xbf16>, vector<8x128xf32> -> vector<8x128xf32>
    %247 = arith.addf %241, %246 : vector<8x128xf32>
    %c0_358 = arith.constant 0 : index
    %c3_359 = arith.constant 3 : index
    %c4_360 = arith.constant 4 : index
    %c0_361 = arith.constant 0 : index
    %c0_362 = arith.constant 0 : index
    %248 = vector.load %arg1[%c0_358, %c3_359, %c4_360, %c0_361, %c0_362] : memref<1x4x9x9x4xbf16, #tpu.memory_space<vmem>>, vector<1x1x1x8x4xbf16>
    %249 = vector.shape_cast %248 : vector<1x1x1x8x4xbf16> to vector<8x4xbf16>
    %c4_363 = arith.constant 4 : index
    %c0_364 = arith.constant 0 : index
    %c0_365 = arith.constant 0 : index
    %250 = vector.load %arg2[%c4_363, %c0_364, %c0_365] : memref<9x4x128xbf16, #tpu.memory_space<vmem>>, vector<1x4x128xbf16>
    %251 = vector.shape_cast %250 : vector<1x4x128xbf16> to vector<4x128xbf16>
    %cst_366 = arith.constant dense<0.000000e+00> : vector<8x128xf32>
    %252 = tpu.matmul %249, %251, %cst_366 {dimension_numbers = #tpu.dot_dimension_numbers<[1], [0], [0], [1], [0, 0, 1, 1], [], []>} : vector<8x4xbf16>, vector<4x128xbf16>, vector<8x128xf32> -> vector<8x128xf32>
    %253 = arith.addf %247, %252 : vector<8x128xf32>
    %c0_367 = arith.constant 0 : index
    %c2_368 = arith.constant 2 : index
    %c4_369 = arith.constant 4 : index
    %c1_370 = arith.constant 1 : index
    %c0_371 = arith.constant 0 : index
    %254 = vector.load %arg1[%c0_367, %c2_368, %c4_369, %c1_370, %c0_371] : memref<1x4x9x9x4xbf16, #tpu.memory_space<vmem>>, vector<1x1x1x8x4xbf16>
    %255 = vector.shape_cast %254 : vector<1x1x1x8x4xbf16> to vector<8x4xbf16>
    %c5_372 = arith.constant 5 : index
    %c0_373 = arith.constant 0 : index
    %c0_374 = arith.constant 0 : index
    %256 = vector.load %arg2[%c5_372, %c0_373, %c0_374] : memref<9x4x128xbf16, #tpu.memory_space<vmem>>, vector<1x4x128xbf16>
    %257 = vector.shape_cast %256 : vector<1x4x128xbf16> to vector<4x128xbf16>
    %cst_375 = arith.constant dense<0.000000e+00> : vector<8x128xf32>
    %258 = tpu.matmul %255, %257, %cst_375 {dimension_numbers = #tpu.dot_dimension_numbers<[1], [0], [0], [1], [0, 0, 1, 1], [], []>} : vector<8x4xbf16>, vector<4x128xbf16>, vector<8x128xf32> -> vector<8x128xf32>
    %259 = arith.addf %253, %258 : vector<8x128xf32>
    %c0_376 = arith.constant 0 : index
    %c0_377 = arith.constant 0 : index
    %c5_378 = arith.constant 5 : index
    %c0_379 = arith.constant 0 : index
    %c0_380 = arith.constant 0 : index
    %260 = vector.load %arg1[%c0_376, %c0_377, %c5_378, %c0_379, %c0_380] : memref<1x4x9x9x4xbf16, #tpu.memory_space<vmem>>, vector<1x1x1x8x4xbf16>
    %261 = vector.shape_cast %260 : vector<1x1x1x8x4xbf16> to vector<8x4xbf16>
    %c6_381 = arith.constant 6 : index
    %c0_382 = arith.constant 0 : index
    %c0_383 = arith.constant 0 : index
    %262 = vector.load %arg2[%c6_381, %c0_382, %c0_383] : memref<9x4x128xbf16, #tpu.memory_space<vmem>>, vector<1x4x128xbf16>
    %263 = vector.shape_cast %262 : vector<1x4x128xbf16> to vector<4x128xbf16>
    %cst_384 = arith.constant dense<0.000000e+00> : vector<8x128xf32>
    %264 = tpu.matmul %261, %263, %cst_384 {dimension_numbers = #tpu.dot_dimension_numbers<[1], [0], [0], [1], [0, 0, 1, 1], [], []>} : vector<8x4xbf16>, vector<4x128xbf16>, vector<8x128xf32> -> vector<8x128xf32>
    %265 = arith.addf %259, %264 : vector<8x128xf32>
    %c0_385 = arith.constant 0 : index
    %c1_386 = arith.constant 1 : index
    %c5_387 = arith.constant 5 : index
    %c0_388 = arith.constant 0 : index
    %c0_389 = arith.constant 0 : index
    %266 = vector.load %arg1[%c0_385, %c1_386, %c5_387, %c0_388, %c0_389] : memref<1x4x9x9x4xbf16, #tpu.memory_space<vmem>>, vector<1x1x1x8x4xbf16>
    %267 = vector.shape_cast %266 : vector<1x1x1x8x4xbf16> to vector<8x4xbf16>
    %c7_390 = arith.constant 7 : index
    %c0_391 = arith.constant 0 : index
    %c0_392 = arith.constant 0 : index
    %268 = vector.load %arg2[%c7_390, %c0_391, %c0_392] : memref<9x4x128xbf16, #tpu.memory_space<vmem>>, vector<1x4x128xbf16>
    %269 = vector.shape_cast %268 : vector<1x4x128xbf16> to vector<4x128xbf16>
    %cst_393 = arith.constant dense<0.000000e+00> : vector<8x128xf32>
    %270 = tpu.matmul %267, %269, %cst_393 {dimension_numbers = #tpu.dot_dimension_numbers<[1], [0], [0], [1], [0, 0, 1, 1], [], []>} : vector<8x4xbf16>, vector<4x128xbf16>, vector<8x128xf32> -> vector<8x128xf32>
    %271 = arith.addf %265, %270 : vector<8x128xf32>
    %c0_394 = arith.constant 0 : index
    %c0_395 = arith.constant 0 : index
    %c5_396 = arith.constant 5 : index
    %c1_397 = arith.constant 1 : index
    %c0_398 = arith.constant 0 : index
    %272 = vector.load %arg1[%c0_394, %c0_395, %c5_396, %c1_397, %c0_398] : memref<1x4x9x9x4xbf16, #tpu.memory_space<vmem>>, vector<1x1x1x8x4xbf16>
    %273 = vector.shape_cast %272 : vector<1x1x1x8x4xbf16> to vector<8x4xbf16>
    %c8_399 = arith.constant 8 : index
    %c0_400 = arith.constant 0 : index
    %c0_401 = arith.constant 0 : index
    %274 = vector.load %arg2[%c8_399, %c0_400, %c0_401] : memref<9x4x128xbf16, #tpu.memory_space<vmem>>, vector<1x4x128xbf16>
    %275 = vector.shape_cast %274 : vector<1x4x128xbf16> to vector<4x128xbf16>
    %cst_402 = arith.constant dense<0.000000e+00> : vector<8x128xf32>
    %276 = tpu.matmul %273, %275, %cst_402 {dimension_numbers = #tpu.dot_dimension_numbers<[1], [0], [0], [1], [0, 0, 1, 1], [], []>} : vector<8x4xbf16>, vector<4x128xbf16>, vector<8x128xf32> -> vector<8x128xf32>
    %277 = arith.addf %271, %276 : vector<8x128xf32>
    %278 = vector.broadcast %0 : vector<1x128xf32> to vector<8x128xf32>
    %279 = arith.addf %277, %278 : vector<8x128xf32>
    %c32 = arith.constant 32 : index
    %c0_403 = arith.constant 0 : index
    %280 = vector.load %arg7[%c32, %c0_403] : memref<64x128xf32, #tpu.memory_space<vmem>>, vector<8x128xf32>
    tpu.vector_store %arg7[%c32, %c0_403], %279 {strides = array<i32>} : memref<64x128xf32, #tpu.memory_space<vmem>>, vector<8x128xf32>,
    %c0_404 = arith.constant 0 : index
    %c0_405 = arith.constant 0 : index
    %c5_406 = arith.constant 5 : index
    %c0_407 = arith.constant 0 : index
    %c0_408 = arith.constant 0 : index
    %281 = vector.load %arg1[%c0_404, %c0_405, %c5_406, %c0_407, %c0_408] : memref<1x4x9x9x4xbf16, #tpu.memory_space<vmem>>, vector<1x1x1x8x4xbf16>
    %282 = vector.shape_cast %281 : vector<1x1x1x8x4xbf16> to vector<8x4xbf16>
    %c0_409 = arith.constant 0 : index
    %c0_410 = arith.constant 0 : index
    %c0_411 = arith.constant 0 : index
    %283 = vector.load %arg2[%c0_409, %c0_410, %c0_411] : memref<9x4x128xbf16, #tpu.memory_space<vmem>>, vector<1x4x128xbf16>
    %284 = vector.shape_cast %283 : vector<1x4x128xbf16> to vector<4x128xbf16>
    %cst_412 = arith.constant dense<0.000000e+00> : vector<8x128xf32>
    %285 = tpu.matmul %282, %284, %cst_412 {dimension_numbers = #tpu.dot_dimension_numbers<[1], [0], [0], [1], [0, 0, 1, 1], [], []>} : vector<8x4xbf16>, vector<4x128xbf16>, vector<8x128xf32> -> vector<8x128xf32>
    %c0_413 = arith.constant 0 : index
    %c1_414 = arith.constant 1 : index
    %c5_415 = arith.constant 5 : index
    %c0_416 = arith.constant 0 : index
    %c0_417 = arith.constant 0 : index
    %286 = vector.load %arg1[%c0_413, %c1_414, %c5_415, %c0_416, %c0_417] : memref<1x4x9x9x4xbf16, #tpu.memory_space<vmem>>, vector<1x1x1x8x4xbf16>
    %287 = vector.shape_cast %286 : vector<1x1x1x8x4xbf16> to vector<8x4xbf16>
    %c1_418 = arith.constant 1 : index
    %c0_419 = arith.constant 0 : index
    %c0_420 = arith.constant 0 : index
    %288 = vector.load %arg2[%c1_418, %c0_419, %c0_420] : memref<9x4x128xbf16, #tpu.memory_space<vmem>>, vector<1x4x128xbf16>
    %289 = vector.shape_cast %288 : vector<1x4x128xbf16> to vector<4x128xbf16>
    %cst_421 = arith.constant dense<0.000000e+00> : vector<8x128xf32>
    %290 = tpu.matmul %287, %289, %cst_421 {dimension_numbers = #tpu.dot_dimension_numbers<[1], [0], [0], [1], [0, 0, 1, 1], [], []>} : vector<8x4xbf16>, vector<4x128xbf16>, vector<8x128xf32> -> vector<8x128xf32>
    %291 = arith.addf %285, %290 : vector<8x128xf32>
    %c0_422 = arith.constant 0 : index
    %c0_423 = arith.constant 0 : index
    %c5_424 = arith.constant 5 : index
    %c1_425 = arith.constant 1 : index
    %c0_426 = arith.constant 0 : index
    %292 = vector.load %arg1[%c0_422, %c0_423, %c5_424, %c1_425, %c0_426] : memref<1x4x9x9x4xbf16, #tpu.memory_space<vmem>>, vector<1x1x1x8x4xbf16>
    %293 = vector.shape_cast %292 : vector<1x1x1x8x4xbf16> to vector<8x4xbf16>
    %c2_427 = arith.constant 2 : index
    %c0_428 = arith.constant 0 : index
    %c0_429 = arith.constant 0 : index
    %294 = vector.load %arg2[%c2_427, %c0_428, %c0_429] : memref<9x4x128xbf16, #tpu.memory_space<vmem>>, vector<1x4x128xbf16>
    %295 = vector.shape_cast %294 : vector<1x4x128xbf16> to vector<4x128xbf16>
    %cst_430 = arith.constant dense<0.000000e+00> : vector<8x128xf32>
    %296 = tpu.matmul %293, %295, %cst_430 {dimension_numbers = #tpu.dot_dimension_numbers<[1], [0], [0], [1], [0, 0, 1, 1], [], []>} : vector<8x4xbf16>, vector<4x128xbf16>, vector<8x128xf32> -> vector<8x128xf32>
    %297 = arith.addf %291, %296 : vector<8x128xf32>
    %c0_431 = arith.constant 0 : index
    %c2_432 = arith.constant 2 : index
    %c5_433 = arith.constant 5 : index
    %c0_434 = arith.constant 0 : index
    %c0_435 = arith.constant 0 : index
    %298 = vector.load %arg1[%c0_431, %c2_432, %c5_433, %c0_434, %c0_435] : memref<1x4x9x9x4xbf16, #tpu.memory_space<vmem>>, vector<1x1x1x8x4xbf16>
    %299 = vector.shape_cast %298 : vector<1x1x1x8x4xbf16> to vector<8x4xbf16>
    %c3_436 = arith.constant 3 : index
    %c0_437 = arith.constant 0 : index
    %c0_438 = arith.constant 0 : index
    %300 = vector.load %arg2[%c3_436, %c0_437, %c0_438] : memref<9x4x128xbf16, #tpu.memory_space<vmem>>, vector<1x4x128xbf16>
    %301 = vector.shape_cast %300 : vector<1x4x128xbf16> to vector<4x128xbf16>
    %cst_439 = arith.constant dense<0.000000e+00> : vector<8x128xf32>
    %302 = tpu.matmul %299, %301, %cst_439 {dimension_numbers = #tpu.dot_dimension_numbers<[1], [0], [0], [1], [0, 0, 1, 1], [], []>} : vector<8x4xbf16>, vector<4x128xbf16>, vector<8x128xf32> -> vector<8x128xf32>
    %303 = arith.addf %297, %302 : vector<8x128xf32>
    %c0_440 = arith.constant 0 : index
    %c3_441 = arith.constant 3 : index
    %c5_442 = arith.constant 5 : index
    %c0_443 = arith.constant 0 : index
    %c0_444 = arith.constant 0 : index
    %304 = vector.load %arg1[%c0_440, %c3_441, %c5_442, %c0_443, %c0_444] : memref<1x4x9x9x4xbf16, #tpu.memory_space<vmem>>, vector<1x1x1x8x4xbf16>
    %305 = vector.shape_cast %304 : vector<1x1x1x8x4xbf16> to vector<8x4xbf16>
    %c4_445 = arith.constant 4 : index
    %c0_446 = arith.constant 0 : index
    %c0_447 = arith.constant 0 : index
    %306 = vector.load %arg2[%c4_445, %c0_446, %c0_447] : memref<9x4x128xbf16, #tpu.memory_space<vmem>>, vector<1x4x128xbf16>
    %307 = vector.shape_cast %306 : vector<1x4x128xbf16> to vector<4x128xbf16>
    %cst_448 = arith.constant dense<0.000000e+00> : vector<8x128xf32>
    %308 = tpu.matmul %305, %307, %cst_448 {dimension_numbers = #tpu.dot_dimension_numbers<[1], [0], [0], [1], [0, 0, 1, 1], [], []>} : vector<8x4xbf16>, vector<4x128xbf16>, vector<8x128xf32> -> vector<8x128xf32>
    %309 = arith.addf %303, %308 : vector<8x128xf32>
    %c0_449 = arith.constant 0 : index
    %c2_450 = arith.constant 2 : index
    %c5_451 = arith.constant 5 : index
    %c1_452 = arith.constant 1 : index
    %c0_453 = arith.constant 0 : index
    %310 = vector.load %arg1[%c0_449, %c2_450, %c5_451, %c1_452, %c0_453] : memref<1x4x9x9x4xbf16, #tpu.memory_space<vmem>>, vector<1x1x1x8x4xbf16>
    %311 = vector.shape_cast %310 : vector<1x1x1x8x4xbf16> to vector<8x4xbf16>
    %c5_454 = arith.constant 5 : index
    %c0_455 = arith.constant 0 : index
    %c0_456 = arith.constant 0 : index
    %312 = vector.load %arg2[%c5_454, %c0_455, %c0_456] : memref<9x4x128xbf16, #tpu.memory_space<vmem>>, vector<1x4x128xbf16>
    %313 = vector.shape_cast %312 : vector<1x4x128xbf16> to vector<4x128xbf16>
    %cst_457 = arith.constant dense<0.000000e+00> : vector<8x128xf32>
    %314 = tpu.matmul %311, %313, %cst_457 {dimension_numbers = #tpu.dot_dimension_numbers<[1], [0], [0], [1], [0, 0, 1, 1], [], []>} : vector<8x4xbf16>, vector<4x128xbf16>, vector<8x128xf32> -> vector<8x128xf32>
    %315 = arith.addf %309, %314 : vector<8x128xf32>
    %c0_458 = arith.constant 0 : index
    %c0_459 = arith.constant 0 : index
    %c6_460 = arith.constant 6 : index
    %c0_461 = arith.constant 0 : index
    %c0_462 = arith.constant 0 : index
    %316 = vector.load %arg1[%c0_458, %c0_459, %c6_460, %c0_461, %c0_462] : memref<1x4x9x9x4xbf16, #tpu.memory_space<vmem>>, vector<1x1x1x8x4xbf16>
    %317 = vector.shape_cast %316 : vector<1x1x1x8x4xbf16> to vector<8x4xbf16>
    %c6_463 = arith.constant 6 : index
    %c0_464 = arith.constant 0 : index
    %c0_465 = arith.constant 0 : index
    %318 = vector.load %arg2[%c6_463, %c0_464, %c0_465] : memref<9x4x128xbf16, #tpu.memory_space<vmem>>, vector<1x4x128xbf16>
    %319 = vector.shape_cast %318 : vector<1x4x128xbf16> to vector<4x128xbf16>
    %cst_466 = arith.constant dense<0.000000e+00> : vector<8x128xf32>
    %320 = tpu.matmul %317, %319, %cst_466 {dimension_numbers = #tpu.dot_dimension_numbers<[1], [0], [0], [1], [0, 0, 1, 1], [], []>} : vector<8x4xbf16>, vector<4x128xbf16>, vector<8x128xf32> -> vector<8x128xf32>
    %321 = arith.addf %315, %320 : vector<8x128xf32>
    %c0_467 = arith.constant 0 : index
    %c1_468 = arith.constant 1 : index
    %c6_469 = arith.constant 6 : index
    %c0_470 = arith.constant 0 : index
    %c0_471 = arith.constant 0 : index
    %322 = vector.load %arg1[%c0_467, %c1_468, %c6_469, %c0_470, %c0_471] : memref<1x4x9x9x4xbf16, #tpu.memory_space<vmem>>, vector<1x1x1x8x4xbf16>
    %323 = vector.shape_cast %322 : vector<1x1x1x8x4xbf16> to vector<8x4xbf16>
    %c7_472 = arith.constant 7 : index
    %c0_473 = arith.constant 0 : index
    %c0_474 = arith.constant 0 : index
    %324 = vector.load %arg2[%c7_472, %c0_473, %c0_474] : memref<9x4x128xbf16, #tpu.memory_space<vmem>>, vector<1x4x128xbf16>
    %325 = vector.shape_cast %324 : vector<1x4x128xbf16> to vector<4x128xbf16>
    %cst_475 = arith.constant dense<0.000000e+00> : vector<8x128xf32>
    %326 = tpu.matmul %323, %325, %cst_475 {dimension_numbers = #tpu.dot_dimension_numbers<[1], [0], [0], [1], [0, 0, 1, 1], [], []>} : vector<8x4xbf16>, vector<4x128xbf16>, vector<8x128xf32> -> vector<8x128xf32>
    %327 = arith.addf %321, %326 : vector<8x128xf32>
    %c0_476 = arith.constant 0 : index
    %c0_477 = arith.constant 0 : index
    %c6_478 = arith.constant 6 : index
    %c1_479 = arith.constant 1 : index
    %c0_480 = arith.constant 0 : index
    %328 = vector.load %arg1[%c0_476, %c0_477, %c6_478, %c1_479, %c0_480] : memref<1x4x9x9x4xbf16, #tpu.memory_space<vmem>>, vector<1x1x1x8x4xbf16>
    %329 = vector.shape_cast %328 : vector<1x1x1x8x4xbf16> to vector<8x4xbf16>
    %c8_481 = arith.constant 8 : index
    %c0_482 = arith.constant 0 : index
    %c0_483 = arith.constant 0 : index
    %330 = vector.load %arg2[%c8_481, %c0_482, %c0_483] : memref<9x4x128xbf16, #tpu.memory_space<vmem>>, vector<1x4x128xbf16>
    %331 = vector.shape_cast %330 : vector<1x4x128xbf16> to vector<4x128xbf16>
    %cst_484 = arith.constant dense<0.000000e+00> : vector<8x128xf32>
    %332 = tpu.matmul %329, %331, %cst_484 {dimension_numbers = #tpu.dot_dimension_numbers<[1], [0], [0], [1], [0, 0, 1, 1], [], []>} : vector<8x4xbf16>, vector<4x128xbf16>, vector<8x128xf32> -> vector<8x128xf32>
    %333 = arith.addf %327, %332 : vector<8x128xf32>
    %334 = vector.broadcast %0 : vector<1x128xf32> to vector<8x128xf32>
    %335 = arith.addf %333, %334 : vector<8x128xf32>
    %c40 = arith.constant 40 : index
    %c0_485 = arith.constant 0 : index
    %336 = vector.load %arg7[%c40, %c0_485] : memref<64x128xf32, #tpu.memory_space<vmem>>, vector<8x128xf32>
    tpu.vector_store %arg7[%c40, %c0_485], %335 {strides = array<i32>} : memref<64x128xf32, #tpu.memory_space<vmem>>, vector<8x128xf32>,
    %c0_486 = arith.constant 0 : index
    %c0_487 = arith.constant 0 : index
    %c6_488 = arith.constant 6 : index
    %c0_489 = arith.constant 0 : index
    %c0_490 = arith.constant 0 : index
    %337 = vector.load %arg1[%c0_486, %c0_487, %c6_488, %c0_489, %c0_490] : memref<1x4x9x9x4xbf16, #tpu.memory_space<vmem>>, vector<1x1x1x8x4xbf16>
    %338 = vector.shape_cast %337 : vector<1x1x1x8x4xbf16> to vector<8x4xbf16>
    %c0_491 = arith.constant 0 : index
    %c0_492 = arith.constant 0 : index
    %c0_493 = arith.constant 0 : index
    %339 = vector.load %arg2[%c0_491, %c0_492, %c0_493] : memref<9x4x128xbf16, #tpu.memory_space<vmem>>, vector<1x4x128xbf16>
    %340 = vector.shape_cast %339 : vector<1x4x128xbf16> to vector<4x128xbf16>
    %cst_494 = arith.constant dense<0.000000e+00> : vector<8x128xf32>
    %341 = tpu.matmul %338, %340, %cst_494 {dimension_numbers = #tpu.dot_dimension_numbers<[1], [0], [0], [1], [0, 0, 1, 1], [], []>} : vector<8x4xbf16>, vector<4x128xbf16>, vector<8x128xf32> -> vector<8x128xf32>
    %c0_495 = arith.constant 0 : index
    %c1_496 = arith.constant 1 : index
    %c6_497 = arith.constant 6 : index
    %c0_498 = arith.constant 0 : index
    %c0_499 = arith.constant 0 : index
    %342 = vector.load %arg1[%c0_495, %c1_496, %c6_497, %c0_498, %c0_499] : memref<1x4x9x9x4xbf16, #tpu.memory_space<vmem>>, vector<1x1x1x8x4xbf16>
    %343 = vector.shape_cast %342 : vector<1x1x1x8x4xbf16> to vector<8x4xbf16>
    %c1_500 = arith.constant 1 : index
    %c0_501 = arith.constant 0 : index
    %c0_502 = arith.constant 0 : index
    %344 = vector.load %arg2[%c1_500, %c0_501, %c0_502] : memref<9x4x128xbf16, #tpu.memory_space<vmem>>, vector<1x4x128xbf16>
    %345 = vector.shape_cast %344 : vector<1x4x128xbf16> to vector<4x128xbf16>
    %cst_503 = arith.constant dense<0.000000e+00> : vector<8x128xf32>
    %346 = tpu.matmul %343, %345, %cst_503 {dimension_numbers = #tpu.dot_dimension_numbers<[1], [0], [0], [1], [0, 0, 1, 1], [], []>} : vector<8x4xbf16>, vector<4x128xbf16>, vector<8x128xf32> -> vector<8x128xf32>
    %347 = arith.addf %341, %346 : vector<8x128xf32>
    %c0_504 = arith.constant 0 : index
    %c0_505 = arith.constant 0 : index
    %c6_506 = arith.constant 6 : index
    %c1_507 = arith.constant 1 : index
    %c0_508 = arith.constant 0 : index
    %348 = vector.load %arg1[%c0_504, %c0_505, %c6_506, %c1_507, %c0_508] : memref<1x4x9x9x4xbf16, #tpu.memory_space<vmem>>, vector<1x1x1x8x4xbf16>
    %349 = vector.shape_cast %348 : vector<1x1x1x8x4xbf16> to vector<8x4xbf16>
    %c2_509 = arith.constant 2 : index
    %c0_510 = arith.constant 0 : index
    %c0_511 = arith.constant 0 : index
    %350 = vector.load %arg2[%c2_509, %c0_510, %c0_511] : memref<9x4x128xbf16, #tpu.memory_space<vmem>>, vector<1x4x128xbf16>
    %351 = vector.shape_cast %350 : vector<1x4x128xbf16> to vector<4x128xbf16>
    %cst_512 = arith.constant dense<0.000000e+00> : vector<8x128xf32>
    %352 = tpu.matmul %349, %351, %cst_512 {dimension_numbers = #tpu.dot_dimension_numbers<[1], [0], [0], [1], [0, 0, 1, 1], [], []>} : vector<8x4xbf16>, vector<4x128xbf16>, vector<8x128xf32> -> vector<8x128xf32>
    %353 = arith.addf %347, %352 : vector<8x128xf32>
    %c0_513 = arith.constant 0 : index
    %c2_514 = arith.constant 2 : index
    %c6_515 = arith.constant 6 : index
    %c0_516 = arith.constant 0 : index
    %c0_517 = arith.constant 0 : index
    %354 = vector.load %arg1[%c0_513, %c2_514, %c6_515, %c0_516, %c0_517] : memref<1x4x9x9x4xbf16, #tpu.memory_space<vmem>>, vector<1x1x1x8x4xbf16>
    %355 = vector.shape_cast %354 : vector<1x1x1x8x4xbf16> to vector<8x4xbf16>
    %c3_518 = arith.constant 3 : index
    %c0_519 = arith.constant 0 : index
    %c0_520 = arith.constant 0 : index
    %356 = vector.load %arg2[%c3_518, %c0_519, %c0_520] : memref<9x4x128xbf16, #tpu.memory_space<vmem>>, vector<1x4x128xbf16>
    %357 = vector.shape_cast %356 : vector<1x4x128xbf16> to vector<4x128xbf16>
    %cst_521 = arith.constant dense<0.000000e+00> : vector<8x128xf32>
    %358 = tpu.matmul %355, %357, %cst_521 {dimension_numbers = #tpu.dot_dimension_numbers<[1], [0], [0], [1], [0, 0, 1, 1], [], []>} : vector<8x4xbf16>, vector<4x128xbf16>, vector<8x128xf32> -> vector<8x128xf32>
    %359 = arith.addf %353, %358 : vector<8x128xf32>
    %c0_522 = arith.constant 0 : index
    %c3_523 = arith.constant 3 : index
    %c6_524 = arith.constant 6 : index
    %c0_525 = arith.constant 0 : index
    %c0_526 = arith.constant 0 : index
    %360 = vector.load %arg1[%c0_522, %c3_523, %c6_524, %c0_525, %c0_526] : memref<1x4x9x9x4xbf16, #tpu.memory_space<vmem>>, vector<1x1x1x8x4xbf16>
    %361 = vector.shape_cast %360 : vector<1x1x1x8x4xbf16> to vector<8x4xbf16>
    %c4_527 = arith.constant 4 : index
    %c0_528 = arith.constant 0 : index
    %c0_529 = arith.constant 0 : index
    %362 = vector.load %arg2[%c4_527, %c0_528, %c0_529] : memref<9x4x128xbf16, #tpu.memory_space<vmem>>, vector<1x4x128xbf16>
    %363 = vector.shape_cast %362 : vector<1x4x128xbf16> to vector<4x128xbf16>
    %cst_530 = arith.constant dense<0.000000e+00> : vector<8x128xf32>
    %364 = tpu.matmul %361, %363, %cst_530 {dimension_numbers = #tpu.dot_dimension_numbers<[1], [0], [0], [1], [0, 0, 1, 1], [], []>} : vector<8x4xbf16>, vector<4x128xbf16>, vector<8x128xf32> -> vector<8x128xf32>
    %365 = arith.addf %359, %364 : vector<8x128xf32>
    %c0_531 = arith.constant 0 : index
    %c2_532 = arith.constant 2 : index
    %c6_533 = arith.constant 6 : index
    %c1_534 = arith.constant 1 : index
    %c0_535 = arith.constant 0 : index
    %366 = vector.load %arg1[%c0_531, %c2_532, %c6_533, %c1_534, %c0_535] : memref<1x4x9x9x4xbf16, #tpu.memory_space<vmem>>, vector<1x1x1x8x4xbf16>
    %367 = vector.shape_cast %366 : vector<1x1x1x8x4xbf16> to vector<8x4xbf16>
    %c5_536 = arith.constant 5 : index
    %c0_537 = arith.constant 0 : index
    %c0_538 = arith.constant 0 : index
    %368 = vector.load %arg2[%c5_536, %c0_537, %c0_538] : memref<9x4x128xbf16, #tpu.memory_space<vmem>>, vector<1x4x128xbf16>
    %369 = vector.shape_cast %368 : vector<1x4x128xbf16> to vector<4x128xbf16>
    %cst_539 = arith.constant dense<0.000000e+00> : vector<8x128xf32>
    %370 = tpu.matmul %367, %369, %cst_539 {dimension_numbers = #tpu.dot_dimension_numbers<[1], [0], [0], [1], [0, 0, 1, 1], [], []>} : vector<8x4xbf16>, vector<4x128xbf16>, vector<8x128xf32> -> vector<8x128xf32>
    %371 = arith.addf %365, %370 : vector<8x128xf32>
    %c0_540 = arith.constant 0 : index
    %c0_541 = arith.constant 0 : index
    %c7_542 = arith.constant 7 : index
    %c0_543 = arith.constant 0 : index
    %c0_544 = arith.constant 0 : index
    %372 = vector.load %arg1[%c0_540, %c0_541, %c7_542, %c0_543, %c0_544] : memref<1x4x9x9x4xbf16, #tpu.memory_space<vmem>>, vector<1x1x1x8x4xbf16>
    %373 = vector.shape_cast %372 : vector<1x1x1x8x4xbf16> to vector<8x4xbf16>
    %c6_545 = arith.constant 6 : index
    %c0_546 = arith.constant 0 : index
    %c0_547 = arith.constant 0 : index
    %374 = vector.load %arg2[%c6_545, %c0_546, %c0_547] : memref<9x4x128xbf16, #tpu.memory_space<vmem>>, vector<1x4x128xbf16>
    %375 = vector.shape_cast %374 : vector<1x4x128xbf16> to vector<4x128xbf16>
    %cst_548 = arith.constant dense<0.000000e+00> : vector<8x128xf32>
    %376 = tpu.matmul %373, %375, %cst_548 {dimension_numbers = #tpu.dot_dimension_numbers<[1], [0], [0], [1], [0, 0, 1, 1], [], []>} : vector<8x4xbf16>, vector<4x128xbf16>, vector<8x128xf32> -> vector<8x128xf32>
    %377 = arith.addf %371, %376 : vector<8x128xf32>
    %c0_549 = arith.constant 0 : index
    %c1_550 = arith.constant 1 : index
    %c7_551 = arith.constant 7 : index
    %c0_552 = arith.constant 0 : index
    %c0_553 = arith.constant 0 : index
    %378 = vector.load %arg1[%c0_549, %c1_550, %c7_551, %c0_552, %c0_553] : memref<1x4x9x9x4xbf16, #tpu.memory_space<vmem>>, vector<1x1x1x8x4xbf16>
    %379 = vector.shape_cast %378 : vector<1x1x1x8x4xbf16> to vector<8x4xbf16>
    %c7_554 = arith.constant 7 : index
    %c0_555 = arith.constant 0 : index
    %c0_556 = arith.constant 0 : index
    %380 = vector.load %arg2[%c7_554, %c0_555, %c0_556] : memref<9x4x128xbf16, #tpu.memory_space<vmem>>, vector<1x4x128xbf16>
    %381 = vector.shape_cast %380 : vector<1x4x128xbf16> to vector<4x128xbf16>
    %cst_557 = arith.constant dense<0.000000e+00> : vector<8x128xf32>
    %382 = tpu.matmul %379, %381, %cst_557 {dimension_numbers = #tpu.dot_dimension_numbers<[1], [0], [0], [1], [0, 0, 1, 1], [], []>} : vector<8x4xbf16>, vector<4x128xbf16>, vector<8x128xf32> -> vector<8x128xf32>
    %383 = arith.addf %377, %382 : vector<8x128xf32>
    %c0_558 = arith.constant 0 : index
    %c0_559 = arith.constant 0 : index
    %c7_560 = arith.constant 7 : index
    %c1_561 = arith.constant 1 : index
    %c0_562 = arith.constant 0 : index
    %384 = vector.load %arg1[%c0_558, %c0_559, %c7_560, %c1_561, %c0_562] : memref<1x4x9x9x4xbf16, #tpu.memory_space<vmem>>, vector<1x1x1x8x4xbf16>
    %385 = vector.shape_cast %384 : vector<1x1x1x8x4xbf16> to vector<8x4xbf16>
    %c8_563 = arith.constant 8 : index
    %c0_564 = arith.constant 0 : index
    %c0_565 = arith.constant 0 : index
    %386 = vector.load %arg2[%c8_563, %c0_564, %c0_565] : memref<9x4x128xbf16, #tpu.memory_space<vmem>>, vector<1x4x128xbf16>
    %387 = vector.shape_cast %386 : vector<1x4x128xbf16> to vector<4x128xbf16>
    %cst_566 = arith.constant dense<0.000000e+00> : vector<8x128xf32>
    %388 = tpu.matmul %385, %387, %cst_566 {dimension_numbers = #tpu.dot_dimension_numbers<[1], [0], [0], [1], [0, 0, 1, 1], [], []>} : vector<8x4xbf16>, vector<4x128xbf16>, vector<8x128xf32> -> vector<8x128xf32>
    %389 = arith.addf %383, %388 : vector<8x128xf32>
    %390 = vector.broadcast %0 : vector<1x128xf32> to vector<8x128xf32>
    %391 = arith.addf %389, %390 : vector<8x128xf32>
    %c48 = arith.constant 48 : index
    %c0_567 = arith.constant 0 : index
    %392 = vector.load %arg7[%c48, %c0_567] : memref<64x128xf32, #tpu.memory_space<vmem>>, vector<8x128xf32>
    tpu.vector_store %arg7[%c48, %c0_567], %391 {strides = array<i32>} : memref<64x128xf32, #tpu.memory_space<vmem>>, vector<8x128xf32>,
    %c0_568 = arith.constant 0 : index
    %c0_569 = arith.constant 0 : index
    %c7_570 = arith.constant 7 : index
    %c0_571 = arith.constant 0 : index
    %c0_572 = arith.constant 0 : index
    %393 = vector.load %arg1[%c0_568, %c0_569, %c7_570, %c0_571, %c0_572] : memref<1x4x9x9x4xbf16, #tpu.memory_space<vmem>>, vector<1x1x1x8x4xbf16>
    %394 = vector.shape_cast %393 : vector<1x1x1x8x4xbf16> to vector<8x4xbf16>
    %c0_573 = arith.constant 0 : index
    %c0_574 = arith.constant 0 : index
    %c0_575 = arith.constant 0 : index
    %395 = vector.load %arg2[%c0_573, %c0_574, %c0_575] : memref<9x4x128xbf16, #tpu.memory_space<vmem>>, vector<1x4x128xbf16>
    %396 = vector.shape_cast %395 : vector<1x4x128xbf16> to vector<4x128xbf16>
    %cst_576 = arith.constant dense<0.000000e+00> : vector<8x128xf32>
    %397 = tpu.matmul %394, %396, %cst_576 {dimension_numbers = #tpu.dot_dimension_numbers<[1], [0], [0], [1], [0, 0, 1, 1], [], []>} : vector<8x4xbf16>, vector<4x128xbf16>, vector<8x128xf32> -> vector<8x128xf32>
    %c0_577 = arith.constant 0 : index
    %c1_578 = arith.constant 1 : index
    %c7_579 = arith.constant 7 : index
    %c0_580 = arith.constant 0 : index
    %c0_581 = arith.constant 0 : index
    %398 = vector.load %arg1[%c0_577, %c1_578, %c7_579, %c0_580, %c0_581] : memref<1x4x9x9x4xbf16, #tpu.memory_space<vmem>>, vector<1x1x1x8x4xbf16>
    %399 = vector.shape_cast %398 : vector<1x1x1x8x4xbf16> to vector<8x4xbf16>
    %c1_582 = arith.constant 1 : index
    %c0_583 = arith.constant 0 : index
    %c0_584 = arith.constant 0 : index
    %400 = vector.load %arg2[%c1_582, %c0_583, %c0_584] : memref<9x4x128xbf16, #tpu.memory_space<vmem>>, vector<1x4x128xbf16>
    %401 = vector.shape_cast %400 : vector<1x4x128xbf16> to vector<4x128xbf16>
    %cst_585 = arith.constant dense<0.000000e+00> : vector<8x128xf32>
    %402 = tpu.matmul %399, %401, %cst_585 {dimension_numbers = #tpu.dot_dimension_numbers<[1], [0], [0], [1], [0, 0, 1, 1], [], []>} : vector<8x4xbf16>, vector<4x128xbf16>, vector<8x128xf32> -> vector<8x128xf32>
    %403 = arith.addf %397, %402 : vector<8x128xf32>
    %c0_586 = arith.constant 0 : index
    %c0_587 = arith.constant 0 : index
    %c7_588 = arith.constant 7 : index
    %c1_589 = arith.constant 1 : index
    %c0_590 = arith.constant 0 : index
    %404 = vector.load %arg1[%c0_586, %c0_587, %c7_588, %c1_589, %c0_590] : memref<1x4x9x9x4xbf16, #tpu.memory_space<vmem>>, vector<1x1x1x8x4xbf16>
    %405 = vector.shape_cast %404 : vector<1x1x1x8x4xbf16> to vector<8x4xbf16>
    %c2_591 = arith.constant 2 : index
    %c0_592 = arith.constant 0 : index
    %c0_593 = arith.constant 0 : index
    %406 = vector.load %arg2[%c2_591, %c0_592, %c0_593] : memref<9x4x128xbf16, #tpu.memory_space<vmem>>, vector<1x4x128xbf16>
    %407 = vector.shape_cast %406 : vector<1x4x128xbf16> to vector<4x128xbf16>
    %cst_594 = arith.constant dense<0.000000e+00> : vector<8x128xf32>
    %408 = tpu.matmul %405, %407, %cst_594 {dimension_numbers = #tpu.dot_dimension_numbers<[1], [0], [0], [1], [0, 0, 1, 1], [], []>} : vector<8x4xbf16>, vector<4x128xbf16>, vector<8x128xf32> -> vector<8x128xf32>
    %409 = arith.addf %403, %408 : vector<8x128xf32>
    %c0_595 = arith.constant 0 : index
    %c2_596 = arith.constant 2 : index
    %c7_597 = arith.constant 7 : index
    %c0_598 = arith.constant 0 : index
    %c0_599 = arith.constant 0 : index
    %410 = vector.load %arg1[%c0_595, %c2_596, %c7_597, %c0_598, %c0_599] : memref<1x4x9x9x4xbf16, #tpu.memory_space<vmem>>, vector<1x1x1x8x4xbf16>
    %411 = vector.shape_cast %410 : vector<1x1x1x8x4xbf16> to vector<8x4xbf16>
    %c3_600 = arith.constant 3 : index
    %c0_601 = arith.constant 0 : index
    %c0_602 = arith.constant 0 : index
    %412 = vector.load %arg2[%c3_600, %c0_601, %c0_602] : memref<9x4x128xbf16, #tpu.memory_space<vmem>>, vector<1x4x128xbf16>
    %413 = vector.shape_cast %412 : vector<1x4x128xbf16> to vector<4x128xbf16>
    %cst_603 = arith.constant dense<0.000000e+00> : vector<8x128xf32>
    %414 = tpu.matmul %411, %413, %cst_603 {dimension_numbers = #tpu.dot_dimension_numbers<[1], [0], [0], [1], [0, 0, 1, 1], [], []>} : vector<8x4xbf16>, vector<4x128xbf16>, vector<8x128xf32> -> vector<8x128xf32>
    %415 = arith.addf %409, %414 : vector<8x128xf32>
    %c0_604 = arith.constant 0 : index
    %c3_605 = arith.constant 3 : index
    %c7_606 = arith.constant 7 : index
    %c0_607 = arith.constant 0 : index
    %c0_608 = arith.constant 0 : index
    %416 = vector.load %arg1[%c0_604, %c3_605, %c7_606, %c0_607, %c0_608] : memref<1x4x9x9x4xbf16, #tpu.memory_space<vmem>>, vector<1x1x1x8x4xbf16>
    %417 = vector.shape_cast %416 : vector<1x1x1x8x4xbf16> to vector<8x4xbf16>
    %c4_609 = arith.constant 4 : index
    %c0_610 = arith.constant 0 : index
    %c0_611 = arith.constant 0 : index
    %418 = vector.load %arg2[%c4_609, %c0_610, %c0_611] : memref<9x4x128xbf16, #tpu.memory_space<vmem>>, vector<1x4x128xbf16>
    %419 = vector.shape_cast %418 : vector<1x4x128xbf16> to vector<4x128xbf16>
    %cst_612 = arith.constant dense<0.000000e+00> : vector<8x128xf32>
    %420 = tpu.matmul %417, %419, %cst_612 {dimension_numbers = #tpu.dot_dimension_numbers<[1], [0], [0], [1], [0, 0, 1, 1], [], []>} : vector<8x4xbf16>, vector<4x128xbf16>, vector<8x128xf32> -> vector<8x128xf32>
    %421 = arith.addf %415, %420 : vector<8x128xf32>
    %c0_613 = arith.constant 0 : index
    %c2_614 = arith.constant 2 : index
    %c7_615 = arith.constant 7 : index
    %c1_616 = arith.constant 1 : index
    %c0_617 = arith.constant 0 : index
    %422 = vector.load %arg1[%c0_613, %c2_614, %c7_615, %c1_616, %c0_617] : memref<1x4x9x9x4xbf16, #tpu.memory_space<vmem>>, vector<1x1x1x8x4xbf16>
    %423 = vector.shape_cast %422 : vector<1x1x1x8x4xbf16> to vector<8x4xbf16>
    %c5_618 = arith.constant 5 : index
    %c0_619 = arith.constant 0 : index
    %c0_620 = arith.constant 0 : index
    %424 = vector.load %arg2[%c5_618, %c0_619, %c0_620] : memref<9x4x128xbf16, #tpu.memory_space<vmem>>, vector<1x4x128xbf16>
    %425 = vector.shape_cast %424 : vector<1x4x128xbf16> to vector<4x128xbf16>
    %cst_621 = arith.constant dense<0.000000e+00> : vector<8x128xf32>
    %426 = tpu.matmul %423, %425, %cst_621 {dimension_numbers = #tpu.dot_dimension_numbers<[1], [0], [0], [1], [0, 0, 1, 1], [], []>} : vector<8x4xbf16>, vector<4x128xbf16>, vector<8x128xf32> -> vector<8x128xf32>
    %427 = arith.addf %421, %426 : vector<8x128xf32>
    %c0_622 = arith.constant 0 : index
    %c0_623 = arith.constant 0 : index
    %c8_624 = arith.constant 8 : index
    %c0_625 = arith.constant 0 : index
    %c0_626 = arith.constant 0 : index
    %428 = vector.load %arg1[%c0_622, %c0_623, %c8_624, %c0_625, %c0_626] : memref<1x4x9x9x4xbf16, #tpu.memory_space<vmem>>, vector<1x1x1x8x4xbf16>
    %429 = vector.shape_cast %428 : vector<1x1x1x8x4xbf16> to vector<8x4xbf16>
    %c6_627 = arith.constant 6 : index
    %c0_628 = arith.constant 0 : index
    %c0_629 = arith.constant 0 : index
    %430 = vector.load %arg2[%c6_627, %c0_628, %c0_629] : memref<9x4x128xbf16, #tpu.memory_space<vmem>>, vector<1x4x128xbf16>
    %431 = vector.shape_cast %430 : vector<1x4x128xbf16> to vector<4x128xbf16>
    %cst_630 = arith.constant dense<0.000000e+00> : vector<8x128xf32>
    %432 = tpu.matmul %429, %431, %cst_630 {dimension_numbers = #tpu.dot_dimension_numbers<[1], [0], [0], [1], [0, 0, 1, 1], [], []>} : vector<8x4xbf16>, vector<4x128xbf16>, vector<8x128xf32> -> vector<8x128xf32>
    %433 = arith.addf %427, %432 : vector<8x128xf32>
    %c0_631 = arith.constant 0 : index
    %c1_632 = arith.constant 1 : index
    %c8_633 = arith.constant 8 : index
    %c0_634 = arith.constant 0 : index
    %c0_635 = arith.constant 0 : index
    %434 = vector.load %arg1[%c0_631, %c1_632, %c8_633, %c0_634, %c0_635] : memref<1x4x9x9x4xbf16, #tpu.memory_space<vmem>>, vector<1x1x1x8x4xbf16>
    %435 = vector.shape_cast %434 : vector<1x1x1x8x4xbf16> to vector<8x4xbf16>
    %c7_636 = arith.constant 7 : index
    %c0_637 = arith.constant 0 : index
    %c0_638 = arith.constant 0 : index
    %436 = vector.load %arg2[%c7_636, %c0_637, %c0_638] : memref<9x4x128xbf16, #tpu.memory_space<vmem>>, vector<1x4x128xbf16>
    %437 = vector.shape_cast %436 : vector<1x4x128xbf16> to vector<4x128xbf16>
    %cst_639 = arith.constant dense<0.000000e+00> : vector<8x128xf32>
    %438 = tpu.matmul %435, %437, %cst_639 {dimension_numbers = #tpu.dot_dimension_numbers<[1], [0], [0], [1], [0, 0, 1, 1], [], []>} : vector<8x4xbf16>, vector<4x128xbf16>, vector<8x128xf32> -> vector<8x128xf32>
    %439 = arith.addf %433, %438 : vector<8x128xf32>
    %c0_640 = arith.constant 0 : index
    %c0_641 = arith.constant 0 : index
    %c8_642 = arith.constant 8 : index
    %c1_643 = arith.constant 1 : index
    %c0_644 = arith.constant 0 : index
    %440 = vector.load %arg1[%c0_640, %c0_641, %c8_642, %c1_643, %c0_644] : memref<1x4x9x9x4xbf16, #tpu.memory_space<vmem>>, vector<1x1x1x8x4xbf16>
    %441 = vector.shape_cast %440 : vector<1x1x1x8x4xbf16> to vector<8x4xbf16>
    %c8_645 = arith.constant 8 : index
    %c0_646 = arith.constant 0 : index
    %c0_647 = arith.constant 0 : index
    %442 = vector.load %arg2[%c8_645, %c0_646, %c0_647] : memref<9x4x128xbf16, #tpu.memory_space<vmem>>, vector<1x4x128xbf16>
    %443 = vector.shape_cast %442 : vector<1x4x128xbf16> to vector<4x128xbf16>
    %cst_648 = arith.constant dense<0.000000e+00> : vector<8x128xf32>
    %444 = tpu.matmul %441, %443, %cst_648 {dimension_numbers = #tpu.dot_dimension_numbers<[1], [0], [0], [1], [0, 0, 1, 1], [], []>} : vector<8x4xbf16>, vector<4x128xbf16>, vector<8x128xf32> -> vector<8x128xf32>
    %445 = arith.addf %439, %444 : vector<8x128xf32>
    %446 = vector.broadcast %0 : vector<1x128xf32> to vector<8x128xf32>
    %447 = arith.addf %445, %446 : vector<8x128xf32>
    %c56 = arith.constant 56 : index
    %c0_649 = arith.constant 0 : index
    %448 = vector.load %arg7[%c56, %c0_649] : memref<64x128xf32, #tpu.memory_space<vmem>>, vector<8x128xf32>
    tpu.vector_store %arg7[%c56, %c0_649], %447 {strides = array<i32>} : memref<64x128xf32, #tpu.memory_space<vmem>>, vector<8x128xf32>,
    %c0_650 = arith.constant 0 : index
    %c0_651 = arith.constant 0 : index
    %449 = vector.load %arg7[%c0_650, %c0_651] : memref<64x128xf32, #tpu.memory_space<vmem>>, vector<64x128xf32>
    %cst_652 = arith.constant dense<0.000000e+00> : vector<128xf32>
    %450 = vector.multi_reduction <add>, %449, %cst_652 [0] : vector<64x128xf32> to vector<128xf32>
    %451 = vector.shape_cast %450 : vector<128xf32> to vector<1x128xf32>
    %cst_653 = arith.constant 1.562500e-02 : f32
    %452 = vector.broadcast %cst_653 : f32 to vector<1x128xf32>
    %453 = arith.mulf %451, %452 : vector<1x128xf32>
    %454 = arith.mulf %449, %449 : vector<64x128xf32>
    %cst_654 = arith.constant dense<0.000000e+00> : vector<128xf32>
    %455 = vector.multi_reduction <add>, %454, %cst_654 [0] : vector<64x128xf32> to vector<128xf32>
    %456 = vector.shape_cast %455 : vector<128xf32> to vector<1x128xf32>
    %cst_655 = arith.constant 1.562500e-02 : f32
    %457 = vector.broadcast %cst_655 : f32 to vector<1x128xf32>
    %458 = arith.mulf %456, %457 : vector<1x128xf32>
    %459 = arith.mulf %453, %453 : vector<1x128xf32>
    %460 = arith.subf %458, %459 : vector<1x128xf32>
    %cst_656 = arith.constant 0.000000e+00 : f32
    %461 = vector.broadcast %cst_656 : f32 to vector<1x128xf32>
    %462 = arith.maximumf %460, %461 : vector<1x128xf32>
    %463 = vector.broadcast %453 : vector<1x128xf32> to vector<64x128xf32>
    %464 = arith.subf %449, %463 : vector<64x128xf32>
    %cst_657 = arith.constant 9.99999974E-6 : f32
    %465 = vector.broadcast %cst_657 : f32 to vector<1x128xf32>
    %466 = arith.addf %462, %465 : vector<1x128xf32>
    %467 = math.rsqrt %466 : vector<1x128xf32>
    %468 = vector.broadcast %467 : vector<1x128xf32> to vector<64x128xf32>
    %469 = arith.mulf %464, %468 : vector<64x128xf32>
    %c0_658 = arith.constant 0 : index
    %c0_659 = arith.constant 0 : index
    %470 = vector.load %arg4[%c0_658, %c0_659] : memref<1x128xf32, #tpu.memory_space<vmem>>, vector<1x128xf32>
    %471 = vector.broadcast %470 : vector<1x128xf32> to vector<64x128xf32>
    %472 = arith.mulf %469, %471 : vector<64x128xf32>
    %c0_660 = arith.constant 0 : index
    %c0_661 = arith.constant 0 : index
    %473 = vector.load %arg5[%c0_660, %c0_661] : memref<1x128xf32, #tpu.memory_space<vmem>>, vector<1x128xf32>
    %474 = vector.broadcast %473 : vector<1x128xf32> to vector<64x128xf32>
    %475 = arith.addf %472, %474 : vector<64x128xf32>
    %cst_662 = arith.constant 0.000000e+00 : f32
    %476 = vector.broadcast %cst_662 : f32 to vector<64x128xf32>
    %477 = arith.maximumf %475, %476 : vector<64x128xf32>
    %478 = arith.truncf %477 : vector<64x128xf32> to vector<64x128xbf16>
    %c0_663 = arith.constant 0 : index
    %c0_664 = arith.constant 0 : index
    %c0_665 = arith.constant 0 : index
    %479 = vector.load %arg6[%c0_663, %c0_664, %c0_665] : memref<1x64x128xbf16, #tpu.memory_space<vmem>>, vector<1x64x128xbf16>
    %480 = vector.shape_cast %479 : vector<1x64x128xbf16> to vector<64x128xbf16>
    %481 = vector.shape_cast %478 : vector<64x128xbf16> to vector<1x64x128xbf16>
    tpu.vector_store %arg6[%c0_663, %c0_664, %c0_665], %481 {strides = array<i32>} : memref<1x64x128xbf16, #tpu.memory_space<vmem>>, vector<1x64x128xbf16>,
    return
  }
  func.func @transform_0(%arg0: i32) -> (i32, i32, i32, i32, i32) {
    %c0_i32 = arith.constant 0 : i32
    %c0_i32_0 = arith.constant 0 : i32
    %c0_i32_1 = arith.constant 0 : i32
    %c0_i32_2 = arith.constant 0 : i32
    %c0_i32_3 = arith.constant 0 : i32
    return %arg0, %c0_i32, %c0_i32_0, %c0_i32_1, %c0_i32_2 : i32, i32, i32, i32, i32
  }
  func.func @transform_1(%arg0: i32) -> (i32, i32, i32) {
    %c0_i32 = arith.constant 0 : i32
    %c0_i32_0 = arith.constant 0 : i32
    %c0_i32_1 = arith.constant 0 : i32
    %c0_i32_2 = arith.constant 0 : i32
    return %c0_i32, %c0_i32_0, %c0_i32_1 : i32, i32, i32
  }
  func.func @transform_2(%arg0: i32) -> (i32, i32) {
    %c0_i32 = arith.constant 0 : i32
    %c0_i32_0 = arith.constant 0 : i32
    %c0_i32_1 = arith.constant 0 : i32
    return %c0_i32, %c0_i32_0 : i32, i32
  }
  func.func @transform_3(%arg0: i32) -> (i32, i32) {
    %c0_i32 = arith.constant 0 : i32
    %c0_i32_0 = arith.constant 0 : i32
    %c0_i32_1 = arith.constant 0 : i32
    return %c0_i32, %c0_i32_0 : i32, i32
  }
  func.func @transform_4(%arg0: i32) -> (i32, i32) {
    %c0_i32 = arith.constant 0 : i32
    %c0_i32_0 = arith.constant 0 : i32
    %c0_i32_1 = arith.constant 0 : i32
    return %c0_i32, %c0_i32_0 : i32, i32
  }
  func.func @transform_5(%arg0: i32) -> (i32, i32, i32) {
    %c0_i32 = arith.constant 0 : i32
    %c0_i32_0 = arith.constant 0 : i32
    %c0_i32_1 = arith.constant 0 : i32
    return %arg0, %c0_i32, %c0_i32_0 : i32, i32, i32
  }
}

module attributes {stable_mosaic.version = 11 : i64} {
  func.func @_head_kernel_1(%arg0: memref<2x2048xbf16, #tpu.memory_space<vmem>>, %arg1: memref<2048x128xbf16, #tpu.memory_space<vmem>>, %arg2: memref<1x128xf32, #tpu.memory_space<vmem>>, %arg3: memref<128x128xbf16, #tpu.memory_space<vmem>>, %arg4: memref<1x128xf32, #tpu.memory_space<vmem>>, %arg5: memref<1x128xf32, #tpu.memory_space<vmem>>, %arg6: memref<1x1xf32, #tpu.memory_space<vmem>>, %arg7: memref<2x1xf32, #tpu.memory_space<vmem>>) attributes {dimension_semantics = [], scalar_prefetch = 0 : i64, scratch_operands = 0 : i64, tpu.core_type = #tpu.core_type<tc>} {
    %c0 = arith.constant 0 : index
    %c0_0 = arith.constant 0 : index
    %0 = vector.load %arg0[%c0, %c0_0] : memref<2x2048xbf16, #tpu.memory_space<vmem>>, vector<2x2048xbf16>
    %c0_1 = arith.constant 0 : index
    %c0_2 = arith.constant 0 : index
    %1 = vector.load %arg1[%c0_1, %c0_2] : memref<2048x128xbf16, #tpu.memory_space<vmem>>, vector<2048x128xbf16>
    %cst = arith.constant dense<0.000000e+00> : vector<2x128xf32>
    %2 = tpu.matmul %0, %1, %cst {dimension_numbers = #tpu.dot_dimension_numbers<[1], [0], [0], [1], [0, 0, 1, 1], [], []>} : vector<2x2048xbf16>, vector<2048x128xbf16>, vector<2x128xf32> -> vector<2x128xf32>
    %c0_3 = arith.constant 0 : index
    %c0_4 = arith.constant 0 : index
    %3 = vector.load %arg2[%c0_3, %c0_4] : memref<1x128xf32, #tpu.memory_space<vmem>>, vector<1x128xf32>
    %4 = vector.broadcast %3 : vector<1x128xf32> to vector<2x128xf32>
    %5 = arith.addf %2, %4 : vector<2x128xf32>
    %cst_5 = arith.constant 0.000000e+00 : f32
    %6 = vector.broadcast %cst_5 : f32 to vector<2x128xf32>
    %7 = arith.maximumf %5, %6 : vector<2x128xf32>
    %8 = arith.truncf %7 : vector<2x128xf32> to vector<2x128xbf16>
    %c0_6 = arith.constant 0 : index
    %c0_7 = arith.constant 0 : index
    %9 = vector.load %arg3[%c0_6, %c0_7] : memref<128x128xbf16, #tpu.memory_space<vmem>>, vector<128x128xbf16>
    %cst_8 = arith.constant dense<0.000000e+00> : vector<2x128xf32>
    %10 = tpu.matmul %8, %9, %cst_8 {dimension_numbers = #tpu.dot_dimension_numbers<[1], [0], [0], [1], [0, 0, 1, 1], [], []>} : vector<2x128xbf16>, vector<128x128xbf16>, vector<2x128xf32> -> vector<2x128xf32>
    %c0_9 = arith.constant 0 : index
    %c0_10 = arith.constant 0 : index
    %11 = vector.load %arg4[%c0_9, %c0_10] : memref<1x128xf32, #tpu.memory_space<vmem>>, vector<1x128xf32>
    %12 = vector.broadcast %11 : vector<1x128xf32> to vector<2x128xf32>
    %13 = arith.addf %10, %12 : vector<2x128xf32>
    %cst_11 = arith.constant 0.000000e+00 : f32
    %14 = vector.broadcast %cst_11 : f32 to vector<2x128xf32>
    %15 = arith.maximumf %13, %14 : vector<2x128xf32>
    %c0_12 = arith.constant 0 : index
    %c0_13 = arith.constant 0 : index
    %16 = vector.load %arg5[%c0_12, %c0_13] : memref<1x128xf32, #tpu.memory_space<vmem>>, vector<1x128xf32>
    %17 = vector.broadcast %16 : vector<1x128xf32> to vector<2x128xf32>
    %18 = arith.mulf %15, %17 : vector<2x128xf32>
    %cst_14 = arith.constant dense<0.000000e+00> : vector<2xf32>
    %19 = vector.multi_reduction <add>, %18, %cst_14 [1] : vector<2x128xf32> to vector<2xf32>
    %20 = vector.shape_cast %19 : vector<2xf32> to vector<2x1xf32>
    %c0_15 = arith.constant 0 : index
    %c0_16 = arith.constant 0 : index
    %21 = vector.load %arg6[%c0_15, %c0_16] : memref<1x1xf32, #tpu.memory_space<vmem>>, vector<1x1xf32>
    %22 = vector.broadcast %21 : vector<1x1xf32> to vector<2x1xf32>
    %23 = arith.addf %20, %22 : vector<2x1xf32>
    %c0_17 = arith.constant 0 : index
    %c0_18 = arith.constant 0 : index
    %24 = vector.load %arg7[%c0_17, %c0_18] : memref<2x1xf32, #tpu.memory_space<vmem>>, vector<2x1xf32>
    tpu.vector_store %arg7[%c0_17, %c0_18], %23 {strides = array<i32>} : memref<2x1xf32, #tpu.memory_space<vmem>>, vector<2x1xf32>,
    return
  }
}

module attributes {stable_mosaic.version = 11 : i64} {
  func.func @_conv_block_kernel(%arg0: i32, %arg1: memref<1x4x5x5x128xbf16, #tpu.memory_space<vmem>>, %arg2: memref<9x128x128xbf16, #tpu.memory_space<vmem>>, %arg3: memref<1x128xf32, #tpu.memory_space<vmem>>, %arg4: memref<1x128xf32, #tpu.memory_space<vmem>>, %arg5: memref<1x128xf32, #tpu.memory_space<vmem>>, %arg6: memref<1x16x128xbf16, #tpu.memory_space<vmem>>, %arg7: memref<16x128xf32, #tpu.memory_space<vmem>>) attributes {dimension_semantics = [#tpu.dimension_semantics<parallel>], iteration_bounds = array<i64: 2>, scalar_prefetch = 0 : i64, scratch_operands = 1 : i64, tpu.core_type = #tpu.core_type<tc>, window_params = [{transform_indices = @transform_0, window_bounds = array<i64: 1, 4, 5, 5, 128>}, {pipeline_mode = #tpu.pipeline_mode<synchronous>, transform_indices = @transform_1, window_bounds = array<i64: 9, 128, 128>}, {pipeline_mode = #tpu.pipeline_mode<synchronous>, transform_indices = @transform_2, window_bounds = array<i64: 1, 128>}, {pipeline_mode = #tpu.pipeline_mode<synchronous>, transform_indices = @transform_3, window_bounds = array<i64: 1, 128>}, {pipeline_mode = #tpu.pipeline_mode<synchronous>, transform_indices = @transform_4, window_bounds = array<i64: 1, 128>}, {transform_indices = @transform_5, window_bounds = array<i64: 1, 16, 128>}]} {
    %c0 = arith.constant 0 : index
    %c0_0 = arith.constant 0 : index
    %0 = vector.load %arg3[%c0, %c0_0] : memref<1x128xf32, #tpu.memory_space<vmem>>, vector<1x128xf32>
    %c0_1 = arith.constant 0 : index
    %c0_2 = arith.constant 0 : index
    %c0_3 = arith.constant 0 : index
    %c0_4 = arith.constant 0 : index
    %c0_5 = arith.constant 0 : index
    %1 = vector.load %arg1[%c0_1, %c0_2, %c0_3, %c0_4, %c0_5] : memref<1x4x5x5x128xbf16, #tpu.memory_space<vmem>>, vector<1x1x1x4x128xbf16>
    %2 = vector.shape_cast %1 : vector<1x1x1x4x128xbf16> to vector<4x128xbf16>
    %c0_6 = arith.constant 0 : index
    %c0_7 = arith.constant 0 : index
    %c0_8 = arith.constant 0 : index
    %3 = vector.load %arg2[%c0_6, %c0_7, %c0_8] : memref<9x128x128xbf16, #tpu.memory_space<vmem>>, vector<1x128x128xbf16>
    %4 = vector.shape_cast %3 : vector<1x128x128xbf16> to vector<128x128xbf16>
    %cst = arith.constant dense<0.000000e+00> : vector<4x128xf32>
    %5 = tpu.matmul %2, %4, %cst {dimension_numbers = #tpu.dot_dimension_numbers<[1], [0], [0], [1], [0, 0, 1, 1], [], []>} : vector<4x128xbf16>, vector<128x128xbf16>, vector<4x128xf32> -> vector<4x128xf32>
    %c0_9 = arith.constant 0 : index
    %c1 = arith.constant 1 : index
    %c0_10 = arith.constant 0 : index
    %c0_11 = arith.constant 0 : index
    %c0_12 = arith.constant 0 : index
    %6 = vector.load %arg1[%c0_9, %c1, %c0_10, %c0_11, %c0_12] : memref<1x4x5x5x128xbf16, #tpu.memory_space<vmem>>, vector<1x1x1x4x128xbf16>
    %7 = vector.shape_cast %6 : vector<1x1x1x4x128xbf16> to vector<4x128xbf16>
    %c1_13 = arith.constant 1 : index
    %c0_14 = arith.constant 0 : index
    %c0_15 = arith.constant 0 : index
    %8 = vector.load %arg2[%c1_13, %c0_14, %c0_15] : memref<9x128x128xbf16, #tpu.memory_space<vmem>>, vector<1x128x128xbf16>
    %9 = vector.shape_cast %8 : vector<1x128x128xbf16> to vector<128x128xbf16>
    %cst_16 = arith.constant dense<0.000000e+00> : vector<4x128xf32>
    %10 = tpu.matmul %7, %9, %cst_16 {dimension_numbers = #tpu.dot_dimension_numbers<[1], [0], [0], [1], [0, 0, 1, 1], [], []>} : vector<4x128xbf16>, vector<128x128xbf16>, vector<4x128xf32> -> vector<4x128xf32>
    %11 = arith.addf %5, %10 : vector<4x128xf32>
    %c0_17 = arith.constant 0 : index
    %c0_18 = arith.constant 0 : index
    %c0_19 = arith.constant 0 : index
    %c1_20 = arith.constant 1 : index
    %c0_21 = arith.constant 0 : index
    %12 = vector.load %arg1[%c0_17, %c0_18, %c0_19, %c1_20, %c0_21] : memref<1x4x5x5x128xbf16, #tpu.memory_space<vmem>>, vector<1x1x1x4x128xbf16>
    %13 = vector.shape_cast %12 : vector<1x1x1x4x128xbf16> to vector<4x128xbf16>
    %c2 = arith.constant 2 : index
    %c0_22 = arith.constant 0 : index
    %c0_23 = arith.constant 0 : index
    %14 = vector.load %arg2[%c2, %c0_22, %c0_23] : memref<9x128x128xbf16, #tpu.memory_space<vmem>>, vector<1x128x128xbf16>
    %15 = vector.shape_cast %14 : vector<1x128x128xbf16> to vector<128x128xbf16>
    %cst_24 = arith.constant dense<0.000000e+00> : vector<4x128xf32>
    %16 = tpu.matmul %13, %15, %cst_24 {dimension_numbers = #tpu.dot_dimension_numbers<[1], [0], [0], [1], [0, 0, 1, 1], [], []>} : vector<4x128xbf16>, vector<128x128xbf16>, vector<4x128xf32> -> vector<4x128xf32>
    %17 = arith.addf %11, %16 : vector<4x128xf32>
    %c0_25 = arith.constant 0 : index
    %c2_26 = arith.constant 2 : index
    %c0_27 = arith.constant 0 : index
    %c0_28 = arith.constant 0 : index
    %c0_29 = arith.constant 0 : index
    %18 = vector.load %arg1[%c0_25, %c2_26, %c0_27, %c0_28, %c0_29] : memref<1x4x5x5x128xbf16, #tpu.memory_space<vmem>>, vector<1x1x1x4x128xbf16>
    %19 = vector.shape_cast %18 : vector<1x1x1x4x128xbf16> to vector<4x128xbf16>
    %c3 = arith.constant 3 : index
    %c0_30 = arith.constant 0 : index
    %c0_31 = arith.constant 0 : index
    %20 = vector.load %arg2[%c3, %c0_30, %c0_31] : memref<9x128x128xbf16, #tpu.memory_space<vmem>>, vector<1x128x128xbf16>
    %21 = vector.shape_cast %20 : vector<1x128x128xbf16> to vector<128x128xbf16>
    %cst_32 = arith.constant dense<0.000000e+00> : vector<4x128xf32>
    %22 = tpu.matmul %19, %21, %cst_32 {dimension_numbers = #tpu.dot_dimension_numbers<[1], [0], [0], [1], [0, 0, 1, 1], [], []>} : vector<4x128xbf16>, vector<128x128xbf16>, vector<4x128xf32> -> vector<4x128xf32>
    %23 = arith.addf %17, %22 : vector<4x128xf32>
    %c0_33 = arith.constant 0 : index
    %c3_34 = arith.constant 3 : index
    %c0_35 = arith.constant 0 : index
    %c0_36 = arith.constant 0 : index
    %c0_37 = arith.constant 0 : index
    %24 = vector.load %arg1[%c0_33, %c3_34, %c0_35, %c0_36, %c0_37] : memref<1x4x5x5x128xbf16, #tpu.memory_space<vmem>>, vector<1x1x1x4x128xbf16>
    %25 = vector.shape_cast %24 : vector<1x1x1x4x128xbf16> to vector<4x128xbf16>
    %c4 = arith.constant 4 : index
    %c0_38 = arith.constant 0 : index
    %c0_39 = arith.constant 0 : index
    %26 = vector.load %arg2[%c4, %c0_38, %c0_39] : memref<9x128x128xbf16, #tpu.memory_space<vmem>>, vector<1x128x128xbf16>
    %27 = vector.shape_cast %26 : vector<1x128x128xbf16> to vector<128x128xbf16>
    %cst_40 = arith.constant dense<0.000000e+00> : vector<4x128xf32>
    %28 = tpu.matmul %25, %27, %cst_40 {dimension_numbers = #tpu.dot_dimension_numbers<[1], [0], [0], [1], [0, 0, 1, 1], [], []>} : vector<4x128xbf16>, vector<128x128xbf16>, vector<4x128xf32> -> vector<4x128xf32>
    %29 = arith.addf %23, %28 : vector<4x128xf32>
    %c0_41 = arith.constant 0 : index
    %c2_42 = arith.constant 2 : index
    %c0_43 = arith.constant 0 : index
    %c1_44 = arith.constant 1 : index
    %c0_45 = arith.constant 0 : index
    %30 = vector.load %arg1[%c0_41, %c2_42, %c0_43, %c1_44, %c0_45] : memref<1x4x5x5x128xbf16, #tpu.memory_space<vmem>>, vector<1x1x1x4x128xbf16>
    %31 = vector.shape_cast %30 : vector<1x1x1x4x128xbf16> to vector<4x128xbf16>
    %c5 = arith.constant 5 : index
    %c0_46 = arith.constant 0 : index
    %c0_47 = arith.constant 0 : index
    %32 = vector.load %arg2[%c5, %c0_46, %c0_47] : memref<9x128x128xbf16, #tpu.memory_space<vmem>>, vector<1x128x128xbf16>
    %33 = vector.shape_cast %32 : vector<1x128x128xbf16> to vector<128x128xbf16>
    %cst_48 = arith.constant dense<0.000000e+00> : vector<4x128xf32>
    %34 = tpu.matmul %31, %33, %cst_48 {dimension_numbers = #tpu.dot_dimension_numbers<[1], [0], [0], [1], [0, 0, 1, 1], [], []>} : vector<4x128xbf16>, vector<128x128xbf16>, vector<4x128xf32> -> vector<4x128xf32>
    %35 = arith.addf %29, %34 : vector<4x128xf32>
    %c0_49 = arith.constant 0 : index
    %c0_50 = arith.constant 0 : index
    %c1_51 = arith.constant 1 : index
    %c0_52 = arith.constant 0 : index
    %c0_53 = arith.constant 0 : index
    %36 = vector.load %arg1[%c0_49, %c0_50, %c1_51, %c0_52, %c0_53] : memref<1x4x5x5x128xbf16, #tpu.memory_space<vmem>>, vector<1x1x1x4x128xbf16>
    %37 = vector.shape_cast %36 : vector<1x1x1x4x128xbf16> to vector<4x128xbf16>
    %c6 = arith.constant 6 : index
    %c0_54 = arith.constant 0 : index
    %c0_55 = arith.constant 0 : index
    %38 = vector.load %arg2[%c6, %c0_54, %c0_55] : memref<9x128x128xbf16, #tpu.memory_space<vmem>>, vector<1x128x128xbf16>
    %39 = vector.shape_cast %38 : vector<1x128x128xbf16> to vector<128x128xbf16>
    %cst_56 = arith.constant dense<0.000000e+00> : vector<4x128xf32>
    %40 = tpu.matmul %37, %39, %cst_56 {dimension_numbers = #tpu.dot_dimension_numbers<[1], [0], [0], [1], [0, 0, 1, 1], [], []>} : vector<4x128xbf16>, vector<128x128xbf16>, vector<4x128xf32> -> vector<4x128xf32>
    %41 = arith.addf %35, %40 : vector<4x128xf32>
    %c0_57 = arith.constant 0 : index
    %c1_58 = arith.constant 1 : index
    %c1_59 = arith.constant 1 : index
    %c0_60 = arith.constant 0 : index
    %c0_61 = arith.constant 0 : index
    %42 = vector.load %arg1[%c0_57, %c1_58, %c1_59, %c0_60, %c0_61] : memref<1x4x5x5x128xbf16, #tpu.memory_space<vmem>>, vector<1x1x1x4x128xbf16>
    %43 = vector.shape_cast %42 : vector<1x1x1x4x128xbf16> to vector<4x128xbf16>
    %c7 = arith.constant 7 : index
    %c0_62 = arith.constant 0 : index
    %c0_63 = arith.constant 0 : index
    %44 = vector.load %arg2[%c7, %c0_62, %c0_63] : memref<9x128x128xbf16, #tpu.memory_space<vmem>>, vector<1x128x128xbf16>
    %45 = vector.shape_cast %44 : vector<1x128x128xbf16> to vector<128x128xbf16>
    %cst_64 = arith.constant dense<0.000000e+00> : vector<4x128xf32>
    %46 = tpu.matmul %43, %45, %cst_64 {dimension_numbers = #tpu.dot_dimension_numbers<[1], [0], [0], [1], [0, 0, 1, 1], [], []>} : vector<4x128xbf16>, vector<128x128xbf16>, vector<4x128xf32> -> vector<4x128xf32>
    %47 = arith.addf %41, %46 : vector<4x128xf32>
    %c0_65 = arith.constant 0 : index
    %c0_66 = arith.constant 0 : index
    %c1_67 = arith.constant 1 : index
    %c1_68 = arith.constant 1 : index
    %c0_69 = arith.constant 0 : index
    %48 = vector.load %arg1[%c0_65, %c0_66, %c1_67, %c1_68, %c0_69] : memref<1x4x5x5x128xbf16, #tpu.memory_space<vmem>>, vector<1x1x1x4x128xbf16>
    %49 = vector.shape_cast %48 : vector<1x1x1x4x128xbf16> to vector<4x128xbf16>
    %c8 = arith.constant 8 : index
    %c0_70 = arith.constant 0 : index
    %c0_71 = arith.constant 0 : index
    %50 = vector.load %arg2[%c8, %c0_70, %c0_71] : memref<9x128x128xbf16, #tpu.memory_space<vmem>>, vector<1x128x128xbf16>
    %51 = vector.shape_cast %50 : vector<1x128x128xbf16> to vector<128x128xbf16>
    %cst_72 = arith.constant dense<0.000000e+00> : vector<4x128xf32>
    %52 = tpu.matmul %49, %51, %cst_72 {dimension_numbers = #tpu.dot_dimension_numbers<[1], [0], [0], [1], [0, 0, 1, 1], [], []>} : vector<4x128xbf16>, vector<128x128xbf16>, vector<4x128xf32> -> vector<4x128xf32>
    %53 = arith.addf %47, %52 : vector<4x128xf32>
    %54 = vector.broadcast %0 : vector<1x128xf32> to vector<4x128xf32>
    %55 = arith.addf %53, %54 : vector<4x128xf32>
    %c0_73 = arith.constant 0 : index
    %c0_74 = arith.constant 0 : index
    %56 = vector.load %arg7[%c0_73, %c0_74] : memref<16x128xf32, #tpu.memory_space<vmem>>, vector<4x128xf32>
    tpu.vector_store %arg7[%c0_73, %c0_74], %55 {strides = array<i32>} : memref<16x128xf32, #tpu.memory_space<vmem>>, vector<4x128xf32>,
    %c0_75 = arith.constant 0 : index
    %c0_76 = arith.constant 0 : index
    %c1_77 = arith.constant 1 : index
    %c0_78 = arith.constant 0 : index
    %c0_79 = arith.constant 0 : index
    %57 = vector.load %arg1[%c0_75, %c0_76, %c1_77, %c0_78, %c0_79] : memref<1x4x5x5x128xbf16, #tpu.memory_space<vmem>>, vector<1x1x1x4x128xbf16>
    %58 = vector.shape_cast %57 : vector<1x1x1x4x128xbf16> to vector<4x128xbf16>
    %c0_80 = arith.constant 0 : index
    %c0_81 = arith.constant 0 : index
    %c0_82 = arith.constant 0 : index
    %59 = vector.load %arg2[%c0_80, %c0_81, %c0_82] : memref<9x128x128xbf16, #tpu.memory_space<vmem>>, vector<1x128x128xbf16>
    %60 = vector.shape_cast %59 : vector<1x128x128xbf16> to vector<128x128xbf16>
    %cst_83 = arith.constant dense<0.000000e+00> : vector<4x128xf32>
    %61 = tpu.matmul %58, %60, %cst_83 {dimension_numbers = #tpu.dot_dimension_numbers<[1], [0], [0], [1], [0, 0, 1, 1], [], []>} : vector<4x128xbf16>, vector<128x128xbf16>, vector<4x128xf32> -> vector<4x128xf32>
    %c0_84 = arith.constant 0 : index
    %c1_85 = arith.constant 1 : index
    %c1_86 = arith.constant 1 : index
    %c0_87 = arith.constant 0 : index
    %c0_88 = arith.constant 0 : index
    %62 = vector.load %arg1[%c0_84, %c1_85, %c1_86, %c0_87, %c0_88] : memref<1x4x5x5x128xbf16, #tpu.memory_space<vmem>>, vector<1x1x1x4x128xbf16>
    %63 = vector.shape_cast %62 : vector<1x1x1x4x128xbf16> to vector<4x128xbf16>
    %c1_89 = arith.constant 1 : index
    %c0_90 = arith.constant 0 : index
    %c0_91 = arith.constant 0 : index
    %64 = vector.load %arg2[%c1_89, %c0_90, %c0_91] : memref<9x128x128xbf16, #tpu.memory_space<vmem>>, vector<1x128x128xbf16>
    %65 = vector.shape_cast %64 : vector<1x128x128xbf16> to vector<128x128xbf16>
    %cst_92 = arith.constant dense<0.000000e+00> : vector<4x128xf32>
    %66 = tpu.matmul %63, %65, %cst_92 {dimension_numbers = #tpu.dot_dimension_numbers<[1], [0], [0], [1], [0, 0, 1, 1], [], []>} : vector<4x128xbf16>, vector<128x128xbf16>, vector<4x128xf32> -> vector<4x128xf32>
    %67 = arith.addf %61, %66 : vector<4x128xf32>
    %c0_93 = arith.constant 0 : index
    %c0_94 = arith.constant 0 : index
    %c1_95 = arith.constant 1 : index
    %c1_96 = arith.constant 1 : index
    %c0_97 = arith.constant 0 : index
    %68 = vector.load %arg1[%c0_93, %c0_94, %c1_95, %c1_96, %c0_97] : memref<1x4x5x5x128xbf16, #tpu.memory_space<vmem>>, vector<1x1x1x4x128xbf16>
    %69 = vector.shape_cast %68 : vector<1x1x1x4x128xbf16> to vector<4x128xbf16>
    %c2_98 = arith.constant 2 : index
    %c0_99 = arith.constant 0 : index
    %c0_100 = arith.constant 0 : index
    %70 = vector.load %arg2[%c2_98, %c0_99, %c0_100] : memref<9x128x128xbf16, #tpu.memory_space<vmem>>, vector<1x128x128xbf16>
    %71 = vector.shape_cast %70 : vector<1x128x128xbf16> to vector<128x128xbf16>
    %cst_101 = arith.constant dense<0.000000e+00> : vector<4x128xf32>
    %72 = tpu.matmul %69, %71, %cst_101 {dimension_numbers = #tpu.dot_dimension_numbers<[1], [0], [0], [1], [0, 0, 1, 1], [], []>} : vector<4x128xbf16>, vector<128x128xbf16>, vector<4x128xf32> -> vector<4x128xf32>
    %73 = arith.addf %67, %72 : vector<4x128xf32>
    %c0_102 = arith.constant 0 : index
    %c2_103 = arith.constant 2 : index
    %c1_104 = arith.constant 1 : index
    %c0_105 = arith.constant 0 : index
    %c0_106 = arith.constant 0 : index
    %74 = vector.load %arg1[%c0_102, %c2_103, %c1_104, %c0_105, %c0_106] : memref<1x4x5x5x128xbf16, #tpu.memory_space<vmem>>, vector<1x1x1x4x128xbf16>
    %75 = vector.shape_cast %74 : vector<1x1x1x4x128xbf16> to vector<4x128xbf16>
    %c3_107 = arith.constant 3 : index
    %c0_108 = arith.constant 0 : index
    %c0_109 = arith.constant 0 : index
    %76 = vector.load %arg2[%c3_107, %c0_108, %c0_109] : memref<9x128x128xbf16, #tpu.memory_space<vmem>>, vector<1x128x128xbf16>
    %77 = vector.shape_cast %76 : vector<1x128x128xbf16> to vector<128x128xbf16>
    %cst_110 = arith.constant dense<0.000000e+00> : vector<4x128xf32>
    %78 = tpu.matmul %75, %77, %cst_110 {dimension_numbers = #tpu.dot_dimension_numbers<[1], [0], [0], [1], [0, 0, 1, 1], [], []>} : vector<4x128xbf16>, vector<128x128xbf16>, vector<4x128xf32> -> vector<4x128xf32>
    %79 = arith.addf %73, %78 : vector<4x128xf32>
    %c0_111 = arith.constant 0 : index
    %c3_112 = arith.constant 3 : index
    %c1_113 = arith.constant 1 : index
    %c0_114 = arith.constant 0 : index
    %c0_115 = arith.constant 0 : index
    %80 = vector.load %arg1[%c0_111, %c3_112, %c1_113, %c0_114, %c0_115] : memref<1x4x5x5x128xbf16, #tpu.memory_space<vmem>>, vector<1x1x1x4x128xbf16>
    %81 = vector.shape_cast %80 : vector<1x1x1x4x128xbf16> to vector<4x128xbf16>
    %c4_116 = arith.constant 4 : index
    %c0_117 = arith.constant 0 : index
    %c0_118 = arith.constant 0 : index
    %82 = vector.load %arg2[%c4_116, %c0_117, %c0_118] : memref<9x128x128xbf16, #tpu.memory_space<vmem>>, vector<1x128x128xbf16>
    %83 = vector.shape_cast %82 : vector<1x128x128xbf16> to vector<128x128xbf16>
    %cst_119 = arith.constant dense<0.000000e+00> : vector<4x128xf32>
    %84 = tpu.matmul %81, %83, %cst_119 {dimension_numbers = #tpu.dot_dimension_numbers<[1], [0], [0], [1], [0, 0, 1, 1], [], []>} : vector<4x128xbf16>, vector<128x128xbf16>, vector<4x128xf32> -> vector<4x128xf32>
    %85 = arith.addf %79, %84 : vector<4x128xf32>
    %c0_120 = arith.constant 0 : index
    %c2_121 = arith.constant 2 : index
    %c1_122 = arith.constant 1 : index
    %c1_123 = arith.constant 1 : index
    %c0_124 = arith.constant 0 : index
    %86 = vector.load %arg1[%c0_120, %c2_121, %c1_122, %c1_123, %c0_124] : memref<1x4x5x5x128xbf16, #tpu.memory_space<vmem>>, vector<1x1x1x4x128xbf16>
    %87 = vector.shape_cast %86 : vector<1x1x1x4x128xbf16> to vector<4x128xbf16>
    %c5_125 = arith.constant 5 : index
    %c0_126 = arith.constant 0 : index
    %c0_127 = arith.constant 0 : index
    %88 = vector.load %arg2[%c5_125, %c0_126, %c0_127] : memref<9x128x128xbf16, #tpu.memory_space<vmem>>, vector<1x128x128xbf16>
    %89 = vector.shape_cast %88 : vector<1x128x128xbf16> to vector<128x128xbf16>
    %cst_128 = arith.constant dense<0.000000e+00> : vector<4x128xf32>
    %90 = tpu.matmul %87, %89, %cst_128 {dimension_numbers = #tpu.dot_dimension_numbers<[1], [0], [0], [1], [0, 0, 1, 1], [], []>} : vector<4x128xbf16>, vector<128x128xbf16>, vector<4x128xf32> -> vector<4x128xf32>
    %91 = arith.addf %85, %90 : vector<4x128xf32>
    %c0_129 = arith.constant 0 : index
    %c0_130 = arith.constant 0 : index
    %c2_131 = arith.constant 2 : index
    %c0_132 = arith.constant 0 : index
    %c0_133 = arith.constant 0 : index
    %92 = vector.load %arg1[%c0_129, %c0_130, %c2_131, %c0_132, %c0_133] : memref<1x4x5x5x128xbf16, #tpu.memory_space<vmem>>, vector<1x1x1x4x128xbf16>
    %93 = vector.shape_cast %92 : vector<1x1x1x4x128xbf16> to vector<4x128xbf16>
    %c6_134 = arith.constant 6 : index
    %c0_135 = arith.constant 0 : index
    %c0_136 = arith.constant 0 : index
    %94 = vector.load %arg2[%c6_134, %c0_135, %c0_136] : memref<9x128x128xbf16, #tpu.memory_space<vmem>>, vector<1x128x128xbf16>
    %95 = vector.shape_cast %94 : vector<1x128x128xbf16> to vector<128x128xbf16>
    %cst_137 = arith.constant dense<0.000000e+00> : vector<4x128xf32>
    %96 = tpu.matmul %93, %95, %cst_137 {dimension_numbers = #tpu.dot_dimension_numbers<[1], [0], [0], [1], [0, 0, 1, 1], [], []>} : vector<4x128xbf16>, vector<128x128xbf16>, vector<4x128xf32> -> vector<4x128xf32>
    %97 = arith.addf %91, %96 : vector<4x128xf32>
    %c0_138 = arith.constant 0 : index
    %c1_139 = arith.constant 1 : index
    %c2_140 = arith.constant 2 : index
    %c0_141 = arith.constant 0 : index
    %c0_142 = arith.constant 0 : index
    %98 = vector.load %arg1[%c0_138, %c1_139, %c2_140, %c0_141, %c0_142] : memref<1x4x5x5x128xbf16, #tpu.memory_space<vmem>>, vector<1x1x1x4x128xbf16>
    %99 = vector.shape_cast %98 : vector<1x1x1x4x128xbf16> to vector<4x128xbf16>
    %c7_143 = arith.constant 7 : index
    %c0_144 = arith.constant 0 : index
    %c0_145 = arith.constant 0 : index
    %100 = vector.load %arg2[%c7_143, %c0_144, %c0_145] : memref<9x128x128xbf16, #tpu.memory_space<vmem>>, vector<1x128x128xbf16>
    %101 = vector.shape_cast %100 : vector<1x128x128xbf16> to vector<128x128xbf16>
    %cst_146 = arith.constant dense<0.000000e+00> : vector<4x128xf32>
    %102 = tpu.matmul %99, %101, %cst_146 {dimension_numbers = #tpu.dot_dimension_numbers<[1], [0], [0], [1], [0, 0, 1, 1], [], []>} : vector<4x128xbf16>, vector<128x128xbf16>, vector<4x128xf32> -> vector<4x128xf32>
    %103 = arith.addf %97, %102 : vector<4x128xf32>
    %c0_147 = arith.constant 0 : index
    %c0_148 = arith.constant 0 : index
    %c2_149 = arith.constant 2 : index
    %c1_150 = arith.constant 1 : index
    %c0_151 = arith.constant 0 : index
    %104 = vector.load %arg1[%c0_147, %c0_148, %c2_149, %c1_150, %c0_151] : memref<1x4x5x5x128xbf16, #tpu.memory_space<vmem>>, vector<1x1x1x4x128xbf16>
    %105 = vector.shape_cast %104 : vector<1x1x1x4x128xbf16> to vector<4x128xbf16>
    %c8_152 = arith.constant 8 : index
    %c0_153 = arith.constant 0 : index
    %c0_154 = arith.constant 0 : index
    %106 = vector.load %arg2[%c8_152, %c0_153, %c0_154] : memref<9x128x128xbf16, #tpu.memory_space<vmem>>, vector<1x128x128xbf16>
    %107 = vector.shape_cast %106 : vector<1x128x128xbf16> to vector<128x128xbf16>
    %cst_155 = arith.constant dense<0.000000e+00> : vector<4x128xf32>
    %108 = tpu.matmul %105, %107, %cst_155 {dimension_numbers = #tpu.dot_dimension_numbers<[1], [0], [0], [1], [0, 0, 1, 1], [], []>} : vector<4x128xbf16>, vector<128x128xbf16>, vector<4x128xf32> -> vector<4x128xf32>
    %109 = arith.addf %103, %108 : vector<4x128xf32>
    %110 = vector.broadcast %0 : vector<1x128xf32> to vector<4x128xf32>
    %111 = arith.addf %109, %110 : vector<4x128xf32>
    %c4_156 = arith.constant 4 : index
    %c0_157 = arith.constant 0 : index
    %112 = vector.load %arg7[%c4_156, %c0_157] : memref<16x128xf32, #tpu.memory_space<vmem>>, vector<4x128xf32>
    tpu.vector_store %arg7[%c4_156, %c0_157], %111 {strides = array<i32>} : memref<16x128xf32, #tpu.memory_space<vmem>>, vector<4x128xf32>,
    %c0_158 = arith.constant 0 : index
    %c0_159 = arith.constant 0 : index
    %c2_160 = arith.constant 2 : index
    %c0_161 = arith.constant 0 : index
    %c0_162 = arith.constant 0 : index
    %113 = vector.load %arg1[%c0_158, %c0_159, %c2_160, %c0_161, %c0_162] : memref<1x4x5x5x128xbf16, #tpu.memory_space<vmem>>, vector<1x1x1x4x128xbf16>
    %114 = vector.shape_cast %113 : vector<1x1x1x4x128xbf16> to vector<4x128xbf16>
    %c0_163 = arith.constant 0 : index
    %c0_164 = arith.constant 0 : index
    %c0_165 = arith.constant 0 : index
    %115 = vector.load %arg2[%c0_163, %c0_164, %c0_165] : memref<9x128x128xbf16, #tpu.memory_space<vmem>>, vector<1x128x128xbf16>
    %116 = vector.shape_cast %115 : vector<1x128x128xbf16> to vector<128x128xbf16>
    %cst_166 = arith.constant dense<0.000000e+00> : vector<4x128xf32>
    %117 = tpu.matmul %114, %116, %cst_166 {dimension_numbers = #tpu.dot_dimension_numbers<[1], [0], [0], [1], [0, 0, 1, 1], [], []>} : vector<4x128xbf16>, vector<128x128xbf16>, vector<4x128xf32> -> vector<4x128xf32>
    %c0_167 = arith.constant 0 : index
    %c1_168 = arith.constant 1 : index
    %c2_169 = arith.constant 2 : index
    %c0_170 = arith.constant 0 : index
    %c0_171 = arith.constant 0 : index
    %118 = vector.load %arg1[%c0_167, %c1_168, %c2_169, %c0_170, %c0_171] : memref<1x4x5x5x128xbf16, #tpu.memory_space<vmem>>, vector<1x1x1x4x128xbf16>
    %119 = vector.shape_cast %118 : vector<1x1x1x4x128xbf16> to vector<4x128xbf16>
    %c1_172 = arith.constant 1 : index
    %c0_173 = arith.constant 0 : index
    %c0_174 = arith.constant 0 : index
    %120 = vector.load %arg2[%c1_172, %c0_173, %c0_174] : memref<9x128x128xbf16, #tpu.memory_space<vmem>>, vector<1x128x128xbf16>
    %121 = vector.shape_cast %120 : vector<1x128x128xbf16> to vector<128x128xbf16>
    %cst_175 = arith.constant dense<0.000000e+00> : vector<4x128xf32>
    %122 = tpu.matmul %119, %121, %cst_175 {dimension_numbers = #tpu.dot_dimension_numbers<[1], [0], [0], [1], [0, 0, 1, 1], [], []>} : vector<4x128xbf16>, vector<128x128xbf16>, vector<4x128xf32> -> vector<4x128xf32>
    %123 = arith.addf %117, %122 : vector<4x128xf32>
    %c0_176 = arith.constant 0 : index
    %c0_177 = arith.constant 0 : index
    %c2_178 = arith.constant 2 : index
    %c1_179 = arith.constant 1 : index
    %c0_180 = arith.constant 0 : index
    %124 = vector.load %arg1[%c0_176, %c0_177, %c2_178, %c1_179, %c0_180] : memref<1x4x5x5x128xbf16, #tpu.memory_space<vmem>>, vector<1x1x1x4x128xbf16>
    %125 = vector.shape_cast %124 : vector<1x1x1x4x128xbf16> to vector<4x128xbf16>
    %c2_181 = arith.constant 2 : index
    %c0_182 = arith.constant 0 : index
    %c0_183 = arith.constant 0 : index
    %126 = vector.load %arg2[%c2_181, %c0_182, %c0_183] : memref<9x128x128xbf16, #tpu.memory_space<vmem>>, vector<1x128x128xbf16>
    %127 = vector.shape_cast %126 : vector<1x128x128xbf16> to vector<128x128xbf16>
    %cst_184 = arith.constant dense<0.000000e+00> : vector<4x128xf32>
    %128 = tpu.matmul %125, %127, %cst_184 {dimension_numbers = #tpu.dot_dimension_numbers<[1], [0], [0], [1], [0, 0, 1, 1], [], []>} : vector<4x128xbf16>, vector<128x128xbf16>, vector<4x128xf32> -> vector<4x128xf32>
    %129 = arith.addf %123, %128 : vector<4x128xf32>
    %c0_185 = arith.constant 0 : index
    %c2_186 = arith.constant 2 : index
    %c2_187 = arith.constant 2 : index
    %c0_188 = arith.constant 0 : index
    %c0_189 = arith.constant 0 : index
    %130 = vector.load %arg1[%c0_185, %c2_186, %c2_187, %c0_188, %c0_189] : memref<1x4x5x5x128xbf16, #tpu.memory_space<vmem>>, vector<1x1x1x4x128xbf16>
    %131 = vector.shape_cast %130 : vector<1x1x1x4x128xbf16> to vector<4x128xbf16>
    %c3_190 = arith.constant 3 : index
    %c0_191 = arith.constant 0 : index
    %c0_192 = arith.constant 0 : index
    %132 = vector.load %arg2[%c3_190, %c0_191, %c0_192] : memref<9x128x128xbf16, #tpu.memory_space<vmem>>, vector<1x128x128xbf16>
    %133 = vector.shape_cast %132 : vector<1x128x128xbf16> to vector<128x128xbf16>
    %cst_193 = arith.constant dense<0.000000e+00> : vector<4x128xf32>
    %134 = tpu.matmul %131, %133, %cst_193 {dimension_numbers = #tpu.dot_dimension_numbers<[1], [0], [0], [1], [0, 0, 1, 1], [], []>} : vector<4x128xbf16>, vector<128x128xbf16>, vector<4x128xf32> -> vector<4x128xf32>
    %135 = arith.addf %129, %134 : vector<4x128xf32>
    %c0_194 = arith.constant 0 : index
    %c3_195 = arith.constant 3 : index
    %c2_196 = arith.constant 2 : index
    %c0_197 = arith.constant 0 : index
    %c0_198 = arith.constant 0 : index
    %136 = vector.load %arg1[%c0_194, %c3_195, %c2_196, %c0_197, %c0_198] : memref<1x4x5x5x128xbf16, #tpu.memory_space<vmem>>, vector<1x1x1x4x128xbf16>
    %137 = vector.shape_cast %136 : vector<1x1x1x4x128xbf16> to vector<4x128xbf16>
    %c4_199 = arith.constant 4 : index
    %c0_200 = arith.constant 0 : index
    %c0_201 = arith.constant 0 : index
    %138 = vector.load %arg2[%c4_199, %c0_200, %c0_201] : memref<9x128x128xbf16, #tpu.memory_space<vmem>>, vector<1x128x128xbf16>
    %139 = vector.shape_cast %138 : vector<1x128x128xbf16> to vector<128x128xbf16>
    %cst_202 = arith.constant dense<0.000000e+00> : vector<4x128xf32>
    %140 = tpu.matmul %137, %139, %cst_202 {dimension_numbers = #tpu.dot_dimension_numbers<[1], [0], [0], [1], [0, 0, 1, 1], [], []>} : vector<4x128xbf16>, vector<128x128xbf16>, vector<4x128xf32> -> vector<4x128xf32>
    %141 = arith.addf %135, %140 : vector<4x128xf32>
    %c0_203 = arith.constant 0 : index
    %c2_204 = arith.constant 2 : index
    %c2_205 = arith.constant 2 : index
    %c1_206 = arith.constant 1 : index
    %c0_207 = arith.constant 0 : index
    %142 = vector.load %arg1[%c0_203, %c2_204, %c2_205, %c1_206, %c0_207] : memref<1x4x5x5x128xbf16, #tpu.memory_space<vmem>>, vector<1x1x1x4x128xbf16>
    %143 = vector.shape_cast %142 : vector<1x1x1x4x128xbf16> to vector<4x128xbf16>
    %c5_208 = arith.constant 5 : index
    %c0_209 = arith.constant 0 : index
    %c0_210 = arith.constant 0 : index
    %144 = vector.load %arg2[%c5_208, %c0_209, %c0_210] : memref<9x128x128xbf16, #tpu.memory_space<vmem>>, vector<1x128x128xbf16>
    %145 = vector.shape_cast %144 : vector<1x128x128xbf16> to vector<128x128xbf16>
    %cst_211 = arith.constant dense<0.000000e+00> : vector<4x128xf32>
    %146 = tpu.matmul %143, %145, %cst_211 {dimension_numbers = #tpu.dot_dimension_numbers<[1], [0], [0], [1], [0, 0, 1, 1], [], []>} : vector<4x128xbf16>, vector<128x128xbf16>, vector<4x128xf32> -> vector<4x128xf32>
    %147 = arith.addf %141, %146 : vector<4x128xf32>
    %c0_212 = arith.constant 0 : index
    %c0_213 = arith.constant 0 : index
    %c3_214 = arith.constant 3 : index
    %c0_215 = arith.constant 0 : index
    %c0_216 = arith.constant 0 : index
    %148 = vector.load %arg1[%c0_212, %c0_213, %c3_214, %c0_215, %c0_216] : memref<1x4x5x5x128xbf16, #tpu.memory_space<vmem>>, vector<1x1x1x4x128xbf16>
    %149 = vector.shape_cast %148 : vector<1x1x1x4x128xbf16> to vector<4x128xbf16>
    %c6_217 = arith.constant 6 : index
    %c0_218 = arith.constant 0 : index
    %c0_219 = arith.constant 0 : index
    %150 = vector.load %arg2[%c6_217, %c0_218, %c0_219] : memref<9x128x128xbf16, #tpu.memory_space<vmem>>, vector<1x128x128xbf16>
    %151 = vector.shape_cast %150 : vector<1x128x128xbf16> to vector<128x128xbf16>
    %cst_220 = arith.constant dense<0.000000e+00> : vector<4x128xf32>
    %152 = tpu.matmul %149, %151, %cst_220 {dimension_numbers = #tpu.dot_dimension_numbers<[1], [0], [0], [1], [0, 0, 1, 1], [], []>} : vector<4x128xbf16>, vector<128x128xbf16>, vector<4x128xf32> -> vector<4x128xf32>
    %153 = arith.addf %147, %152 : vector<4x128xf32>
    %c0_221 = arith.constant 0 : index
    %c1_222 = arith.constant 1 : index
    %c3_223 = arith.constant 3 : index
    %c0_224 = arith.constant 0 : index
    %c0_225 = arith.constant 0 : index
    %154 = vector.load %arg1[%c0_221, %c1_222, %c3_223, %c0_224, %c0_225] : memref<1x4x5x5x128xbf16, #tpu.memory_space<vmem>>, vector<1x1x1x4x128xbf16>
    %155 = vector.shape_cast %154 : vector<1x1x1x4x128xbf16> to vector<4x128xbf16>
    %c7_226 = arith.constant 7 : index
    %c0_227 = arith.constant 0 : index
    %c0_228 = arith.constant 0 : index
    %156 = vector.load %arg2[%c7_226, %c0_227, %c0_228] : memref<9x128x128xbf16, #tpu.memory_space<vmem>>, vector<1x128x128xbf16>
    %157 = vector.shape_cast %156 : vector<1x128x128xbf16> to vector<128x128xbf16>
    %cst_229 = arith.constant dense<0.000000e+00> : vector<4x128xf32>
    %158 = tpu.matmul %155, %157, %cst_229 {dimension_numbers = #tpu.dot_dimension_numbers<[1], [0], [0], [1], [0, 0, 1, 1], [], []>} : vector<4x128xbf16>, vector<128x128xbf16>, vector<4x128xf32> -> vector<4x128xf32>
    %159 = arith.addf %153, %158 : vector<4x128xf32>
    %c0_230 = arith.constant 0 : index
    %c0_231 = arith.constant 0 : index
    %c3_232 = arith.constant 3 : index
    %c1_233 = arith.constant 1 : index
    %c0_234 = arith.constant 0 : index
    %160 = vector.load %arg1[%c0_230, %c0_231, %c3_232, %c1_233, %c0_234] : memref<1x4x5x5x128xbf16, #tpu.memory_space<vmem>>, vector<1x1x1x4x128xbf16>
    %161 = vector.shape_cast %160 : vector<1x1x1x4x128xbf16> to vector<4x128xbf16>
    %c8_235 = arith.constant 8 : index
    %c0_236 = arith.constant 0 : index
    %c0_237 = arith.constant 0 : index
    %162 = vector.load %arg2[%c8_235, %c0_236, %c0_237] : memref<9x128x128xbf16, #tpu.memory_space<vmem>>, vector<1x128x128xbf16>
    %163 = vector.shape_cast %162 : vector<1x128x128xbf16> to vector<128x128xbf16>
    %cst_238 = arith.constant dense<0.000000e+00> : vector<4x128xf32>
    %164 = tpu.matmul %161, %163, %cst_238 {dimension_numbers = #tpu.dot_dimension_numbers<[1], [0], [0], [1], [0, 0, 1, 1], [], []>} : vector<4x128xbf16>, vector<128x128xbf16>, vector<4x128xf32> -> vector<4x128xf32>
    %165 = arith.addf %159, %164 : vector<4x128xf32>
    %166 = vector.broadcast %0 : vector<1x128xf32> to vector<4x128xf32>
    %167 = arith.addf %165, %166 : vector<4x128xf32>
    %c8_239 = arith.constant 8 : index
    %c0_240 = arith.constant 0 : index
    %168 = vector.load %arg7[%c8_239, %c0_240] : memref<16x128xf32, #tpu.memory_space<vmem>>, vector<4x128xf32>
    tpu.vector_store %arg7[%c8_239, %c0_240], %167 {strides = array<i32>} : memref<16x128xf32, #tpu.memory_space<vmem>>, vector<4x128xf32>,
    %c0_241 = arith.constant 0 : index
    %c0_242 = arith.constant 0 : index
    %c3_243 = arith.constant 3 : index
    %c0_244 = arith.constant 0 : index
    %c0_245 = arith.constant 0 : index
    %169 = vector.load %arg1[%c0_241, %c0_242, %c3_243, %c0_244, %c0_245] : memref<1x4x5x5x128xbf16, #tpu.memory_space<vmem>>, vector<1x1x1x4x128xbf16>
    %170 = vector.shape_cast %169 : vector<1x1x1x4x128xbf16> to vector<4x128xbf16>
    %c0_246 = arith.constant 0 : index
    %c0_247 = arith.constant 0 : index
    %c0_248 = arith.constant 0 : index
    %171 = vector.load %arg2[%c0_246, %c0_247, %c0_248] : memref<9x128x128xbf16, #tpu.memory_space<vmem>>, vector<1x128x128xbf16>
    %172 = vector.shape_cast %171 : vector<1x128x128xbf16> to vector<128x128xbf16>
    %cst_249 = arith.constant dense<0.000000e+00> : vector<4x128xf32>
    %173 = tpu.matmul %170, %172, %cst_249 {dimension_numbers = #tpu.dot_dimension_numbers<[1], [0], [0], [1], [0, 0, 1, 1], [], []>} : vector<4x128xbf16>, vector<128x128xbf16>, vector<4x128xf32> -> vector<4x128xf32>
    %c0_250 = arith.constant 0 : index
    %c1_251 = arith.constant 1 : index
    %c3_252 = arith.constant 3 : index
    %c0_253 = arith.constant 0 : index
    %c0_254 = arith.constant 0 : index
    %174 = vector.load %arg1[%c0_250, %c1_251, %c3_252, %c0_253, %c0_254] : memref<1x4x5x5x128xbf16, #tpu.memory_space<vmem>>, vector<1x1x1x4x128xbf16>
    %175 = vector.shape_cast %174 : vector<1x1x1x4x128xbf16> to vector<4x128xbf16>
    %c1_255 = arith.constant 1 : index
    %c0_256 = arith.constant 0 : index
    %c0_257 = arith.constant 0 : index
    %176 = vector.load %arg2[%c1_255, %c0_256, %c0_257] : memref<9x128x128xbf16, #tpu.memory_space<vmem>>, vector<1x128x128xbf16>
    %177 = vector.shape_cast %176 : vector<1x128x128xbf16> to vector<128x128xbf16>
    %cst_258 = arith.constant dense<0.000000e+00> : vector<4x128xf32>
    %178 = tpu.matmul %175, %177, %cst_258 {dimension_numbers = #tpu.dot_dimension_numbers<[1], [0], [0], [1], [0, 0, 1, 1], [], []>} : vector<4x128xbf16>, vector<128x128xbf16>, vector<4x128xf32> -> vector<4x128xf32>
    %179 = arith.addf %173, %178 : vector<4x128xf32>
    %c0_259 = arith.constant 0 : index
    %c0_260 = arith.constant 0 : index
    %c3_261 = arith.constant 3 : index
    %c1_262 = arith.constant 1 : index
    %c0_263 = arith.constant 0 : index
    %180 = vector.load %arg1[%c0_259, %c0_260, %c3_261, %c1_262, %c0_263] : memref<1x4x5x5x128xbf16, #tpu.memory_space<vmem>>, vector<1x1x1x4x128xbf16>
    %181 = vector.shape_cast %180 : vector<1x1x1x4x128xbf16> to vector<4x128xbf16>
    %c2_264 = arith.constant 2 : index
    %c0_265 = arith.constant 0 : index
    %c0_266 = arith.constant 0 : index
    %182 = vector.load %arg2[%c2_264, %c0_265, %c0_266] : memref<9x128x128xbf16, #tpu.memory_space<vmem>>, vector<1x128x128xbf16>
    %183 = vector.shape_cast %182 : vector<1x128x128xbf16> to vector<128x128xbf16>
    %cst_267 = arith.constant dense<0.000000e+00> : vector<4x128xf32>
    %184 = tpu.matmul %181, %183, %cst_267 {dimension_numbers = #tpu.dot_dimension_numbers<[1], [0], [0], [1], [0, 0, 1, 1], [], []>} : vector<4x128xbf16>, vector<128x128xbf16>, vector<4x128xf32> -> vector<4x128xf32>
    %185 = arith.addf %179, %184 : vector<4x128xf32>
    %c0_268 = arith.constant 0 : index
    %c2_269 = arith.constant 2 : index
    %c3_270 = arith.constant 3 : index
    %c0_271 = arith.constant 0 : index
    %c0_272 = arith.constant 0 : index
    %186 = vector.load %arg1[%c0_268, %c2_269, %c3_270, %c0_271, %c0_272] : memref<1x4x5x5x128xbf16, #tpu.memory_space<vmem>>, vector<1x1x1x4x128xbf16>
    %187 = vector.shape_cast %186 : vector<1x1x1x4x128xbf16> to vector<4x128xbf16>
    %c3_273 = arith.constant 3 : index
    %c0_274 = arith.constant 0 : index
    %c0_275 = arith.constant 0 : index
    %188 = vector.load %arg2[%c3_273, %c0_274, %c0_275] : memref<9x128x128xbf16, #tpu.memory_space<vmem>>, vector<1x128x128xbf16>
    %189 = vector.shape_cast %188 : vector<1x128x128xbf16> to vector<128x128xbf16>
    %cst_276 = arith.constant dense<0.000000e+00> : vector<4x128xf32>
    %190 = tpu.matmul %187, %189, %cst_276 {dimension_numbers = #tpu.dot_dimension_numbers<[1], [0], [0], [1], [0, 0, 1, 1], [], []>} : vector<4x128xbf16>, vector<128x128xbf16>, vector<4x128xf32> -> vector<4x128xf32>
    %191 = arith.addf %185, %190 : vector<4x128xf32>
    %c0_277 = arith.constant 0 : index
    %c3_278 = arith.constant 3 : index
    %c3_279 = arith.constant 3 : index
    %c0_280 = arith.constant 0 : index
    %c0_281 = arith.constant 0 : index
    %192 = vector.load %arg1[%c0_277, %c3_278, %c3_279, %c0_280, %c0_281] : memref<1x4x5x5x128xbf16, #tpu.memory_space<vmem>>, vector<1x1x1x4x128xbf16>
    %193 = vector.shape_cast %192 : vector<1x1x1x4x128xbf16> to vector<4x128xbf16>
    %c4_282 = arith.constant 4 : index
    %c0_283 = arith.constant 0 : index
    %c0_284 = arith.constant 0 : index
    %194 = vector.load %arg2[%c4_282, %c0_283, %c0_284] : memref<9x128x128xbf16, #tpu.memory_space<vmem>>, vector<1x128x128xbf16>
    %195 = vector.shape_cast %194 : vector<1x128x128xbf16> to vector<128x128xbf16>
    %cst_285 = arith.constant dense<0.000000e+00> : vector<4x128xf32>
    %196 = tpu.matmul %193, %195, %cst_285 {dimension_numbers = #tpu.dot_dimension_numbers<[1], [0], [0], [1], [0, 0, 1, 1], [], []>} : vector<4x128xbf16>, vector<128x128xbf16>, vector<4x128xf32> -> vector<4x128xf32>
    %197 = arith.addf %191, %196 : vector<4x128xf32>
    %c0_286 = arith.constant 0 : index
    %c2_287 = arith.constant 2 : index
    %c3_288 = arith.constant 3 : index
    %c1_289 = arith.constant 1 : index
    %c0_290 = arith.constant 0 : index
    %198 = vector.load %arg1[%c0_286, %c2_287, %c3_288, %c1_289, %c0_290] : memref<1x4x5x5x128xbf16, #tpu.memory_space<vmem>>, vector<1x1x1x4x128xbf16>
    %199 = vector.shape_cast %198 : vector<1x1x1x4x128xbf16> to vector<4x128xbf16>
    %c5_291 = arith.constant 5 : index
    %c0_292 = arith.constant 0 : index
    %c0_293 = arith.constant 0 : index
    %200 = vector.load %arg2[%c5_291, %c0_292, %c0_293] : memref<9x128x128xbf16, #tpu.memory_space<vmem>>, vector<1x128x128xbf16>
    %201 = vector.shape_cast %200 : vector<1x128x128xbf16> to vector<128x128xbf16>
    %cst_294 = arith.constant dense<0.000000e+00> : vector<4x128xf32>
    %202 = tpu.matmul %199, %201, %cst_294 {dimension_numbers = #tpu.dot_dimension_numbers<[1], [0], [0], [1], [0, 0, 1, 1], [], []>} : vector<4x128xbf16>, vector<128x128xbf16>, vector<4x128xf32> -> vector<4x128xf32>
    %203 = arith.addf %197, %202 : vector<4x128xf32>
    %c0_295 = arith.constant 0 : index
    %c0_296 = arith.constant 0 : index
    %c4_297 = arith.constant 4 : index
    %c0_298 = arith.constant 0 : index
    %c0_299 = arith.constant 0 : index
    %204 = vector.load %arg1[%c0_295, %c0_296, %c4_297, %c0_298, %c0_299] : memref<1x4x5x5x128xbf16, #tpu.memory_space<vmem>>, vector<1x1x1x4x128xbf16>
    %205 = vector.shape_cast %204 : vector<1x1x1x4x128xbf16> to vector<4x128xbf16>
    %c6_300 = arith.constant 6 : index
    %c0_301 = arith.constant 0 : index
    %c0_302 = arith.constant 0 : index
    %206 = vector.load %arg2[%c6_300, %c0_301, %c0_302] : memref<9x128x128xbf16, #tpu.memory_space<vmem>>, vector<1x128x128xbf16>
    %207 = vector.shape_cast %206 : vector<1x128x128xbf16> to vector<128x128xbf16>
    %cst_303 = arith.constant dense<0.000000e+00> : vector<4x128xf32>
    %208 = tpu.matmul %205, %207, %cst_303 {dimension_numbers = #tpu.dot_dimension_numbers<[1], [0], [0], [1], [0, 0, 1, 1], [], []>} : vector<4x128xbf16>, vector<128x128xbf16>, vector<4x128xf32> -> vector<4x128xf32>
    %209 = arith.addf %203, %208 : vector<4x128xf32>
    %c0_304 = arith.constant 0 : index
    %c1_305 = arith.constant 1 : index
    %c4_306 = arith.constant 4 : index
    %c0_307 = arith.constant 0 : index
    %c0_308 = arith.constant 0 : index
    %210 = vector.load %arg1[%c0_304, %c1_305, %c4_306, %c0_307, %c0_308] : memref<1x4x5x5x128xbf16, #tpu.memory_space<vmem>>, vector<1x1x1x4x128xbf16>
    %211 = vector.shape_cast %210 : vector<1x1x1x4x128xbf16> to vector<4x128xbf16>
    %c7_309 = arith.constant 7 : index
    %c0_310 = arith.constant 0 : index
    %c0_311 = arith.constant 0 : index
    %212 = vector.load %arg2[%c7_309, %c0_310, %c0_311] : memref<9x128x128xbf16, #tpu.memory_space<vmem>>, vector<1x128x128xbf16>
    %213 = vector.shape_cast %212 : vector<1x128x128xbf16> to vector<128x128xbf16>
    %cst_312 = arith.constant dense<0.000000e+00> : vector<4x128xf32>
    %214 = tpu.matmul %211, %213, %cst_312 {dimension_numbers = #tpu.dot_dimension_numbers<[1], [0], [0], [1], [0, 0, 1, 1], [], []>} : vector<4x128xbf16>, vector<128x128xbf16>, vector<4x128xf32> -> vector<4x128xf32>
    %215 = arith.addf %209, %214 : vector<4x128xf32>
    %c0_313 = arith.constant 0 : index
    %c0_314 = arith.constant 0 : index
    %c4_315 = arith.constant 4 : index
    %c1_316 = arith.constant 1 : index
    %c0_317 = arith.constant 0 : index
    %216 = vector.load %arg1[%c0_313, %c0_314, %c4_315, %c1_316, %c0_317] : memref<1x4x5x5x128xbf16, #tpu.memory_space<vmem>>, vector<1x1x1x4x128xbf16>
    %217 = vector.shape_cast %216 : vector<1x1x1x4x128xbf16> to vector<4x128xbf16>
    %c8_318 = arith.constant 8 : index
    %c0_319 = arith.constant 0 : index
    %c0_320 = arith.constant 0 : index
    %218 = vector.load %arg2[%c8_318, %c0_319, %c0_320] : memref<9x128x128xbf16, #tpu.memory_space<vmem>>, vector<1x128x128xbf16>
    %219 = vector.shape_cast %218 : vector<1x128x128xbf16> to vector<128x128xbf16>
    %cst_321 = arith.constant dense<0.000000e+00> : vector<4x128xf32>
    %220 = tpu.matmul %217, %219, %cst_321 {dimension_numbers = #tpu.dot_dimension_numbers<[1], [0], [0], [1], [0, 0, 1, 1], [], []>} : vector<4x128xbf16>, vector<128x128xbf16>, vector<4x128xf32> -> vector<4x128xf32>
    %221 = arith.addf %215, %220 : vector<4x128xf32>
    %222 = vector.broadcast %0 : vector<1x128xf32> to vector<4x128xf32>
    %223 = arith.addf %221, %222 : vector<4x128xf32>
    %c12 = arith.constant 12 : index
    %c0_322 = arith.constant 0 : index
    %224 = vector.load %arg7[%c12, %c0_322] : memref<16x128xf32, #tpu.memory_space<vmem>>, vector<4x128xf32>
    tpu.vector_store %arg7[%c12, %c0_322], %223 {strides = array<i32>} : memref<16x128xf32, #tpu.memory_space<vmem>>, vector<4x128xf32>,
    %c0_323 = arith.constant 0 : index
    %c0_324 = arith.constant 0 : index
    %225 = vector.load %arg7[%c0_323, %c0_324] : memref<16x128xf32, #tpu.memory_space<vmem>>, vector<16x128xf32>
    %cst_325 = arith.constant dense<0.000000e+00> : vector<128xf32>
    %226 = vector.multi_reduction <add>, %225, %cst_325 [0] : vector<16x128xf32> to vector<128xf32>
    %227 = vector.shape_cast %226 : vector<128xf32> to vector<1x128xf32>
    %cst_326 = arith.constant 6.250000e-02 : f32
    %228 = vector.broadcast %cst_326 : f32 to vector<1x128xf32>
    %229 = arith.mulf %227, %228 : vector<1x128xf32>
    %230 = arith.mulf %225, %225 : vector<16x128xf32>
    %cst_327 = arith.constant dense<0.000000e+00> : vector<128xf32>
    %231 = vector.multi_reduction <add>, %230, %cst_327 [0] : vector<16x128xf32> to vector<128xf32>
    %232 = vector.shape_cast %231 : vector<128xf32> to vector<1x128xf32>
    %cst_328 = arith.constant 6.250000e-02 : f32
    %233 = vector.broadcast %cst_328 : f32 to vector<1x128xf32>
    %234 = arith.mulf %232, %233 : vector<1x128xf32>
    %235 = arith.mulf %229, %229 : vector<1x128xf32>
    %236 = arith.subf %234, %235 : vector<1x128xf32>
    %cst_329 = arith.constant 0.000000e+00 : f32
    %237 = vector.broadcast %cst_329 : f32 to vector<1x128xf32>
    %238 = arith.maximumf %236, %237 : vector<1x128xf32>
    %239 = vector.broadcast %229 : vector<1x128xf32> to vector<16x128xf32>
    %240 = arith.subf %225, %239 : vector<16x128xf32>
    %cst_330 = arith.constant 9.99999974E-6 : f32
    %241 = vector.broadcast %cst_330 : f32 to vector<1x128xf32>
    %242 = arith.addf %238, %241 : vector<1x128xf32>
    %243 = math.rsqrt %242 : vector<1x128xf32>
    %244 = vector.broadcast %243 : vector<1x128xf32> to vector<16x128xf32>
    %245 = arith.mulf %240, %244 : vector<16x128xf32>
    %c0_331 = arith.constant 0 : index
    %c0_332 = arith.constant 0 : index
    %246 = vector.load %arg4[%c0_331, %c0_332] : memref<1x128xf32, #tpu.memory_space<vmem>>, vector<1x128xf32>
    %247 = vector.broadcast %246 : vector<1x128xf32> to vector<16x128xf32>
    %248 = arith.mulf %245, %247 : vector<16x128xf32>
    %c0_333 = arith.constant 0 : index
    %c0_334 = arith.constant 0 : index
    %249 = vector.load %arg5[%c0_333, %c0_334] : memref<1x128xf32, #tpu.memory_space<vmem>>, vector<1x128xf32>
    %250 = vector.broadcast %249 : vector<1x128xf32> to vector<16x128xf32>
    %251 = arith.addf %248, %250 : vector<16x128xf32>
    %cst_335 = arith.constant 0.000000e+00 : f32
    %252 = vector.broadcast %cst_335 : f32 to vector<16x128xf32>
    %253 = arith.maximumf %251, %252 : vector<16x128xf32>
    %254 = arith.truncf %253 : vector<16x128xf32> to vector<16x128xbf16>
    %c0_336 = arith.constant 0 : index
    %c0_337 = arith.constant 0 : index
    %c0_338 = arith.constant 0 : index
    %255 = vector.load %arg6[%c0_336, %c0_337, %c0_338] : memref<1x16x128xbf16, #tpu.memory_space<vmem>>, vector<1x16x128xbf16>
    %256 = vector.shape_cast %255 : vector<1x16x128xbf16> to vector<16x128xbf16>
    %257 = vector.shape_cast %254 : vector<16x128xbf16> to vector<1x16x128xbf16>
    tpu.vector_store %arg6[%c0_336, %c0_337, %c0_338], %257 {strides = array<i32>} : memref<1x16x128xbf16, #tpu.memory_space<vmem>>, vector<1x16x128xbf16>,
    return
  }
  func.func @transform_0(%arg0: i32) -> (i32, i32, i32, i32, i32) {
    %c0_i32 = arith.constant 0 : i32
    %c0_i32_0 = arith.constant 0 : i32
    %c0_i32_1 = arith.constant 0 : i32
    %c0_i32_2 = arith.constant 0 : i32
    %c0_i32_3 = arith.constant 0 : i32
    return %arg0, %c0_i32, %c0_i32_0, %c0_i32_1, %c0_i32_2 : i32, i32, i32, i32, i32
  }
  func.func @transform_1(%arg0: i32) -> (i32, i32, i32) {
    %c0_i32 = arith.constant 0 : i32
    %c0_i32_0 = arith.constant 0 : i32
    %c0_i32_1 = arith.constant 0 : i32
    %c0_i32_2 = arith.constant 0 : i32
    return %c0_i32, %c0_i32_0, %c0_i32_1 : i32, i32, i32
  }
  func.func @transform_2(%arg0: i32) -> (i32, i32) {
    %c0_i32 = arith.constant 0 : i32
    %c0_i32_0 = arith.constant 0 : i32
    %c0_i32_1 = arith.constant 0 : i32
    return %c0_i32, %c0_i32_0 : i32, i32
  }
  func.func @transform_3(%arg0: i32) -> (i32, i32) {
    %c0_i32 = arith.constant 0 : i32
    %c0_i32_0 = arith.constant 0 : i32
    %c0_i32_1 = arith.constant 0 : i32
    return %c0_i32, %c0_i32_0 : i32, i32
  }
  func.func @transform_4(%arg0: i32) -> (i32, i32) {
    %c0_i32 = arith.constant 0 : i32
    %c0_i32_0 = arith.constant 0 : i32
    %c0_i32_1 = arith.constant 0 : i32
    return %c0_i32, %c0_i32_0 : i32, i32
  }
  func.func @transform_5(%arg0: i32) -> (i32, i32, i32) {
    %c0_i32 = arith.constant 0 : i32
    %c0_i32_0 = arith.constant 0 : i32
    %c0_i32_1 = arith.constant 0 : i32
    return %arg0, %c0_i32, %c0_i32_0 : i32, i32, i32
  }
}

</mosaic_0001>

<bundles_post_ra>
// kernel: d4_forward.5
= control target key start
LH: loop header
LB: loop body
LE: loop exit
PB: predicated region body
PF: predicated region fallthrough
CT: control target
= control target key end

     0   :  { %vm1391_vm0 = vcmask 1041408   ;;  %vm1400_vm1 = vcmask 1024   ;;  %s2559_s1 = inlined_call_operand.vmem [shape: bf16[2048,128], index: 1, kind: input, shape index: {}]   ;;  %s2560_s0 = inlined_call_operand.vmem [shape: bf16[2,2048], index: 0, kind: input, shape index: {}]   ;;  %s2561_s2 = inlined_call_operand.vmem [shape: f32[1,128], index: 2, kind: input, shape index: {}]   ;;  %s2562_s4 = inlined_call_operand.vmem [shape: f32[1,128], index: 4, kind: input, shape index: {}]   ;;  %s2563_s3 = inlined_call_operand.vmem [shape: bf16[128,128], index: 3, kind: input, shape index: {}]   ;;  %s2564_s5 = inlined_call_operand.vmem [shape: f32[1,128], index: 5, kind: input, shape index: {}]   ;;  %s2565_s6 = inlined_call_operand.<no memory space> [shape: f32[1,1], index: 6, kind: input, shape index: {}]   ;;  %s2566_s7 = inlined_call_operand.vmem [shape: f32[2,1], index: 7, kind: output, shape index: {}]  }
   0x1   :  { %v1957_v0 = vld [vmem:[%s2559_s1 + $0x38] sm:$0xff]  ;;  %v1956_v4 = vld [vmem:[%s2559_s1 + $0x30] sm:$0xff]  ;;  %v1955_v8 = vld [vmem:[%s2559_s1 + $0x28] sm:$0xff] }
   0x2   :  { %v1965_v1 = vld [vmem:[%s2559_s1 + $0x78] sm:$0xff]  ;;  %1094 = vmatpush.bf16.msra.mxu0 %v1957_v0  ;;  %v1964_v5 = vld [vmem:[%s2559_s1 + $0x70] sm:$0xff]  ;;  %v1963_v9 = vld [vmem:[%s2559_s1 + $0x68] sm:$0xff] }
   0x3   :  { %v1973_v2 = vld [vmem:[%s2559_s1 + $0xb8] sm:$0xff]  ;;  %1107 = vmatpush.bf16.msra.mxu1 %v1965_v1  ;;  %v1972_v6 = vld [vmem:[%s2559_s1 + $0xb0] sm:$0xff]  ;;  %v1971_v10 = vld [vmem:[%s2559_s1 + $0xa8] sm:$0xff] }
   0x4   :  { %v1981_v3 = vld [vmem:[%s2559_s1 + $0xf8] sm:$0xff]  ;;  %1120 = vmatpush.bf16.msra.mxu2 %v1973_v2  ;;  %v1980_v7 = vld [vmem:[%s2559_s1 + $0xf0] sm:$0xff]  ;;  %v1979_v11 = vld [vmem:[%s2559_s1 + $0xe8] sm:$0xff] }
   0x5   :  { %1133 = vmatpush.bf16.msra.mxu3 %v1981_v3  ;;  %v1954_v12 = vld [vmem:[%s2559_s1 + $0x20] sm:$0xff]  ;;  %v1953_v16 = vld [vmem:[%s2559_s1 + $0x18] sm:$0xff]  ;;  %v1952_v21 = vld [vmem:[%s2559_s1 + $0x10] sm:$0xff] }
   0x6   :  { %1095 = vmatpush.bf16.msra.mxu0 %v1956_v4  ;;  %v1962_v13 = vld [vmem:[%s2559_s1 + $0x60] sm:$0xff]  ;;  %v1961_v17 = vld [vmem:[%s2559_s1 + $0x58] sm:$0xff]  ;;  %v1960_v22 = vld [vmem:[%s2559_s1 + $0x50] sm:$0xff] }
   0x7   :  { %1108 = vmatpush.bf16.msra.mxu1 %v1964_v5  ;;  %v1970_v14 = vld [vmem:[%s2559_s1 + $0xa0] sm:$0xff]  ;;  %v1969_v18 = vld [vmem:[%s2559_s1 + $0x98] sm:$0xff]  ;;  %v1968_v23 = vld [vmem:[%s2559_s1 + $0x90] sm:$0xff] }
   0x8   :  { %1121 = vmatpush.bf16.msra.mxu2 %v1972_v6  ;;  %v1978_v15 = vld [vmem:[%s2559_s1 + $0xe0] sm:$0xff]  ;;  %v1977_v19 = vld [vmem:[%s2559_s1 + $0xd8] sm:$0xff]  ;;  %v1976_v24 = vld [vmem:[%s2559_s1 + $0xd0] sm:$0xff] }
   0x9   :  { %1134 = vmatpush.bf16.msra.mxu3 %v1980_v7  ;;  %v28_v20 = vld [vmem:[%s2560_s0] sm:$0xff]  ;;  %v1951_v25 = vld [vmem:[%s2559_s1 + $0x8] sm:$0xff]  ;;  %v1989_v33 = vld [vmem:[%s2559_s1 + $0x138] sm:$0xff] }
   0xa   :  { %1096 = vmatpush.bf16.msra.mxu0 %v1955_v8  ;;  %291 = vst [vmem:[#allocation1] ss:$9 sm:$0xff] %v28_v20  ;;  %v1959_v26 = vld [vmem:[%s2559_s1 + $0x48] sm:$0xff]  ;;  %v1950_v29 = vld [vmem:[%s2559_s1] sm:$0xff]  ;;  %v1997_v34 = vld [vmem:[%s2559_s1 + $0x178] sm:$0xff] }
   0xb   :  { %1109 = vmatpush.bf16.msra.mxu1 %v1963_v9  ;;  %v1967_v27 = vld [vmem:[%s2559_s1 + $0x88] sm:$0xff]  ;;  %v1958_v30 = vld [vmem:[%s2559_s1 + $0x40] sm:$0xff]  ;;  %v2005_v35 = vld [vmem:[%s2559_s1 + $0x1b8] sm:$0xff] }
   0xc   :  { %1122 = vmatpush.bf16.msra.mxu2 %v1971_v10  ;;  %v1975_v28 = vld [vmem:[%s2559_s1 + $0xc8] sm:$0xff]  ;;  %v1966_v31 = vld [vmem:[%s2559_s1 + $0x80] sm:$0xff]  ;;  %v2013_v36 = vld [vmem:[%s2559_s1 + $0x1f8] sm:$0xff] }
   0xd   :  { %1135 = vmatpush.bf16.msra.mxu3 %v1979_v11  ;;  %v1974_v32 = vld [vmem:[%s2559_s1 + $0xc0] sm:$0xff]  ;;  %v1988_v37 = vld [vmem:[%s2559_s1 + $0x130] sm:$0xff]  ;;  %v1987_v45 = vld [vmem:[%s2559_s1 + $0x128] sm:$0xff] }
   0xe   :  { %1097 = vmatpush.bf16.msra.mxu0 %v1954_v12  ;;  %v1996_v40 = vld [vmem:[%s2559_s1 + $0x170] sm:$0xff]  ;;  %v1995_v46 = vld [vmem:[%s2559_s1 + $0x168] sm:$0xff]  ;;  %v1986_v54 = vld [vmem:[%s2559_s1 + $0x120] sm:$0xff] }
   0xf   :  { %1110 = vmatpush.bf16.msra.mxu1 %v1962_v13  ;;  %v2004_v43 = vld [vmem:[%s2559_s1 + $0x1b0] sm:$0xff]  ;;  %v2003_v47 = vld [vmem:[%s2559_s1 + $0x1a8] sm:$0xff]  ;;  %v1994_v55 = vld [vmem:[%s2559_s1 + $0x160] sm:$0xff] }
  0x10   :  { %1123 = vmatpush.bf16.msra.mxu2 %v1970_v14  ;;  %v2012_v44 = vld [vmem:[%s2559_s1 + $0x1f0] sm:$0xff]  ;;  %v2011_v48 = vld [vmem:[%s2559_s1 + $0x1e8] sm:$0xff]  ;;  %v2002_v56 = vld [vmem:[%s2559_s1 + $0x1a0] sm:$0xff] }
  0x11   :  { %1136 = vmatpush.bf16.msra.mxu3 %v1978_v15  ;;  %v294_v38 = vld [vmem:[#allocation1 + $0x12] sm:$0xff]  ;;  %v292_v39 = vld [vmem:[#allocation1] sm:$0xff]  ;;  %v293_v42 = vld [vmem:[#allocation1 + $0x9] sm:$0xff] }
  0x12   :  { %1098 = vmatpush.bf16.msra.mxu0 %v1953_v16  ;;  %v295_v41 = vld [vmem:[#allocation1 + $0x1b] sm:$0xff]  ;;  %v29_v49 = vld [vmem:[%s2560_s0 + $0x8] sm:$0xff]  ;;  %v1984_v62 = vld [vmem:[%s2559_s1 + $0x110] sm:$0xff] }
  0x13   :  { %1111 = vmatpush.bf16.msra.mxu1 %v1961_v17  ;;  %v298_v50 = vld [vmem:[#allocation1 + $0x36] sm:$0xff]  ;;  %v296_v51 = vld [vmem:[#allocation1 + $0x24] sm:$0xff]  ;;  %v297_v53 = vld [vmem:[#allocation1 + $0x2d] sm:$0xff] }
  0x14   :  { %1124 = vmatpush.bf16.msra.mxu2 %v1969_v18  ;;  %v299_v52 = vld [vmem:[#allocation1 + $0x3f] sm:$0xff]  ;;  %v1992_v63 = vld [vmem:[%s2559_s1 + $0x150] sm:$0xff]  ;;  %v1983_v2 = vld [vmem:[%s2559_s1 + $0x108] sm:$0xff] }
  0x15   :  { %1137 = vmatpush.bf16.msra.mxu3 %v1977_v19  ;;  %301 = vst [vmem:[#allocation1] ss:$9 sm:$0xff] %v29_v49  ;;  %v2010_v57 = vld [vmem:[%s2559_s1 + $0x1e0] sm:$0xff]  ;;  %v1985_v58 = vld [vmem:[%s2559_s1 + $0x118] sm:$0xff]  ;;  %v2000_v0 = vld [vmem:[%s2559_s1 + $0x190] sm:$0xff] }
  0x16   :  { %1099 = vmatpush.bf16.msra.mxu0 %v1952_v21  ;;  %v1993_v59 = vld [vmem:[%s2559_s1 + $0x158] sm:$0xff]  ;;  %v2008_v1 = vld [vmem:[%s2559_s1 + $0x1d0] sm:$0xff]  ;;  %v1991_v3 = vld [vmem:[%s2559_s1 + $0x148] sm:$0xff] }
  0x17   :  { %1112 = vmatpush.bf16.msra.mxu1 %v1960_v22  ;;  %v2001_v60 = vld [vmem:[%s2559_s1 + $0x198] sm:$0xff]  ;;  %v1999_v4 = vld [vmem:[%s2559_s1 + $0x188] sm:$0xff]  ;;  %v1982_v6 = vld [vmem:[%s2559_s1 + $0x100] sm:$0xff] }
  0x18   :  { %1125 = vmatpush.bf16.msra.mxu2 %v1968_v23  ;;  %v2009_v61 = vld [vmem:[%s2559_s1 + $0x1d8] sm:$0xff]  ;;  %v2007_v5 = vld [vmem:[%s2559_s1 + $0x1c8] sm:$0xff]  ;;  %v1990_v7 = vld [vmem:[%s2559_s1 + $0x140] sm:$0xff] }
  0x19   :  { %1138 = vmatpush.bf16.msra.mxu3 %v1976_v24  ;;  %v1998_v8 = vld [vmem:[%s2559_s1 + $0x180] sm:$0xff]  ;;  %v2021_v10 = vld [vmem:[%s2559_s1 + $0x238] sm:$0xff]  ;;  %v2020_v14 = vld [vmem:[%s2559_s1 + $0x230] sm:$0xff] }
  0x1a   :  { %1100 = vmatpush.bf16.msra.mxu0 %v1951_v25  ;;  %v2006_v9 = vld [vmem:[%s2559_s1 + $0x1c0] sm:$0xff]  ;;  %v2029_v11 = vld [vmem:[%s2559_s1 + $0x278] sm:$0xff]  ;;  %v2028_v15 = vld [vmem:[%s2559_s1 + $0x270] sm:$0xff] }
  0x1b   :  { %1113 = vmatpush.bf16.msra.mxu1 %v1959_v26  ;;  %v2037_v12 = vld [vmem:[%s2559_s1 + $0x2b8] sm:$0xff]  ;;  %v2036_v16 = vld [vmem:[%s2559_s1 + $0x2b0] sm:$0xff]  ;;  %v2019_v18 = vld [vmem:[%s2559_s1 + $0x228] sm:$0xff] }
  0x1c   :  { %1126 = vmatpush.bf16.msra.mxu2 %v1967_v27  ;;  %v2045_v13 = vld [vmem:[%s2559_s1 + $0x2f8] sm:$0xff]  ;;  %v2044_v17 = vld [vmem:[%s2559_s1 + $0x2f0] sm:$0xff]  ;;  %v2027_v19 = vld [vmem:[%s2559_s1 + $0x268] sm:$0xff] }
  0x1d   :  { %1139 = vmatpush.bf16.msra.mxu3 %v1975_v28  ;;  %v2035_v20 = vld [vmem:[%s2559_s1 + $0x2a8] sm:$0xff]  ;;  %v2018_v22 = vld [vmem:[%s2559_s1 + $0x220] sm:$0xff]  ;;  %v2017_v26 = vld [vmem:[%s2559_s1 + $0x218] sm:$0xff] }
  0x1e   :  { %1101 = vmatpush.bf16.msra.mxu0 %v1950_v29  ;;  %v2043_v21 = vld [vmem:[%s2559_s1 + $0x2e8] sm:$0xff]  ;;  %v2026_v23 = vld [vmem:[%s2559_s1 + $0x260] sm:$0xff]  ;;  %v2025_v27 = vld [vmem:[%s2559_s1 + $0x258] sm:$0xff] }
  0x1f   :  { %1114 = vmatpush.bf16.msra.mxu1 %v1958_v30  ;;  %v2034_v24 = vld [vmem:[%s2559_s1 + $0x2a0] sm:$0xff]  ;;  %v2033_v28 = vld [vmem:[%s2559_s1 + $0x298] sm:$0xff]  ;;  %v2016_v30 = vld [vmem:[%s2559_s1 + $0x210] sm:$0xff] }
  0x20   :  { %1127 = vmatpush.bf16.msra.mxu2 %v1966_v31  ;;  %v2042_v25 = vld [vmem:[%s2559_s1 + $0x2e0] sm:$0xff]  ;;  %v2041_v29 = vld [vmem:[%s2559_s1 + $0x2d8] sm:$0xff]  ;;  %v2024_v31 = vld [vmem:[%s2559_s1 + $0x250] sm:$0xff] }
  0x21   :  { %1140 = vmatpush.bf16.msra.mxu3 %v1974_v32  ;;  %1102 = vmatmul.bf16.vlgmr.msra.gmra.mxu0 %v292_v39  ;;  %v2032_v32 = vld [vmem:[%s2559_s1 + $0x290] sm:$0xff]  ;;  %v2022_v39 = vld [vmem:[%s2559_s1 + $0x240] sm:$0xff] }
  0x22   :  { %1146 = vmatpush.bf16.msrb.mxu0 %v1989_v33  ;;  %1115 = vmatmul.bf16.vlgmr.msra.gmra.mxu1 %v293_v42  ;;  %v2040_v33 = vld [vmem:[%s2559_s1 + $0x2d0] sm:$0xff]  ;;  %v2053_v42 = vld [vmem:[%s2559_s1 + $0x338] sm:$0xff] }
  0x23   :  { %1159 = vmatpush.bf16.msrb.mxu1 %v1997_v34  ;;  %1128 = vmatmul.bf16.vlgmr.msra.gmra.mxu2 %v294_v38  ;;  %v2015_v34 = vld [vmem:[%s2559_s1 + $0x208] sm:$0xff]  ;;  %v2014_v38 = vld [vmem:[%s2559_s1 + $0x200] sm:$0xff] }
  0x24   :  { %1172 = vmatpush.bf16.msrb.mxu2 %v2005_v35  ;;  %1141 = vmatmul.bf16.vlgmr.msra.gmra.mxu3 %v295_v41  ;;  %v2023_v35 = vld [vmem:[%s2559_s1 + $0x248] sm:$0xff]  ;;  %v2038_v41 = vld [vmem:[%s2559_s1 + $0x2c0] sm:$0xff] }
  0x25   :  { %1185 = vmatpush.bf16.msrb.mxu3 %v2013_v36  ;;  %v2031_v36 = vld [vmem:[%s2559_s1 + $0x288] sm:$0xff]  ;;  %v305_v49 = vld [vmem:[#allocation1 + $0x1b] sm:$0xff] }
  0x26   :  { %1147 = vmatpush.bf16.msrb.mxu0 %v1988_v37  ;;  %v2039_v37 = vld [vmem:[%s2559_s1 + $0x2c8] sm:$0xff] }
  0x27   :  { %1160 = vmatpush.bf16.msrb.mxu1 %v1996_v40  ;;  %v2030_v40 = vld [vmem:[%s2559_s1 + $0x280] sm:$0xff] }
  0x28   :  { %1173 = vmatpush.bf16.msrb.mxu2 %v2004_v43  ;;  %v2061_v43 = vld [vmem:[%s2559_s1 + $0x378] sm:$0xff] }
  0x29   :  { %1186 = vmatpush.bf16.msrb.mxu3 %v2012_v44  ;;  %v2069_v44 = vld [vmem:[%s2559_s1 + $0x3b8] sm:$0xff] }
  0x2a   :  { %1148 = vmatpush.bf16.msrb.mxu0 %v1987_v45  ;;  %v2077_v45 = vld [vmem:[%s2559_s1 + $0x3f8] sm:$0xff] }
  0x2b   :  { %1161 = vmatpush.bf16.msrb.mxu1 %v1995_v46  ;;  %v302_v46 = vld [vmem:[#allocation1] sm:$0xff] }
  0x2c   :  { %1174 = vmatpush.bf16.msrb.mxu2 %v2003_v47  ;;  %v304_v47 = vld [vmem:[#allocation1 + $0x12] sm:$0xff] }
  0x2d   :  { %1187 = vmatpush.bf16.msrb.mxu3 %v2011_v48  ;;  %v303_v48 = vld [vmem:[#allocation1 + $0x9] sm:$0xff] }
  0x2e   :  { %1149 = vmatpush.bf16.msrb.mxu0 %v1986_v54  ;;  %v2051_v54 = vld [vmem:[%s2559_s1 + $0x328] sm:$0xff] }
  0x2f   :  { %1162 = vmatpush.bf16.msrb.mxu1 %v1994_v55  ;;  %v2059_v55 = vld [vmem:[%s2559_s1 + $0x368] sm:$0xff] }
  0x30   :  { %1175 = vmatpush.bf16.msrb.mxu2 %v2002_v56  ;;  %v2067_v56 = vld [vmem:[%s2559_s1 + $0x3a8] sm:$0xff] }
  0x31   :  { %1188 = vmatpush.bf16.msrb.mxu3 %v2010_v57  ;;  %v2075_v57 = vld [vmem:[%s2559_s1 + $0x3e8] sm:$0xff] }
  0x32   :  { %1150 = vmatpush.bf16.msrb.mxu0 %v1985_v58  ;;  %v2050_v58 = vld [vmem:[%s2559_s1 + $0x320] sm:$0xff] }
  0x33   :  { %1163 = vmatpush.bf16.msrb.mxu1 %v1993_v59  ;;  %v2058_v59 = vld [vmem:[%s2559_s1 + $0x360] sm:$0xff] }
  0x34   :  { %1176 = vmatpush.bf16.msrb.mxu2 %v2001_v60  ;;  %v2066_v60 = vld [vmem:[%s2559_s1 + $0x3a0] sm:$0xff] }
  0x35   :  { %1189 = vmatpush.bf16.msrb.mxu3 %v2009_v61  ;;  %v2074_v61 = vld [vmem:[%s2559_s1 + $0x3e0] sm:$0xff] }
  0x36   :  { %1151 = vmatpush.bf16.msrb.mxu0 %v1984_v62  ;;  %v2049_v62 = vld [vmem:[%s2559_s1 + $0x318] sm:$0xff] }
  0x37   :  { %1164 = vmatpush.bf16.msrb.mxu1 %v1992_v63  ;;  %v2057_v63 = vld [vmem:[%s2559_s1 + $0x358] sm:$0xff] }
  0x38   :  { %1177 = vmatpush.bf16.msrb.mxu2 %v2000_v0  ;;  %v2065_v0 = vld [vmem:[%s2559_s1 + $0x398] sm:$0xff] }
  0x39   :  { %1190 = vmatpush.bf16.msrb.mxu3 %v2008_v1  ;;  %v2073_v1 = vld [vmem:[%s2559_s1 + $0x3d8] sm:$0xff] }
  0x3a   :  { %1152 = vmatpush.bf16.msrb.mxu0 %v1983_v2  ;;  %v2048_v2 = vld [vmem:[%s2559_s1 + $0x310] sm:$0xff] }
  0x3b   :  { %1165 = vmatpush.bf16.msrb.mxu1 %v1991_v3  ;;  %v2056_v3 = vld [vmem:[%s2559_s1 + $0x350] sm:$0xff] }
  0x3c   :  { %1178 = vmatpush.bf16.msrb.mxu2 %v1999_v4  ;;  %v2064_v4 = vld [vmem:[%s2559_s1 + $0x390] sm:$0xff] }
  0x3d   :  { %1191 = vmatpush.bf16.msrb.mxu3 %v2007_v5  ;;  %v2072_v5 = vld [vmem:[%s2559_s1 + $0x3d0] sm:$0xff] }
  0x3e   :  { %1153 = vmatpush.bf16.msrb.mxu0 %v1982_v6  ;;  %v2047_v6 = vld [vmem:[%s2559_s1 + $0x308] sm:$0xff] }
  0x3f   :  { %1166 = vmatpush.bf16.msrb.mxu1 %v1990_v7  ;;  %v2055_v7 = vld [vmem:[%s2559_s1 + $0x348] sm:$0xff] }
  0x40   :  { %1179 = vmatpush.bf16.msrb.mxu2 %v1998_v8  ;;  %v2063_v8 = vld [vmem:[%s2559_s1 + $0x388] sm:$0xff] }
  0x41   :  { %1192 = vmatpush.bf16.msrb.mxu3 %v2006_v9  ;;  %1154 = vmatmul.bf16.vlgmr.msrb.gmra.mxu0 %v296_v51  ;;  %v2060_v51 = vld [vmem:[%s2559_s1 + $0x370] sm:$0xff]  ;;  %v2071_v9 = vld [vmem:[%s2559_s1 + $0x3c8] sm:$0xff] }
  0x42   :  { %1198 = vmatpush.bf16.msra.mxu0 %v2021_v10  ;;  %1167 = vmatmul.bf16.vlgmr.msrb.gmra.mxu1 %v297_v53  ;;  %v2076_v53 = vld [vmem:[%s2559_s1 + $0x3f0] sm:$0xff]  ;;  %v2046_v10 = vld [vmem:[%s2559_s1 + $0x300] sm:$0xff] }
  0x43   :  { %1211 = vmatpush.bf16.msra.mxu1 %v2029_v11  ;;  %1180 = vmatmul.bf16.vlgmr.msrb.gmra.mxu2 %v298_v50  ;;  %v2052_v50 = vld [vmem:[%s2559_s1 + $0x330] sm:$0xff]  ;;  %v2054_v11 = vld [vmem:[%s2559_s1 + $0x340] sm:$0xff] }
  0x44   :  { %1224 = vmatpush.bf16.msra.mxu2 %v2037_v12  ;;  %1193 = vmatmul.bf16.vlgmr.msrb.gmra.mxu3 %v299_v52  ;;  %v2068_v52 = vld [vmem:[%s2559_s1 + $0x3b0] sm:$0xff]  ;;  %v2062_v12 = vld [vmem:[%s2559_s1 + $0x380] sm:$0xff] }
  0x45   :  { %1237 = vmatpush.bf16.msra.mxu3 %v2045_v13  ;;  %v2070_v13 = vld [vmem:[%s2559_s1 + $0x3c0] sm:$0xff] }
  0x46   :  { %1199 = vmatpush.bf16.msra.mxu0 %v2020_v14  ;;  %v306_v14 = vld [vmem:[#allocation1 + $0x24] sm:$0xff] }
  0x47   :  { %1212 = vmatpush.bf16.msra.mxu1 %v2028_v15  ;;  %v307_v15 = vld [vmem:[#allocation1 + $0x2d] sm:$0xff] }
  0x48   :  { %1225 = vmatpush.bf16.msra.mxu2 %v2036_v16  ;;  %v308_v16 = vld [vmem:[#allocation1 + $0x36] sm:$0xff] }
  0x49   :  { %1238 = vmatpush.bf16.msra.mxu3 %v2044_v17  ;;  %v309_v17 = vld [vmem:[#allocation1 + $0x3f] sm:$0xff] }
  0x4a   :  { %1200 = vmatpush.bf16.msra.mxu0 %v2019_v18  ;;  %v2086_v18 = vld [vmem:[%s2561_s2] ss:$0 sm:$0xff] }
  0x4b   :  { %1213 = vmatpush.bf16.msra.mxu1 %v2027_v19 }
  0x4c   :  { %1226 = vmatpush.bf16.msra.mxu2 %v2035_v20 }
  0x4d   :  { %1239 = vmatpush.bf16.msra.mxu3 %v2043_v21 }
  0x4e   :  { %1201 = vmatpush.bf16.msra.mxu0 %v2018_v22 }
  0x4f   :  { %1214 = vmatpush.bf16.msra.mxu1 %v2026_v23 }
  0x50   :  { %1227 = vmatpush.bf16.msra.mxu2 %v2034_v24 }
  0x51   :  { %1240 = vmatpush.bf16.msra.mxu3 %v2042_v25 }
  0x52   :  { %1202 = vmatpush.bf16.msra.mxu0 %v2017_v26 }
  0x53   :  { %1215 = vmatpush.bf16.msra.mxu1 %v2025_v27 }
  0x54   :  { %1228 = vmatpush.bf16.msra.mxu2 %v2033_v28 }
  0x55   :  { %1241 = vmatpush.bf16.msra.mxu3 %v2041_v29 }
  0x56   :  { %1203 = vmatpush.bf16.msra.mxu0 %v2016_v30 }
  0x57   :  { %1216 = vmatpush.bf16.msra.mxu1 %v2024_v31 }
  0x58   :  { %1229 = vmatpush.bf16.msra.mxu2 %v2032_v32 }
  0x59   :  { %1242 = vmatpush.bf16.msra.mxu3 %v2040_v33 }
  0x5a   :  { %1204 = vmatpush.bf16.msra.mxu0 %v2015_v34 }
  0x5b   :  { %1217 = vmatpush.bf16.msra.mxu1 %v2023_v35  ;;  %v2085_v35 = vld [vmem:[%s2563_s3 + $0x38] sm:$0xff] }
  0x5c   :  { %1230 = vmatpush.bf16.msra.mxu2 %v2031_v36 }
  0x5d   :  { %1243 = vmatpush.bf16.msra.mxu3 %v2039_v37 }
  0x5e   :  { %1205 = vmatpush.bf16.msra.mxu0 %v2014_v38  ;;  %v2084_v38 = vld [vmem:[%s2563_s3 + $0x30] sm:$0xff] }
  0x5f   :  { %1218 = vmatpush.bf16.msra.mxu1 %v2022_v39  ;;  %v2083_v39 = vld [vmem:[%s2563_s3 + $0x28] sm:$0xff] }
  0x60   :  { %1231 = vmatpush.bf16.msra.mxu2 %v2030_v40 }
  0x61   :  { %1244 = vmatpush.bf16.msra.mxu3 %v2038_v41  ;;  %1206 = vmatmul.bf16.vlgmr.msra.gmra.mxu0 %v302_v46 }
  0x62   :  { %1250 = vmatpush.bf16.msrb.mxu0 %v2053_v42  ;;  %1219 = vmatmul.bf16.vlgmr.msra.gmra.mxu1 %v303_v48  ;;  %v2082_v42 = vld [vmem:[%s2563_s3 + $0x20] sm:$0xff] }
  0x63   :  { %1263 = vmatpush.bf16.msrb.mxu1 %v2061_v43  ;;  %1232 = vmatmul.bf16.vlgmr.msra.gmra.mxu2 %v304_v47  ;;  %v2081_v43 = vld [vmem:[%s2563_s3 + $0x18] sm:$0xff]  ;;  %v2079_v47 = vld [vmem:[%s2563_s3 + $0x8] sm:$0xff] }
  0x64   :  { %1276 = vmatpush.bf16.msrb.mxu2 %v2069_v44  ;;  %1245 = vmatmul.bf16.vlgmr.msra.gmra.mxu3 %v305_v49 }
  0x65   :  { %1289 = vmatpush.bf16.msrb.mxu3 %v2077_v45  ;;  %v2080_v45 = vld [vmem:[%s2563_s3 + $0x10] sm:$0xff] }
  0x66   :  { %1251 = vmatpush.bf16.msrb.mxu0 %v2052_v50 }
  0x67   :  { %1264 = vmatpush.bf16.msrb.mxu1 %v2060_v51 }
  0x68   :  { %1277 = vmatpush.bf16.msrb.mxu2 %v2068_v52  ;;  %v2078_v52 = vld [vmem:[%s2563_s3] sm:$0xff] }
  0x69   :  { %1290 = vmatpush.bf16.msrb.mxu3 %v2076_v53 }
  0x6a   :  { %1252 = vmatpush.bf16.msrb.mxu0 %v2051_v54 }
  0x6b   :  { %1265 = vmatpush.bf16.msrb.mxu1 %v2059_v55 }
  0x6c   :  { %1278 = vmatpush.bf16.msrb.mxu2 %v2067_v56 }
  0x6d   :  { %1291 = vmatpush.bf16.msrb.mxu3 %v2075_v57 }
  0x6e   :  { %1253 = vmatpush.bf16.msrb.mxu0 %v2050_v58 }
  0x6f   :  { %1266 = vmatpush.bf16.msrb.mxu1 %v2058_v59 }
  0x70   :  { %1279 = vmatpush.bf16.msrb.mxu2 %v2066_v60 }
  0x71   :  { %1292 = vmatpush.bf16.msrb.mxu3 %v2074_v61 }
  0x72   :  { %1254 = vmatpush.bf16.msrb.mxu0 %v2049_v62 }
  0x73   :  { %1267 = vmatpush.bf16.msrb.mxu1 %v2057_v63 }
  0x74   :  { %1280 = vmatpush.bf16.msrb.mxu2 %v2065_v0 }
  0x75   :  { %1293 = vmatpush.bf16.msrb.mxu3 %v2073_v1 }
  0x76   :  { %1255 = vmatpush.bf16.msrb.mxu0 %v2048_v2 }
  0x77   :  { %1268 = vmatpush.bf16.msrb.mxu1 %v2056_v3 }
  0x78   :  { %1281 = vmatpush.bf16.msrb.mxu2 %v2064_v4 }
  0x79   :  { %1294 = vmatpush.bf16.msrb.mxu3 %v2072_v5 }
  0x7a   :  { %1256 = vmatpush.bf16.msrb.mxu0 %v2047_v6 }
  0x7b   :  { %1269 = vmatpush.bf16.msrb.mxu1 %v2055_v7 }
  0x7c   :  { %1282 = vmatpush.bf16.msrb.mxu2 %v2063_v8 }
  0x7d   :  { %1295 = vmatpush.bf16.msrb.mxu3 %v2071_v9 }
  0x7e   :  { %1257 = vmatpush.bf16.msrb.mxu0 %v2046_v10 }
  0x7f   :  { %1270 = vmatpush.bf16.msrb.mxu1 %v2054_v11 }
  0x80   :  { %1283 = vmatpush.bf16.msrb.mxu2 %v2062_v12 }
  0x81   :  { %1296 = vmatpush.bf16.msrb.mxu3 %v2070_v13  ;;  %1258 = vmatmul.bf16.vlgmr.msrb.gmra.mxu0 %v306_v14  ;;  %v12_v13 = vstv %s2565_s6  ;;  %v2087_v14 = vld [vmem:[%s2562_s4] ss:$0 sm:$0xff] }
  0x82   :  { %1271 = vmatmul.bf16.vlgmr.msrb.gmra.mxu1 %v307_v15  ;;  %1372 = vmatpush.bf16.msra.mxu0 %v2085_v35  ;;  %13 = vst [vmem:[#allocation2] sm:$0x1] %v12_v13 }
  0x83   :  { %1284 = vmatmul.bf16.vlgmr.msrb.gmra.mxu2 %v308_v16 }
  0x84   :  { %1297 = vmatmul.bf16.vlgmr.msrb.gmra.mxu3 %v309_v17  ;;  %v2088_v17 = vld [vmem:[%s2564_s5] ss:$0 sm:$0xff] }
  0x86   :  { %1373 = vmatpush.bf16.msra.mxu0 %v2084_v38 }
  0x8a   :  { %1374 = vmatpush.bf16.msra.mxu0 %v2083_v39 }
  0x8e   :  { %1375 = vmatpush.bf16.msra.mxu0 %v2082_v42 }
  0x92   :  { %1376 = vmatpush.bf16.msra.mxu0 %v2081_v43 }
  0x96   :  { %1377 = vmatpush.bf16.msra.mxu0 %v2080_v45 }
  0x9a   :  { %1378 = vmatpush.bf16.msra.mxu0 %v2079_v47 }
  0x9e   :  { %v1103_v19 = vpop.f32.mrf.mxu0  ;;  %1379 = vmatpush.bf16.msra.mxu0 %v2078_v52 }
  0x9f   :  { %v1104_v20 = vadd.f32 %v2086_v18, %v1103_v19  ;;  %v1116_v21 = vpop.f32.mrf.mxu1 }
  0xa1   :  { %v1117_v22 = vadd.f32 %v1116_v21, %v1104_v20 }
  0xa6   :  { %v1129_v23 = vpop.f32.mrf.mxu2  ;;  %v1105_v26 = vpop.f32.mrf.mxu0 }
  0xa7   :  { %v1130_v24 = vadd.f32 %v1129_v23, %v1117_v22  ;;  %v1142_v25 = vpop.f32.mrf.mxu3  ;;  %v1118_v28 = vpop.f32.mrf.mxu1  ;;  %v2089_v22 = vld [vmem:[#allocation2] ss:$0 sm:$0xff] }
  0xa9   :  { %v1143_v27 = vadd.f32 %v1142_v25, %v1130_v24 }
  0xae   :  { %v1131_v29 = vpop.f32.mrf.mxu2 }
  0xaf   :  { %v1144_v30 = vpop.f32.mrf.mxu3 }
  0xbe   :  { %v1155_v31 = vpop.f32.mrf.mxu0 }
  0xbf   :  { %v1168_v32 = vpop.f32.mrf.mxu1  ;;  %v1156_v48 = vadd.f32 %v1155_v31, %v1143_v27 }
  0xc1   :  { %v1169_v53 = vadd.f32 %v1168_v32, %v1156_v48 }
  0xc6   :  { %v1181_v33 = vpop.f32.mrf.mxu2  ;;  %v1157_v36 = vpop.f32.mrf.mxu0 }
  0xc7   :  { %v1194_v34 = vpop.f32.mrf.mxu3  ;;  %v1170_v37 = vpop.f32.mrf.mxu1  ;;  %v1182_v55 = vadd.f32 %v1181_v33, %v1169_v53 }
  0xc9   :  { %v1195_v58 = vadd.f32 %v1194_v34, %v1182_v55 }
  0xce   :  { %v1183_v40 = vpop.f32.mrf.mxu2 }
  0xcf   :  { %v1196_v41 = vpop.f32.mrf.mxu3 }
  0xde   :  { %v1207_v44 = vpop.f32.mrf.mxu0 }
  0xdf   :  { %v1220_v46 = vpop.f32.mrf.mxu1  ;;  %v1208_v59 = vadd.f32 %v1207_v44, %v1195_v58 }
  0xe1   :  { %v1221_v60 = vadd.f32 %v1220_v46, %v1208_v59 }
  0xe6   :  { %v1233_v49 = vpop.f32.mrf.mxu2  ;;  %v1209_v51 = vpop.f32.mrf.mxu0 }
  0xe7   :  { %v1246_v50 = vpop.f32.mrf.mxu3  ;;  %v1222_v54 = vpop.f32.mrf.mxu1  ;;  %v1234_v61 = vadd.f32 %v1233_v49, %v1221_v60 }
  0xe9   :  { %v1247_v62 = vadd.f32 %v1246_v50, %v1234_v61 }
  0xee   :  { %v1235_v56 = vpop.f32.mrf.mxu2 }
  0xef   :  { %v1248_v57 = vpop.f32.mrf.mxu3 }
  0xfe   :  { %v1259_v63 = vpop.f32.mrf.mxu0 }
  0xff   :  { %v1272_v0 = vpop.f32.mrf.mxu1  ;;  %v1260_v1 = vadd.f32 %v1259_v63, %v1247_v62 }
 0x101   :  { %v1273_v2 = vadd.f32 %v1272_v0, %v1260_v1 }
 0x106   :  { %v1285_v3 = vpop.f32.mrf.mxu2  ;;  %v1261_v6 = vpop.f32.mrf.mxu0 }
 0x107   :  { %v1298_v4 = vpop.f32.mrf.mxu3  ;;  %v1286_v5 = vadd.f32 %v1285_v3, %v1273_v2  ;;  %v1274_v7 = vpop.f32.mrf.mxu1 }
 0x109   :  { %v1299_v8 = vadd.f32 %v1298_v4, %v1286_v5 }
 0x10b   :  { %v1302_v9 = vmax.f32 %v1299_v8, 0.0 }
 0x10d   :  { %v1303_v10 = vpack.c.bf16 %v1302_v9, %v1302_v9 }
 0x10e   :  { %v1287_v11 = vpop.f32.mrf.mxu2 }
 0x10f   :  { %v1300_v12 = vpop.f32.mrf.mxu3  ;;  %1380 = vmatmul.bf16.vlgmr.msra.gmra.mxu0 %v1303_v10 }
 0x18c   :  { %v1381_v15 = vpop.f32.mrf.mxu0 }
 0x18d   :  { %v1382_v16 = vadd.f32 %v2087_v14, %v1381_v15 }
 0x18f   :  { %v1385_v18 = vmax.f32 %v1382_v16, 0.0 }
 0x191   :  { %v1390_v19 = vmul.f32 %v2088_v17, %v1385_v18 }
 0x193   :  { %v1392_v20 = vsel %vm1391_vm0, %v1390_v19, 0.0 }
 0x194   :  { %v1383_v21 = vpop.f32.mrf.mxu0  ;;  %1393 = vadd.xlane.f32.xlu0 %v1392_v20 }
 0x207   :  { %v1394_v23 = vpop.xlane.xlu0 %1393 }
 0x208   :  { %v1399_v24 = vadd.f32 %v2089_v22, %v1394_v23 }
 0x20a   :  { %1401 = vst.msk [vmem:[%s2566_s7] sm:$0x3] %vm1400_vm1, %v1399_v24 }

// kernel: d4_forward.3
= control target key start
LH: loop header
LB: loop body
LE: loop exit
PB: predicated region body
PF: predicated region fallthrough
CT: control target
= control target key end

     0   :  { %s2781_s18 = smov 0   ;;  %s3330_s0 = inlined_call_operand.vmem [shape: bf16[2,4,9,9,4], index: 0, kind: input, shape index: {}]   ;;  %s3331_s1 = inlined_call_operand.vmem [shape: bf16[9,4,128], index: 1, kind: input, shape index: {}]   ;;  %s3332_s2 = inlined_call_operand.vmem [shape: f32[1,128], index: 2, kind: input, shape index: {}]   ;;  %s3333_s3 = inlined_call_operand.vmem [shape: f32[1,128], index: 3, kind: input, shape index: {}]   ;;  %s3334_s4 = inlined_call_operand.vmem [shape: f32[1,128], index: 4, kind: input, shape index: {}]   ;;  %s3335_s5 = inlined_call_operand.vmem [shape: bf16[2,64,128], index: 5, kind: output, shape index: {}]  }
   0x1 LB: > { %s2346_s19 = sadd.s32 4294967295, %s2749_s18   ;;  %p2350_p0 = scmp.ge.s32.totalorder %s2749_s18, 1  ;;  %s2749_s18 = sphi %s2781_s18, %s15_s18  }
   0x2   : > { %p187_p1 = scmp.lt.s32.totalorder %s2749_s18, 3 }
   0x4   : > { %p188_p2 = pnand %p2350_p0, %p187_p1 }
   0x5   : > { %p215_p3 = scmp.lt.s32.totalorder (!%p188_p2), %s2346_s19, 1 }
   0x6   : > { %191 = sbr.rel (%p188_p2) target bundleno = 493 (0x1ed), region = 40 }
   0xb   : > { %v2355_v0 = vld [vmem:[%s3331_s1 + $0x2] sm:$0x3]  ;;  %vm237_vm0 = vcmask 1041408   ;;  %v228_v1 = vld [vmem:[%s3331_s1] sm:$0x3]  ;;  %s3337_s19 = smov (!%p215_p3, %s2346_s19), 1 }
   0xc   : > { %v239_v2 = vsel %vm237_vm0, %v2355_v0, 0  ;;  %v258_v3 = vsel %vm237_vm0, %v228_v1, 0  ;;  %v2365_v4 = vld [vmem:[%s3331_s1 + $0x6] sm:$0x3]  ;;  %v2358_v6 = vld [vmem:[%s3331_s1 + $0x4] sm:$0x3] }
   0xd   : > { %248 = vmatpush.bf16.msra.mxu0 %v239_v2  ;;  %267 = vmatpush.bf16.msra.mxu1 %v258_v3  ;;  %v317_v5 = vsel %vm237_vm0, %v2365_v4, 0  ;;  %v2379_v7 = vld [vmem:[%s3331_s1 + $0xc] sm:$0x3]  ;;  %v293_v8 = vsel %vm237_vm0, %v2358_v6, 0  ;;  %v2368_v10 = vld [vmem:[%s3331_s1 + $0x8] sm:$0x3] }
   0xe   : > { %326 = vmatpush.bf16.msra.mxu3 %v317_v5  ;;  %v401_v9 = vsel %vm237_vm0, %v2379_v7, 0  ;;  %v2382_v11 = vld [vmem:[%s3331_s1 + $0xe] sm:$0x3]  ;;  %s2729_s9 = smul.u32 288, %s3337_s19  ;;  %302 = vmatpush.bf16.msra.mxu2 %v293_v8  ;;  %v341_v12 = vsel %vm237_vm0, %v2368_v10, 0  ;;  %vm233_vm1 = vcmask 31744  }
   0xf   : > { %v425_v13 = vsel %vm237_vm0, %v2382_v11, 0  ;;  %v2372_v14 = vld [vmem:[%s3331_s1 + $0xa] sm:$0x3]  ;;  %v2386_v16 = vld [vmem:[%s3331_s1 + $0x10] sm:$0x3]  ;;  %s2681_s15 = sshll.u32 %s3337_s19, 5 }
  0x10   : > { %v377_v15 = vsel %vm237_vm0, %v2372_v14, 0  ;;  %s2830_s16 = scalar_lea.vmem %s3330_s0, %s2729_s9  ;;  %v461_v17 = vsel %vm237_vm0, %v2386_v16, 0  ;;  %v2399_v18 = vld [vmem:[%s3331_s1 + $0x4] sm:$0x3]  ;;  %v2394_v19 = vld [vmem:[%s3331_s1 + $0x2] sm:$0x3]  ;;  %s224_s21 = scalar_lea.vmem %s3335_s5, %s2681_s15 }
  0x11   : > { %350 = vmatpush.bf16.msrb.mxu0 %v341_v12  ;;  %386 = vmatpush.bf16.msrb.mxu1 %v377_v15  ;;  %v2354_v20 = vld [vmem:[%s2830_s16 + $0x48] sm:$0xf]  ;;  %v227_v21 = vld [vmem:[%s2830_s16] sm:$0xf]  ;;  %v2364_v22 = vld [vmem:[%s2830_s16 + $0x90] sm:$0xf] }
  0x12   : > { %410 = vmatpush.bf16.msrb.mxu2 %v401_v9  ;;  %434 = vmatpush.bf16.msrb.mxu3 %v425_v13  ;;  %v2361_v23 = vld [vmem:[%s2830_s16] sm:$0xf]  ;;  %v2682_v24 = vld [vmem:[%s2830_s16] sm:$0x10]  ;;  %v2375_v26 = vld [vmem:[%s2830_s16 + $0x90] sm:$0xf] }
  0x13   : > { %2356 = vmatmul.msk.bf16.vlgmr.msra.gmra.mxu0 %vm233_vm1, %v2354_v20  ;;  %2357 = vmatmul.msk.bf16.vlgmr.msra.gmra.mxu1 %vm233_vm1, %v227_v21  ;;  %v2362_v25 = vor.u32 %v2682_v24, %v2361_v23  ;;  %v2683_v27 = vld [vmem:[%s2830_s16 + $0x90] sm:$0x10]  ;;  %v543_v29 = vsel %vm237_vm0, %v2399_v18, 0  ;;  %v490_v30 = vsel %vm237_vm0, %v2394_v19, 0  ;;  %v483_v34 = vld [vmem:[%s3331_s1] sm:$0x3] }
  0x14   : > { %2366 = vmatmul.msk.bf16.vlgmr.msra.gmra.mxu3 %vm233_vm1, %v2364_v22  ;;  %v2376_v28 = vor.u32 %v2683_v27, %v2375_v26  ;;  %v509_v37 = vsel %vm237_vm0, %v483_v34, 0  ;;  %v2406_v40 = vld [vmem:[%s3331_s1 + $0x6] sm:$0x3]  ;;  %v2367_v41 = vld [vmem:[%s2830_s16 + $0xd8] sm:$0xf] }
  0x15   : > { %470 = vmatpush.bf16.msra.mxu0 %v461_v17  ;;  %v283_v31 = vshrl.u32 %v2362_v25, 16  ;;  %v285_v32 = vshll.u32 %v2362_v25, 16  ;;  %499 = vmatpush.bf16.msra.mxu1 %v490_v30  ;;  %v2420_v43 = vld [vmem:[%s3331_s1 + $0xc] sm:$0x3]  ;;  %v2409_v44 = vld [vmem:[%s3331_s1 + $0x8] sm:$0x3] }
  0x16   : > { %552 = vmatpush.bf16.msra.mxu3 %v543_v29  ;;  %v369_v33 = vshll.u32 %v2376_v28, 16  ;;  %v367_v38 = vshrl.u32 %v2376_v28, 16  ;;  %v2381_v45 = vld [vmem:[%s2830_s16 + $0x50] sm:$0xf]  ;;  %v2389_v46 = vld [vmem:[%s2830_s16 + $0x8] sm:$0xf] }
  0x17   : > { %v287_v35 = vrot.slane %v285_v32, 1  ;;  %v2684_v47 = vld [vmem:[%s2830_s16 + $0x8] sm:$0x10]  ;;  %v2402_v48 = vld [vmem:[%s2830_s16 + $0x8] sm:$0xf]  ;;  %v566_v50 = vsel %vm237_vm0, %v2406_v40, 0 }
  0x18   : > { %v371_v39 = vrot.slane %v369_v33, 1  ;;  %v2685_v49 = vld [vmem:[%s2830_s16 + $0x8] sm:$0x10]  ;;  %v647_v51 = vsel %vm237_vm0, %v2420_v43, 0  ;;  %v589_v52 = vsel %vm237_vm0, %v2409_v44, 0  ;;  %v2390_v53 = vor.u32 %v2684_v47, %v2389_v46 }
  0x19   : > { %v288_v36 = vor.u32 %v287_v35, %v283_v31  ;;  %v2403_v54 = vor.u32 %v2685_v49, %v2402_v48  ;;  %v2413_v56 = vld [vmem:[%s3331_s1 + $0xa] sm:$0x3]  ;;  %v2423_v0 = vld [vmem:[%s3331_s1 + $0xe] sm:$0x3]  ;;  %v724_v2 = vld [vmem:[%s3331_s1] sm:$0x3] }
  0x1a   : > { %v372_v42 = vor.u32 %v371_v39, %v367_v38  ;;  %v453_v55 = vshll.u32 %v2390_v53, 16  ;;  %v2378_v58 = vld [vmem:[%s2830_s16 + $0x8] sm:$0xf]  ;;  %v624_v59 = vsel %vm237_vm0, %v2413_v56, 0  ;;  %v451_v60 = vshrl.u32 %v2390_v53, 16 }
  0x1b   : > { %2363 = vmatmul.msk.bf16.vlgmr.msra.gmra.mxu2 %vm233_vm1, %v288_v36  ;;  %v535_v57 = vshll.u32 %v2403_v54, 16  ;;  %v533_v62 = vshrl.u32 %v2403_v54, 16  ;;  %v2427_v3 = vld [vmem:[%s3331_s1 + $0x10] sm:$0x3]  ;;  %v670_v6 = vsel %vm237_vm0, %v2423_v0, 0  ;;  %v750_v7 = vsel %vm237_vm0, %v724_v2, 0 }
  0x1c   : > { %518 = vmatpush.bf16.msra.mxu2 %v509_v37  ;;  %v455_v61 = vrot.slane %v453_v55, 1  ;;  %v2393_v4 = vld [vmem:[%s2830_s16 + $0x50] sm:$0xf]  ;;  %v705_v8 = vsel %vm237_vm0, %v2427_v3, 0  ;;  %v2435_v9 = vld [vmem:[%s3331_s1 + $0x2] sm:$0x3] }
  0x1d   : > { %v537_v63 = vrot.slane %v535_v57, 1  ;;  %v2392_v10 = vld [vmem:[%s2830_s16 + $0x8] sm:$0xf]  ;;  %v2416_v11 = vld [vmem:[%s2830_s16 + $0x98] sm:$0xf]  ;;  %v731_v13 = vsel %vm237_vm0, %v2435_v9, 0 }
  0x1e   : > { %v456_v1 = vor.u32 %v455_v61, %v451_v60  ;;  %v2686_v12 = vld [vmem:[%s2830_s16 + $0x98] sm:$0x10]  ;;  %v2405_v15 = vld [vmem:[%s2830_s16 + $0x98] sm:$0xf]  ;;  %v2440_v16 = vld [vmem:[%s3331_s1 + $0x4] sm:$0x3] }
  0x1f   : > { %v538_v5 = vor.u32 %v537_v63, %v533_v62  ;;  %v2417_v14 = vor.u32 %v2686_v12, %v2416_v11  ;;  %v2408_v17 = vld [vmem:[%s2830_s16 + $0xe0] sm:$0xf]  ;;  %v2454_v18 = vld [vmem:[%s3331_s1 + $0xa] sm:$0x3]  ;;  %v2447_v19 = vld [vmem:[%s3331_s1 + $0x6] sm:$0x3] }
  0x20   : > { %v2430_v21 = vld [vmem:[%s2830_s16 + $0x10] sm:$0xf]  ;;  %v2687_v22 = vld [vmem:[%s2830_s16 + $0x10] sm:$0x10]  ;;  %v784_v24 = vsel %vm237_vm0, %v2440_v16, 0  ;;  %v865_v25 = vsel %vm237_vm0, %v2454_v18, 0 }
  0x21   : > { %v616_v20 = vshll.u32 %v2417_v14, 16  ;;  %v2419_v23 = vld [vmem:[%s2830_s16 + $0x10] sm:$0xf]  ;;  %v807_v26 = vsel %vm237_vm0, %v2447_v19, 0  ;;  %v2431_v27 = vor.u32 %v2687_v22, %v2430_v21  ;;  %v614_v28 = vshrl.u32 %v2417_v14, 16 }
  0x22   : > { %v2450_v31 = vld [vmem:[%s3331_s1 + $0x8] sm:$0x3]  ;;  %v2461_v36 = vld [vmem:[%s3331_s1 + $0xc] sm:$0x3]  ;;  %v2422_v37 = vld [vmem:[%s2830_s16 + $0x58] sm:$0xf] }
  0x23   : > { %2369 = vmatmul.msk.bf16.vlgmr.msrb.gmra.mxu0 %vm233_vm1, %v2367_v41  ;;  %2377 = vmatmul.msk.bf16.vlgmr.msrb.gmra.mxu1 %vm233_vm1, %v372_v42  ;;  %v618_v29 = vrot.slane %v616_v20, 1  ;;  %v697_v30 = vshll.u32 %v2431_v27, 16  ;;  %v830_v33 = vsel %vm237_vm0, %v2450_v31, 0  ;;  %v695_v34 = vshrl.u32 %v2431_v27, 16  ;;  %v2476_v39 = vld [vmem:[%s3331_s1 + $0x2] sm:$0x3] }
  0x24   : > { %2383 = vmatmul.msk.bf16.vlgmr.msrb.gmra.mxu3 %vm233_vm1, %v2381_v45  ;;  %575 = vmatpush.bf16.msrb.mxu0 %v566_v50  ;;  %v2464_v40 = vld [vmem:[%s3331_s1 + $0xe] sm:$0x3]  ;;  %v2433_v41 = vld [vmem:[%s2830_s16 + $0x10] sm:$0xf]  ;;  %v2688_v43 = vld [vmem:[%s2830_s16 + $0x10] sm:$0x10] }
  0x25   : > { %656 = vmatpush.bf16.msrb.mxu3 %v647_v51  ;;  %598 = vmatpush.bf16.msrb.mxu1 %v589_v52  ;;  %v619_v32 = vor.u32 %v618_v29, %v614_v28  ;;  %v699_v35 = vrot.slane %v697_v30, 1  ;;  %v2443_v42 = vld [vmem:[%s2830_s16 + $0x10] sm:$0xf]  ;;  %v2457_v44 = vld [vmem:[%s2830_s16 + $0xa0] sm:$0xf]  ;;  %v888_v46 = vsel %vm237_vm0, %v2461_v36, 0 }
  0x26   : > { %v2689_v45 = vld [vmem:[%s2830_s16 + $0xa0] sm:$0x10]  ;;  %v972_v47 = vsel %vm237_vm0, %v2476_v39, 0  ;;  %v911_v48 = vsel %vm237_vm0, %v2464_v40, 0  ;;  %v2444_v49 = vor.u32 %v2688_v43, %v2443_v42  ;;  %v2468_v52 = vld [vmem:[%s3331_s1 + $0x10] sm:$0x3] }
  0x27   : > { %v700_v38 = vor.u32 %v699_v35, %v695_v34  ;;  %v2458_v50 = vor.u32 %v2689_v45, %v2457_v44  ;;  %v2434_v54 = vld [vmem:[%s2830_s16 + $0x58] sm:$0xf]  ;;  %v946_v55 = vsel %vm237_vm0, %v2468_v52, 0  ;;  %v965_v60 = vld [vmem:[%s3331_s1] sm:$0x3] }
  0x28   : > { %v776_v51 = vshll.u32 %v2444_v49, 16  ;;  %v774_v56 = vshrl.u32 %v2444_v49, 16  ;;  %v2491_v62 = vld [vmem:[%s3331_s1 + $0x8] sm:$0x3]  ;;  %v2481_v63 = vld [vmem:[%s3331_s1 + $0x4] sm:$0x3] }
  0x29   : > { %v857_v53 = vshll.u32 %v2458_v50, 16  ;;  %v2446_v0 = vld [vmem:[%s2830_s16 + $0xa0] sm:$0xf]  ;;  %v991_v2 = vsel %vm237_vm0, %v965_v60, 0  ;;  %v1071_v3 = vsel %vm237_vm0, %v2491_v62, 0 }
  0x2a   : > { %v778_v57 = vrot.slane %v776_v51, 1  ;;  %v2460_v11 = vld [vmem:[%s2830_s16 + $0x18] sm:$0xf]  ;;  %v2495_v12 = vld [vmem:[%s3331_s1 + $0xa] sm:$0x3] }
  0x2b   : > { %2380 = vmatmul.msk.bf16.vlgmr.msrb.gmra.mxu2 %vm233_vm1, %v2378_v58  ;;  %v855_v58 = vshrl.u32 %v2458_v50, 16  ;;  %v2509_v14 = vld [vmem:[%s3331_s1 + $0x10] sm:$0x3]  ;;  %v2691_v18 = vld [vmem:[%s2830_s16 + $0x18] sm:$0x10]  ;;  %v1106_v20 = vsel %vm237_vm0, %v2495_v12, 0 }
  0x2c   : > { %633 = vmatpush.bf16.msrb.mxu2 %v624_v59  ;;  %v859_v59 = vrot.slane %v857_v53, 1  ;;  %v779_v61 = vor.u32 %v778_v57, %v774_v56  ;;  %v2475_v19 = vld [vmem:[%s2830_s16 + $0x60] sm:$0xf]  ;;  %v1187_v21 = vsel %vm237_vm0, %v2509_v14, 0  ;;  %v2505_v27 = vld [vmem:[%s3331_s1 + $0xe] sm:$0x3] }
  0x2d   : > { %v1152_v29 = vsel %vm237_vm0, %v2505_v27, 0  ;;  %v2490_v35 = vld [vmem:[%s2830_s16 + $0xf0] sm:$0xf]  ;;  %v2529_v36 = vld [vmem:[%s3331_s1 + $0x6] sm:$0x3] }
  0x2e   : > { %v1206_v39 = vld [vmem:[%s3331_s1] sm:$0x3]  ;;  %v1289_v43 = vsel %vm237_vm0, %v2529_v36, 0  ;;  %v2487_v50 = vld [vmem:[%s2830_s16 + $0xa8] sm:$0xf] }
  0x2f   : > { %v2512_v40 = vld [vmem:[%s2830_s16 + $0x20] sm:$0xf]  ;;  %v1232_v44 = vsel %vm237_vm0, %v1206_v39, 0  ;;  %v2532_v56 = vld [vmem:[%s3331_s1 + $0x8] sm:$0x3] }
  0x30   : > { %v2550_v14 = vld [vmem:[%s3331_s1 + $0x10] sm:$0x3]  ;;  %v1447_v39 = vld [vmem:[%s3331_s1] sm:$0x3] }
  0x31   : > { %v1428_v27 = vsel %vm237_vm0, %v2550_v14, 0 }
  0x33   : > { %2391 = vmatmul.msk.bf16.vlgmr.msra.gmra.mxu0 %vm233_vm1, %v456_v1  ;;  %2395 = vmatmul.msk.bf16.vlgmr.msra.gmra.mxu1 %vm233_vm1, %v2393_v4  ;;  %v860_v1 = vor.u32 %v859_v59, %v855_v58  ;;  %v1025_v4 = vsel %vm237_vm0, %v2481_v63, 0  ;;  %v2546_v58 = vld [vmem:[%s3331_s1 + $0xe] sm:$0x3]  ;;  %v2536_v63 = vld [vmem:[%s3331_s1 + $0xa] sm:$0x3] }
  0x34   : > { %2404 = vmatmul.msk.bf16.vlgmr.msra.gmra.mxu3 %vm233_vm1, %v538_v5  ;;  %679 = vmatpush.bf16.msra.mxu0 %v670_v6  ;;  %v2488_v5 = vld [vmem:[%s3331_s1 + $0x6] sm:$0x3]  ;;  %v2449_v6 = vld [vmem:[%s2830_s16 + $0xe8] sm:$0xf] }
  0x35   : > { %759 = vmatpush.bf16.msra.mxu3 %v750_v7  ;;  %714 = vmatpush.bf16.msra.mxu1 %v705_v8  ;;  %v2471_v7 = vld [vmem:[%s2830_s16 + $0x18] sm:$0xf]  ;;  %v2690_v8 = vld [vmem:[%s2830_s16 + $0x18] sm:$0x10]  ;;  %v1048_v9 = vsel %vm237_vm0, %v2488_v5, 0 }
  0x36   : > { %v2543_v5 = vld [vmem:[%s3331_s1 + $0xc] sm:$0x3] }
  0x3b   : > { %2396 = vmatmul.msk.bf16.vlgmr.msra.gmra.mxu2 %vm233_vm1, %v2392_v10  ;;  %v2472_v10 = vor.u32 %v2690_v8, %v2471_v7  ;;  %v2525_v8 = vld [vmem:[%s2830_s16 + $0x20] sm:$0xf] }
  0x3c   : > { %740 = vmatpush.bf16.msra.mxu2 %v731_v13  ;;  %v2463_v13 = vld [vmem:[%s2830_s16 + $0x60] sm:$0xf] }
  0x3d   : > { %v938_v16 = vshll.u32 %v2472_v10, 16 }
  0x43   : > { %2407 = vmatmul.msk.bf16.vlgmr.msrb.gmra.mxu0 %vm233_vm1, %v2405_v15  ;;  %2410 = vmatmul.msk.bf16.vlgmr.msrb.gmra.mxu1 %vm233_vm1, %v2408_v17  ;;  %v2502_v15 = vld [vmem:[%s3331_s1 + $0xc] sm:$0x3]  ;;  %v2484_v17 = vld [vmem:[%s2830_s16 + $0x18] sm:$0xf] }
  0x44   : > { %2421 = vmatmul.msk.bf16.vlgmr.msrb.gmra.mxu3 %vm233_vm1, %v2419_v23  ;;  %793 = vmatpush.bf16.msrb.mxu0 %v784_v24  ;;  %v1129_v22 = vsel %vm237_vm0, %v2502_v15, 0  ;;  %v2485_v23 = vor.u32 %v2691_v18, %v2484_v17  ;;  %v936_v24 = vshrl.u32 %v2472_v10, 16  ;;  %v2504_v10 = vld [vmem:[%s2830_s16 + $0x68] sm:$0xf]  ;;  %v2515_v17 = vld [vmem:[%s2830_s16 + $0x20] sm:$0xf] }
  0x45   : > { %874 = vmatpush.bf16.msrb.mxu3 %v865_v25  ;;  %816 = vmatpush.bf16.msrb.mxu1 %v807_v26  ;;  %v940_v25 = vrot.slane %v938_v16, 1 }
  0x46   : > { %v1017_v26 = vshll.u32 %v2485_v23, 16  ;;  %v1015_v30 = vshrl.u32 %v2485_v23, 16  ;;  %v2539_v23 = vld [vmem:[%s2830_s16 + $0xb0] sm:$0xf] }
  0x47   : > { %v941_v28 = vor.u32 %v940_v25, %v936_v24  ;;  %v2695_v24 = vld [vmem:[%s2830_s16 + $0xb0] sm:$0x10]  ;;  %v2558_v25 = vld [vmem:[%s3331_s1 + $0x2] sm:$0x3] }
  0x48   : > { %v1019_v31 = vrot.slane %v1017_v26, 1  ;;  %v2528_v26 = vld [vmem:[%s2830_s16 + $0xb0] sm:$0xf] }
  0x4a   : > { %v1020_v34 = vor.u32 %v1019_v31, %v1015_v30  ;;  %v1454_v30 = vsel %vm237_vm0, %v2558_v25, 0  ;;  %v2540_v31 = vor.u32 %v2695_v24, %v2539_v23  ;;  %v2557_v25 = vld [vmem:[%s2830_s16 + $0x70] sm:$0xf] }
  0x4b   : > { %2418 = vmatmul.msk.bf16.vlgmr.msrb.gmra.mxu2 %vm233_vm1, %v619_v32  ;;  %v2517_v32 = vld [vmem:[%s3331_s1 + $0x2] sm:$0x3] }
  0x4c   : > { %839 = vmatpush.bf16.msrb.mxu2 %v830_v33  ;;  %v2474_v33 = vld [vmem:[%s2830_s16 + $0x18] sm:$0xf]  ;;  %v1213_v42 = vsel %vm237_vm0, %v2517_v32, 0 }
  0x53   : > { %2424 = vmatmul.msk.bf16.vlgmr.msra.gmra.mxu0 %vm233_vm1, %v2422_v37  ;;  %2432 = vmatmul.msk.bf16.vlgmr.msra.gmra.mxu1 %vm233_vm1, %v700_v38  ;;  %v2498_v37 = vld [vmem:[%s2830_s16 + $0xa8] sm:$0xf]  ;;  %v2692_v38 = vld [vmem:[%s2830_s16 + $0xa8] sm:$0x10] }
  0x54   : > { %2437 = vmatmul.msk.bf16.vlgmr.msra.gmra.mxu3 %vm233_vm1, %v2433_v41  ;;  %897 = vmatpush.bf16.msra.mxu0 %v888_v46  ;;  %v2693_v41 = vld [vmem:[%s2830_s16 + $0x20] sm:$0x10]  ;;  %v2499_v45 = vor.u32 %v2692_v38, %v2498_v37  ;;  %v1339_v38 = vshll.u32 %v2540_v31, 16 }
  0x55   : > { %981 = vmatpush.bf16.msra.mxu3 %v972_v47  ;;  %920 = vmatpush.bf16.msra.mxu1 %v911_v48  ;;  %v2513_v46 = vor.u32 %v2693_v41, %v2512_v40  ;;  %v2522_v48 = vld [vmem:[%s3331_s1 + $0x4] sm:$0x3] }
  0x56   : > { %v1098_v47 = vshll.u32 %v2499_v45, 16  ;;  %v1266_v51 = vsel %vm237_vm0, %v2522_v48, 0  ;;  %v1096_v52 = vshrl.u32 %v2499_v45, 16  ;;  %v1341_v45 = vrot.slane %v1339_v38, 1 }
  0x57   : > { %v1179_v49 = vshll.u32 %v2513_v46, 16 }
  0x58   : > { %v1100_v53 = vrot.slane %v1098_v47, 1 }
  0x5a   : > { %v1101_v57 = vor.u32 %v1100_v53, %v1096_v52  ;;  %v2584_v52 = vld [vmem:[%s3331_s1 + $0xc] sm:$0x3] }
  0x5b   : > { %2436 = vmatmul.msk.bf16.vlgmr.msra.gmra.mxu2 %vm233_vm1, %v2434_v54  ;;  %v1177_v54 = vshrl.u32 %v2513_v46, 16  ;;  %v2570_v46 = vld [vmem:[%s3331_s1 + $0x6] sm:$0x3] }
  0x5c   : > { %955 = vmatpush.bf16.msra.mxu2 %v946_v55  ;;  %v1181_v55 = vrot.slane %v1179_v49, 1  ;;  %v2531_v49 = vld [vmem:[%s2830_s16 + $0xf8] sm:$0xf] }
  0x5e   : > { %v1182_v62 = vor.u32 %v1181_v55, %v1177_v54 }
  0x63   : > { %2445 = vmatmul.msk.bf16.vlgmr.msrb.gmra.mxu0 %vm233_vm1, %v779_v61  ;;  %2448 = vmatmul.msk.bf16.vlgmr.msrb.gmra.mxu1 %vm233_vm1, %v2446_v0  ;;  %v2501_v61 = vld [vmem:[%s2830_s16 + $0x20] sm:$0xf] }
  0x64   : > { %2459 = vmatmul.msk.bf16.vlgmr.msrb.gmra.mxu3 %vm233_vm1, %v860_v1  ;;  %1000 = vmatpush.bf16.msrb.mxu0 %v991_v2  ;;  %v1312_v1 = vsel %vm237_vm0, %v2532_v56, 0  ;;  %v1393_v2 = vsel %vm237_vm0, %v2546_v58, 0  ;;  %v2553_v56 = vld [vmem:[%s2830_s16 + $0x28] sm:$0xf] }
  0x65   : > { %1080 = vmatpush.bf16.msrb.mxu3 %v1071_v3  ;;  %1034 = vmatpush.bf16.msrb.mxu1 %v1025_v4  ;;  %v1347_v3 = vsel %vm237_vm0, %v2536_v63, 0  ;;  %v2573_v58 = vld [vmem:[%s3331_s1 + $0x8] sm:$0x3]  ;;  %v1611_v63 = vsel %vm237_vm0, %v2584_v52, 0 }
  0x6b   : > { %2451 = vmatmul.msk.bf16.vlgmr.msrb.gmra.mxu2 %vm233_vm1, %v2449_v6 }
  0x6c   : > { %1057 = vmatpush.bf16.msrb.mxu2 %v1048_v9  ;;  %v2694_v9 = vld [vmem:[%s2830_s16 + $0x20] sm:$0x10] }
  0x6d   : > { %v2526_v12 = vor.u32 %v2694_v9, %v2525_v8 }
  0x6f   : > { %v1258_v18 = vshll.u32 %v2526_v12, 16 }
  0x73   : > { %2462 = vmatmul.msk.bf16.vlgmr.msra.gmra.mxu0 %vm233_vm1, %v2460_v11  ;;  %2465 = vmatmul.msk.bf16.vlgmr.msra.gmra.mxu1 %vm233_vm1, %v2463_v13  ;;  %v1370_v11 = vsel %vm237_vm0, %v2543_v5, 0  ;;  %v2516_v13 = vld [vmem:[%s2830_s16 + $0x68] sm:$0xf] }
  0x74   : > { %2477 = vmatmul.msk.bf16.vlgmr.msra.gmra.mxu3 %vm233_vm1, %v2475_v19  ;;  %1115 = vmatpush.bf16.msra.mxu0 %v1106_v20  ;;  %v2563_v19 = vld [vmem:[%s3331_s1 + $0x4] sm:$0x3] }
  0x75   : > { %1196 = vmatpush.bf16.msra.mxu3 %v1187_v21  ;;  %1138 = vmatpush.bf16.msra.mxu1 %v1129_v22 }
  0x7b   : > { %2473 = vmatmul.msk.bf16.vlgmr.msra.gmra.mxu2 %vm233_vm1, %v941_v28 }
  0x7c   : > { %1161 = vmatpush.bf16.msra.mxu2 %v1152_v29  ;;  %v1507_v29 = vsel %vm237_vm0, %v2563_v19, 0 }
  0x83   : > { %2478 = vmatmul.msk.bf16.vlgmr.msrb.gmra.mxu0 %vm233_vm1, %v2474_v33  ;;  %2486 = vmatmul.msk.bf16.vlgmr.msrb.gmra.mxu1 %vm233_vm1, %v1020_v34  ;;  %v1256_v33 = vshrl.u32 %v2526_v12, 16  ;;  %v1260_v34 = vrot.slane %v1258_v18, 1 }
  0x84   : > { %2492 = vmatmul.msk.bf16.vlgmr.msrb.gmra.mxu3 %vm233_vm1, %v2490_v35  ;;  %1222 = vmatpush.bf16.msrb.mxu0 %v1213_v42 }
  0x85   : > { %1298 = vmatpush.bf16.msrb.mxu3 %v1289_v43  ;;  %1241 = vmatpush.bf16.msrb.mxu1 %v1232_v44  ;;  %v1261_v42 = vor.u32 %v1260_v34, %v1256_v33  ;;  %v1473_v43 = vsel %vm237_vm0, %v1447_v39, 0  ;;  %v1337_v44 = vshrl.u32 %v2540_v31, 16  ;;  %v2580_v39 = vld [vmem:[%s2830_s16 + $0xb8] sm:$0xf] }
  0x8b   : > { %2489 = vmatmul.msk.bf16.vlgmr.msrb.gmra.mxu2 %vm233_vm1, %v2487_v50  ;;  %v1342_v50 = vor.u32 %v1341_v45, %v1337_v44  ;;  %v2569_v44 = vld [vmem:[%s2830_s16 + $0xb8] sm:$0xf]  ;;  %v2604_v45 = vld [vmem:[%s3331_s1 + $0x4] sm:$0x3] }
  0x8c   : > { %1275 = vmatpush.bf16.msrb.mxu2 %v1266_v51  ;;  %v2545_v51 = vld [vmem:[%s2830_s16 + $0x70] sm:$0xf] }
  0x90   : > { %v250_v59 = vpop.f32.mrf.mxu0  ;;  %v269_v60 = vpop.f32.mrf.mxu1 }
  0x91   : > { %v270_v0 = vadd.f32 %v269_v60, %v250_v59  ;;  %v2566_v59 = vld [vmem:[%s2830_s16 + $0x28] sm:$0xf]  ;;  %v2697_v60 = vld [vmem:[%s2830_s16 + $0x28] sm:$0x10] }
  0x93   : > { %2500 = vmatmul.msk.bf16.vlgmr.msra.gmra.mxu0 %vm233_vm1, %v1101_v57  ;;  %2503 = vmatmul.msk.bf16.vlgmr.msra.gmra.mxu1 %vm233_vm1, %v2501_v61  ;;  %v2696_v57 = vld [vmem:[%s2830_s16 + $0x28] sm:$0x10]  ;;  %v1530_v61 = vsel %vm237_vm0, %v2570_v46, 0 }
  0x94   : > { %2514 = vmatmul.msk.bf16.vlgmr.msra.gmra.mxu3 %vm233_vm1, %v1182_v62  ;;  %1321 = vmatpush.bf16.msra.mxu0 %v1312_v1  ;;  %v2554_v1 = vor.u32 %v2696_v57, %v2553_v56  ;;  %v2611_v56 = vld [vmem:[%s3331_s1 + $0x6] sm:$0x3]  ;;  %v2583_v57 = vld [vmem:[%s2830_s16 + $0x30] sm:$0xf] }
  0x95   : > { %1402 = vmatpush.bf16.msra.mxu3 %v1393_v2  ;;  %1356 = vmatpush.bf16.msra.mxu1 %v1347_v3  ;;  %v2567_v3 = vor.u32 %v2697_v60, %v2566_v59  ;;  %v3155_v59 = vld [vmem:[%s3332_s2] ss:$0 sm:$0xff] }
  0x97   : > { %v328_v4 = vpop.f32.mrf.mxu3 }
  0x98   : > { %v252_v6 = vpop.f32.mrf.mxu0  ;;  %v271_v7 = vpop.f32.mrf.mxu1 }
  0x99   : > { %v1420_v6 = vshll.u32 %v2554_v1, 16  ;;  %v2577_v7 = vld [vmem:[%s3331_s1 + $0xa] sm:$0x3] }
  0x9a   : > { %v1588_v12 = vsel %vm237_vm0, %v2577_v7, 0 }
  0x9b   : > { %2506 = vmatmul.msk.bf16.vlgmr.msra.gmra.mxu2 %vm233_vm1, %v2504_v10  ;;  %v1499_v10 = vshll.u32 %v2567_v3, 16  ;;  %v1422_v14 = vrot.slane %v1420_v6, 1 }
  0x9c   : > { %1379 = vmatpush.bf16.msra.mxu2 %v1370_v11  ;;  %v2542_v11 = vld [vmem:[%s2830_s16 + $0x28] sm:$0xf] }
  0x9e   : > { %v304_v15 = vpop.f32.mrf.mxu2 }
  0x9f   : > { %v330_v16 = vpop.f32.mrf.mxu3  ;;  %v308_v20 = vadd.f32 %v304_v15, %v270_v0  ;;  %v1553_v0 = vsel %vm237_vm0, %v2573_v58, 0  ;;  %v1497_v15 = vshrl.u32 %v2567_v3, 16  ;;  %v1748_v58 = vsel %vm237_vm0, %v2604_v45, 0  ;;  %v2632_v45 = vld [vmem:[%s3331_s1 + $0x10] sm:$0x3] }
  0xa0   : > { %v352_v21 = vpop.f32.mrf.mxu0  ;;  %v388_v22 = vpop.f32.mrf.mxu1  ;;  %v1501_v16 = vrot.slane %v1499_v10, 1 }
  0xa1   : > { %v332_v28 = vadd.f32 %v328_v4, %v308_v20 }
  0xa3   : > { %2518 = vmatmul.msk.bf16.vlgmr.msrb.gmra.mxu0 %vm233_vm1, %v2516_v13  ;;  %2519 = vmatmul.msk.bf16.vlgmr.msrb.gmra.mxu1 %vm233_vm1, %v2515_v17  ;;  %v356_v32 = vadd.f32 %v352_v21, %v332_v28  ;;  %v1418_v13 = vshrl.u32 %v2554_v1, 16  ;;  %v2587_v17 = vld [vmem:[%s3331_s1 + $0xe] sm:$0x3]  ;;  %v1688_v21 = vld [vmem:[%s3331_s1] sm:$0x3] }
  0xa4   : > { %2530 = vmatmul.msk.bf16.vlgmr.msrb.gmra.mxu3 %vm233_vm1, %v2528_v26  ;;  %1437 = vmatpush.bf16.msrb.mxu0 %v1428_v27  ;;  %v1502_v26 = vor.u32 %v1501_v16, %v1497_v15  ;;  %v2591_v27 = vld [vmem:[%s3331_s1 + $0x10] sm:$0x3]  ;;  %v1634_v28 = vsel %vm237_vm0, %v2587_v17, 0 }
  0xa5   : > { %1516 = vmatpush.bf16.msrb.mxu3 %v1507_v29  ;;  %1463 = vmatpush.bf16.msrb.mxu1 %v1454_v30  ;;  %v392_v35 = vadd.f32 %v388_v22, %v356_v32  ;;  %v1423_v20 = vor.u32 %v1422_v14, %v1418_v13  ;;  %v1714_v30 = vsel %vm237_vm0, %v1688_v21, 0  ;;  %v1669_v31 = vsel %vm237_vm0, %v2591_v27, 0 }
  0xa6   : > { %v306_v36 = vpop.f32.mrf.mxu2 }
  0xa7   : > { %v436_v37 = vpop.f32.mrf.mxu3  ;;  %v2599_v36 = vld [vmem:[%s3331_s1 + $0x2] sm:$0x3] }
  0xa8   : > { %v354_v40 = vpop.f32.mrf.mxu0  ;;  %v390_v41 = vpop.f32.mrf.mxu1 }
  0xa9   : > { %v2698_v40 = vld [vmem:[%s2830_s16 + $0xb8] sm:$0x10]  ;;  %v2556_v41 = vld [vmem:[%s2830_s16 + $0x28] sm:$0xf] }
  0xab   : > { %2527 = vmatmul.msk.bf16.vlgmr.msrb.gmra.mxu2 %vm233_vm1, %v1261_v42  ;;  %v1695_v42 = vsel %vm237_vm0, %v2599_v36, 0 }
  0xac   : > { %1482 = vmatpush.bf16.msrb.mxu2 %v1473_v43  ;;  %v2581_v43 = vor.u32 %v2698_v40, %v2580_v39 }
  0xae   : > { %v412_v47 = vpop.f32.mrf.mxu2  ;;  %v1578_v1 = vshrl.u32 %v2581_v43, 16 }
  0xaf   : > { %v438_v48 = vpop.f32.mrf.mxu3  ;;  %v416_v53 = vadd.f32 %v412_v47, %v392_v35 }
  0xb0   : > { %v472_v54 = vpop.f32.mrf.mxu0  ;;  %v501_v55 = vpop.f32.mrf.mxu1  ;;  %v2572_v48 = vld [vmem:[%s2830_s16 + $0x100] sm:$0xf] }
  0xb1   : > { %v440_v62 = vadd.f32 %v436_v37, %v416_v53 }
  0xb3   : > { %2533 = vmatmul.msk.bf16.vlgmr.msra.gmra.mxu0 %vm233_vm1, %v2531_v49  ;;  %2541 = vmatmul.msk.bf16.vlgmr.msra.gmra.mxu1 %vm233_vm1, %v1342_v50  ;;  %v3104_v2 = vadd.f32 %v472_v54, %v440_v62  ;;  %v1580_v49 = vshll.u32 %v2581_v43, 16  ;;  %v2618_v50 = vld [vmem:[%s3331_s1 + $0xa] sm:$0x3]  ;;  %v2594_v54 = vld [vmem:[%s2830_s16 + $0x30] sm:$0xf]  ;;  %v1771_v62 = vsel %vm237_vm0, %v2611_v56, 0 }
  0xb4   : > { %2547 = vmatmul.msk.bf16.vlgmr.msra.gmra.mxu3 %vm233_vm1, %v2545_v51  ;;  %1539 = vmatpush.bf16.msra.mxu0 %v1530_v61  ;;  %v1829_v61 = vsel %vm237_vm0, %v2618_v50, 0  ;;  %v1910_v50 = vsel %vm237_vm0, %v2632_v45, 0 }
  0xb5   : > { %1620 = vmatpush.bf16.msra.mxu3 %v1611_v63  ;;  %1562 = vmatpush.bf16.msra.mxu1 %v1553_v0  ;;  %v1582_v3 = vrot.slane %v1580_v49, 1  ;;  %v2598_v49 = vld [vmem:[%s2830_s16 + $0x78] sm:$0xf] }
  0xb6   : > { %v414_v4 = vpop.f32.mrf.mxu2 }
  0xb7   : > { %v554_v5 = vpop.f32.mrf.mxu3  ;;  %v3164_v4 = vadd.f32 %v3155_v59, %v3104_v2  ;;  %v1583_v13 = vor.u32 %v1582_v3, %v1578_v1  ;;  %v2645_v3 = vld [vmem:[%s3331_s1 + $0x4] sm:$0x3] }
  0xb8   : > { %v474_v8 = vpop.f32.mrf.mxu0  ;;  %v503_v9 = vpop.f32.mrf.mxu1 }
  0xb9   : > { %v2614_v9 = vld [vmem:[%s3331_s1 + $0x8] sm:$0x3]  ;;  %v2191_v2 = vmul.f32 %v3164_v4, %v3164_v4 }
  0xba   : > { %v1794_v16 = vsel %vm237_vm0, %v2614_v9, 0 }
  0xbb   : > { %2544 = vmatmul.msk.bf16.vlgmr.msra.gmra.mxu2 %vm233_vm1, %v2542_v11 }
  0xbc   : > { %1597 = vmatpush.bf16.msra.mxu2 %v1588_v12 }
  0xbe   : > { %v520_v18 = vpop.f32.mrf.mxu2 }
  0xbf   : > { %v556_v19 = vpop.f32.mrf.mxu3  ;;  %v521_v22 = vadd.f32 %v520_v18, %v501_v55  ;;  %v2699_v55 = vld [vmem:[%s2830_s16 + $0x30] sm:$0x10] }
  0xc0   : > { %v577_v23 = vpop.f32.mrf.mxu0  ;;  %v600_v24 = vpop.f32.mrf.mxu1  ;;  %v2595_v63 = vor.u32 %v2699_v55, %v2594_v54  ;;  %v1929_v55 = vld [vmem:[%s3331_s1] sm:$0x3] }
  0xc1   : > { %v558_v29 = vadd.f32 %v554_v5, %v521_v22 }
  0xc2   : > { %v1661_v8 = vshll.u32 %v2595_v63, 16  ;;  %v1659_v17 = vshrl.u32 %v2595_v63, 16 }
  0xc3   : > { %2555 = vmatmul.msk.bf16.vlgmr.msrb.gmra.mxu0 %vm233_vm1, %v1423_v20  ;;  %2559 = vmatmul.msk.bf16.vlgmr.msrb.gmra.mxu1 %vm233_vm1, %v2557_v25  ;;  %v581_v32 = vadd.f32 %v577_v23, %v558_v29  ;;  %v2625_v20 = vld [vmem:[%s3331_s1 + $0xc] sm:$0x3]  ;;  %v2586_v23 = vld [vmem:[%s2830_s16 + $0x78] sm:$0xf]  ;;  %v2597_v25 = vld [vmem:[%s2830_s16 + $0x30] sm:$0xf] }
  0xc4   : > { %2568 = vmatmul.msk.bf16.vlgmr.msrb.gmra.mxu3 %vm233_vm1, %v1502_v26  ;;  %1643 = vmatpush.bf16.msrb.mxu0 %v1634_v28  ;;  %v1663_v18 = vrot.slane %v1661_v8, 1  ;;  %v2640_v26 = vld [vmem:[%s3331_s1 + $0x2] sm:$0x3]  ;;  %v1989_v8 = vsel %vm237_vm0, %v2645_v3, 0  ;;  %v2704_v3 = vld [vmem:[%s2830_s16 + $0xc8] sm:$0x10] }
  0xc5   : > { %1723 = vmatpush.bf16.msrb.mxu3 %v1714_v30  ;;  %1678 = vmatpush.bf16.msrb.mxu1 %v1669_v31  ;;  %v604_v33 = vadd.f32 %v600_v24, %v581_v32  ;;  %v2607_v30 = vld [vmem:[%s2830_s16 + $0x30] sm:$0xf]  ;;  %v2700_v31 = vld [vmem:[%s2830_s16 + $0x30] sm:$0x10]  ;;  %v2621_v32 = vld [vmem:[%s2830_s16 + $0xc0] sm:$0xf] }
  0xc6   : > { %v522_v34 = vpop.f32.mrf.mxu2  ;;  %v1664_v24 = vor.u32 %v1663_v18, %v1659_v17  ;;  %v2608_v39 = vor.u32 %v2700_v31, %v2607_v30  ;;  %v2613_v17 = vld [vmem:[%s2830_s16 + $0x108] sm:$0xf]  ;;  %v2635_v18 = vld [vmem:[%s2830_s16 + $0x38] sm:$0xf] }
  0xc7   : > { %v658_v35 = vpop.f32.mrf.mxu3  ;;  %v1852_v34 = vsel %vm237_vm0, %v2625_v20, 0  ;;  %v2702_v20 = vld [vmem:[%s2830_s16 + $0x38] sm:$0x10] }
  0xc8   : > { %v579_v37 = vpop.f32.mrf.mxu0  ;;  %v602_v38 = vpop.f32.mrf.mxu1 }
  0xc9   : > { %v1936_v37 = vsel %vm237_vm0, %v2640_v26, 0  ;;  %v2624_v26 = vld [vmem:[%s2830_s16 + $0x38] sm:$0xf] }
  0xcb   : > { %2560 = vmatmul.msk.bf16.vlgmr.msrb.gmra.mxu2 %vm233_vm1, %v2556_v41 }
  0xcc   : > { %1704 = vmatpush.bf16.msrb.mxu2 %v1695_v42 }
  0xce   : > { %v635_v46 = vpop.f32.mrf.mxu2 }
  0xcf   : > { %v660_v47 = vpop.f32.mrf.mxu3  ;;  %v639_v51 = vadd.f32 %v635_v46, %v604_v33  ;;  %v2701_v33 = vld [vmem:[%s2830_s16 + $0xc0] sm:$0x10] }
  0xd0   : > { %v681_v52 = vpop.f32.mrf.mxu0  ;;  %v716_v53 = vpop.f32.mrf.mxu1  ;;  %v2622_v41 = vor.u32 %v2701_v33, %v2621_v32  ;;  %v2648_v33 = vld [vmem:[%s2830_s16 + $0x38] sm:$0xf] }
  0xd1   : > { %v662_v60 = vadd.f32 %v658_v35, %v639_v51  ;;  %v2628_v35 = vld [vmem:[%s3331_s1 + $0xe] sm:$0x3]  ;;  %v1738_v51 = vshrl.u32 %v2608_v39, 16 }
  0xd2   : > { %v1875_v38 = vsel %vm237_vm0, %v2628_v35, 0 }
  0xd3   : > { %2571 = vmatmul.msk.bf16.vlgmr.msra.gmra.mxu0 %vm233_vm1, %v2569_v44  ;;  %2574 = vmatmul.msk.bf16.vlgmr.msra.gmra.mxu1 %vm233_vm1, %v2572_v48  ;;  %v685_v0 = vadd.f32 %v681_v52, %v662_v60  ;;  %v1740_v44 = vshll.u32 %v2608_v39, 16  ;;  %v1821_v48 = vshll.u32 %v2622_v41, 16  ;;  %v2655_v60 = vld [vmem:[%s3331_s1 + $0x8] sm:$0x3] }
  0xd4   : > { %2585 = vmatmul.msk.bf16.vlgmr.msra.gmra.mxu3 %vm233_vm1, %v2583_v57  ;;  %1757 = vmatpush.bf16.msra.mxu0 %v1748_v58 }
  0xd5   : > { %1838 = vmatpush.bf16.msra.mxu3 %v1829_v61  ;;  %1780 = vmatpush.bf16.msra.mxu1 %v1771_v62  ;;  %v720_v5 = vadd.f32 %v716_v53, %v685_v0  ;;  %v1742_v52 = vrot.slane %v1740_v44, 1  ;;  %v1819_v53 = vshrl.u32 %v2622_v41, 16  ;;  %v1823_v54 = vrot.slane %v1821_v48, 1  ;;  %v2610_v0 = vld [vmem:[%s2830_s16 + $0xc0] sm:$0xf] }
  0xd6   : > { %v637_v6 = vpop.f32.mrf.mxu2 }
  0xd7   : > { %v761_v7 = vpop.f32.mrf.mxu3  ;;  %v3170_v10 = vadd.f32 %v3155_v59, %v720_v5  ;;  %v1743_v58 = vor.u32 %v1742_v52, %v1738_v51  ;;  %v1824_v1 = vor.u32 %v1823_v54, %v1819_v53  ;;  %v1955_v5 = vsel %vm237_vm0, %v1929_v55, 0 }
  0xd8   : > { %v683_v11 = vpop.f32.mrf.mxu0  ;;  %v718_v12 = vpop.f32.mrf.mxu1 }
  0xd9   : > { %v3176_v14 = vadd.f32 %v3170_v10, %v3164_v4  ;;  %v2192_v15 = vmul.f32 %v3170_v10, %v3170_v10 }
  0xdb   : > { %v3181_v19 = vadd.f32 %v2192_v15, %v2191_v2  ;;  %2582 = vmatmul.msk.bf16.vlgmr.msra.gmra.mxu2 %vm233_vm1, %v1583_v13  ;;  %v2652_v2 = vld [vmem:[%s3331_s1 + $0x6] sm:$0x3] }
  0xdc   : > { %1803 = vmatpush.bf16.msra.mxu2 %v1794_v16 }
  0xde   : > { %v742_v21 = vpop.f32.mrf.mxu2 }
  0xdf   : > { %v763_v22 = vpop.f32.mrf.mxu3  ;;  %v762_v27 = vadd.f32 %v761_v7, %v742_v21  ;;  %v2035_v7 = vsel %vm237_vm0, %v2655_v60, 0  ;;  %v2012_v21 = vsel %vm237_vm0, %v2652_v2, 0 }
  0xe0   : > { %v795_v28 = vpop.f32.mrf.mxu0  ;;  %v818_v29 = vpop.f32.mrf.mxu1  ;;  %v2636_v22 = vor.u32 %v2702_v20, %v2635_v18 }
  0xe1   : > { %v799_v36 = vadd.f32 %v795_v28, %v762_v27  ;;  %v2627_v27 = vld [vmem:[%s2830_s16 + $0x80] sm:$0xf]  ;;  %v2673_v28 = vld [vmem:[%s3331_s1 + $0x10] sm:$0x3] }
  0xe2   : > { %v1902_v32 = vshll.u32 %v2636_v22, 16  ;;  %v2151_v39 = vsel %vm237_vm0, %v2673_v28, 0  ;;  %v1900_v41 = vshrl.u32 %v2636_v22, 16 }
  0xe3   : > { %2588 = vmatmul.msk.bf16.vlgmr.msrb.gmra.mxu0 %vm233_vm1, %v2586_v23  ;;  %2596 = vmatmul.msk.bf16.vlgmr.msrb.gmra.mxu1 %vm233_vm1, %v1664_v24  ;;  %v822_v40 = vadd.f32 %v818_v29, %v799_v36  ;;  %v2659_v23 = vld [vmem:[%s3331_s1 + $0xa] sm:$0x3]  ;;  %v2639_v36 = vld [vmem:[%s2830_s16 + $0x80] sm:$0xf] }
  0xe4   : > { %2601 = vmatmul.msk.bf16.vlgmr.msrb.gmra.mxu3 %vm233_vm1, %v2597_v25  ;;  %1861 = vmatpush.bf16.msrb.mxu0 %v1852_v34  ;;  %v2703_v34 = vld [vmem:[%s2830_s16 + $0x38] sm:$0x10] }
  0xe5   : > { %1945 = vmatpush.bf16.msrb.mxu3 %v1936_v37  ;;  %1884 = vmatpush.bf16.msrb.mxu1 %v1875_v38  ;;  %v2070_v37 = vsel %vm237_vm0, %v2659_v23, 0 }
  0xe6   : > { %v744_v42 = vpop.f32.mrf.mxu2 }
  0xe7   : > { %v876_v43 = vpop.f32.mrf.mxu3  ;;  %v2649_v42 = vor.u32 %v2703_v34, %v2648_v33  ;;  %v2665_v33 = vld [vmem:[%s2830_s16 + $0x40] sm:$0xf] }
  0xe8   : > { %v797_v46 = vpop.f32.mrf.mxu0  ;;  %v820_v47 = vpop.f32.mrf.mxu1 }
  0xe9   : > { %v1904_v46 = vrot.slane %v1902_v32, 1  ;;  %v1981_v51 = vshll.u32 %v2649_v42, 16 }
  0xeb   : > { %2600 = vmatmul.msk.bf16.vlgmr.msrb.gmra.mxu2 %vm233_vm1, %v2598_v49  ;;  %v1905_v54 = vor.u32 %v1904_v46, %v1900_v41  ;;  %v2668_v46 = vld [vmem:[%s2830_s16 + $0x88] sm:$0xf] }
  0xec   : > { %1919 = vmatpush.bf16.msrb.mxu2 %v1910_v50 }
  0xee   : > { %v841_v56 = vpop.f32.mrf.mxu2 }
  0xef   : > { %v878_v57 = vpop.f32.mrf.mxu3  ;;  %v845_v61 = vadd.f32 %v841_v56, %v822_v40  ;;  %v1983_v56 = vrot.slane %v1981_v51, 1 }
  0xf0   : > { %v899_v62 = vpop.f32.mrf.mxu0  ;;  %v922_v63 = vpop.f32.mrf.mxu1 }
  0xf1   : > { %v880_v6 = vadd.f32 %v876_v43, %v845_v61  ;;  %v2666_v43 = vld [vmem:[%s3331_s1 + $0xc] sm:$0x3] }
  0xf2   : > { %v2093_v47 = vsel %vm237_vm0, %v2666_v43, 0 }
  0xf3   : > { %2609 = vmatmul.msk.bf16.vlgmr.msra.gmra.mxu0 %vm233_vm1, %v1743_v58  ;;  %2612 = vmatmul.msk.bf16.vlgmr.msra.gmra.mxu1 %vm233_vm1, %v2610_v0  ;;  %v903_v9 = vadd.f32 %v899_v62, %v880_v6  ;;  %v2638_v0 = vld [vmem:[%s2830_s16 + $0x38] sm:$0xf]  ;;  %v2676_v6 = vld [vmem:[%s2830_s16 + $0x40] sm:$0xf] }
  0xf4   : > { %2623 = vmatmul.msk.bf16.vlgmr.msra.gmra.mxu3 %vm233_vm1, %v1824_v1  ;;  %1964 = vmatpush.bf16.msra.mxu0 %v1955_v5  ;;  %v2662_v1 = vld [vmem:[%s2830_s16 + $0xc8] sm:$0xf]  ;;  %v2654_v5 = vld [vmem:[%s2830_s16 + $0x110] sm:$0xf] }
  0xf5   : > { %2044 = vmatpush.bf16.msra.mxu3 %v2035_v7  ;;  %1998 = vmatpush.bf16.msra.mxu1 %v1989_v8  ;;  %v926_v11 = vadd.f32 %v922_v63, %v903_v9  ;;  %v2705_v7 = vld [vmem:[%s2830_s16 + $0x40] sm:$0x10]  ;;  %v2663_v9 = vor.u32 %v2704_v3, %v2662_v1 }
  0xf6   : > { %v843_v12 = vpop.f32.mrf.mxu2 }
  0xf7   : > { %v983_v13 = vpop.f32.mrf.mxu3  ;;  %v2677_v12 = vor.u32 %v2705_v7, %v2676_v6  ;;  %v2060_v22 = vshrl.u32 %v2663_v9, 16 }
  0xf8   : > { %v901_v15 = vpop.f32.mrf.mxu0  ;;  %v924_v16 = vpop.f32.mrf.mxu1 }
  0xf9   : > { %v2062_v16 = vshll.u32 %v2663_v9, 16  ;;  %v2143_v20 = vshll.u32 %v2677_v12, 16 }
  0xfb   : > { %2615 = vmatmul.msk.bf16.vlgmr.msra.gmra.mxu2 %vm233_vm1, %v2613_v17  ;;  %v2064_v23 = vrot.slane %v2062_v16, 1 }
  0xfc   : > { %2021 = vmatpush.bf16.msra.mxu2 %v2012_v21  ;;  %v2651_v21 = vld [vmem:[%s2830_s16 + $0xc8] sm:$0xf] }
  0xfd   : > { %v2065_v28 = vor.u32 %v2064_v23, %v2060_v22 }
  0xfe   : > { %v957_v24 = vpop.f32.mrf.mxu2 }
  0xff   : > { %v985_v25 = vpop.f32.mrf.mxu3  ;;  %v961_v29 = vadd.f32 %v957_v24, %v926_v11  ;;  %v2141_v24 = vshrl.u32 %v2677_v12, 16 }
 0x100   : > { %v1002_v30 = vpop.f32.mrf.mxu0  ;;  %v1036_v31 = vpop.f32.mrf.mxu1  ;;  %v2145_v25 = vrot.slane %v2143_v20, 1 }
 0x101   : > { %v1003_v35 = vadd.f32 %v1002_v30, %v983_v13  ;;  %v3248_v38 = vadd.f32 %v3155_v59, %v961_v29 }
 0x102   : > { %v2146_v32 = vor.u32 %v2145_v25, %v2141_v24 }
 0x103   : > { %v1040_v40 = vadd.f32 %v1036_v31, %v1003_v35  ;;  %2626 = vmatmul.msk.bf16.vlgmr.msrb.gmra.mxu0 %vm233_vm1, %v2624_v26  ;;  %2629 = vmatmul.msk.bf16.vlgmr.msrb.gmra.mxu1 %vm233_vm1, %v2627_v27  ;;  %v3258_v44 = vadd.f32 %v3176_v14, %v3248_v38  ;;  %v2193_v45 = vmul.f32 %v3248_v38, %v3248_v38  ;;  %v2669_v14 = vld [vmem:[%s3331_s1 + $0xe] sm:$0x3] }
 0x104   : > { %2641 = vmatmul.msk.bf16.vlgmr.msrb.gmra.mxu3 %vm233_vm1, %v2639_v36  ;;  %2079 = vmatpush.bf16.msrb.mxu0 %v2070_v37  ;;  %v2116_v55 = vsel %vm237_vm0, %v2669_v14, 0 }
 0x105   : > { %2160 = vmatpush.bf16.msrb.mxu3 %v2151_v39  ;;  %2102 = vmatpush.bf16.msrb.mxu1 %v2093_v47  ;;  %v3265_v48 = vadd.f32 %v3181_v19, %v2193_v45  ;;  %v1979_v19 = vshrl.u32 %v2649_v42, 16 }
 0x106   : > { %v959_v49 = vpop.f32.mrf.mxu2 }
 0x107   : > { %v1082_v50 = vpop.f32.mrf.mxu3  ;;  %v1984_v60 = vor.u32 %v1983_v56, %v1979_v19 }
 0x108   : > { %v1004_v52 = vpop.f32.mrf.mxu0  ;;  %v1038_v53 = vpop.f32.mrf.mxu1 }
 0x10b   : > { %2637 = vmatmul.msk.bf16.vlgmr.msrb.gmra.mxu2 %vm233_vm1, %v1905_v54 }
 0x10c   : > { %2125 = vmatpush.bf16.msrb.mxu2 %v2116_v55 }
 0x10e   : > { %v1059_v57 = vpop.f32.mrf.mxu2 }
 0x10f   : > { %v1084_v58 = vpop.f32.mrf.mxu3  ;;  %v1063_v61 = vadd.f32 %v1059_v57, %v1040_v40 }
 0x110   : > { %v1117_v62 = vpop.f32.mrf.mxu0  ;;  %v1140_v63 = vpop.f32.mrf.mxu1 }
 0x111   : > { %v1086_v8 = vadd.f32 %v1082_v50, %v1063_v61 }
 0x113   : > { %2642 = vmatmul.msk.bf16.vlgmr.msra.gmra.mxu0 %vm233_vm1, %v2638_v0  ;;  %2650 = vmatmul.msk.bf16.vlgmr.msra.gmra.mxu1 %vm233_vm1, %v1984_v60  ;;  %v1121_v11 = vadd.f32 %v1117_v62, %v1086_v8 }
 0x114   : > { %2656 = vmatmul.msk.bf16.vlgmr.msra.gmra.mxu3 %vm233_vm1, %v2654_v5 }
 0x115   : > { %v1144_v13 = vadd.f32 %v1140_v63, %v1121_v11 }
 0x116   : > { %v1061_v2 = vpop.f32.mrf.mxu2 }
 0x117   : > { %v1198_v15 = vpop.f32.mrf.mxu3 }
 0x118   : > { %v1119_v17 = vpop.f32.mrf.mxu0  ;;  %v1142_v18 = vpop.f32.mrf.mxu1 }
 0x11b   : > { %2653 = vmatmul.msk.bf16.vlgmr.msra.gmra.mxu2 %vm233_vm1, %v2651_v21 }
 0x11e   : > { %v1163_v26 = vpop.f32.mrf.mxu2 }
 0x11f   : > { %v1200_v27 = vpop.f32.mrf.mxu3  ;;  %v1167_v29 = vadd.f32 %v1163_v26, %v1144_v13 }
 0x120   : > { %v1224_v30 = vpop.f32.mrf.mxu0  ;;  %v1243_v31 = vpop.f32.mrf.mxu1 }
 0x121   : > { %v1244_v34 = vadd.f32 %v1243_v31, %v1224_v30  ;;  %v1202_v35 = vadd.f32 %v1198_v15, %v1167_v29 }
 0x123   : > { %2664 = vmatmul.msk.bf16.vlgmr.msrb.gmra.mxu0 %vm233_vm1, %v2065_v28  ;;  %2667 = vmatmul.msk.bf16.vlgmr.msrb.gmra.mxu1 %vm233_vm1, %v2665_v33  ;;  %v3287_v36 = vadd.f32 %v3155_v59, %v1202_v35 }
 0x124   : > { %2678 = vmatmul.msk.bf16.vlgmr.msrb.gmra.mxu3 %vm233_vm1, %v2146_v32 }
 0x125   : > { %v2194_v37 = vmul.f32 %v3287_v36, %v3287_v36  ;;  %v2179_v39 = vadd.f32 %v3258_v44, %v3287_v36 }
 0x126   : > { %v1165_v40 = vpop.f32.mrf.mxu2 }
 0x127   : > { %v1300_v41 = vpop.f32.mrf.mxu3  ;;  %v2201_v45 = vadd.f32 %v3265_v48, %v2194_v37 }
 0x128   : > { %v1226_v42 = vpop.f32.mrf.mxu0  ;;  %v1245_v43 = vpop.f32.mrf.mxu1 }
 0x12b   : > { %2670 = vmatmul.msk.bf16.vlgmr.msrb.gmra.mxu2 %vm233_vm1, %v2668_v46 }
 0x12e   : > { %v1277_v47 = vpop.f32.mrf.mxu2 }
 0x12f   : > { %v1302_v49 = vpop.f32.mrf.mxu3  ;;  %v1281_v50 = vadd.f32 %v1277_v47, %v1244_v34 }
 0x130   : > { %v1323_v51 = vpop.f32.mrf.mxu0  ;;  %v1358_v14 = vpop.f32.mrf.mxu1 }
 0x131   : > { %v1304_v52 = vadd.f32 %v1300_v41, %v1281_v50 }
 0x133   : > { %v1327_v53 = vadd.f32 %v1323_v51, %v1304_v52 }
 0x135   : > { %v1362_v54 = vadd.f32 %v1358_v14, %v1327_v53 }
 0x136   : > { %v1279_v55 = vpop.f32.mrf.mxu2 }
 0x137   : > { %v1404_v19 = vpop.f32.mrf.mxu3 }
 0x138   : > { %v1325_v44 = vpop.f32.mrf.mxu0  ;;  %v1360_v56 = vpop.f32.mrf.mxu1 }
 0x13e   : > { %v1381_v57 = vpop.f32.mrf.mxu2 }
 0x13f   : > { %v1406_v58 = vpop.f32.mrf.mxu3  ;;  %v1385_v60 = vadd.f32 %v1381_v57, %v1362_v54 }
 0x140   : > { %v1439_v61 = vpop.f32.mrf.mxu0  ;;  %v1465_v48 = vpop.f32.mrf.mxu1 }
 0x141   : > { %v1408_v62 = vadd.f32 %v1404_v19, %v1385_v60 }
 0x143   : > { %v1443_v63 = vadd.f32 %v1439_v61, %v1408_v62 }
 0x145   : > { %v3298_v0 = vadd.f32 %v3155_v59, %v1443_v63 }
 0x146   : > { %v1383_v1 = vpop.f32.mrf.mxu2 }
 0x147   : > { %v1518_v3 = vpop.f32.mrf.mxu3  ;;  %v2180_v5 = vadd.f32 %v2179_v39, %v3298_v0  ;;  %v2195_v6 = vmul.f32 %v3298_v0, %v3298_v0 }
 0x148   : > { %v1441_v7 = vpop.f32.mrf.mxu0  ;;  %v1467_v8 = vpop.f32.mrf.mxu1 }
 0x149   : > { %v2202_v9 = vadd.f32 %v2201_v45, %v2195_v6 }
 0x14e   : > { %v1484_v11 = vpop.f32.mrf.mxu2 }
 0x14f   : > { %v1520_v12 = vpop.f32.mrf.mxu3  ;;  %v1485_v13 = vadd.f32 %v1484_v11, %v1465_v48 }
 0x150   : > { %v1541_v2 = vpop.f32.mrf.mxu0  ;;  %v1564_v15 = vpop.f32.mrf.mxu1 }
 0x151   : > { %v1522_v16 = vadd.f32 %v1518_v3, %v1485_v13 }
 0x153   : > { %v1545_v17 = vadd.f32 %v1541_v2, %v1522_v16 }
 0x155   : > { %v1568_v18 = vadd.f32 %v1564_v15, %v1545_v17 }
 0x156   : > { %v1486_v20 = vpop.f32.mrf.mxu2 }
 0x157   : > { %v1622_v21 = vpop.f32.mrf.mxu3 }
 0x158   : > { %v1543_v22 = vpop.f32.mrf.mxu0  ;;  %v1566_v23 = vpop.f32.mrf.mxu1 }
 0x15e   : > { %v1599_v24 = vpop.f32.mrf.mxu2 }
 0x15f   : > { %v1624_v25 = vpop.f32.mrf.mxu3  ;;  %v1603_v26 = vadd.f32 %v1599_v24, %v1568_v18 }
 0x160   : > { %v1645_v27 = vpop.f32.mrf.mxu0  ;;  %v1680_v28 = vpop.f32.mrf.mxu1 }
 0x161   : > { %v1626_v29 = vadd.f32 %v1622_v21, %v1603_v26 }
 0x163   : > { %v1649_v30 = vadd.f32 %v1645_v27, %v1626_v29 }
 0x165   : > { %v1684_v31 = vadd.f32 %v1680_v28, %v1649_v30 }
 0x166   : > { %v1601_v32 = vpop.f32.mrf.mxu2 }
 0x167   : > { %v1725_v33 = vpop.f32.mrf.mxu3  ;;  %v3304_v34 = vadd.f32 %v3155_v59, %v1684_v31 }
 0x168   : > { %v1647_v35 = vpop.f32.mrf.mxu0  ;;  %v1682_v37 = vpop.f32.mrf.mxu1 }
 0x169   : > { %v2181_v39 = vadd.f32 %v2180_v5, %v3304_v34  ;;  %v2196_v40 = vmul.f32 %v3304_v34, %v3304_v34 }
 0x16b   : > { %v2203_v41 = vadd.f32 %v2202_v9, %v2196_v40 }
 0x16e   : > { %v1706_v42 = vpop.f32.mrf.mxu2 }
 0x16f   : > { %v1727_v43 = vpop.f32.mrf.mxu3  ;;  %v1726_v48 = vadd.f32 %v1725_v33, %v1706_v42 }
 0x170   : > { %v1759_v45 = vpop.f32.mrf.mxu0  ;;  %v1782_v46 = vpop.f32.mrf.mxu1 }
 0x171   : > { %v1763_v62 = vadd.f32 %v1759_v45, %v1726_v48 }
 0x173   : > { %v1786_v6 = vadd.f32 %v1782_v46, %v1763_v62 }
 0x176   : > { %v1708_v47 = vpop.f32.mrf.mxu2 }
 0x177   : > { %v1840_v49 = vpop.f32.mrf.mxu3 }
 0x178   : > { %v1761_v50 = vpop.f32.mrf.mxu0  ;;  %v1784_v51 = vpop.f32.mrf.mxu1 }
 0x17e   : > { %v1805_v14 = vpop.f32.mrf.mxu2 }
 0x17f   : > { %v1842_v52 = vpop.f32.mrf.mxu3  ;;  %v1809_v7 = vadd.f32 %v1805_v14, %v1786_v6 }
 0x180   : > { %v1863_v53 = vpop.f32.mrf.mxu0  ;;  %v1886_v54 = vpop.f32.mrf.mxu1 }
 0x181   : > { %v1844_v12 = vadd.f32 %v1840_v49, %v1809_v7 }
 0x183   : > { %v1867_v17 = vadd.f32 %v1863_v53, %v1844_v12 }
 0x185   : > { %v1890_v22 = vadd.f32 %v1886_v54, %v1867_v17 }
 0x186   : > { %v1807_v55 = vpop.f32.mrf.mxu2 }
 0x187   : > { %v1947_v19 = vpop.f32.mrf.mxu3 }
 0x188   : > { %v1865_v44 = vpop.f32.mrf.mxu0  ;;  %v1888_v56 = vpop.f32.mrf.mxu1 }
 0x18e   : > { %v1921_v57 = vpop.f32.mrf.mxu2 }
 0x18f   : > { %v1949_v58 = vpop.f32.mrf.mxu3  ;;  %v1925_v25 = vadd.f32 %v1921_v57, %v1890_v22 }
 0x190   : > { %v1966_v60 = vpop.f32.mrf.mxu0  ;;  %v2000_v61 = vpop.f32.mrf.mxu1 }
 0x191   : > { %v1967_v8 = vadd.f32 %v1966_v60, %v1947_v19  ;;  %v1926_v27 = vadd.f32 %v3155_v59, %v1925_v25 }
 0x193   : > { %v2004_v13 = vadd.f32 %v2000_v61, %v1967_v8  ;;  %v2197_v32 = vmul.f32 %v1926_v27, %v1926_v27  ;;  %v2182_v35 = vadd.f32 %v2181_v39, %v1926_v27 }
 0x195   : > { %v2204_v40 = vadd.f32 %v2203_v41, %v2197_v32 }
 0x196   : > { %v1923_v63 = vpop.f32.mrf.mxu2 }
 0x197   : > { %v2046_v1 = vpop.f32.mrf.mxu3 }
 0x198   : > { %v1968_v3 = vpop.f32.mrf.mxu0  ;;  %v2002_v5 = vpop.f32.mrf.mxu1 }
 0x19e   : > { %v2023_v9 = vpop.f32.mrf.mxu2 }
 0x19f   : > { %v2048_v11 = vpop.f32.mrf.mxu3  ;;  %v2027_v16 = vadd.f32 %v2023_v9, %v2004_v13 }
 0x1a0   : > { %v2081_v2 = vpop.f32.mrf.mxu0  ;;  %v2104_v15 = vpop.f32.mrf.mxu1 }
 0x1a1   : > { %v2050_v18 = vadd.f32 %v2046_v1, %v2027_v16 }
 0x1a3   : > { %v2085_v26 = vadd.f32 %v2081_v2, %v2050_v18  ;;  %v2740_v2 = vld [vmem:[%s3334_s4] ss:$0 sm:$0xff] }
 0x1a5   : > { %v2108_v28 = vadd.f32 %v2104_v15, %v2085_v26 }
 0x1a6   : > { %v2025_v20 = vpop.f32.mrf.mxu2 }
 0x1a7   : > { %v2162_v21 = vpop.f32.mrf.mxu3 }
 0x1a8   : > { %v2083_v23 = vpop.f32.mrf.mxu0  ;;  %v2106_v24 = vpop.f32.mrf.mxu1 }
 0x1ae   : > { %v2127_v29 = vpop.f32.mrf.mxu2 }
 0x1af   : > { %v2164_v30 = vpop.f32.mrf.mxu3  ;;  %v2131_v31 = vadd.f32 %v2127_v29, %v2108_v28 }
 0x1b1   : > { %v2166_v33 = vadd.f32 %v2162_v21, %v2131_v31 }
 0x1b3   : > { %v2167_v37 = vadd.f32 %v3155_v59, %v2166_v33 }
 0x1b5   : > { %v2183_v42 = vadd.f32 %v2182_v35, %v2167_v37  ;;  %v2198_v43 = vmul.f32 %v2167_v37, %v2167_v37 }
 0x1b6   : > { %v2129_v45 = vpop.f32.mrf.mxu2 }
 0x1b7   : > { %v2184_v46 = vrot.slane %v2183_v42, 4  ;;  %v2205_v47 = vadd.f32 %v2204_v40, %v2198_v43 }
 0x1b9   : > { %v2185_v49 = vadd.f32 %v2184_v46, %v2183_v42  ;;  %v2206_v50 = vrot.slane %v2205_v47, 4 }
 0x1bb   : > { %v2186_v51 = vrot.slane %v2185_v49, 2  ;;  %v2207_v14 = vadd.f32 %v2206_v50, %v2205_v47 }
 0x1bd   : > { %v2187_v52 = vadd.f32 %v2186_v51, %v2185_v49  ;;  %v2208_v53 = vrot.slane %v2207_v14, 2 }
 0x1bf   : > { %v2188_v54 = vrot.slane %v2187_v52, 1  ;;  %v2209_v55 = vadd.f32 %v2208_v53, %v2207_v14 }
 0x1c1   : > { %v2189_v19 = vadd.f32 %v2188_v54, %v2187_v52  ;;  %v2210_v44 = vrot.slane %v2209_v55, 1 }
 0x1c3   : > { %v2190_v56 = vmul.f32 0.015625, %v2189_v19  ;;  %v2211_v39 = vadd.f32 %v2210_v44, %v2209_v55 }
 0x1c5   : > { %v2212_v57 = vmul.f32 0.015625, %v2211_v39  ;;  %v2213_v59 = vmul.f32 %v2190_v56, %v2190_v56  ;;  %v2216_v41 = vsub.f32 %v3164_v4, %v2190_v56  ;;  %v2217_v58 = vsub.f32 %v3170_v10, %v2190_v56  ;;  %v2739_v10 = vld [vmem:[%s3333_s3] ss:$0 sm:$0xff] }
 0x1c6   : > { %v2218_v60 = vsub.f32 %v3248_v38, %v2190_v56  ;;  %v2219_v61 = vsub.f32 %v3287_v36, %v2190_v56  ;;  %v2220_v48 = vsub.f32 %v3298_v0, %v2190_v56  ;;  %v2221_v62 = vsub.f32 %v3304_v34, %v2190_v56 }
 0x1c7   : > { %v2214_v63 = vsub.f32 %v2212_v57, %v2213_v59  ;;  %v2222_v38 = vsub.f32 %v1926_v27, %v2190_v56  ;;  %v2223_v36 = vsub.f32 %v2167_v37, %v2190_v56 }
 0x1c9   : > { %v2215_v1 = vmax.f32 %v2214_v63, 0.0 }
 0x1cb   : > { %v2224_v3 = vadd.f32 1e-05, %v2215_v1 }
 0x1cd   : > { %2741 = vrsqrt.f32 %v2224_v3  ;;  %vm2231_vm3 = vweird.f32 %v2224_v3 }
 0x1d3   : > { %v2742_v5 = vpop.eup %2741 }
 0x1d4   : > { %v2226_v6 = vmul.f32 %v2742_v5, %v2224_v3  ;;  %vm2232_vm2 = vweird.f32 %v2742_v5 }
 0x1d5   : > { %vm2233_vm4 = vmor %vm2231_vm3, %vm2232_vm2 }
 0x1d6   : > { %v2227_v7 = vmul.f32 %v2742_v5, %v2226_v6 }
 0x1d8   : > { %v2228_v8 = vmul.f32 0.5, %v2227_v7 }
 0x1da   : > { %v2229_v9 = vsub.f32 1.5, %v2228_v8 }
 0x1dc   : > { %v2230_v4 = vmul.f32 %v2742_v5, %v2229_v9 }
 0x1de   : > { %v2234_v0 = vsel %vm2233_vm4, %v2742_v5, %v2230_v4 }
 0x1df   : > { %v2235_v34 = vmul.f32 %v2234_v0, %v2216_v41  ;;  %v2236_v11 = vmul.f32 %v2234_v0, %v2217_v58  ;;  %v2237_v12 = vmul.f32 %v2234_v0, %v2218_v60  ;;  %v2238_v13 = vmul.f32 %v2234_v0, %v2219_v61 }
 0x1e0   : > { %v2239_v15 = vmul.f32 %v2234_v0, %v2220_v48  ;;  %v2240_v16 = vmul.f32 %v2234_v0, %v2221_v62  ;;  %v2241_v17 = vmul.f32 %v2234_v0, %v2222_v38  ;;  %v2242_v18 = vmul.f32 %v2234_v0, %v2223_v36 }
 0x1e1   : > { %v2247_v20 = vmul.f32 %v2739_v10, %v2235_v34  ;;  %v2248_v21 = vmul.f32 %v2739_v10, %v2236_v11  ;;  %v2249_v22 = vmul.f32 %v2739_v10, %v2237_v12  ;;  %v2250_v23 = vmul.f32 %v2739_v10, %v2238_v13 }
 0x1e2   : > { %v2251_v24 = vmul.f32 %v2739_v10, %v2239_v15  ;;  %v2252_v25 = vmul.f32 %v2739_v10, %v2240_v16  ;;  %v2253_v26 = vmul.f32 %v2739_v10, %v2241_v17  ;;  %v2254_v27 = vmul.f32 %v2739_v10, %v2242_v18 }
 0x1e3   : > { %v2259_v28 = vadd.f32 %v2740_v2, %v2247_v20  ;;  %v2260_v29 = vadd.f32 %v2740_v2, %v2248_v21  ;;  %v2261_v30 = vadd.f32 %v2740_v2, %v2249_v22  ;;  %v2262_v31 = vadd.f32 %v2740_v2, %v2250_v23 }
 0x1e4   : > { %v2263_v32 = vadd.f32 %v2740_v2, %v2251_v24  ;;  %v2264_v33 = vadd.f32 %v2740_v2, %v2252_v25  ;;  %v2265_v35 = vadd.f32 %v2740_v2, %v2253_v26  ;;  %v2266_v37 = vadd.f32 %v2740_v2, %v2254_v27 }
 0x1e5   : > { %v2267_v40 = vmax.f32 %v2259_v28, 0.0  ;;  %v2268_v42 = vmax.f32 %v2260_v29, 0.0  ;;  %v2269_v43 = vmax.f32 %v2261_v30, 0.0  ;;  %v2270_v45 = vmax.f32 %v2262_v31, 0.0 }
 0x1e6   : > { %v2271_v46 = vmax.f32 %v2263_v32, 0.0  ;;  %v2272_v47 = vmax.f32 %v2264_v33, 0.0  ;;  %v2273_v49 = vmax.f32 %v2265_v35, 0.0  ;;  %v2274_v50 = vmax.f32 %v2266_v37, 0.0 }
 0x1e7   : > { %v2709_v51 = vpack.c.bf16 %v2268_v42, %v2267_v40  ;;  %v2714_v14 = vpack.c.bf16 %v2270_v45, %v2269_v43 }
 0x1e8   : > { %v2719_v52 = vpack.c.bf16 %v2272_v47, %v2271_v46  ;;  %v2724_v53 = vpack.c.bf16 %v2274_v50, %v2273_v49 }
 0x1e9   : > { %2710 = vst [vmem:[%s224_s21] sm:$0xff] %v2709_v51  }
 0x1ea   : > { %2726 = vst [vmem:[%s224_s21 + $0x8] sm:$0xff] %v2714_v14  }
 0x1eb   : > { %2727 = vst [vmem:[%s224_s21 + $0x10] sm:$0xff] %v2719_v52  }
 0x1ec   : > { %2728 = vst [vmem:[%s224_s21 + $0x18] sm:$0xff] %v2724_v53  }
 0x1ed PF: > { %s15_s18 = sadd.s32 1, %s2749_s18  }
 0x1ee   : > { %p12_p4 = scmp.ge.s32.totalorder %s15_s18, 4  }
 0x1f0   :  { %14 = sbr.rel (!%p12_p4) target bundleno = 1 (0x1), region = 111 }

// kernel: d4_forward.4
= control target key start
LH: loop header
LB: loop body
LE: loop exit
PB: predicated region body
PF: predicated region fallthrough
CT: control target
= control target key end

     0   :  { %s5395_s18 = smov 0   ;;  %s6357_s0 = inlined_call_operand.vmem [shape: bf16[2,4,5,5,128], index: 0, kind: input, shape index: {}]   ;;  %s6358_s1 = inlined_call_operand.vmem [shape: bf16[9,128,128], index: 1, kind: input, shape index: {}]   ;;  %s6359_s2 = inlined_call_operand.vmem [shape: f32[1,128], index: 2, kind: input, shape index: {}]   ;;  %s6360_s3 = inlined_call_operand.vmem [shape: f32[1,128], index: 3, kind: input, shape index: {}]   ;;  %s6361_s4 = inlined_call_operand.vmem [shape: f32[1,128], index: 4, kind: input, shape index: {}]   ;;  %s6362_s5 = inlined_call_operand.vmem [shape: bf16[2,16,128], index: 5, kind: output, shape index: {}]  }
   0x1 LB: > { %s3341_s19 = sadd.s32 4294967295, %s5363_s18   ;;  %p3345_p0 = scmp.ge.s32.totalorder %s5363_s18, 1  ;;  %s5363_s18 = sphi %s5395_s18, %s15_s18  }
   0x2   : > { %p187_p1 = scmp.lt.s32.totalorder %s5363_s18, 3 }
   0x4   : > { %p188_p2 = pnand %p3345_p0, %p187_p1 }
   0x5   : > { %p215_p3 = scmp.lt.s32.totalorder (!%p188_p2), %s3341_s19, 1 }
   0x6   : > { %191 = sbr.rel (%p188_p2) target bundleno = 500 (0x1f4), region = 40 }
   0xb   : > { %v5065_v0 = vld [vmem:[%s6358_s1 + $0x78] sm:$0xff]  ;;  %v5064_v4 = vld [vmem:[%s6358_s1 + $0x70] sm:$0xff]  ;;  %v5063_v8 = vld [vmem:[%s6358_s1 + $0x68] sm:$0xff]  ;;  %s6364_s19 = smov (!%p215_p3, %s3341_s19), 1 }
   0xc   : > { %v5057_v1 = vld [vmem:[%s6358_s1 + $0x38] sm:$0xff]  ;;  %310 = vmatpush.bf16.msra.mxu0 %v5065_v0  ;;  %v5056_v5 = vld [vmem:[%s6358_s1 + $0x30] sm:$0xff]  ;;  %v5055_v9 = vld [vmem:[%s6358_s1 + $0x28] sm:$0xff]  ;;  %s5343_s25 = smul.u32 80, %s6364_s19  ;;  %s5049_s6 = sshll.u32 %s6364_s19, 3 }
   0xd   : > { %v5073_v2 = vld [vmem:[%s6358_s1 + $0xb8] sm:$0xff]  ;;  %371 = vmatpush.bf16.msra.mxu1 %v5057_v1  ;;  %v5072_v6 = vld [vmem:[%s6358_s1 + $0xb0] sm:$0xff]  ;;  %v5071_v10 = vld [vmem:[%s6358_s1 + $0xa8] sm:$0xff]  ;;  %s224_s9 = scalar_lea.vmem %s6362_s5, %s5049_s6 }
   0xe   : > { %v5081_v3 = vld [vmem:[%s6358_s1 + $0xf8] sm:$0xff]  ;;  %461 = vmatpush.bf16.msra.mxu2 %v5073_v2  ;;  %v5080_v7 = vld [vmem:[%s6358_s1 + $0xf0] sm:$0xff]  ;;  %v5079_v11 = vld [vmem:[%s6358_s1 + $0xe8] sm:$0xff]  ;;  %s5463_s11 = scalar_lea.vmem %s6357_s0, %s5343_s25 }
   0xf   : > { %542 = vmatpush.bf16.msra.mxu3 %v5081_v3  ;;  %v5062_v12 = vld [vmem:[%s6358_s1 + $0x60] sm:$0xff]  ;;  %v5061_v16 = vld [vmem:[%s6358_s1 + $0x58] sm:$0xff]  ;;  %v5060_v20 = vld [vmem:[%s6358_s1 + $0x50] sm:$0xff] }
  0x10   : > { %311 = vmatpush.bf16.msra.mxu0 %v5064_v4  ;;  %v5054_v13 = vld [vmem:[%s6358_s1 + $0x20] sm:$0xff]  ;;  %v5053_v17 = vld [vmem:[%s6358_s1 + $0x18] sm:$0xff]  ;;  %v5052_v21 = vld [vmem:[%s6358_s1 + $0x10] sm:$0xff] }
  0x11   : > { %372 = vmatpush.bf16.msra.mxu1 %v5056_v5  ;;  %v5070_v14 = vld [vmem:[%s6358_s1 + $0xa0] sm:$0xff]  ;;  %v5069_v18 = vld [vmem:[%s6358_s1 + $0x98] sm:$0xff]  ;;  %v5068_v24 = vld [vmem:[%s6358_s1 + $0x90] sm:$0xff] }
  0x12   : > { %462 = vmatpush.bf16.msra.mxu2 %v5072_v6  ;;  %v5078_v15 = vld [vmem:[%s6358_s1 + $0xe0] sm:$0xff]  ;;  %v5077_v19 = vld [vmem:[%s6358_s1 + $0xd8] sm:$0xff]  ;;  %v5076_v25 = vld [vmem:[%s6358_s1 + $0xd0] sm:$0xff] }
  0x13   : > { %543 = vmatpush.bf16.msra.mxu3 %v5080_v7  ;;  %v384_v22 = vld [vmem:[%s5463_s11] sm:$0x7]  ;;  %v5059_v27 = vld [vmem:[%s6358_s1 + $0x48] sm:$0xff]  ;;  %v5089_v38 = vld [vmem:[%s6358_s1 + $0x138] sm:$0xff] }
  0x14   : > { %312 = vmatpush.bf16.msra.mxu0 %v5063_v8  ;;  %v403_v23 = vunpack.c.l.b16 %v384_v22  ;;  %v5051_v28 = vld [vmem:[%s6358_s1 + $0x8] sm:$0xff]  ;;  %v5058_v32 = vld [vmem:[%s6358_s1 + $0x40] sm:$0xff]  ;;  %v5097_v39 = vld [vmem:[%s6358_s1 + $0x178] sm:$0xff] }
  0x15   : > { %373 = vmatpush.bf16.msra.mxu1 %v5055_v9  ;;  %v5067_v30 = vld [vmem:[%s6358_s1 + $0x88] sm:$0xff]  ;;  %v5050_v33 = vld [vmem:[%s6358_s1] sm:$0xff]  ;;  %v5105_v40 = vld [vmem:[%s6358_s1 + $0x1b8] sm:$0xff] }
  0x16   : > { %463 = vmatpush.bf16.msra.mxu2 %v5071_v10  ;;  %v404_v26 = vpack.c.b16 %v403_v23, %v403_v23  ;;  %v5075_v31 = vld [vmem:[%s6358_s1 + $0xc8] sm:$0xff]  ;;  %v5066_v36 = vld [vmem:[%s6358_s1 + $0x80] sm:$0xff]  ;;  %v5113_v41 = vld [vmem:[%s6358_s1 + $0x1f8] sm:$0xff] }
  0x17   : > { %544 = vmatpush.bf16.msra.mxu3 %v5079_v11  ;;  %v5074_v37 = vld [vmem:[%s6358_s1 + $0xc0] sm:$0xff]  ;;  %v5088_v43 = vld [vmem:[%s6358_s1 + $0x130] sm:$0xff]  ;;  %v3478_v46 = vld [vmem:[%s5463_s11 + $0x28] sm:$0x3] }
  0x18   : > { %313 = vmatpush.bf16.msra.mxu0 %v5062_v12  ;;  %v408_v29 = vshll.u32 %v404_v26, 16  ;;  %v406_v34 = vshrl.u32 %v404_v26, 16  ;;  %v3349_v44 = vld [vmem:[%s5463_s11 + $0x14] sm:$0x3]  ;;  %v226_v47 = vld [vmem:[%s5463_s11] sm:$0x3] }
  0x19   : > { %374 = vmatpush.bf16.msra.mxu1 %v5054_v13  ;;  %v5096_v45 = vld [vmem:[%s6358_s1 + $0x170] sm:$0xff]  ;;  %v5087_v50 = vld [vmem:[%s6358_s1 + $0x128] sm:$0xff]  ;;  %v5086_v54 = vld [vmem:[%s6358_s1 + $0x120] sm:$0xff] }
  0x1a   : > { %464 = vmatpush.bf16.msra.mxu2 %v5070_v14  ;;  %v410_v35 = vrot.slane %v408_v29, 1  ;;  %v5104_v48 = vld [vmem:[%s6358_s1 + $0x1b0] sm:$0xff]  ;;  %v5095_v51 = vld [vmem:[%s6358_s1 + $0x168] sm:$0xff]  ;;  %v5094_v55 = vld [vmem:[%s6358_s1 + $0x160] sm:$0xff] }
  0x1b   : > { %545 = vmatpush.bf16.msra.mxu3 %v5078_v15  ;;  %v5112_v49 = vld [vmem:[%s6358_s1 + $0x1f0] sm:$0xff]  ;;  %v5103_v52 = vld [vmem:[%s6358_s1 + $0x1a8] sm:$0xff]  ;;  %v5102_v56 = vld [vmem:[%s6358_s1 + $0x1a0] sm:$0xff] }
  0x1c   : > { %314 = vmatpush.bf16.msra.mxu0 %v5061_v16  ;;  %v411_v42 = vor.u32 %v410_v35, %v406_v34  ;;  %v5111_v53 = vld [vmem:[%s6358_s1 + $0x1e8] sm:$0xff]  ;;  %v5110_v57 = vld [vmem:[%s6358_s1 + $0x1e0] sm:$0xff]  ;;  %v5085_v59 = vld [vmem:[%s6358_s1 + $0x118] sm:$0xff] }
  0x1d   : > { %375 = vmatpush.bf16.msra.mxu1 %v5053_v17  ;;  %v3576_v58 = vld [vmem:[%s5463_s11 + $0x28] sm:$0x7]  ;;  %v5093_v60 = vld [vmem:[%s6358_s1 + $0x158] sm:$0xff]  ;;  %v5084_v0 = vld [vmem:[%s6358_s1 + $0x110] sm:$0xff] }
  0x1e   : > { %465 = vmatpush.bf16.msra.mxu2 %v5069_v18  ;;  %v5101_v61 = vld [vmem:[%s6358_s1 + $0x198] sm:$0xff]  ;;  %v656_v63 = vunpack.c.l.b16 %v3576_v58  ;;  %v5092_v1 = vld [vmem:[%s6358_s1 + $0x150] sm:$0xff]  ;;  %v5083_v5 = vld [vmem:[%s6358_s1 + $0x108] sm:$0xff] }
  0x1f   : > { %546 = vmatpush.bf16.msra.mxu3 %v5077_v19  ;;  %v5109_v62 = vld [vmem:[%s6358_s1 + $0x1d8] sm:$0xff]  ;;  %v5100_v2 = vld [vmem:[%s6358_s1 + $0x190] sm:$0xff]  ;;  %v5091_v6 = vld [vmem:[%s6358_s1 + $0x148] sm:$0xff] }
  0x20   : > { %315 = vmatpush.bf16.msra.mxu0 %v5060_v20  ;;  %v5108_v3 = vld [vmem:[%s6358_s1 + $0x1d0] sm:$0xff]  ;;  %v657_v4 = vpack.c.b16 %v656_v63, %v656_v63  ;;  %v5099_v7 = vld [vmem:[%s6358_s1 + $0x188] sm:$0xff]  ;;  %v5082_v10 = vld [vmem:[%s6358_s1 + $0x100] sm:$0xff] }
  0x21   : > { %376 = vmatpush.bf16.msra.mxu1 %v5052_v21  ;;  %v5107_v8 = vld [vmem:[%s6358_s1 + $0x1c8] sm:$0xff]  ;;  %v5090_v11 = vld [vmem:[%s6358_s1 + $0x140] sm:$0xff]  ;;  %v5121_v16 = vld [vmem:[%s6358_s1 + $0x238] sm:$0xff] }
  0x22   : > { %466 = vmatpush.bf16.msra.mxu2 %v5068_v24  ;;  %v661_v9 = vshll.u32 %v657_v4, 16  ;;  %v5098_v12 = vld [vmem:[%s6358_s1 + $0x180] sm:$0xff]  ;;  %v659_v14 = vshrl.u32 %v657_v4, 16  ;;  %v5137_v17 = vld [vmem:[%s6358_s1 + $0x78] sm:$0xff]  ;;  %v5120_v23 = vld [vmem:[%s6358_s1 + $0x230] sm:$0xff] }
  0x23   : > { %547 = vmatpush.bf16.msra.mxu3 %v5076_v25  ;;  %v5106_v13 = vld [vmem:[%s6358_s1 + $0x1c0] sm:$0xff]  ;;  %v5129_v18 = vld [vmem:[%s6358_s1 + $0x38] sm:$0xff]  ;;  %v5136_v24 = vld [vmem:[%s6358_s1 + $0x70] sm:$0xff] }
  0x24   : > { %316 = vmatpush.bf16.msra.mxu0 %v5059_v27  ;;  %v663_v15 = vrot.slane %v661_v9, 1  ;;  %v5145_v19 = vld [vmem:[%s6358_s1 + $0xb8] sm:$0xff]  ;;  %v3625_v20 = vld [vmem:[%s5463_s11 + $0x4] sm:$0x3]  ;;  %v5128_v26 = vld [vmem:[%s6358_s1 + $0x30] sm:$0xff] }
  0x25   : > { %377 = vmatpush.bf16.msra.mxu1 %v5051_v28  ;;  %v3527_v21 = vld [vmem:[%s5463_s11 + $0x3c] sm:$0x3]  ;;  %v3674_v25 = vld [vmem:[%s5463_s11 + $0x18] sm:$0x3]  ;;  %v5144_v27 = vld [vmem:[%s6358_s1 + $0xb0] sm:$0xff] }
  0x26   : > { %467 = vmatpush.bf16.msra.mxu2 %v5067_v30  ;;  %v664_v22 = vor.u32 %v663_v15, %v659_v14  ;;  %v5119_v28 = vld [vmem:[%s6358_s1 + $0x228] sm:$0xff]  ;;  %v5126_v34 = vld [vmem:[%s6358_s1 + $0x20] sm:$0xff]  ;;  %v3773_v9 = vld [vmem:[%s5463_s11 + $0x18] sm:$0x3] }
  0x27   : > { %548 = vmatpush.bf16.msra.mxu3 %v5075_v31  ;;  %v5135_v29 = vld [vmem:[%s6358_s1 + $0x68] sm:$0xff]  ;;  %v5142_v35 = vld [vmem:[%s6358_s1 + $0xa0] sm:$0xff] }
  0x28   : > { %317 = vmatpush.bf16.msra.mxu0 %v5058_v32  ;;  %v5127_v30 = vld [vmem:[%s6358_s1 + $0x28] sm:$0xff]  ;;  %v5118_v32 = vld [vmem:[%s6358_s1 + $0x220] sm:$0xff] }
  0x29   : > { %378 = vmatpush.bf16.msra.mxu1 %v5050_v33  ;;  %v5143_v31 = vld [vmem:[%s6358_s1 + $0xa8] sm:$0xff]  ;;  %v5134_v33 = vld [vmem:[%s6358_s1 + $0x60] sm:$0xff] }
  0x2a   : > { %468 = vmatpush.bf16.msra.mxu2 %v5066_v36  ;;  %v3723_v36 = vld [vmem:[%s5463_s11 + $0x4] sm:$0x7]  ;;  %v5167_v14 = vld [vmem:[%s6358_s1 + $0x168] sm:$0xff] }
  0x2b   : > { %549 = vmatpush.bf16.msra.mxu3 %v5074_v37  ;;  %318 = vmatmul.bf16.vlgmr.msra.gmra.mxu0 %v3349_v44  ;;  %v3854_v37 = vld [vmem:[%s5463_s11 + $0x4] sm:$0x7]  ;;  %v5116_v44 = vld [vmem:[%s6358_s1 + $0x210] sm:$0xff]  ;;  %v5175_v15 = vld [vmem:[%s6358_s1 + $0x1a8] sm:$0xff] }
  0x2c   : > { %623 = vmatpush.bf16.msrb.mxu0 %v5089_v38  ;;  %379 = vmatmul.bf16.vlgmr.msra.gmra.mxu1 %v226_v47  ;;  %v5117_v38 = vld [vmem:[%s6358_s1 + $0x218] sm:$0xff]  ;;  %v5124_v47 = vld [vmem:[%s6358_s1 + $0x10] sm:$0xff] }
  0x2d   : > { %714 = vmatpush.bf16.msrb.mxu1 %v5097_v39  ;;  %469 = vmatmul.bf16.vlgmr.msra.gmra.mxu2 %v411_v42  ;;  %v5133_v39 = vld [vmem:[%s6358_s1 + $0x58] sm:$0xff] }
  0x2e   : > { %795 = vmatpush.bf16.msrb.mxu2 %v5105_v40  ;;  %550 = vmatmul.bf16.vlgmr.msra.gmra.mxu3 %v3478_v46  ;;  %v909_v40 = vunpack.c.l.b16 %v3723_v36  ;;  %v5141_v42 = vld [vmem:[%s6358_s1 + $0x98] sm:$0xff]  ;;  %v5146_v36 = vld [vmem:[%s6358_s1 + $0xc0] sm:$0xff] }
  0x2f   : > { %876 = vmatpush.bf16.msrb.mxu3 %v5113_v41  ;;  %v5125_v41 = vld [vmem:[%s6358_s1 + $0x18] sm:$0xff] }
  0x30   : > { %624 = vmatpush.bf16.msrb.mxu0 %v5088_v43  ;;  %v1160_v43 = vunpack.c.l.b16 %v3854_v37  ;;  %v910_v46 = vpack.c.b16 %v909_v40, %v909_v40  ;;  %v5154_v37 = vld [vmem:[%s6358_s1 + $0x100] sm:$0xff] }
  0x31   : > { %715 = vmatpush.bf16.msrb.mxu1 %v5096_v45  ;;  %v5132_v45 = vld [vmem:[%s6358_s1 + $0x50] sm:$0xff]  ;;  %v5162_v40 = vld [vmem:[%s6358_s1 + $0x140] sm:$0xff] }
  0x32   : > { %796 = vmatpush.bf16.msrb.mxu2 %v5104_v48  ;;  %v5140_v48 = vld [vmem:[%s6358_s1 + $0x90] sm:$0xff]  ;;  %v912_v58 = vshrl.u32 %v910_v46, 16 }
  0x33   : > { %877 = vmatpush.bf16.msrb.mxu3 %v5112_v49  ;;  %v1161_v49 = vpack.c.b16 %v1160_v43, %v1160_v43  ;;  %v5193_v43 = vld [vmem:[%s6358_s1 + $0x238] sm:$0xff] }
  0x34   : > { %625 = vmatpush.bf16.msrb.mxu0 %v5087_v50  ;;  %v5115_v50 = vld [vmem:[%s6358_s1 + $0x208] sm:$0xff] }
  0x35   : > { %716 = vmatpush.bf16.msrb.mxu1 %v5095_v51  ;;  %v5131_v51 = vld [vmem:[%s6358_s1 + $0x48] sm:$0xff] }
  0x36   : > { %797 = vmatpush.bf16.msrb.mxu2 %v5103_v52  ;;  %v914_v52 = vshll.u32 %v910_v46, 16 }
  0x37   : > { %878 = vmatpush.bf16.msrb.mxu3 %v5111_v53  ;;  %v5123_v53 = vld [vmem:[%s6358_s1 + $0x8] sm:$0xff] }
  0x38   : > { %626 = vmatpush.bf16.msrb.mxu0 %v5086_v54  ;;  %v5139_v54 = vld [vmem:[%s6358_s1 + $0x88] sm:$0xff] }
  0x39   : > { %717 = vmatpush.bf16.msrb.mxu1 %v5094_v55  ;;  %v1165_v55 = vshll.u32 %v1161_v49, 16 }
  0x3a   : > { %798 = vmatpush.bf16.msrb.mxu2 %v5102_v56  ;;  %v5114_v56 = vld [vmem:[%s6358_s1 + $0x200] sm:$0xff] }
  0x3b   : > { %879 = vmatpush.bf16.msrb.mxu3 %v5110_v57  ;;  %v5130_v57 = vld [vmem:[%s6358_s1 + $0x40] sm:$0xff]  ;;  %v1167_v63 = vrot.slane %v1165_v55, 1  ;;  %v5191_v55 = vld [vmem:[%s6358_s1 + $0x228] sm:$0xff] }
  0x3c   : > { %627 = vmatpush.bf16.msrb.mxu0 %v5085_v59  ;;  %v916_v59 = vrot.slane %v914_v52, 1  ;;  %v5208_v52 = vld [vmem:[%s6358_s1 + $0x70] sm:$0xff] }
  0x3d   : > { %718 = vmatpush.bf16.msrb.mxu1 %v5093_v60  ;;  %v5122_v60 = vld [vmem:[%s6358_s1] sm:$0xff] }
  0x3e   : > { %799 = vmatpush.bf16.msrb.mxu2 %v5101_v61  ;;  %v5138_v61 = vld [vmem:[%s6358_s1 + $0x80] sm:$0xff]  ;;  %v917_v4 = vor.u32 %v916_v59, %v912_v58 }
  0x3f   : > { %880 = vmatpush.bf16.msrb.mxu3 %v5109_v62  ;;  %v1163_v62 = vshrl.u32 %v1161_v49, 16  ;;  %v5192_v49 = vld [vmem:[%s6358_s1 + $0x230] sm:$0xff]  ;;  %v5182_v58 = vld [vmem:[%s6358_s1 + $0x1e0] sm:$0xff] }
  0x40   : > { %628 = vmatpush.bf16.msrb.mxu0 %v5084_v0  ;;  %v5153_v0 = vld [vmem:[%s6358_s1 + $0xf8] sm:$0xff]  ;;  %v5190_v59 = vld [vmem:[%s6358_s1 + $0x220] sm:$0xff] }
  0x41   : > { %719 = vmatpush.bf16.msrb.mxu1 %v5092_v1  ;;  %v5161_v1 = vld [vmem:[%s6358_s1 + $0x138] sm:$0xff] }
  0x42   : > { %800 = vmatpush.bf16.msrb.mxu2 %v5100_v2  ;;  %v5169_v2 = vld [vmem:[%s6358_s1 + $0x178] sm:$0xff] }
  0x43   : > { %881 = vmatpush.bf16.msrb.mxu3 %v5108_v3  ;;  %v5177_v3 = vld [vmem:[%s6358_s1 + $0x1b8] sm:$0xff] }
  0x44   : > { %629 = vmatpush.bf16.msrb.mxu0 %v5083_v5  ;;  %v3772_v5 = vld [vmem:[%s5463_s11 + $0x4] sm:$0x3] }
  0x45   : > { %720 = vmatpush.bf16.msrb.mxu1 %v5091_v6  ;;  %v1168_v6 = vor.u32 %v1167_v63, %v1163_v62  ;;  %v4148_v62 = vld [vmem:[%s5463_s11 + $0x8] sm:$0x7]  ;;  %v5181_v63 = vld [vmem:[%s6358_s1 + $0x1d8] sm:$0xff] }
  0x46   : > { %801 = vmatpush.bf16.msrb.mxu2 %v5099_v7  ;;  %v5152_v7 = vld [vmem:[%s6358_s1 + $0xf0] sm:$0xff] }
  0x47   : > { %882 = vmatpush.bf16.msrb.mxu3 %v5107_v8  ;;  %v5160_v8 = vld [vmem:[%s6358_s1 + $0x130] sm:$0xff] }
  0x48   : > { %630 = vmatpush.bf16.msrb.mxu0 %v5082_v10  ;;  %v5168_v10 = vld [vmem:[%s6358_s1 + $0x170] sm:$0xff] }
  0x49   : > { %721 = vmatpush.bf16.msrb.mxu1 %v5090_v11  ;;  %v5176_v11 = vld [vmem:[%s6358_s1 + $0x1b0] sm:$0xff] }
  0x4a   : > { %802 = vmatpush.bf16.msrb.mxu2 %v5098_v12  ;;  %v5151_v12 = vld [vmem:[%s6358_s1 + $0xe8] sm:$0xff] }
  0x4b   : > { %883 = vmatpush.bf16.msrb.mxu3 %v5106_v13  ;;  %631 = vmatmul.bf16.vlgmr.msrb.gmra.mxu0 %v3527_v21  ;;  %v5159_v13 = vld [vmem:[%s6358_s1 + $0x128] sm:$0xff]  ;;  %v5149_v21 = vld [vmem:[%s6358_s1 + $0xd8] sm:$0xff] }
  0x4c   : > { %967 = vmatpush.bf16.msra.mxu0 %v5121_v16  ;;  %722 = vmatmul.bf16.vlgmr.msrb.gmra.mxu1 %v664_v22  ;;  %v5150_v16 = vld [vmem:[%s6358_s1 + $0xe0] sm:$0xff]  ;;  %v5157_v22 = vld [vmem:[%s6358_s1 + $0x118] sm:$0xff] }
  0x4d   : > { %1068 = vmatpush.bf16.msra.mxu1 %v5137_v17  ;;  %803 = vmatmul.bf16.vlgmr.msrb.gmra.mxu2 %v3625_v20  ;;  %v5158_v17 = vld [vmem:[%s6358_s1 + $0x120] sm:$0xff]  ;;  %v4001_v20 = vld [vmem:[%s5463_s11 + $0x2c] sm:$0x7] }
  0x4e   : > { %1129 = vmatpush.bf16.msra.mxu2 %v5129_v18  ;;  %884 = vmatmul.bf16.vlgmr.msrb.gmra.mxu3 %v3674_v25  ;;  %v5166_v18 = vld [vmem:[%s6358_s1 + $0x160] sm:$0xff]  ;;  %v5173_v25 = vld [vmem:[%s6358_s1 + $0x198] sm:$0xff] }
  0x4f   : > { %1218 = vmatpush.bf16.msra.mxu3 %v5145_v19  ;;  %v5174_v19 = vld [vmem:[%s6358_s1 + $0x1a0] sm:$0xff] }
  0x50   : > { %968 = vmatpush.bf16.msra.mxu0 %v5120_v23  ;;  %v1410_v23 = vunpack.c.l.b16 %v4001_v20  ;;  %v5217_v20 = vld [vmem:[%s6358_s1 + $0xb8] sm:$0xff] }
  0x51   : > { %1069 = vmatpush.bf16.msra.mxu1 %v5136_v24  ;;  %v5165_v24 = vld [vmem:[%s6358_s1 + $0x158] sm:$0xff] }
  0x52   : > { %1130 = vmatpush.bf16.msra.mxu2 %v5128_v26  ;;  %v5148_v26 = vld [vmem:[%s6358_s1 + $0xd0] sm:$0xff] }
  0x53   : > { %1219 = vmatpush.bf16.msra.mxu3 %v5144_v27  ;;  %v5156_v27 = vld [vmem:[%s6358_s1 + $0x110] sm:$0xff] }
  0x54   : > { %969 = vmatpush.bf16.msra.mxu0 %v5119_v28  ;;  %v1411_v28 = vpack.c.b16 %v1410_v23, %v1410_v23  ;;  %v5241_v23 = vld [vmem:[%s6358_s1 + $0x178] sm:$0xff] }
  0x55   : > { %1070 = vmatpush.bf16.msra.mxu1 %v5135_v29  ;;  %v5164_v29 = vld [vmem:[%s6358_s1 + $0x150] sm:$0xff] }
  0x56   : > { %1131 = vmatpush.bf16.msra.mxu2 %v5127_v30  ;;  %v5172_v30 = vld [vmem:[%s6358_s1 + $0x190] sm:$0xff] }
  0x57   : > { %1220 = vmatpush.bf16.msra.mxu3 %v5143_v31  ;;  %v5147_v31 = vld [vmem:[%s6358_s1 + $0xc8] sm:$0xff] }
  0x58   : > { %970 = vmatpush.bf16.msra.mxu0 %v5118_v32  ;;  %v5155_v32 = vld [vmem:[%s6358_s1 + $0x108] sm:$0xff] }
  0x59   : > { %1071 = vmatpush.bf16.msra.mxu1 %v5134_v33  ;;  %v1415_v33 = vshll.u32 %v1411_v28, 16 }
  0x5a   : > { %1132 = vmatpush.bf16.msra.mxu2 %v5126_v34  ;;  %v5163_v34 = vld [vmem:[%s6358_s1 + $0x148] sm:$0xff] }
  0x5b   : > { %1221 = vmatpush.bf16.msra.mxu3 %v5142_v35  ;;  %v5171_v35 = vld [vmem:[%s6358_s1 + $0x188] sm:$0xff] }
  0x5c   : > { %971 = vmatpush.bf16.msra.mxu0 %v5117_v38  ;;  %v1413_v38 = vshrl.u32 %v1411_v28, 16  ;;  %v4198_v28 = vld [vmem:[%s5463_s11 + $0x1c] sm:$0x3] }
  0x5d   : > { %1072 = vmatpush.bf16.msra.mxu1 %v5133_v39  ;;  %v1417_v39 = vrot.slane %v1415_v33, 1  ;;  %v5223_v33 = vld [vmem:[%s6358_s1 + $0xe8] sm:$0xff] }
  0x5e   : > { %1133 = vmatpush.bf16.msra.mxu2 %v5125_v41  ;;  %v5170_v41 = vld [vmem:[%s6358_s1 + $0x180] sm:$0xff] }
  0x5f   : > { %1222 = vmatpush.bf16.msra.mxu3 %v5141_v42  ;;  %v5185_v42 = vld [vmem:[%s6358_s1 + $0x1f8] sm:$0xff]  ;;  %v1418_v46 = vor.u32 %v1417_v39, %v1413_v38  ;;  %v5222_v38 = vld [vmem:[%s6358_s1 + $0xe0] sm:$0xff] }
  0x60   : > { %972 = vmatpush.bf16.msra.mxu0 %v5116_v44  ;;  %v5209_v44 = vld [vmem:[%s6358_s1 + $0x78] sm:$0xff] }
  0x61   : > { %1073 = vmatpush.bf16.msra.mxu1 %v5132_v45  ;;  %v5201_v45 = vld [vmem:[%s6358_s1 + $0x38] sm:$0xff] }
  0x62   : > { %1134 = vmatpush.bf16.msra.mxu2 %v5124_v47  ;;  %v5184_v47 = vld [vmem:[%s6358_s1 + $0x1f0] sm:$0xff] }
  0x63   : > { %1223 = vmatpush.bf16.msra.mxu3 %v5140_v48  ;;  %v3903_v48 = vld [vmem:[%s5463_s11 + $0x2c] sm:$0x3] }
  0x64   : > { %973 = vmatpush.bf16.msra.mxu0 %v5115_v50  ;;  %v4050_v50 = vld [vmem:[%s5463_s11 + $0x8] sm:$0x3] }
  0x65   : > { %1074 = vmatpush.bf16.msra.mxu1 %v5131_v51  ;;  %v3952_v51 = vld [vmem:[%s5463_s11 + $0x40] sm:$0x3] }
  0x66   : > { %1135 = vmatpush.bf16.msra.mxu2 %v5123_v53  ;;  %v5200_v53 = vld [vmem:[%s6358_s1 + $0x30] sm:$0xff] }
  0x67   : > { %1224 = vmatpush.bf16.msra.mxu3 %v5139_v54  ;;  %v5183_v54 = vld [vmem:[%s6358_s1 + $0x1e8] sm:$0xff] }
  0x68   : > { %974 = vmatpush.bf16.msra.mxu0 %v5114_v56  ;;  %v5207_v56 = vld [vmem:[%s6358_s1 + $0x68] sm:$0xff] }
  0x69   : > { %1075 = vmatpush.bf16.msra.mxu1 %v5130_v57  ;;  %v5199_v57 = vld [vmem:[%s6358_s1 + $0x28] sm:$0xff] }
  0x6a   : > { %1136 = vmatpush.bf16.msra.mxu2 %v5122_v60  ;;  %v5206_v60 = vld [vmem:[%s6358_s1 + $0x60] sm:$0xff] }
  0x6b   : > { %1225 = vmatpush.bf16.msra.mxu3 %v5138_v61  ;;  %975 = vmatmul.bf16.vlgmr.msra.gmra.mxu0 %v917_v4  ;;  %v5198_v61 = vld [vmem:[%s6358_s1 + $0x20] sm:$0xff]  ;;  %v5180_v4 = vld [vmem:[%s6358_s1 + $0x1d0] sm:$0xff] }
  0x6c   : > { %1298 = vmatpush.bf16.msrb.mxu0 %v5153_v0  ;;  %1076 = vmatmul.bf16.vlgmr.msra.gmra.mxu1 %v3773_v9  ;;  %v5189_v0 = vld [vmem:[%s6358_s1 + $0x218] sm:$0xff]  ;;  %v5179_v9 = vld [vmem:[%s6358_s1 + $0x1c8] sm:$0xff] }
  0x6d   : > { %1378 = vmatpush.bf16.msrb.mxu1 %v5161_v1  ;;  %1137 = vmatmul.bf16.vlgmr.msra.gmra.mxu2 %v3772_v5  ;;  %v1660_v1 = vunpack.c.l.b16 %v4148_v62  ;;  %v5188_v5 = vld [vmem:[%s6358_s1 + $0x210] sm:$0xff] }
  0x6e   : > { %1468 = vmatpush.bf16.msrb.mxu2 %v5169_v2  ;;  %1226 = vmatmul.bf16.vlgmr.msra.gmra.mxu3 %v1168_v6  ;;  %v5205_v2 = vld [vmem:[%s6358_s1 + $0x58] sm:$0xff] }
  0x6f   : > { %1548 = vmatpush.bf16.msrb.mxu3 %v5177_v3  ;;  %v5197_v3 = vld [vmem:[%s6358_s1 + $0x18] sm:$0xff]  ;;  %v1661_v6 = vpack.c.b16 %v1660_v1, %v1660_v1 }
  0x70   : > { %1299 = vmatpush.bf16.msrb.mxu0 %v5152_v7  ;;  %v5204_v7 = vld [vmem:[%s6358_s1 + $0x50] sm:$0xff] }
  0x71   : > { %1379 = vmatpush.bf16.msrb.mxu1 %v5160_v8  ;;  %v5196_v8 = vld [vmem:[%s6358_s1 + $0x10] sm:$0xff] }
  0x72   : > { %1469 = vmatpush.bf16.msrb.mxu2 %v5168_v10  ;;  %v5187_v10 = vld [vmem:[%s6358_s1 + $0x208] sm:$0xff] }
  0x73   : > { %1549 = vmatpush.bf16.msrb.mxu3 %v5176_v11  ;;  %v1665_v11 = vshll.u32 %v1661_v6, 16 }
  0x74   : > { %1300 = vmatpush.bf16.msrb.mxu0 %v5151_v12  ;;  %v5203_v12 = vld [vmem:[%s6358_s1 + $0x48] sm:$0xff] }
  0x75   : > { %1380 = vmatpush.bf16.msrb.mxu1 %v5159_v13  ;;  %v5195_v13 = vld [vmem:[%s6358_s1 + $0x8] sm:$0xff] }
  0x76   : > { %1470 = vmatpush.bf16.msrb.mxu2 %v5167_v14  ;;  %v5178_v14 = vld [vmem:[%s6358_s1 + $0x1c0] sm:$0xff] }
  0x77   : > { %1550 = vmatpush.bf16.msrb.mxu3 %v5175_v15  ;;  %v5186_v15 = vld [vmem:[%s6358_s1 + $0x200] sm:$0xff] }
  0x78   : > { %1301 = vmatpush.bf16.msrb.mxu0 %v5150_v16  ;;  %v1663_v16 = vshrl.u32 %v1661_v6, 16 }
  0x79   : > { %1381 = vmatpush.bf16.msrb.mxu1 %v5158_v17  ;;  %v1667_v17 = vrot.slane %v1665_v11, 1 }
  0x7a   : > { %1471 = vmatpush.bf16.msrb.mxu2 %v5166_v18  ;;  %v5202_v18 = vld [vmem:[%s6358_s1 + $0x40] sm:$0xff] }
  0x7b   : > { %1551 = vmatpush.bf16.msrb.mxu3 %v5174_v19  ;;  %v5194_v19 = vld [vmem:[%s6358_s1] sm:$0xff] }
  0x7c   : > { %1302 = vmatpush.bf16.msrb.mxu0 %v5149_v21  ;;  %v5225_v21 = vld [vmem:[%s6358_s1 + $0xf8] sm:$0xff] }
  0x7d   : > { %1382 = vmatpush.bf16.msrb.mxu1 %v5157_v22  ;;  %v5233_v22 = vld [vmem:[%s6358_s1 + $0x138] sm:$0xff] }
  0x7e   : > { %1472 = vmatpush.bf16.msrb.mxu2 %v5165_v24  ;;  %v1668_v24 = vor.u32 %v1667_v17, %v1663_v16  ;;  %v4377_v17 = vld [vmem:[%s5463_s11 + $0x44] sm:$0x3] }
  0x7f   : > { %1552 = vmatpush.bf16.msrb.mxu3 %v5173_v25  ;;  %v4099_v25 = vld [vmem:[%s5463_s11 + $0x1c] sm:$0x3] }
  0x80   : > { %1303 = vmatpush.bf16.msrb.mxu0 %v5148_v26  ;;  %v5216_v26 = vld [vmem:[%s6358_s1 + $0xb0] sm:$0xff] }
  0x81   : > { %1383 = vmatpush.bf16.msrb.mxu1 %v5156_v27  ;;  %v5224_v27 = vld [vmem:[%s6358_s1 + $0xf0] sm:$0xff] }
  0x82   : > { %1473 = vmatpush.bf16.msrb.mxu2 %v5164_v29  ;;  %v4197_v29 = vld [vmem:[%s5463_s11 + $0x8] sm:$0x3] }
  0x83   : > { %1553 = vmatpush.bf16.msrb.mxu3 %v5172_v30  ;;  %v5232_v30 = vld [vmem:[%s6358_s1 + $0x130] sm:$0xff] }
  0x84   : > { %1304 = vmatpush.bf16.msrb.mxu0 %v5147_v31  ;;  %v5240_v31 = vld [vmem:[%s6358_s1 + $0x170] sm:$0xff] }
  0x85   : > { %1384 = vmatpush.bf16.msrb.mxu1 %v5155_v32  ;;  %v5215_v32 = vld [vmem:[%s6358_s1 + $0xa8] sm:$0xff] }
  0x86   : > { %1474 = vmatpush.bf16.msrb.mxu2 %v5163_v34  ;;  %v5231_v34 = vld [vmem:[%s6358_s1 + $0x128] sm:$0xff] }
  0x87   : > { %1554 = vmatpush.bf16.msrb.mxu3 %v5171_v35  ;;  %v5239_v35 = vld [vmem:[%s6358_s1 + $0x168] sm:$0xff] }
  0x88   : > { %1305 = vmatpush.bf16.msrb.mxu0 %v5146_v36 }
  0x89   : > { %1385 = vmatpush.bf16.msrb.mxu1 %v5154_v37  ;;  %v5214_v37 = vld [vmem:[%s6358_s1 + $0xa0] sm:$0xff] }
  0x8a   : > { %1475 = vmatpush.bf16.msrb.mxu2 %v5162_v40  ;;  %v5230_v40 = vld [vmem:[%s6358_s1 + $0x120] sm:$0xff] }
  0x8b   : > { %1555 = vmatpush.bf16.msrb.mxu3 %v5170_v41  ;;  %1306 = vmatmul.bf16.vlgmr.msrb.gmra.mxu0 %v3903_v48  ;;  %v5238_v41 = vld [vmem:[%s6358_s1 + $0x160] sm:$0xff]  ;;  %v5237_v48 = vld [vmem:[%s6358_s1 + $0x158] sm:$0xff] }
  0x8c   : > { %1628 = vmatpush.bf16.msra.mxu0 %v5185_v42  ;;  %1386 = vmatmul.bf16.vlgmr.msrb.gmra.mxu1 %v3952_v51  ;;  %v4279_v42 = vld [vmem:[%s5463_s11 + $0x8] sm:$0x7] }
  0x8d   : > { %1718 = vmatpush.bf16.msra.mxu1 %v5193_v43  ;;  %1476 = vmatmul.bf16.vlgmr.msrb.gmra.mxu2 %v1418_v46  ;;  %v4426_v43 = vld [vmem:[%s5463_s11 + $0x30] sm:$0x7]  ;;  %v1908_v46 = vunpack.c.l.b16 %v4279_v42 }
  0x8e   : > { %1816 = vmatpush.bf16.msra.mxu2 %v5209_v44  ;;  %1556 = vmatmul.bf16.vlgmr.msrb.gmra.mxu3 %v4050_v50  ;;  %v5213_v44 = vld [vmem:[%s6358_s1 + $0x98] sm:$0xff]  ;;  %v2158_v50 = vunpack.c.l.b16 %v4426_v43 }
  0x8f   : > { %1877 = vmatpush.bf16.msra.mxu3 %v5201_v45  ;;  %v5221_v45 = vld [vmem:[%s6358_s1 + $0xd8] sm:$0xff] }
  0x90   : > { %1629 = vmatpush.bf16.msra.mxu0 %v5184_v47  ;;  %v5229_v47 = vld [vmem:[%s6358_s1 + $0x118] sm:$0xff] }
  0x91   : > { %1719 = vmatpush.bf16.msra.mxu1 %v5192_v49 }
  0x92   : > { %1817 = vmatpush.bf16.msra.mxu2 %v5208_v52 }
  0x93   : > { %1878 = vmatpush.bf16.msra.mxu3 %v5200_v53  ;;  %v5212_v53 = vld [vmem:[%s6358_s1 + $0x90] sm:$0xff] }
  0x94   : > { %1630 = vmatpush.bf16.msra.mxu0 %v5183_v54  ;;  %v5220_v54 = vld [vmem:[%s6358_s1 + $0xd0] sm:$0xff] }
  0x95   : > { %1720 = vmatpush.bf16.msra.mxu1 %v5191_v55  ;;  %v1909_v55 = vpack.c.b16 %v1908_v46, %v1908_v46  ;;  %v5252_v46 = vld [vmem:[%s6358_s1 + $0x1d0] sm:$0xff] }
  0x96   : > { %1818 = vmatpush.bf16.msra.mxu2 %v5207_v56 }
  0x97   : > { %1879 = vmatpush.bf16.msra.mxu3 %v5199_v57  ;;  %v5228_v57 = vld [vmem:[%s6358_s1 + $0x110] sm:$0xff]  ;;  %v1913_v62 = vshll.u32 %v1909_v55, 16  ;;  %v1911_v6 = vshrl.u32 %v1909_v55, 16 }
  0x98   : > { %1631 = vmatpush.bf16.msra.mxu0 %v5182_v58  ;;  %v5236_v58 = vld [vmem:[%s6358_s1 + $0x150] sm:$0xff] }
  0x99   : > { %1721 = vmatpush.bf16.msra.mxu1 %v5190_v59  ;;  %v2159_v59 = vpack.c.b16 %v2158_v50, %v2158_v50  ;;  %v5260_v50 = vld [vmem:[%s6358_s1 + $0x210] sm:$0xff] }
  0x9a   : > { %1819 = vmatpush.bf16.msra.mxu2 %v5206_v60  ;;  %v5211_v60 = vld [vmem:[%s6358_s1 + $0x88] sm:$0xff] }
  0x9b   : > { %1880 = vmatpush.bf16.msra.mxu3 %v5198_v61  ;;  %v5219_v61 = vld [vmem:[%s6358_s1 + $0xc8] sm:$0xff]  ;;  %v2163_v1 = vshll.u32 %v2159_v59, 16 }
  0x9c   : > { %1632 = vmatpush.bf16.msra.mxu0 %v5181_v63  ;;  %v5227_v63 = vld [vmem:[%s6358_s1 + $0x108] sm:$0xff] }
  0x9d   : > { %1722 = vmatpush.bf16.msra.mxu1 %v5189_v0  ;;  %v5235_v0 = vld [vmem:[%s6358_s1 + $0x148] sm:$0xff]  ;;  %v2165_v11 = vrot.slane %v2163_v1, 1  ;;  %v5274_v1 = vld [vmem:[%s6358_s1 + $0x40] sm:$0xff] }
  0x9e   : > { %1820 = vmatpush.bf16.msra.mxu2 %v5205_v2 }
  0x9f   : > { %1881 = vmatpush.bf16.msra.mxu3 %v5197_v3 }
  0xa0   : > { %1633 = vmatpush.bf16.msra.mxu0 %v5180_v4  ;;  %v5210_v4 = vld [vmem:[%s6358_s1 + $0x80] sm:$0xff] }
  0xa1   : > { %1723 = vmatpush.bf16.msra.mxu1 %v5188_v5  ;;  %v5218_v5 = vld [vmem:[%s6358_s1 + $0xc0] sm:$0xff] }
  0xa2   : > { %1821 = vmatpush.bf16.msra.mxu2 %v5204_v7  ;;  %v1915_v7 = vrot.slane %v1913_v62, 1 }
  0xa3   : > { %1882 = vmatpush.bf16.msra.mxu3 %v5196_v8  ;;  %v5226_v8 = vld [vmem:[%s6358_s1 + $0x100] sm:$0xff] }
  0xa4   : > { %1634 = vmatpush.bf16.msra.mxu0 %v5179_v9  ;;  %v5234_v9 = vld [vmem:[%s6358_s1 + $0x140] sm:$0xff]  ;;  %v1916_v16 = vor.u32 %v1915_v7, %v1911_v6 }
  0xa5   : > { %1724 = vmatpush.bf16.msra.mxu1 %v5187_v10  ;;  %v2161_v10 = vshrl.u32 %v2159_v59, 16 }
  0xa6   : > { %1822 = vmatpush.bf16.msra.mxu2 %v5203_v12  ;;  %v5249_v12 = vld [vmem:[%s6358_s1 + $0x1b8] sm:$0xff] }
  0xa7   : > { %1883 = vmatpush.bf16.msra.mxu3 %v5195_v13  ;;  %v5257_v13 = vld [vmem:[%s6358_s1 + $0x1f8] sm:$0xff] }
  0xa8   : > { %1635 = vmatpush.bf16.msra.mxu0 %v5178_v14  ;;  %v5947_v36 = vpop.f32.mrf.mxu0  ;;  %v5265_v14 = vld [vmem:[%s6358_s1 + $0x238] sm:$0xff] }
  0xa9   : > { %1725 = vmatpush.bf16.msra.mxu1 %v5186_v15  ;;  %v5955_v39 = vpop.f32.mrf.mxu1  ;;  %v5281_v15 = vld [vmem:[%s6358_s1 + $0x78] sm:$0xff] }
  0xaa   : > { %1823 = vmatpush.bf16.msra.mxu2 %v5202_v18  ;;  %v2166_v18 = vor.u32 %v2165_v11, %v2161_v10  ;;  %v5272_v10 = vld [vmem:[%s6358_s1 + $0x30] sm:$0xff] }
  0xab   : > { %1884 = vmatpush.bf16.msra.mxu3 %v5194_v19  ;;  %1636 = vmatmul.bf16.vlgmr.msra.gmra.mxu0 %v4099_v25  ;;  %v5248_v19 = vld [vmem:[%s6358_s1 + $0x1b0] sm:$0xff]  ;;  %v5255_v25 = vld [vmem:[%s6358_s1 + $0x1e8] sm:$0xff] }
  0xac   : > { %1966 = vmatpush.bf16.msrb.mxu0 %v5217_v20  ;;  %1726 = vmatmul.bf16.vlgmr.msra.gmra.mxu1 %v1668_v24  ;;  %v5256_v20 = vld [vmem:[%s6358_s1 + $0x1f0] sm:$0xff]  ;;  %v5247_v24 = vld [vmem:[%s6358_s1 + $0x1a8] sm:$0xff] }
  0xad   : > { %2046 = vmatpush.bf16.msrb.mxu1 %v5225_v21  ;;  %1824 = vmatmul.bf16.vlgmr.msra.gmra.mxu2 %v4198_v28  ;;  %v4328_v21 = vld [vmem:[%s5463_s11 + $0x30] sm:$0x3] }
  0xae   : > { %2126 = vmatpush.bf16.msrb.mxu2 %v5233_v22  ;;  %1885 = vmatmul.bf16.vlgmr.msra.gmra.mxu3 %v4197_v29  ;;  %v5264_v22 = vld [vmem:[%s6358_s1 + $0x230] sm:$0xff]  ;;  %v5246_v29 = vld [vmem:[%s6358_s1 + $0x1a0] sm:$0xff] }
  0xaf   : > { %2216 = vmatpush.bf16.msrb.mxu3 %v5241_v23  ;;  %v5280_v23 = vld [vmem:[%s6358_s1 + $0x70] sm:$0xff] }
  0xb0   : > { %1967 = vmatpush.bf16.msrb.mxu0 %v5216_v26  ;;  %v5977_v49 = vpop.f32.mrf.mxu2  ;;  %v321_v52 = vpop.f32.mrf.mxu0  ;;  %v5263_v26 = vld [vmem:[%s6358_s1 + $0x228] sm:$0xff]  ;;  %v5288_v11 = vld [vmem:[%s6358_s1 + $0xb0] sm:$0xff] }
  0xb1   : > { %2047 = vmatpush.bf16.msrb.mxu1 %v5224_v27  ;;  %v5979_v51 = vpop.f32.mrf.mxu3  ;;  %v382_v56 = vpop.f32.mrf.mxu1  ;;  %v5279_v27 = vld [vmem:[%s6358_s1 + $0x68] sm:$0xff] }
  0xb2   : > { %2127 = vmatpush.bf16.msrb.mxu2 %v5232_v30  ;;  %v5254_v30 = vld [vmem:[%s6358_s1 + $0x1e0] sm:$0xff]  ;;  %v5259_v56 = vld [vmem:[%s6358_s1 + $0x208] sm:$0xff] }
  0xb3   : > { %2217 = vmatpush.bf16.msrb.mxu3 %v5240_v31 }
  0xb4   : > { %1968 = vmatpush.bf16.msrb.mxu0 %v5215_v32  ;;  %v5262_v32 = vld [vmem:[%s6358_s1 + $0x220] sm:$0xff] }
  0xb5   : > { %2048 = vmatpush.bf16.msrb.mxu1 %v5223_v33  ;;  %v5278_v33 = vld [vmem:[%s6358_s1 + $0x60] sm:$0xff] }
  0xb6   : > { %2128 = vmatpush.bf16.msrb.mxu2 %v5231_v34  ;;  %v4573_v34 = vld [vmem:[%s5463_s11 + $0xc] sm:$0x7] }
  0xb7   : > { %2218 = vmatpush.bf16.msrb.mxu3 %v5239_v35  ;;  %v381_v35 = vadd.f32 %v5955_v39, %v5947_v36  ;;  %v5277_v36 = vld [vmem:[%s6358_s1 + $0x58] sm:$0xff] }
  0xb8   : > { %1969 = vmatpush.bf16.msrb.mxu0 %v5214_v37  ;;  %v472_v2 = vpop.f32.mrf.mxu2  ;;  %v5245_v37 = vld [vmem:[%s6358_s1 + $0x198] sm:$0xff] }
  0xb9   : > { %2049 = vmatpush.bf16.msrb.mxu1 %v5222_v38  ;;  %v553_v3 = vpop.f32.mrf.mxu3  ;;  %v5253_v38 = vld [vmem:[%s6358_s1 + $0x1d8] sm:$0xff] }
  0xba   : > { %2129 = vmatpush.bf16.msrb.mxu2 %v5230_v40  ;;  %v2408_v40 = vunpack.c.l.b16 %v4573_v34  ;;  %v5273_v2 = vld [vmem:[%s6358_s1 + $0x38] sm:$0xff] }
  0xbb   : > { %2219 = vmatpush.bf16.msrb.mxu3 %v5238_v41  ;;  %v5261_v41 = vld [vmem:[%s6358_s1 + $0x218] sm:$0xff] }
  0xbc   : > { %1970 = vmatpush.bf16.msrb.mxu0 %v5213_v44  ;;  %v474_v44 = vadd.f32 %v5977_v49, %v381_v35  ;;  %v5276_v49 = vld [vmem:[%s6358_s1 + $0x50] sm:$0xff]  ;;  %v5289_v3 = vld [vmem:[%s6358_s1 + $0xb8] sm:$0xff] }
  0xbd   : > { %2050 = vmatpush.bf16.msrb.mxu1 %v5221_v45  ;;  %v5244_v45 = vld [vmem:[%s6358_s1 + $0x190] sm:$0xff]  ;;  %v5301_v34 = vld [vmem:[%s6358_s1 + $0x118] sm:$0xff] }
  0xbe   : > { %2130 = vmatpush.bf16.msrb.mxu2 %v5229_v47  ;;  %v2409_v47 = vpack.c.b16 %v2408_v40, %v2408_v40  ;;  %v555_v52 = vadd.f32 %v5979_v51, %v474_v44  ;;  %v5275_v51 = vld [vmem:[%s6358_s1 + $0x48] sm:$0xff] }
  0xbf   : > { %2220 = vmatpush.bf16.msrb.mxu3 %v5237_v48 }
  0xc0   : > { %1971 = vmatpush.bf16.msrb.mxu0 %v5212_v53  ;;  %v5243_v53 = vld [vmem:[%s6358_s1 + $0x188] sm:$0xff]  ;;  %v2413_v55 = vshll.u32 %v2409_v47, 16  ;;  %v2411_v62 = vshrl.u32 %v2409_v47, 16 }
  0xc1   : > { %2051 = vmatpush.bf16.msrb.mxu1 %v5220_v54  ;;  %v5251_v54 = vld [vmem:[%s6358_s1 + $0x1c8] sm:$0xff] }
  0xc2   : > { %2131 = vmatpush.bf16.msrb.mxu2 %v5228_v57  ;;  %v5291_v47 = vld [vmem:[%s6358_s1 + $0xc8] sm:$0xff] }
  0xc3   : > { %2221 = vmatpush.bf16.msrb.mxu3 %v5236_v58 }
  0xc4   : > { %1972 = vmatpush.bf16.msrb.mxu0 %v5211_v60  ;;  %v5242_v60 = vld [vmem:[%s6358_s1 + $0x180] sm:$0xff] }
  0xc5   : > { %2052 = vmatpush.bf16.msrb.mxu1 %v5219_v61  ;;  %v5250_v61 = vld [vmem:[%s6358_s1 + $0x1c0] sm:$0xff] }
  0xc6   : > { %2132 = vmatpush.bf16.msrb.mxu2 %v5227_v63  ;;  %v2415_v63 = vrot.slane %v2413_v55, 1  ;;  %v5290_v55 = vld [vmem:[%s6358_s1 + $0xc0] sm:$0xff] }
  0xc7   : > { %2222 = vmatpush.bf16.msrb.mxu3 %v5235_v0  ;;  %v5258_v0 = vld [vmem:[%s6358_s1 + $0x200] sm:$0xff] }
  0xc8   : > { %1973 = vmatpush.bf16.msrb.mxu0 %v5210_v4  ;;  %v632_v28 = vpop.f32.mrf.mxu0  ;;  %v5297_v4 = vld [vmem:[%s6358_s1 + $0xf8] sm:$0xff]  ;;  %v2416_v7 = vor.u32 %v2415_v63, %v2411_v62  ;;  %v4753_v62 = vld [vmem:[%s5463_s11 + $0x34] sm:$0x3]  ;;  %v4622_v63 = vld [vmem:[%s5463_s11 + $0xc] sm:$0x3] }
  0xc9   : > { %2053 = vmatpush.bf16.msrb.mxu1 %v5218_v5  ;;  %v723_v31 = vpop.f32.mrf.mxu1  ;;  %v636_v59 = vadd.f32 %v632_v28, %v555_v52  ;;  %v5305_v5 = vld [vmem:[%s6358_s1 + $0x138] sm:$0xff]  ;;  %v5302_v28 = vld [vmem:[%s6358_s1 + $0x120] sm:$0xff] }
  0xca   : > { %2133 = vmatpush.bf16.msrb.mxu2 %v5226_v8  ;;  %v4475_v8 = vld [vmem:[%s5463_s11 + $0xc] sm:$0x3] }
  0xcb   : > { %2223 = vmatpush.bf16.msrb.mxu3 %v5234_v9  ;;  %1974 = vmatmul.bf16.vlgmr.msrb.gmra.mxu0 %v1916_v16  ;;  %v727_v6 = vadd.f32 %v723_v31, %v636_v59  ;;  %v4524_v9 = vld [vmem:[%s5463_s11 + $0x20] sm:$0x3]  ;;  %v5271_v16 = vld [vmem:[%s6358_s1 + $0x28] sm:$0xff]  ;;  %v5269_v31 = vld [vmem:[%s6358_s1 + $0x18] sm:$0xff] }
  0xcc   : > { %2296 = vmatpush.bf16.msra.mxu0 %v5249_v12  ;;  %2054 = vmatmul.bf16.vlgmr.msrb.gmra.mxu1 %v4328_v21  ;;  %v4623_v12 = vld [vmem:[%s5463_s11 + $0x20] sm:$0x3]  ;;  %v5321_v59 = vld [vmem:[%s6358_s1 + $0x1b8] sm:$0xff] }
  0xcd   : > { %2376 = vmatpush.bf16.msra.mxu1 %v5257_v13  ;;  %2134 = vmatmul.bf16.vlgmr.msrb.gmra.mxu2 %v4377_v17  ;;  %v5296_v13 = vld [vmem:[%s6358_s1 + $0xf0] sm:$0xff]  ;;  %v5287_v17 = vld [vmem:[%s6358_s1 + $0xa8] sm:$0xff]  ;;  %v6165_v21 = vld [vmem:[%s6359_s2] ss:$0 sm:$0xff] }
  0xce   : > { %2466 = vmatpush.bf16.msra.mxu2 %v5265_v14  ;;  %2224 = vmatmul.bf16.vlgmr.msrb.gmra.mxu3 %v2166_v18  ;;  %v5304_v14 = vld [vmem:[%s6358_s1 + $0x130] sm:$0xff]  ;;  %v5295_v18 = vld [vmem:[%s6358_s1 + $0xe8] sm:$0xff] }
  0xcf   : > { %2564 = vmatpush.bf16.msra.mxu3 %v5281_v15 }
  0xd0   : > { %2297 = vmatpush.bf16.msra.mxu0 %v5248_v19  ;;  %v804_v39 = vpop.f32.mrf.mxu2  ;;  %v634_v43 = vpop.f32.mrf.mxu0  ;;  %v5303_v19 = vld [vmem:[%s6358_s1 + $0x128] sm:$0xff] }
  0xd1   : > { %2377 = vmatpush.bf16.msra.mxu1 %v5256_v20  ;;  %v6082_v42 = vpop.f32.mrf.mxu3  ;;  %v725_v48 = vpop.f32.mrf.mxu1  ;;  %v808_v15 = vadd.f32 %v804_v39, %v727_v6  ;;  %v5300_v43 = vld [vmem:[%s6358_s1 + $0x110] sm:$0xff]  ;;  %v5311_v6 = vld [vmem:[%s6358_s1 + $0x168] sm:$0xff] }
  0xd2   : > { %2467 = vmatpush.bf16.msra.mxu2 %v5264_v22  ;;  %v5299_v48 = vld [vmem:[%s6358_s1 + $0x108] sm:$0xff] }
  0xd3   : > { %2565 = vmatpush.bf16.msra.mxu3 %v5280_v23  ;;  %v889_v20 = vadd.f32 %v6082_v42, %v808_v15  ;;  %v5292_v42 = vld [vmem:[%s6358_s1 + $0xd0] sm:$0xff]  ;;  %v5326_v15 = vld [vmem:[%s6358_s1 + $0x1e0] sm:$0xff] }
  0xd4   : > { %2298 = vmatpush.bf16.msra.mxu0 %v5247_v24  ;;  %v5270_v24 = vld [vmem:[%s6358_s1 + $0x20] sm:$0xff] }
  0xd5   : > { %2378 = vmatpush.bf16.msra.mxu1 %v5255_v25  ;;  %v5286_v25 = vld [vmem:[%s6358_s1 + $0xa0] sm:$0xff] }
  0xd6   : > { %2468 = vmatpush.bf16.msra.mxu2 %v5263_v26 }
  0xd7   : > { %2566 = vmatpush.bf16.msra.mxu3 %v5279_v27  ;;  %v5294_v27 = vld [vmem:[%s6358_s1 + $0xe0] sm:$0xff] }
  0xd8   : > { %2299 = vmatpush.bf16.msra.mxu0 %v5246_v29  ;;  %v806_v57 = vpop.f32.mrf.mxu2 }
  0xd9   : > { %2379 = vmatpush.bf16.msra.mxu1 %v5254_v30  ;;  %v887_v58 = vpop.f32.mrf.mxu3  ;;  %v4704_v30 = vld [vmem:[%s5463_s11 + $0xc] sm:$0x7] }
  0xda   : > { %2469 = vmatpush.bf16.msra.mxu2 %v5262_v32  ;;  %v5285_v32 = vld [vmem:[%s6358_s1 + $0x98] sm:$0xff] }
  0xdb   : > { %2567 = vmatpush.bf16.msra.mxu3 %v5278_v33  ;;  %v5293_v33 = vld [vmem:[%s6358_s1 + $0xd8] sm:$0xff] }
  0xdc   : > { %2300 = vmatpush.bf16.msra.mxu0 %v5245_v37  ;;  %v2656_v37 = vunpack.c.l.b16 %v4704_v30  ;;  %v5313_v58 = vld [vmem:[%s6358_s1 + $0x178] sm:$0xff] }
  0xdd   : > { %2380 = vmatpush.bf16.msra.mxu1 %v5253_v38 }
  0xde   : > { %2470 = vmatpush.bf16.msra.mxu2 %v5261_v41  ;;  %v5268_v41 = vld [vmem:[%s6358_s1 + $0x10] sm:$0xff]  ;;  %v2657_v44 = vpack.c.b16 %v2656_v37, %v2656_v37 }
  0xdf   : > { %2568 = vmatpush.bf16.msra.mxu3 %v5277_v36  ;;  %v5284_v36 = vld [vmem:[%s6358_s1 + $0x90] sm:$0xff] }
  0xe0   : > { %2301 = vmatpush.bf16.msra.mxu0 %v5244_v45  ;;  %v5267_v45 = vld [vmem:[%s6358_s1 + $0x8] sm:$0xff]  ;;  %v5324_v37 = vld [vmem:[%s6358_s1 + $0x1d0] sm:$0xff] }
  0xe1   : > { %2381 = vmatpush.bf16.msra.mxu1 %v5252_v46  ;;  %v5283_v46 = vld [vmem:[%s6358_s1 + $0x88] sm:$0xff] }
  0xe2   : > { %2471 = vmatpush.bf16.msra.mxu2 %v5260_v50  ;;  %v2661_v50 = vshll.u32 %v2657_v44, 16 }
  0xe3   : > { %2569 = vmatpush.bf16.msra.mxu3 %v5276_v49 }
  0xe4   : > { %2302 = vmatpush.bf16.msra.mxu0 %v5243_v53  ;;  %v5266_v53 = vld [vmem:[%s6358_s1] sm:$0xff]  ;;  %v2663_v57 = vrot.slane %v2661_v50, 1 }
  0xe5   : > { %2382 = vmatpush.bf16.msra.mxu1 %v5251_v54  ;;  %v5282_v54 = vld [vmem:[%s6358_s1 + $0x80] sm:$0xff] }
  0xe6   : > { %2472 = vmatpush.bf16.msra.mxu2 %v5259_v56  ;;  %v5298_v56 = vld [vmem:[%s6358_s1 + $0x100] sm:$0xff] }
  0xe7   : > { %2570 = vmatpush.bf16.msra.mxu3 %v5275_v51  ;;  %v2659_v51 = vshrl.u32 %v2657_v44, 16  ;;  %v5314_v50 = vld [vmem:[%s6358_s1 + $0x180] sm:$0xff] }
  0xe8   : > { %2303 = vmatpush.bf16.msra.mxu0 %v5242_v60  ;;  %v976_v22 = vpop.f32.mrf.mxu0  ;;  %v5329_v60 = vld [vmem:[%s6358_s1 + $0x1f8] sm:$0xff] }
  0xe9   : > { %2383 = vmatpush.bf16.msra.mxu1 %v5250_v61  ;;  %v980_v23 = vadd.f32 %v976_v22, %v889_v20  ;;  %v6173_v26 = vpop.f32.mrf.mxu1  ;;  %v5337_v61 = vld [vmem:[%s6358_s1 + $0x238] sm:$0xff] }
  0xea   : > { %2473 = vmatpush.bf16.msra.mxu2 %v5258_v0  ;;  %v2664_v0 = vor.u32 %v2663_v57, %v2659_v51  ;;  %v5317_v20 = vld [vmem:[%s6358_s1 + $0x198] sm:$0xff]  ;;  %v4900_v51 = vld [vmem:[%s5463_s11 + $0x10] sm:$0x3] }
  0xeb   : > { %2571 = vmatpush.bf16.msra.mxu3 %v5274_v1  ;;  %2304 = vmatmul.bf16.vlgmr.msra.gmra.mxu0 %v4475_v8  ;;  %v984_v29 = vadd.f32 %v6165_v21, %v980_v23  ;;  %v5312_v1 = vld [vmem:[%s6358_s1 + $0x170] sm:$0xff]  ;;  %v5327_v8 = vld [vmem:[%s6358_s1 + $0x1e8] sm:$0xff]  ;;  %v5325_v23 = vld [vmem:[%s6358_s1 + $0x1d8] sm:$0xff] }
  0xec   : > { %2625 = vmatpush.bf16.msrb.mxu0 %v5273_v2  ;;  %2384 = vmatmul.bf16.vlgmr.msra.gmra.mxu1 %v4524_v9  ;;  %v5320_v2 = vld [vmem:[%s6358_s1 + $0x1b0] sm:$0xff]  ;;  %v5335_v9 = vld [vmem:[%s6358_s1 + $0x228] sm:$0xff] }
  0xed   : > { %2714 = vmatpush.bf16.msrb.mxu1 %v5289_v3  ;;  %2474 = vmatmul.bf16.vlgmr.msra.gmra.mxu2 %v2416_v7  ;;  %985 = vst [vmem:[#allocation2] sm:$0xf] %v984_v29  ;;  %v4802_v3 = vld [vmem:[%s5463_s11 + $0x48] sm:$0x3] }
  0xee   : > { %2794 = vmatpush.bf16.msrb.mxu2 %v5297_v4  ;;  %2572 = vmatmul.bf16.vlgmr.msra.gmra.mxu3 %v4623_v12  ;;  %v5328_v4 = vld [vmem:[%s6358_s1 + $0x1f0] sm:$0xff]  ;;  %v5319_v7 = vld [vmem:[%s6358_s1 + $0x1a8] sm:$0xff]  ;;  %v5318_v12 = vld [vmem:[%s6358_s1 + $0x1a0] sm:$0xff] }
  0xef   : > { %2874 = vmatpush.bf16.msrb.mxu3 %v5305_v5  ;;  %v5336_v5 = vld [vmem:[%s6358_s1 + $0x230] sm:$0xff] }
  0xf0   : > { %2626 = vmatpush.bf16.msrb.mxu0 %v5272_v10  ;;  %v6195_v35 = vpop.f32.mrf.mxu2  ;;  %v978_v40 = vpop.f32.mrf.mxu0 }
  0xf1   : > { %2715 = vmatpush.bf16.msrb.mxu1 %v5288_v11  ;;  %v6197_v38 = vpop.f32.mrf.mxu3  ;;  %v1079_v39 = vpop.f32.mrf.mxu1  ;;  %v5310_v11 = vld [vmem:[%s6358_s1 + $0x160] sm:$0xff]  ;;  %v1139_v30 = vadd.f32 %v6195_v35, %v6173_v26  ;;  %v5332_v26 = vld [vmem:[%s6358_s1 + $0x210] sm:$0xff] }
  0xf2   : > { %2795 = vmatpush.bf16.msrb.mxu2 %v5296_v13 }
  0xf3   : > { %2875 = vmatpush.bf16.msrb.mxu3 %v5304_v14  ;;  %v4851_v14 = vld [vmem:[%s5463_s11 + $0x34] sm:$0x7]  ;;  %v1231_v40 = vadd.f32 %v6197_v38, %v1139_v30  ;;  %v5331_v38 = vld [vmem:[%s6358_s1 + $0x208] sm:$0xff] }
  0xf4   : > { %2627 = vmatpush.bf16.msrb.mxu0 %v5271_v16  ;;  %v5334_v16 = vld [vmem:[%s6358_s1 + $0x220] sm:$0xff] }
  0xf5   : > { %2716 = vmatpush.bf16.msrb.mxu1 %v5287_v17  ;;  %v4998_v17 = vld [vmem:[%s5463_s11 + $0x10] sm:$0x7] }
  0xf6   : > { %2796 = vmatpush.bf16.msrb.mxu2 %v5295_v18  ;;  %v2906_v18 = vunpack.c.l.b16 %v4851_v14  ;;  %v3156_v22 = vunpack.c.l.b16 %v4998_v17 }
  0xf7   : > { %2876 = vmatpush.bf16.msrb.mxu3 %v5303_v19  ;;  %v5309_v19 = vld [vmem:[%s6358_s1 + $0x158] sm:$0xff] }
  0xf8   : > { %2628 = vmatpush.bf16.msrb.mxu0 %v5270_v24  ;;  %v1140_v49 = vpop.f32.mrf.mxu2  ;;  %v5333_v24 = vld [vmem:[%s6358_s1 + $0x218] sm:$0xff] }
  0xf9   : > { %2717 = vmatpush.bf16.msrb.mxu1 %v5286_v25  ;;  %v1229_v52 = vpop.f32.mrf.mxu3 }
  0xfa   : > { %2797 = vmatpush.bf16.msrb.mxu2 %v5294_v27 }
  0xfb   : > { %2877 = vmatpush.bf16.msrb.mxu3 %v5302_v28  ;;  %v2907_v28 = vpack.c.b16 %v2906_v18, %v2906_v18 }
  0xfc   : > { %2629 = vmatpush.bf16.msrb.mxu0 %v5269_v31  ;;  %v5308_v31 = vld [vmem:[%s6358_s1 + $0x150] sm:$0xff] }
  0xfd   : > { %2718 = vmatpush.bf16.msrb.mxu1 %v5285_v32  ;;  %v5316_v32 = vld [vmem:[%s6358_s1 + $0x190] sm:$0xff]  ;;  %v2911_v35 = vshll.u32 %v2907_v28, 16 }
  0xfe   : > { %2798 = vmatpush.bf16.msrb.mxu2 %v5293_v33  ;;  %v3157_v33 = vpack.c.b16 %v3156_v22, %v3156_v22 }
  0xff   : > { %2878 = vmatpush.bf16.msrb.mxu3 %v5301_v34 }
 0x100   : > { %2630 = vmatpush.bf16.msrb.mxu0 %v5268_v41  ;;  %v5307_v41 = vld [vmem:[%s6358_s1 + $0x148] sm:$0xff]  ;;  %v3161_v39 = vshll.u32 %v3157_v33, 16  ;;  %v3159_v49 = vshrl.u32 %v3157_v33, 16 }
 0x101   : > { %2719 = vmatpush.bf16.msrb.mxu1 %v5284_v36  ;;  %v5315_v36 = vld [vmem:[%s6358_s1 + $0x188] sm:$0xff] }
 0x102   : > { %2799 = vmatpush.bf16.msrb.mxu2 %v5292_v42  ;;  %v5323_v42 = vld [vmem:[%s6358_s1 + $0x1c8] sm:$0xff]  ;;  %v3163_v52 = vrot.slane %v3161_v39, 1 }
 0x103   : > { %2879 = vmatpush.bf16.msrb.mxu3 %v5300_v43 }
 0x104   : > { %2631 = vmatpush.bf16.msrb.mxu0 %v5267_v45  ;;  %v2909_v45 = vshrl.u32 %v2907_v28, 16  ;;  %v3164_v57 = vor.u32 %v3163_v52, %v3159_v49 }
 0x105   : > { %2720 = vmatpush.bf16.msrb.mxu1 %v5283_v46  ;;  %v2913_v46 = vrot.slane %v2911_v35, 1 }
 0x106   : > { %2800 = vmatpush.bf16.msrb.mxu2 %v5291_v47 }
 0x107   : > { %2880 = vmatpush.bf16.msrb.mxu3 %v5299_v48  ;;  %v5306_v48 = vld [vmem:[%s6358_s1 + $0x140] sm:$0xff] }
 0x108   : > { %2632 = vmatpush.bf16.msrb.mxu0 %v5266_v53  ;;  %v1307_v10 = vpop.f32.mrf.mxu0  ;;  %v5322_v53 = vld [vmem:[%s6358_s1 + $0x1c0] sm:$0xff] }
 0x109   : > { %2721 = vmatpush.bf16.msrb.mxu1 %v5282_v54  ;;  %v1387_v13 = vpop.f32.mrf.mxu1  ;;  %v1311_v47 = vadd.f32 %v1307_v10, %v1231_v40  ;;  %v5330_v54 = vld [vmem:[%s6358_s1 + $0x200] sm:$0xff] }
 0x10a   : > { %2801 = vmatpush.bf16.msrb.mxu2 %v5290_v55  ;;  %v2914_v55 = vor.u32 %v2913_v46, %v2909_v45 }
 0x10b   : > { %2881 = vmatpush.bf16.msrb.mxu3 %v5298_v56  ;;  %2633 = vmatmul.bf16.vlgmr.msrb.gmra.mxu0 %v4622_v63  ;;  %v1391_v56 = vadd.f32 %v1387_v13, %v1311_v47 }
 0x10c   : > { %2964 = vmatpush.bf16.msra.mxu0 %v5313_v58  ;;  %2722 = vmatmul.bf16.vlgmr.msrb.gmra.mxu1 %v2664_v0  ;;  %v4949_v58 = vld [vmem:[%s5463_s11 + $0x24] sm:$0x3] }
 0x10d   : > { %3044 = vmatpush.bf16.msra.mxu1 %v5321_v59  ;;  %2802 = vmatmul.bf16.vlgmr.msrb.gmra.mxu2 %v4753_v62 }
 0x10e   : > { %3124 = vmatpush.bf16.msra.mxu2 %v5329_v60  ;;  %2882 = vmatmul.bf16.vlgmr.msrb.gmra.mxu3 %v4802_v3 }
 0x10f   : > { %3214 = vmatpush.bf16.msra.mxu3 %v5337_v61 }
 0x110   : > { %2965 = vmatpush.bf16.msra.mxu0 %v5312_v1  ;;  %v1477_v25 = vpop.f32.mrf.mxu2  ;;  %v1309_v29 = vpop.f32.mrf.mxu0 }
 0x111   : > { %3045 = vmatpush.bf16.msra.mxu1 %v5320_v2  ;;  %v1557_v27 = vpop.f32.mrf.mxu3  ;;  %v1389_v34 = vpop.f32.mrf.mxu1  ;;  %v1481_v59 = vadd.f32 %v1477_v25, %v1391_v56 }
 0x112   : > { %3125 = vmatpush.bf16.msra.mxu2 %v5328_v4 }
 0x113   : > { %3215 = vmatpush.bf16.msra.mxu3 %v5336_v5  ;;  %v1561_v60 = vadd.f32 %v1557_v27, %v1481_v59 }
 0x114   : > { %2966 = vmatpush.bf16.msra.mxu0 %v5311_v6 }
 0x115   : > { %3046 = vmatpush.bf16.msra.mxu1 %v5319_v7 }
 0x116   : > { %3126 = vmatpush.bf16.msra.mxu2 %v5327_v8 }
 0x117   : > { %3216 = vmatpush.bf16.msra.mxu3 %v5335_v9 }
 0x118   : > { %2967 = vmatpush.bf16.msra.mxu0 %v5310_v11  ;;  %v1479_v43 = vpop.f32.mrf.mxu2 }
 0x119   : > { %3047 = vmatpush.bf16.msra.mxu1 %v5318_v12  ;;  %v1559_v44 = vpop.f32.mrf.mxu3 }
 0x11a   : > { %3127 = vmatpush.bf16.msra.mxu2 %v5326_v15 }
 0x11b   : > { %3217 = vmatpush.bf16.msra.mxu3 %v5334_v16 }
 0x11c   : > { %2968 = vmatpush.bf16.msra.mxu0 %v5309_v19 }
 0x11d   : > { %3048 = vmatpush.bf16.msra.mxu1 %v5317_v20 }
 0x11e   : > { %3128 = vmatpush.bf16.msra.mxu2 %v5325_v23 }
 0x11f   : > { %3218 = vmatpush.bf16.msra.mxu3 %v5333_v24 }
 0x120   : > { %2969 = vmatpush.bf16.msra.mxu0 %v5308_v31 }
 0x121   : > { %3049 = vmatpush.bf16.msra.mxu1 %v5316_v32 }
 0x122   : > { %3129 = vmatpush.bf16.msra.mxu2 %v5324_v37 }
 0x123   : > { %3219 = vmatpush.bf16.msra.mxu3 %v5332_v26 }
 0x124   : > { %2970 = vmatpush.bf16.msra.mxu0 %v5307_v41 }
 0x125   : > { %3050 = vmatpush.bf16.msra.mxu1 %v5315_v36 }
 0x126   : > { %3130 = vmatpush.bf16.msra.mxu2 %v5323_v42 }
 0x127   : > { %3220 = vmatpush.bf16.msra.mxu3 %v5331_v38 }
 0x128   : > { %2971 = vmatpush.bf16.msra.mxu0 %v5306_v48  ;;  %v1637_v61 = vpop.f32.mrf.mxu0 }
 0x129   : > { %3051 = vmatpush.bf16.msra.mxu1 %v5314_v50  ;;  %v1727_v62 = vpop.f32.mrf.mxu1  ;;  %v1641_v63 = vadd.f32 %v1637_v61, %v1561_v60 }
 0x12a   : > { %3131 = vmatpush.bf16.msra.mxu2 %v5322_v53 }
 0x12b   : > { %3221 = vmatpush.bf16.msra.mxu3 %v5330_v54  ;;  %2972 = vmatmul.bf16.vlgmr.msra.gmra.mxu0 %v2914_v55  ;;  %v1731_v0 = vadd.f32 %v1727_v62, %v1641_v63 }
 0x12c   : > { %3052 = vmatmul.bf16.vlgmr.msra.gmra.mxu1 %v4900_v51 }
 0x12d   : > { %3132 = vmatmul.bf16.vlgmr.msra.gmra.mxu2 %v4949_v58  ;;  %v1732_v1 = vadd.f32 %v6165_v21, %v1731_v0 }
 0x12e   : > { %3222 = vmatmul.bf16.vlgmr.msra.gmra.mxu3 %v3164_v57 }
 0x12f   : > { %1733 = vst [vmem:[#allocation2 + $0x4] sm:$0xf] %v1732_v1 }
 0x130   : > { %v1825_v2 = vpop.f32.mrf.mxu2  ;;  %v1639_v4 = vpop.f32.mrf.mxu0 }
 0x131   : > { %v1886_v3 = vpop.f32.mrf.mxu3  ;;  %v1729_v5 = vpop.f32.mrf.mxu1 }
 0x132   : > { %v1887_v14 = vadd.f32 %v1886_v3, %v1825_v2 }
 0x136   : > { %v3230_v59 = vld [vmem:[#allocation2] sm:$0xff] }
 0x137   : > { %v3240_v61 = vmul.f32 %v3230_v59, %v3230_v59 }
 0x138   : > { %v1827_v6 = vpop.f32.mrf.mxu2 }
 0x139   : > { %v1888_v7 = vpop.f32.mrf.mxu3 }
 0x148   : > { %v1975_v8 = vpop.f32.mrf.mxu0 }
 0x149   : > { %v2055_v9 = vpop.f32.mrf.mxu1  ;;  %v1979_v17 = vadd.f32 %v1975_v8, %v1887_v14 }
 0x14b   : > { %v2059_v18 = vadd.f32 %v2055_v9, %v1979_v17 }
 0x150   : > { %v2135_v10 = vpop.f32.mrf.mxu2  ;;  %v1977_v12 = vpop.f32.mrf.mxu0 }
 0x151   : > { %v2225_v11 = vpop.f32.mrf.mxu3  ;;  %v2057_v13 = vpop.f32.mrf.mxu1  ;;  %v2139_v19 = vadd.f32 %v2135_v10, %v2059_v18 }
 0x153   : > { %v2229_v20 = vadd.f32 %v2225_v11, %v2139_v19 }
 0x158   : > { %v2137_v15 = vpop.f32.mrf.mxu2 }
 0x159   : > { %v2227_v16 = vpop.f32.mrf.mxu3 }
 0x168   : > { %v2305_v22 = vpop.f32.mrf.mxu0 }
 0x169   : > { %v2309_v23 = vadd.f32 %v2305_v22, %v2229_v20  ;;  %v2385_v24 = vpop.f32.mrf.mxu1 }
 0x16b   : > { %v2389_v25 = vadd.f32 %v2385_v24, %v2309_v23 }
 0x170   : > { %v2475_v27 = vpop.f32.mrf.mxu2  ;;  %v2307_v30 = vpop.f32.mrf.mxu0 }
 0x171   : > { %v2479_v28 = vadd.f32 %v2475_v27, %v2389_v25  ;;  %v2573_v29 = vpop.f32.mrf.mxu3  ;;  %v2387_v32 = vpop.f32.mrf.mxu1 }
 0x172   : > { %v5354_v32 = vld [vmem:[%s6361_s4] ss:$0 sm:$0xff] }
 0x173   : > { %v2480_v31 = vadd.f32 %v6165_v21, %v2479_v28  ;;  %v5353_v28 = vld [vmem:[%s6360_s3] ss:$0 sm:$0xff] }
 0x175   : > { %2481 = vst [vmem:[#allocation2 + $0x8] sm:$0xf] %v2480_v31 }
 0x178   : > { %v2477_v33 = vpop.f32.mrf.mxu2 }
 0x179   : > { %v2575_v34 = vpop.f32.mrf.mxu3 }
 0x188   : > { %v2634_v37 = vpop.f32.mrf.mxu0 }
 0x189   : > { %v2723_v26 = vpop.f32.mrf.mxu1  ;;  %v2635_v38 = vadd.f32 %v2634_v37, %v2573_v29 }
 0x18b   : > { %v2727_v43 = vadd.f32 %v2723_v26, %v2635_v38 }
 0x190   : > { %v2803_v35 = vpop.f32.mrf.mxu2  ;;  %v2636_v41 = vpop.f32.mrf.mxu0 }
 0x191   : > { %v2883_v40 = vpop.f32.mrf.mxu3  ;;  %v2725_v36 = vpop.f32.mrf.mxu1  ;;  %v2807_v44 = vadd.f32 %v2803_v35, %v2727_v43 }
 0x193   : > { %v2887_v45 = vadd.f32 %v2883_v40, %v2807_v44 }
 0x198   : > { %v2805_v39 = vpop.f32.mrf.mxu2 }
 0x199   : > { %v2885_v42 = vpop.f32.mrf.mxu3 }
 0x1a8   : > { %v2973_v46 = vpop.f32.mrf.mxu0 }
 0x1a9   : > { %v3053_v47 = vpop.f32.mrf.mxu1  ;;  %v2977_v48 = vadd.f32 %v2973_v46, %v2887_v45 }
 0x1ab   : > { %v3057_v50 = vadd.f32 %v3053_v47, %v2977_v48 }
 0x1b0   : > { %v3133_v49 = vpop.f32.mrf.mxu2  ;;  %v2975_v54 = vpop.f32.mrf.mxu0 }
 0x1b1   : > { %v3223_v52 = vpop.f32.mrf.mxu3  ;;  %v3137_v53 = vadd.f32 %v3133_v49, %v3057_v50  ;;  %v3055_v55 = vpop.f32.mrf.mxu1 }
 0x1b3   : > { %v3227_v56 = vadd.f32 %v3223_v52, %v3137_v53 }
 0x1b5   : > { %v3228_v51 = vadd.f32 %v6165_v21, %v3227_v56 }
 0x1b7   : > { %3229 = vst [vmem:[#allocation2 + $0xc] sm:$0xf] %v3228_v51 }
 0x1b8   : > { %v3135_v57 = vpop.f32.mrf.mxu2 }
 0x1b9   : > { %v3225_v58 = vpop.f32.mrf.mxu3 }
 0x1be   : > { %v3231_v60 = vld [vmem:[#allocation2 + $0x8] sm:$0xff] }
 0x1bf   : > { %v3232_v62 = vadd.f32 %v3231_v60, %v3230_v59  ;;  %v3241_v63 = vmul.f32 %v3231_v60, %v3231_v60 }
 0x1c1   : > { %v3233_v0 = vrot.slane %v3232_v62, 4  ;;  %v3242_v1 = vadd.f32 %v3241_v63, %v3240_v61 }
 0x1c3   : > { %v3234_v2 = vadd.f32 %v3233_v0, %v3232_v62  ;;  %v3243_v3 = vrot.slane %v3242_v1, 4 }
 0x1c5   : > { %v3235_v4 = vrot.slane %v3234_v2, 2  ;;  %v3244_v5 = vadd.f32 %v3243_v3, %v3242_v1 }
 0x1c7   : > { %v3236_v6 = vadd.f32 %v3235_v4, %v3234_v2  ;;  %v3245_v7 = vrot.slane %v3244_v5, 2 }
 0x1c9   : > { %v3237_v8 = vrot.slane %v3236_v6, 1  ;;  %v3246_v9 = vadd.f32 %v3245_v7, %v3244_v5 }
 0x1cb   : > { %v3238_v10 = vadd.f32 %v3237_v8, %v3236_v6  ;;  %v3247_v21 = vrot.slane %v3246_v9, 1 }
 0x1cd   : > { %v3239_v11 = vmul.f32 0.0625, %v3238_v10  ;;  %v3248_v12 = vadd.f32 %v3247_v21, %v3246_v9 }
 0x1cf   : > { %v3249_v13 = vmul.f32 0.0625, %v3248_v12  ;;  %v3250_v14 = vmul.f32 %v3239_v11, %v3239_v11  ;;  %v3253_v25 = vsub.f32 %v3230_v59, %v3239_v11  ;;  %v3254_v27 = vsub.f32 %v3231_v60, %v3239_v11 }
 0x1d1   : > { %v3251_v15 = vsub.f32 %v3249_v13, %v3250_v14 }
 0x1d3   : > { %v3252_v16 = vmax.f32 %v3251_v15, 0.0 }
 0x1d5   : > { %v3255_v17 = vadd.f32 1e-05, %v3252_v16 }
 0x1d7   : > { %5355 = vrsqrt.f32 %v3255_v17  ;;  %vm3262_vm1 = vweird.f32 %v3255_v17 }
 0x1dd   : > { %v5356_v18 = vpop.eup %5355 }
 0x1de   : > { %v3257_v19 = vmul.f32 %v5356_v18, %v3255_v17  ;;  %vm3263_vm0 = vweird.f32 %v5356_v18 }
 0x1df   : > { %vm3264_vm2 = vmor %vm3262_vm1, %vm3263_vm0 }
 0x1e0   : > { %v3258_v20 = vmul.f32 %v5356_v18, %v3257_v19 }
 0x1e2   : > { %v3259_v22 = vmul.f32 0.5, %v3258_v20 }
 0x1e4   : > { %v3260_v23 = vsub.f32 1.5, %v3259_v22 }
 0x1e6   : > { %v3261_v24 = vmul.f32 %v5356_v18, %v3260_v23 }
 0x1e8   : > { %v3265_v29 = vsel %vm3264_vm2, %v5356_v18, %v3261_v24 }
 0x1e9   : > { %v3266_v30 = vmul.f32 %v3265_v29, %v3253_v25  ;;  %v3267_v31 = vmul.f32 %v3265_v29, %v3254_v27 }
 0x1eb   : > { %v3272_v33 = vmul.f32 %v5353_v28, %v3266_v30  ;;  %v3273_v34 = vmul.f32 %v5353_v28, %v3267_v31 }
 0x1ed   : > { %v3278_v37 = vadd.f32 %v5354_v32, %v3272_v33  ;;  %v3279_v26 = vadd.f32 %v5354_v32, %v3273_v34 }
 0x1ef   : > { %v3280_v35 = vmax.f32 %v3278_v37, 0.0  ;;  %v3281_v40 = vmax.f32 %v3279_v26, 0.0 }
 0x1f1   : > { %v5341_v41 = vpack.c.bf16 %v3281_v40, %v3280_v35 }
 0x1f3   : > { %5342 = vst [vmem:[%s224_s9] sm:$0xff] %v5341_v41  }
 0x1f4 PF: > { %s15_s18 = sadd.s32 1, %s5363_s18  }
 0x1f5   : > { %p12_p4 = scmp.ge.s32.totalorder %s15_s18, 4  }
 0x1f7   :  { %14 = sbr.rel (!%p12_p4) target bundleno = 1 (0x1), region = 95 }

</bundles_post_ra>
